<compile_context>
chip_gen: v6e
topology: v6e:2x2x1
jax: 0.10.0
libtpu: 0.0.40
codegen_flags: <defaults>
</compile_context>

<pallas_src>
import functools

import numpy as np
import jax
import jax.numpy as jnp
from jax.experimental import pallas as pl
from jax.experimental.pallas import tpu as pltpu

V_TH = 1.0  # spikingjelly IFNode default v_threshold (hard reset to 0)


# ---------------------------- Pallas kernels ----------------------------

def _matmul_bias_kernel(x_ref, w_ref, b_ref, o_ref):
    o_ref[...] = (jnp.dot(x_ref[...], w_ref[...],
                          preferred_element_type=jnp.float32)
                  + b_ref[...]).astype(o_ref.dtype)


def matmul_bias(x, w, b):
    """[M,K] @ [K,N] + b[N] as one full-block Pallas matmul (sizes are tiny)."""
    m, k = x.shape
    n = w.shape[1]
    return pl.pallas_call(
        _matmul_bias_kernel,
        out_shape=jax.ShapeDtypeStruct((m, n), jnp.float32),
        grid=(1,),
        in_specs=[pl.BlockSpec((m, k), lambda i: (0, 0)),
                  pl.BlockSpec((k, n), lambda i: (0, 0)),
                  pl.BlockSpec((1, n), lambda i: (0, 0))],
        out_specs=pl.BlockSpec((m, n), lambda i: (0, 0)),
    )(x, w, b.reshape(1, n))


def _snn_fused_kernel(c1_ref, m0_ref, m1_ref, m2_ref, shm_ref, shp_ref, b2_ref,
                      ph_ref, pw_ref, wfc_ref, msk_ref, a2_ref, bsel_ref, bfc_ref,
                      o_ref, v1_ref, v2_ref, v3_ref, cnt_ref):
    """One simulation timestep; grid axis 0 = time, state carried in VMEM scratch."""
    t = pl.program_id(0)

    @pl.when(t == 0)
    def _init():  # functional.reset_net(): all membrane potentials start at 0
        v1_ref[...] = jnp.zeros_like(v1_ref)
        v2_ref[...] = jnp.zeros_like(v2_ref)
        v3_ref[...] = jnp.zeros_like(v3_ref)
        cnt_ref[...] = jnp.zeros_like(cnt_ref)

    # ---- layer 1: IF neuron + 2x2 max-pool ---------------------------------
    # c1/v1 layout [4, B*16, 16*32]: leading axis = position inside the 2x2 pooling
    # window, rows = (b, padded pooled-h), lanes = (padded pooled-w, channel).
    # Zero-padded border entries never fire (input current is 0 there).
    v1 = v1_ref[...] + c1_ref[...]
    s1 = (v1 >= V_TH).astype(jnp.float32)
    v1_ref[...] = v1 * (1.0 - s1)
    p1 = jnp.maximum(jnp.maximum(s1[0], s1[1]),
                     jnp.maximum(s1[2], s1[3]))            # [B*16, 512] pooled spikes

    # ---- conv2 (+ folded bn2) ----------------------------------------------
    # Banded matrices m0/m1/m2 handle the kw/channel contraction along lanes; the two
    # shift matrices handle the kh = 0 / 2 row offsets (kh = 1 needs none).  Spikes are
    # exactly 0/1 so the bf16 cast is lossless; accumulation is f32.
    p1b = p1.astype(jnp.bfloat16)
    y0 = jnp.dot(p1b, m0_ref[...], preferred_element_type=jnp.float32)
    y1 = jnp.dot(p1b, m1_ref[...], preferred_element_type=jnp.float32)
    y2 = jnp.dot(p1b, m2_ref[...], preferred_element_type=jnp.float32)
    cur2 = (jnp.dot(shm_ref[...], y0, preferred_element_type=jnp.float32)
            + y1
            + jnp.dot(shp_ref[...], y2, preferred_element_type=jnp.float32)
            + b2_ref[...])                                  # [B*16, 16*64]

    # ---- layer 2: IF neuron -------------------------------------------------
    v2 = v2_ref[...] + cur2
    s2 = (v2 >= V_TH).astype(jnp.float32)
    v2_ref[...] = v2 * (1.0 - s2)
    # (padded border rows/lanes hold garbage but are filtered out by ph/pw below)

    # ---- 2x2 max-pool + NCHW flatten + fc, all as small matmuls ------------
    # Spikes are 0/1, so max over a pooling window == (sum over the window >= 1).
    hsum = jnp.dot(ph_ref[...], s2, preferred_element_type=jnp.float32)    # [7B, 1024]
    wsum = jnp.dot(hsum, pw_ref[...], preferred_element_type=jnp.float32)  # [7B, 448]
    p2 = (wsum >= 0.5).astype(jnp.float32)                                 # pooled spikes
    tt = jnp.dot(p2, wfc_ref[...], preferred_element_type=jnp.float32) * msk_ref[...]
    cur3 = (jnp.dot(jnp.dot(a2_ref[...], tt, preferred_element_type=jnp.float32),
                    bsel_ref[...], preferred_element_type=jnp.float32)
            + bfc_ref[...])                                                # [B, 10]

    # ---- output IF neuron + spike-count accumulation ------------------------
    v3 = v3_ref[...] + cur3
    s3 = (v3 >= V_TH).astype(jnp.float32)
    v3_ref[...] = v3 * (1.0 - s3)
    cnt = cnt_ref[...] + s3
    cnt_ref[...] = cnt
    o_ref[...] = cnt  # constant out block index -> HBM writeback once, after last step


# ---------------------------- JAX glue (run once per forward) ----------------------------

def _fold_bn(w, b, gamma, beta, mean, var, eps=1e-5):
    # BatchNorm in eval mode (running stats) folded into the conv affine.
    scale = gamma / jnp.sqrt(var + eps)
    return w * scale[:, None, None, None], (b - mean) * scale + beta


def _im2col_3x3(x):
    # x: [B, H, W, C], pad=1, stride=1 -> [B, H, W, 9*C]; col index = kh*3*C + kw*C + c
    b, h, w, c = x.shape
    xp = jnp.pad(x, ((0, 0), (1, 1), (1, 1), (0, 0)))
    cols = [xp[:, kh:kh + h, kw:kw + w, :] for kh in range(3) for kw in range(3)]
    return jnp.concatenate(cols, axis=-1)


def _conv_w_to_mat(w):
    # PyTorch [Cout, Cin, 3, 3] -> [9*Cin, Cout] matching _im2col_3x3 ordering.
    cout = w.shape[0]
    return jnp.transpose(w, (2, 3, 1, 0)).reshape(-1, cout)


# ---------------------------- forward pass ----------------------------

@functools.partial(jax.jit, static_argnames=("t_sim",))
def wu_spatial_cnn_forward(x_nchw, params, t_sim):
    B = x_nchw.shape[0]
    x = jnp.transpose(x_nchw, (0, 2, 3, 1)).astype(jnp.float32)  # NCHW -> NHWC [B,28,28,1]
    R1 = B * 16  # padded pooled rows for the fused kernel layouts

    w1, b1 = _fold_bn(params["conv1_w"], params["conv1_b"], params["bn1_gamma"],
                      params["bn1_beta"], params["bn1_mean"], params["bn1_var"])
    w2, b2 = _fold_bn(params["conv2_w"], params["conv2_b"], params["bn2_gamma"],
                      params["bn2_beta"], params["bn2_mean"], params["bn2_var"])

    # conv1+bn1 is time-invariant: one Pallas matmul (im2col in glue, computed once).
    patches1 = _im2col_3x3(x).reshape(B * 28 * 28, 9)
    c1 = matmul_bias(patches1, _conv_w_to_mat(w1), b1)           # [B*784, 32]

    # Rearrange c1 into the fused-kernel layout [4, B*16, 16*32]:
    #   leading axis q = 2*di + dj (position inside the 2x2 pool window),
    #   rows  = b*16 + (i+1), lanes = (j+1)*32 + c   (i, j = pooled coords, 1-padded).
    c1p = c1.reshape(B, 14, 2, 14, 2, 32).transpose(2, 4, 0, 1, 3, 5)  # [di,dj,b,i,j,c]
    c1p = c1p.reshape(4, B, 14, 14, 32)
    c1p = jnp.pad(c1p, ((0, 0), (0, 0), (1, 1), (1, 1), (0, 0)))        # zero borders
    c1_r = c1p.reshape(4, R1, 16 * 32)

    # conv2 weights as banded lane matrices (one per kh):
    #   M_kh[w_in*32 + c, w_out*64 + n] = w2[n, c, kh, kw]  with  w_in = w_out + (kw-1)
    w2t = jnp.transpose(w2, (2, 3, 1, 0))                        # [kh, kw, cin=32, cout=64]
    mbanded = []
    for kh in range(3):
        m = jnp.zeros((16 * 32, 16 * 64), jnp.float32)
        for kw in range(3):
            band = np.eye(16, k=-(kw - 1), dtype=np.float32)
            m = m + jnp.kron(band, w2t[kh, kw])
        mbanded.append(m.astype(jnp.bfloat16))                   # spikes are 0/1 -> bf16-safe
    m0, m1, m2 = mbanded
    b2row = jnp.tile(b2, 16).reshape(1, 16 * 64)

    # Row-shift matrices for the kh = 0 / 2 offsets (borders only touch padded rows).
    shm = jnp.asarray(np.eye(R1, k=-1, dtype=np.float32))
    shp = jnp.asarray(np.eye(R1, k=+1, dtype=np.float32))

    # Constant pooling / flatten / selection matrices (pure 0/1, built with numpy).
    ph = np.zeros((7 * B, R1), np.float32)                       # h-pair pooling; row = i2*B + b
    for i2 in range(7):
        for bb in range(B):
            ph[i2 * B + bb, bb * 16 + 2 * i2 + 1] = 1.0
            ph[i2 * B + bb, bb * 16 + 2 * i2 + 2] = 1.0
    ew = np.zeros((16, 7), np.float32)                           # w-pair pooling
    for j2 in range(7):
        ew[2 * j2 + 1, j2] = 1.0
        ew[2 * j2 + 2, j2] = 1.0
    pw = np.kron(ew, np.eye(64, dtype=np.float32))               # [1024, 448]

    # fc weight rearranged to the pooled layout + PyTorch NCHW flatten order:
    #   wfcbig[j2*64 + c, i2*10 + n] = fc_w[n, c*49 + i2*7 + j2]
    wfcbig = params["fc_w"].reshape(10, 64, 7, 7).transpose(3, 1, 2, 0).reshape(448, 70)
    msk = (np.arange(7 * B)[:, None] // B ==
           np.arange(70)[None, :] // 10).astype(np.float32)      # couple i2 row/col blocks
    a2 = (np.arange(7 * B)[None, :] % B ==
          np.arange(B)[:, None]).astype(np.float32)              # select batch rows
    bsel = (np.arange(70)[:, None] % 10 ==
            np.arange(10)[None, :]).astype(np.float32)           # fold i2 blocks -> classes
    bfc_row = params["fc_b"].reshape(1, 10)

    inputs = (c1_r, m0, m1, m2, shm, shp, b2row,
              jnp.asarray(ph), jnp.asarray(pw), wfcbig,
              jnp.asarray(msk), jnp.asarray(a2), jnp.asarray(bsel), bfc_row)

    def _const_map(t_idx, *, nd):
        return (0,) * nd

    in_specs = [pl.BlockSpec(tuple(a.shape), functools.partial(_const_map, nd=a.ndim))
                for a in inputs]

    out_count = pl.pallas_call(
        _snn_fused_kernel,
        out_shape=jax.ShapeDtypeStruct((B, 10), jnp.float32),
        grid=(t_sim,),
        in_specs=in_specs,
        out_specs=pl.BlockSpec((B, 10), lambda t_idx: (0, 0)),
        scratch_shapes=[
            pltpu.VMEM((4, R1, 16 * 32), jnp.float32),   # v1 (layer-1 membrane)
            pltpu.VMEM((R1, 16 * 64), jnp.float32),      # v2 (layer-2 membrane)
            pltpu.VMEM((B, 10), jnp.float32),            # v3 (output membrane)
            pltpu.VMEM((B, 10), jnp.float32),            # spike-count accumulator
        ],
        compiler_params=pltpu.CompilerParams(
            dimension_semantics=("arbitrary",),          # state carried across timesteps
            vmem_limit_bytes=32 * 1024 * 1024),
    )(*inputs)
    return out_count


# ---------------------------- deterministic parameter init ----------------------------

def init_params(key):
    ks = jax.random.split(key, 14)

    def unif(k, shape, bound):
        return jax.random.uniform(k, shape, jnp.float32, -bound, bound)

    fan1, fan2, fan3 = 1 * 9, 32 * 9, 64 * 7 * 7
    return {
        "conv1_w": unif(ks[0], (32, 1, 3, 3), fan1 ** -0.5),
        "conv1_b": unif(ks[1], (32,), fan1 ** -0.5),
        "bn1_gamma": 1.0 + 0.1 * jax.random.normal(ks[2], (32,)),
        "bn1_beta": 0.1 * jax.random.normal(ks[3], (32,)),
        "bn1_mean": 0.1 * jax.random.normal(ks[4], (32,)),
        "bn1_var": jax.random.uniform(ks[5], (32,), jnp.float32, 0.5, 1.5),
        "conv2_w": unif(ks[6], (64, 32, 3, 3), fan2 ** -0.5),
        "conv2_b": unif(ks[7], (64,), fan2 ** -0.5),
        "bn2_gamma": 1.0 + 0.1 * jax.random.normal(ks[8], (64,)),
        "bn2_beta": 0.1 * jax.random.normal(ks[9], (64,)),
        "bn2_mean": 0.1 * jax.random.normal(ks[10], (64,)),
        "bn2_var": jax.random.uniform(ks[11], (64,), jnp.float32, 0.5, 1.5),
        "fc_w": unif(ks[12], (10, fan3), fan3 ** -0.5),
        "fc_b": unif(ks[13], (10,), fan3 ** -0.5),
    }


if __name__ == "__main__":
    key = jax.random.PRNGKey(0)
    kx, kp = jax.random.split(key)

    B, T_SIM = 2, 4
    x = jax.random.uniform(kx, (B, 1, 28, 28), jnp.float32)   # NCHW, MNIST-like
    params = init_params(kp)

    out = wu_spatial_cnn_forward(x, params, t_sim=T_SIM)
    out = jax.block_until_ready(out)

    assert out.shape == (B, 10)
    assert bool(jnp.all(jnp.isfinite(out)))
    # spike counts over T_SIM steps are integers in [0, T_SIM]
    assert bool(jnp.all((out >= 0.0) & (out <= float(T_SIM))))
    assert bool(jnp.all(out == jnp.round(out)))
    print("KERNEL_OK")
</pallas_src>

<mosaic_0001>
module attributes {stable_mosaic.version = 11 : i64} {
  func.func @_matmul_bias_kernel(%arg0: i32, %arg1: memref<1568x9xf32, #tpu.memory_space<vmem>>, %arg2: memref<9x32xf32, #tpu.memory_space<vmem>>, %arg3: memref<1x32xf32, #tpu.memory_space<vmem>>, %arg4: memref<1568x32xf32, #tpu.memory_space<vmem>>) attributes {dimension_semantics = [#tpu.dimension_semantics<arbitrary>], iteration_bounds = array<i64: 1>, scalar_prefetch = 0 : i64, scratch_operands = 0 : i64, tpu.core_type = #tpu.core_type<tc>, window_params = [{pipeline_mode = #tpu.pipeline_mode<synchronous>, transform_indices = @transform_0, window_bounds = array<i64: 1568, 9>}, {pipeline_mode = #tpu.pipeline_mode<synchronous>, transform_indices = @transform_1, window_bounds = array<i64: 9, 32>}, {pipeline_mode = #tpu.pipeline_mode<synchronous>, transform_indices = @transform_2, window_bounds = array<i64: 1, 32>}, {pipeline_mode = #tpu.pipeline_mode<synchronous>, transform_indices = @transform_3, window_bounds = array<i64: 1568, 32>}]} {
    %c0 = arith.constant 0 : index
    %c0_0 = arith.constant 0 : index
    %0 = vector.load %arg1[%c0, %c0_0] : memref<1568x9xf32, #tpu.memory_space<vmem>>, vector<1568x9xf32>
    %c0_1 = arith.constant 0 : index
    %c0_2 = arith.constant 0 : index
    %1 = vector.load %arg2[%c0_1, %c0_2] : memref<9x32xf32, #tpu.memory_space<vmem>>, vector<9x32xf32>
    %cst = arith.constant dense<0.000000e+00> : vector<1568x32xf32>
    %2 = tpu.matmul %0, %1, %cst {dimension_numbers = #tpu.dot_dimension_numbers<[1], [0], [0], [1], [0, 0, 1, 1], [], []>} : vector<1568x9xf32>, vector<9x32xf32>, vector<1568x32xf32> -> vector<1568x32xf32>
    %c0_3 = arith.constant 0 : index
    %c0_4 = arith.constant 0 : index
    %3 = vector.load %arg3[%c0_3, %c0_4] : memref<1x32xf32, #tpu.memory_space<vmem>>, vector<1x32xf32>
    %4 = vector.broadcast %3 : vector<1x32xf32> to vector<1568x32xf32>
    %5 = arith.addf %2, %4 : vector<1568x32xf32>
    %c0_5 = arith.constant 0 : index
    %c0_6 = arith.constant 0 : index
    %6 = vector.load %arg4[%c0_5, %c0_6] : memref<1568x32xf32, #tpu.memory_space<vmem>>, vector<1568x32xf32>
    tpu.vector_store %arg4[%c0_5, %c0_6], %5 {strides = array<i32>} : memref<1568x32xf32, #tpu.memory_space<vmem>>, vector<1568x32xf32>,
    return
  }
  func.func @transform_0(%arg0: i32) -> (i32, i32) {
    %c0_i32 = arith.constant 0 : i32
    %c0_i32_0 = arith.constant 0 : i32
    %c0_i32_1 = arith.constant 0 : i32
    return %c0_i32, %c0_i32_0 : i32, i32
  }
  func.func @transform_1(%arg0: i32) -> (i32, i32) {
    %c0_i32 = arith.constant 0 : i32
    %c0_i32_0 = arith.constant 0 : i32
    %c0_i32_1 = arith.constant 0 : i32
    return %c0_i32, %c0_i32_0 : i32, i32
  }
  func.func @transform_2(%arg0: i32) -> (i32, i32) {
    %c0_i32 = arith.constant 0 : i32
    %c0_i32_0 = arith.constant 0 : i32
    %c0_i32_1 = arith.constant 0 : i32
    return %c0_i32, %c0_i32_0 : i32, i32
  }
  func.func @transform_3(%arg0: i32) -> (i32, i32) {
    %c0_i32 = arith.constant 0 : i32
    %c0_i32_0 = arith.constant 0 : i32
    %c0_i32_1 = arith.constant 0 : i32
    return %c0_i32, %c0_i32_0 : i32, i32
  }
}

module attributes {stable_mosaic.version = 11 : i64} {
  func.func @_snn_fused_kernel(%arg0: i32, %arg1: memref<4x32x512xf32, #tpu.memory_space<vmem>>, %arg2: memref<512x1024xbf16, #tpu.memory_space<vmem>>, %arg3: memref<512x1024xbf16, #tpu.memory_space<vmem>>, %arg4: memref<512x1024xbf16, #tpu.memory_space<vmem>>, %arg5: memref<32x32xf32, #tpu.memory_space<vmem>>, %arg6: memref<32x32xf32, #tpu.memory_space<vmem>>, %arg7: memref<1x1024xf32, #tpu.memory_space<vmem>>, %arg8: memref<14x32xf32, #tpu.memory_space<vmem>>, %arg9: memref<1024x448xf32, #tpu.memory_space<vmem>>, %arg10: memref<448x70xf32, #tpu.memory_space<vmem>>, %arg11: memref<14x70xf32, #tpu.memory_space<vmem>>, %arg12: memref<2x14xf32, #tpu.memory_space<vmem>>, %arg13: memref<70x10xf32, #tpu.memory_space<vmem>>, %arg14: memref<1x10xf32, #tpu.memory_space<vmem>>, %arg15: memref<2x10xf32, #tpu.memory_space<vmem>>, %arg16: memref<4x32x512xf32, #tpu.memory_space<vmem>>, %arg17: memref<32x1024xf32, #tpu.memory_space<vmem>>, %arg18: memref<2x10xf32, #tpu.memory_space<vmem>>, %arg19: memref<2x10xf32, #tpu.memory_space<vmem>>) attributes {dimension_semantics = [#tpu.dimension_semantics<arbitrary>], iteration_bounds = array<i64: 4>, scalar_prefetch = 0 : i64, scratch_operands = 4 : i64, tpu.core_type = #tpu.core_type<tc>, window_params = [{pipeline_mode = #tpu.pipeline_mode<synchronous>, transform_indices = @transform_0, window_bounds = array<i64: 4, 32, 512>}, {pipeline_mode = #tpu.pipeline_mode<synchronous>, transform_indices = @transform_1, window_bounds = array<i64: 512, 1024>}, {pipeline_mode = #tpu.pipeline_mode<synchronous>, transform_indices = @transform_2, window_bounds = array<i64: 512, 1024>}, {pipeline_mode = #tpu.pipeline_mode<synchronous>, transform_indices = @transform_3, window_bounds = array<i64: 512, 1024>}, {pipeline_mode = #tpu.pipeline_mode<synchronous>, transform_indices = @transform_4, window_bounds = array<i64: 32, 32>}, {pipeline_mode = #tpu.pipeline_mode<synchronous>, transform_indices = @transform_5, window_bounds = array<i64: 32, 32>}, {pipeline_mode = #tpu.pipeline_mode<synchronous>, transform_indices = @transform_6, window_bounds = array<i64: 1, 1024>}, {pipeline_mode = #tpu.pipeline_mode<synchronous>, transform_indices = @transform_7, window_bounds = array<i64: 14, 32>}, {pipeline_mode = #tpu.pipeline_mode<synchronous>, transform_indices = @transform_8, window_bounds = array<i64: 1024, 448>}, {pipeline_mode = #tpu.pipeline_mode<synchronous>, transform_indices = @transform_9, window_bounds = array<i64: 448, 70>}, {pipeline_mode = #tpu.pipeline_mode<synchronous>, transform_indices = @transform_10, window_bounds = array<i64: 14, 70>}, {pipeline_mode = #tpu.pipeline_mode<synchronous>, transform_indices = @transform_11, window_bounds = array<i64: 2, 14>}, {pipeline_mode = #tpu.pipeline_mode<synchronous>, transform_indices = @transform_12, window_bounds = array<i64: 70, 10>}, {pipeline_mode = #tpu.pipeline_mode<synchronous>, transform_indices = @transform_13, window_bounds = array<i64: 1, 10>}, {pipeline_mode = #tpu.pipeline_mode<synchronous>, transform_indices = @transform_14, window_bounds = array<i64: 2, 10>}]} {
    %c0_i32 = arith.constant 0 : i32
    %0 = arith.cmpi eq, %arg0, %c0_i32 : i32
    %1 = arith.extui %0 : i1 to i32
    %c0_i32_0 = arith.constant 0 : i32
    %2 = arith.cmpi ne, %1, %c0_i32_0 : i32
    scf.if %2 {
      %cst_65 = arith.constant 0.000000e+00 : f32
      %84 = vector.broadcast %cst_65 : f32 to vector<4x32x512xf32>
      %c0_66 = arith.constant 0 : index
      %c0_67 = arith.constant 0 : index
      %c0_68 = arith.constant 0 : index
      %85 = vector.load %arg16[%c0_66, %c0_67, %c0_68] : memref<4x32x512xf32, #tpu.memory_space<vmem>>, vector<4x32x512xf32>
      tpu.vector_store %arg16[%c0_66, %c0_67, %c0_68], %84 {strides = array<i32>} : memref<4x32x512xf32, #tpu.memory_space<vmem>>, vector<4x32x512xf32>,
      %cst_69 = arith.constant 0.000000e+00 : f32
      %86 = vector.broadcast %cst_69 : f32 to vector<32x1024xf32>
      %c0_70 = arith.constant 0 : index
      %c0_71 = arith.constant 0 : index
      %87 = vector.load %arg17[%c0_70, %c0_71] : memref<32x1024xf32, #tpu.memory_space<vmem>>, vector<32x1024xf32>
      tpu.vector_store %arg17[%c0_70, %c0_71], %86 {strides = array<i32>} : memref<32x1024xf32, #tpu.memory_space<vmem>>, vector<32x1024xf32>,
      %cst_72 = arith.constant 0.000000e+00 : f32
      %88 = vector.broadcast %cst_72 : f32 to vector<2x10xf32>
      %c0_73 = arith.constant 0 : index
      %c0_74 = arith.constant 0 : index
      %89 = vector.load %arg18[%c0_73, %c0_74] : memref<2x10xf32, #tpu.memory_space<vmem>>, vector<2x10xf32>
      tpu.vector_store %arg18[%c0_73, %c0_74], %88 {strides = array<i32>} : memref<2x10xf32, #tpu.memory_space<vmem>>, vector<2x10xf32>,
      %cst_75 = arith.constant 0.000000e+00 : f32
      %90 = vector.broadcast %cst_75 : f32 to vector<2x10xf32>
      %c0_76 = arith.constant 0 : index
      %c0_77 = arith.constant 0 : index
      %91 = vector.load %arg19[%c0_76, %c0_77] : memref<2x10xf32, #tpu.memory_space<vmem>>, vector<2x10xf32>
      tpu.vector_store %arg19[%c0_76, %c0_77], %90 {strides = array<i32>} : memref<2x10xf32, #tpu.memory_space<vmem>>, vector<2x10xf32>,
    } else {
    }
    %c0 = arith.constant 0 : index
    %c0_1 = arith.constant 0 : index
    %c0_2 = arith.constant 0 : index
    %3 = vector.load %arg16[%c0, %c0_1, %c0_2] : memref<4x32x512xf32, #tpu.memory_space<vmem>>, vector<4x32x512xf32>
    %c0_3 = arith.constant 0 : index
    %c0_4 = arith.constant 0 : index
    %c0_5 = arith.constant 0 : index
    %4 = vector.load %arg1[%c0_3, %c0_4, %c0_5] : memref<4x32x512xf32, #tpu.memory_space<vmem>>, vector<4x32x512xf32>
    %5 = arith.addf %3, %4 : vector<4x32x512xf32>
    %cst = arith.constant 1.000000e+00 : f32
    %6 = vector.broadcast %cst : f32 to vector<4x32x512xf32>
    %7 = arith.cmpf oge, %5, %6 : vector<4x32x512xf32>
    %8 = arith.extui %7 : vector<4x32x512xi1> to vector<4x32x512xi32>
    %9 = arith.sitofp %8 : vector<4x32x512xi32> to vector<4x32x512xf32>
    %cst_6 = arith.constant 1.000000e+00 : f32
    %10 = vector.broadcast %cst_6 : f32 to vector<4x32x512xf32>
    %11 = arith.subf %10, %9 : vector<4x32x512xf32>
    %12 = arith.mulf %5, %11 : vector<4x32x512xf32>
    %c0_7 = arith.constant 0 : index
    %c0_8 = arith.constant 0 : index
    %c0_9 = arith.constant 0 : index
    %13 = vector.load %arg16[%c0_7, %c0_8, %c0_9] : memref<4x32x512xf32, #tpu.memory_space<vmem>>, vector<4x32x512xf32>
    tpu.vector_store %arg16[%c0_7, %c0_8, %c0_9], %12 {strides = array<i32>} : memref<4x32x512xf32, #tpu.memory_space<vmem>>, vector<4x32x512xf32>,
    %14 = vector.extract_strided_slice %9 {offsets = [0, 0, 0], sizes = [1, 32, 512], strides = [1, 1, 1]} : vector<4x32x512xf32> to vector<1x32x512xf32>
    %15 = vector.shape_cast %14 : vector<1x32x512xf32> to vector<32x512xf32>
    %16 = vector.extract_strided_slice %9 {offsets = [1, 0, 0], sizes = [1, 32, 512], strides = [1, 1, 1]} : vector<4x32x512xf32> to vector<1x32x512xf32>
    %17 = vector.shape_cast %16 : vector<1x32x512xf32> to vector<32x512xf32>
    %18 = arith.maximumf %15, %17 : vector<32x512xf32>
    %19 = vector.extract_strided_slice %9 {offsets = [2, 0, 0], sizes = [1, 32, 512], strides = [1, 1, 1]} : vector<4x32x512xf32> to vector<1x32x512xf32>
    %20 = vector.shape_cast %19 : vector<1x32x512xf32> to vector<32x512xf32>
    %21 = vector.extract_strided_slice %9 {offsets = [3, 0, 0], sizes = [1, 32, 512], strides = [1, 1, 1]} : vector<4x32x512xf32> to vector<1x32x512xf32>
    %22 = vector.shape_cast %21 : vector<1x32x512xf32> to vector<32x512xf32>
    %23 = arith.maximumf %20, %22 : vector<32x512xf32>
    %24 = arith.maximumf %18, %23 : vector<32x512xf32>
    %25 = arith.truncf %24 : vector<32x512xf32> to vector<32x512xbf16>
    %c0_10 = arith.constant 0 : index
    %c0_11 = arith.constant 0 : index
    %26 = vector.load %arg2[%c0_10, %c0_11] : memref<512x1024xbf16, #tpu.memory_space<vmem>>, vector<512x1024xbf16>
    %cst_12 = arith.constant dense<0.000000e+00> : vector<32x1024xf32>
    %27 = tpu.matmul %25, %26, %cst_12 {dimension_numbers = #tpu.dot_dimension_numbers<[1], [0], [0], [1], [0, 0, 1, 1], [], []>} : vector<32x512xbf16>, vector<512x1024xbf16>, vector<32x1024xf32> -> vector<32x1024xf32>
    %c0_13 = arith.constant 0 : index
    %c0_14 = arith.constant 0 : index
    %28 = vector.load %arg3[%c0_13, %c0_14] : memref<512x1024xbf16, #tpu.memory_space<vmem>>, vector<512x1024xbf16>
    %cst_15 = arith.constant dense<0.000000e+00> : vector<32x1024xf32>
    %29 = tpu.matmul %25, %28, %cst_15 {dimension_numbers = #tpu.dot_dimension_numbers<[1], [0], [0], [1], [0, 0, 1, 1], [], []>} : vector<32x512xbf16>, vector<512x1024xbf16>, vector<32x1024xf32> -> vector<32x1024xf32>
    %c0_16 = arith.constant 0 : index
    %c0_17 = arith.constant 0 : index
    %30 = vector.load %arg4[%c0_16, %c0_17] : memref<512x1024xbf16, #tpu.memory_space<vmem>>, vector<512x1024xbf16>
    %cst_18 = arith.constant dense<0.000000e+00> : vector<32x1024xf32>
    %31 = tpu.matmul %25, %30, %cst_18 {dimension_numbers = #tpu.dot_dimension_numbers<[1], [0], [0], [1], [0, 0, 1, 1], [], []>} : vector<32x512xbf16>, vector<512x1024xbf16>, vector<32x1024xf32> -> vector<32x1024xf32>
    %c0_19 = arith.constant 0 : index
    %c0_20 = arith.constant 0 : index
    %32 = vector.load %arg5[%c0_19, %c0_20] : memref<32x32xf32, #tpu.memory_space<vmem>>, vector<32x32xf32>
    %cst_21 = arith.constant dense<0.000000e+00> : vector<32x1024xf32>
    %33 = tpu.matmul %32, %27, %cst_21 {dimension_numbers = #tpu.dot_dimension_numbers<[1], [0], [0], [1], [0, 0, 1, 1], [], []>} : vector<32x32xf32>, vector<32x1024xf32>, vector<32x1024xf32> -> vector<32x1024xf32>
    %34 = arith.addf %33, %29 : vector<32x1024xf32>
    %c0_22 = arith.constant 0 : index
    %c0_23 = arith.constant 0 : index
    %35 = vector.load %arg6[%c0_22, %c0_23] : memref<32x32xf32, #tpu.memory_space<vmem>>, vector<32x32xf32>
    %cst_24 = arith.constant dense<0.000000e+00> : vector<32x1024xf32>
    %36 = tpu.matmul %35, %31, %cst_24 {dimension_numbers = #tpu.dot_dimension_numbers<[1], [0], [0], [1], [0, 0, 1, 1], [], []>} : vector<32x32xf32>, vector<32x1024xf32>, vector<32x1024xf32> -> vector<32x1024xf32>
    %37 = arith.addf %34, %36 : vector<32x1024xf32>
    %c0_25 = arith.constant 0 : index
    %c0_26 = arith.constant 0 : index
    %38 = vector.load %arg7[%c0_25, %c0_26] : memref<1x1024xf32, #tpu.memory_space<vmem>>, vector<1x1024xf32>
    %39 = vector.broadcast %38 : vector<1x1024xf32> to vector<32x1024xf32>
    %40 = arith.addf %37, %39 : vector<32x1024xf32>
    %c0_27 = arith.constant 0 : index
    %c0_28 = arith.constant 0 : index
    %41 = vector.load %arg17[%c0_27, %c0_28] : memref<32x1024xf32, #tpu.memory_space<vmem>>, vector<32x1024xf32>
    %42 = arith.addf %41, %40 : vector<32x1024xf32>
    %cst_29 = arith.constant 1.000000e+00 : f32
    %43 = vector.broadcast %cst_29 : f32 to vector<32x1024xf32>
    %44 = arith.cmpf oge, %42, %43 : vector<32x1024xf32>
    %45 = arith.extui %44 : vector<32x1024xi1> to vector<32x1024xi32>
    %46 = arith.sitofp %45 : vector<32x1024xi32> to vector<32x1024xf32>
    %cst_30 = arith.constant 1.000000e+00 : f32
    %47 = vector.broadcast %cst_30 : f32 to vector<32x1024xf32>
    %48 = arith.subf %47, %46 : vector<32x1024xf32>
    %49 = arith.mulf %42, %48 : vector<32x1024xf32>
    %c0_31 = arith.constant 0 : index
    %c0_32 = arith.constant 0 : index
    %50 = vector.load %arg17[%c0_31, %c0_32] : memref<32x1024xf32, #tpu.memory_space<vmem>>, vector<32x1024xf32>
    tpu.vector_store %arg17[%c0_31, %c0_32], %49 {strides = array<i32>} : memref<32x1024xf32, #tpu.memory_space<vmem>>, vector<32x1024xf32>,
    %c0_33 = arith.constant 0 : index
    %c0_34 = arith.constant 0 : index
    %51 = vector.load %arg8[%c0_33, %c0_34] : memref<14x32xf32, #tpu.memory_space<vmem>>, vector<14x32xf32>
    %cst_35 = arith.constant dense<0.000000e+00> : vector<14x1024xf32>
    %52 = tpu.matmul %51, %46, %cst_35 {dimension_numbers = #tpu.dot_dimension_numbers<[1], [0], [0], [1], [0, 0, 1, 1], [], []>} : vector<14x32xf32>, vector<32x1024xf32>, vector<14x1024xf32> -> vector<14x1024xf32>
    %c0_36 = arith.constant 0 : index
    %c0_37 = arith.constant 0 : index
    %53 = vector.load %arg9[%c0_36, %c0_37] : memref<1024x448xf32, #tpu.memory_space<vmem>>, vector<1024x448xf32>
    %cst_38 = arith.constant dense<0.000000e+00> : vector<14x448xf32>
    %54 = tpu.matmul %52, %53, %cst_38 {dimension_numbers = #tpu.dot_dimension_numbers<[1], [0], [0], [1], [0, 0, 1, 1], [], []>} : vector<14x1024xf32>, vector<1024x448xf32>, vector<14x448xf32> -> vector<14x448xf32>
    %cst_39 = arith.constant 5.000000e-01 : f32
    %55 = vector.broadcast %cst_39 : f32 to vector<14x448xf32>
    %56 = arith.cmpf oge, %54, %55 : vector<14x448xf32>
    %57 = arith.extui %56 : vector<14x448xi1> to vector<14x448xi32>
    %58 = arith.sitofp %57 : vector<14x448xi32> to vector<14x448xf32>
    %c0_40 = arith.constant 0 : index
    %c0_41 = arith.constant 0 : index
    %59 = vector.load %arg10[%c0_40, %c0_41] : memref<448x70xf32, #tpu.memory_space<vmem>>, vector<448x70xf32>
    %cst_42 = arith.constant dense<0.000000e+00> : vector<14x70xf32>
    %60 = tpu.matmul %58, %59, %cst_42 {dimension_numbers = #tpu.dot_dimension_numbers<[1], [0], [0], [1], [0, 0, 1, 1], [], []>} : vector<14x448xf32>, vector<448x70xf32>, vector<14x70xf32> -> vector<14x70xf32>
    %c0_43 = arith.constant 0 : index
    %c0_44 = arith.constant 0 : index
    %61 = vector.load %arg11[%c0_43, %c0_44] : memref<14x70xf32, #tpu.memory_space<vmem>>, vector<14x70xf32>
    %62 = arith.mulf %60, %61 : vector<14x70xf32>
    %c0_45 = arith.constant 0 : index
    %c0_46 = arith.constant 0 : index
    %63 = vector.load %arg12[%c0_45, %c0_46] : memref<2x14xf32, #tpu.memory_space<vmem>>, vector<2x14xf32>
    %cst_47 = arith.constant dense<0.000000e+00> : vector<2x70xf32>
    %64 = tpu.matmul %63, %62, %cst_47 {dimension_numbers = #tpu.dot_dimension_numbers<[1], [0], [0], [1], [0, 0, 1, 1], [], []>} : vector<2x14xf32>, vector<14x70xf32>, vector<2x70xf32> -> vector<2x70xf32>
    %c0_48 = arith.constant 0 : index
    %c0_49 = arith.constant 0 : index
    %65 = vector.load %arg13[%c0_48, %c0_49] : memref<70x10xf32, #tpu.memory_space<vmem>>, vector<70x10xf32>
    %cst_50 = arith.constant dense<0.000000e+00> : vector<2x10xf32>
    %66 = tpu.matmul %64, %65, %cst_50 {dimension_numbers = #tpu.dot_dimension_numbers<[1], [0], [0], [1], [0, 0, 1, 1], [], []>} : vector<2x70xf32>, vector<70x10xf32>, vector<2x10xf32> -> vector<2x10xf32>
    %c0_51 = arith.constant 0 : index
    %c0_52 = arith.constant 0 : index
    %67 = vector.load %arg14[%c0_51, %c0_52] : memref<1x10xf32, #tpu.memory_space<vmem>>, vector<1x10xf32>
    %68 = vector.broadcast %67 : vector<1x10xf32> to vector<2x10xf32>
    %69 = arith.addf %66, %68 : vector<2x10xf32>
    %c0_53 = arith.constant 0 : index
    %c0_54 = arith.constant 0 : index
    %70 = vector.load %arg18[%c0_53, %c0_54] : memref<2x10xf32, #tpu.memory_space<vmem>>, vector<2x10xf32>
    %71 = arith.addf %70, %69 : vector<2x10xf32>
    %cst_55 = arith.constant 1.000000e+00 : f32
    %72 = vector.broadcast %cst_55 : f32 to vector<2x10xf32>
    %73 = arith.cmpf oge, %71, %72 : vector<2x10xf32>
    %74 = arith.extui %73 : vector<2x10xi1> to vector<2x10xi32>
    %75 = arith.sitofp %74 : vector<2x10xi32> to vector<2x10xf32>
    %cst_56 = arith.constant 1.000000e+00 : f32
    %76 = vector.broadcast %cst_56 : f32 to vector<2x10xf32>
    %77 = arith.subf %76, %75 : vector<2x10xf32>
    %78 = arith.mulf %71, %77 : vector<2x10xf32>
    %c0_57 = arith.constant 0 : index
    %c0_58 = arith.constant 0 : index
    %79 = vector.load %arg18[%c0_57, %c0_58] : memref<2x10xf32, #tpu.memory_space<vmem>>, vector<2x10xf32>
    tpu.vector_store %arg18[%c0_57, %c0_58], %78 {strides = array<i32>} : memref<2x10xf32, #tpu.memory_space<vmem>>, vector<2x10xf32>,
    %c0_59 = arith.constant 0 : index
    %c0_60 = arith.constant 0 : index
    %80 = vector.load %arg19[%c0_59, %c0_60] : memref<2x10xf32, #tpu.memory_space<vmem>>, vector<2x10xf32>
    %81 = arith.addf %80, %75 : vector<2x10xf32>
    %c0_61 = arith.constant 0 : index
    %c0_62 = arith.constant 0 : index
    %82 = vector.load %arg19[%c0_61, %c0_62] : memref<2x10xf32, #tpu.memory_space<vmem>>, vector<2x10xf32>
    tpu.vector_store %arg19[%c0_61, %c0_62], %81 {strides = array<i32>} : memref<2x10xf32, #tpu.memory_space<vmem>>, vector<2x10xf32>,
    %c0_63 = arith.constant 0 : index
    %c0_64 = arith.constant 0 : index
    %83 = vector.load %arg15[%c0_63, %c0_64] : memref<2x10xf32, #tpu.memory_space<vmem>>, vector<2x10xf32>
    tpu.vector_store %arg15[%c0_63, %c0_64], %81 {strides = array<i32>} : memref<2x10xf32, #tpu.memory_space<vmem>>, vector<2x10xf32>,
    return
  }
  func.func @transform_0(%arg0: i32) -> (i32, i32, i32) {
    %c0_i32 = arith.constant 0 : i32
    %c0_i32_0 = arith.constant 0 : i32
    %c0_i32_1 = arith.constant 0 : i32
    %c0_i32_2 = arith.constant 0 : i32
    return %c0_i32, %c0_i32_0, %c0_i32_1 : i32, i32, i32
  }
  func.func @transform_1(%arg0: i32) -> (i32, i32) {
    %c0_i32 = arith.constant 0 : i32
    %c0_i32_0 = arith.constant 0 : i32
    %c0_i32_1 = arith.constant 0 : i32
    return %c0_i32, %c0_i32_0 : i32, i32
  }
  func.func @transform_2(%arg0: i32) -> (i32, i32) {
    %c0_i32 = arith.constant 0 : i32
    %c0_i32_0 = arith.constant 0 : i32
    %c0_i32_1 = arith.constant 0 : i32
    return %c0_i32, %c0_i32_0 : i32, i32
  }
  func.func @transform_3(%arg0: i32) -> (i32, i32) {
    %c0_i32 = arith.constant 0 : i32
    %c0_i32_0 = arith.constant 0 : i32
    %c0_i32_1 = arith.constant 0 : i32
    return %c0_i32, %c0_i32_0 : i32, i32
  }
  func.func @transform_4(%arg0: i32) -> (i32, i32) {
    %c0_i32 = arith.constant 0 : i32
    %c0_i32_0 = arith.constant 0 : i32
    %c0_i32_1 = arith.constant 0 : i32
    return %c0_i32, %c0_i32_0 : i32, i32
  }
  func.func @transform_5(%arg0: i32) -> (i32, i32) {
    %c0_i32 = arith.constant 0 : i32
    %c0_i32_0 = arith.constant 0 : i32
    %c0_i32_1 = arith.constant 0 : i32
    return %c0_i32, %c0_i32_0 : i32, i32
  }
  func.func @transform_6(%arg0: i32) -> (i32, i32) {
    %c0_i32 = arith.constant 0 : i32
    %c0_i32_0 = arith.constant 0 : i32
    %c0_i32_1 = arith.constant 0 : i32
    return %c0_i32, %c0_i32_0 : i32, i32
  }
  func.func @transform_7(%arg0: i32) -> (i32, i32) {
    %c0_i32 = arith.constant 0 : i32
    %c0_i32_0 = arith.constant 0 : i32
    %c0_i32_1 = arith.constant 0 : i32
    return %c0_i32, %c0_i32_0 : i32, i32
  }
  func.func @transform_8(%arg0: i32) -> (i32, i32) {
    %c0_i32 = arith.constant 0 : i32
    %c0_i32_0 = arith.constant 0 : i32
    %c0_i32_1 = arith.constant 0 : i32
    return %c0_i32, %c0_i32_0 : i32, i32
  }
  func.func @transform_9(%arg0: i32) -> (i32, i32) {
    %c0_i32 = arith.constant 0 : i32
    %c0_i32_0 = arith.constant 0 : i32
    %c0_i32_1 = arith.constant 0 : i32
    return %c0_i32, %c0_i32_0 : i32, i32
  }
  func.func @transform_10(%arg0: i32) -> (i32, i32) {
    %c0_i32 = arith.constant 0 : i32
    %c0_i32_0 = arith.constant 0 : i32
    %c0_i32_1 = arith.constant 0 : i32
    return %c0_i32, %c0_i32_0 : i32, i32
  }
  func.func @transform_11(%arg0: i32) -> (i32, i32) {
    %c0_i32 = arith.constant 0 : i32
    %c0_i32_0 = arith.constant 0 : i32
    %c0_i32_1 = arith.constant 0 : i32
    return %c0_i32, %c0_i32_0 : i32, i32
  }
  func.func @transform_12(%arg0: i32) -> (i32, i32) {
    %c0_i32 = arith.constant 0 : i32
    %c0_i32_0 = arith.constant 0 : i32
    %c0_i32_1 = arith.constant 0 : i32
    return %c0_i32, %c0_i32_0 : i32, i32
  }
  func.func @transform_13(%arg0: i32) -> (i32, i32) {
    %c0_i32 = arith.constant 0 : i32
    %c0_i32_0 = arith.constant 0 : i32
    %c0_i32_1 = arith.constant 0 : i32
    return %c0_i32, %c0_i32_0 : i32, i32
  }
  func.func @transform_14(%arg0: i32) -> (i32, i32) {
    %c0_i32 = arith.constant 0 : i32
    %c0_i32_0 = arith.constant 0 : i32
    %c0_i32_1 = arith.constant 0 : i32
    return %c0_i32, %c0_i32_0 : i32, i32
  }
}

</mosaic_0001>

<bundles_post_ra>
// kernel: wu_spatial_cnn_forward.2
= control target key start
LH: loop header
LB: loop body
LE: loop exit
PB: predicated region body
PF: predicated region fallthrough
CT: control target
= control target key end

     0   :  { %vm808_vm0 = vcmask 1040384   ;;  %vm219_vm1 = vcmask 72704   ;;  %vm1857_vm2 = vcmask 261120   ;;  %s4557_s1 = inlined_call_operand.vmem [shape: f32[9,32], index: 1, kind: input, shape index: {}]   ;;  %s4558_s0 = inlined_call_operand.vmem [shape: f32[1568,9], index: 0, kind: input, shape index: {}]   ;;  %s4559_s2 = inlined_call_operand.vmem [shape: f32[1,32], index: 2, kind: input, shape index: {}]   ;;  %s4560_s3 = inlined_call_operand.vmem [shape: f32[1568,32], index: 3, kind: output, shape index: {}]  }
   0x1   :  { %v211_v0 = vld [vmem:[%s4557_s1 + $0x8] sm:$0x1]  ;;  %v210_v1 = vld [vmem:[%s4557_s1] sm:$0xff]  ;;  %v112_v3 = vld [vmem:[%s4558_s0 + $0x310] sm:$0xff] }
   0x2   :  { %2454 = vmatprep.subr.msk.mxu0 %vm808_vm0, %v211_v0  ;;  %2752 = vmatprep.subr.msk.mxu1 %vm808_vm0, %v211_v0  ;;  %v14_v2 = vld [vmem:[%s4558_s0] sm:$0xff]  ;;  %v15_v4 = vld [vmem:[%s4558_s0 + $0x8] sm:$0xff]  ;;  %v113_v5 = vld [vmem:[%s4558_s0 + $0x318] sm:$0xff] }
   0x3   :  { %2455 = vmatpush3.msk.msra.mxu0 %vm808_vm0, %v211_v0  ;;  %2754 = vmatpush3.msk.msra.mxu1 %vm808_vm0, %v211_v0  ;;  %v16_v6 = vld [vmem:[%s4558_s0 + $0x10] sm:$0xff]  ;;  %v114_v7 = vld [vmem:[%s4558_s0 + $0x320] sm:$0xff]  ;;  %v17_v8 = vld [vmem:[%s4558_s0 + $0x18] sm:$0xff] }
   0x4   :  { %2456 = vmatprep.subr.mxu0 %v210_v1  ;;  %2753 = vmatprep.subr.mxu1 %v210_v1  ;;  %v115_v9 = vld [vmem:[%s4558_s0 + $0x328] sm:$0xff]  ;;  %v18_v10 = vld [vmem:[%s4558_s0 + $0x20] sm:$0xff]  ;;  %v116_v11 = vld [vmem:[%s4558_s0 + $0x330] sm:$0xff] }
   0x5   :  { %2457 = vmatpush3.msra.mxu0 %v210_v1  ;;  %2755 = vmatpush3.msra.mxu1 %v210_v1  ;;  %v19_v12 = vld [vmem:[%s4558_s0 + $0x28] sm:$0xff]  ;;  %v117_v13 = vld [vmem:[%s4558_s0 + $0x338] sm:$0xff]  ;;  %v20_v14 = vld [vmem:[%s4558_s0 + $0x30] sm:$0xff] }
   0x6   :  { %2458 = vmatprep.mubr.msk.f32.mxu0 %vm219_vm1, %v14_v2  ;;  %2605 = vmatprep.mubr.msk.f32.mxu1 %vm219_vm1, %v112_v3  ;;  %v118_v15 = vld [vmem:[%s4558_s0 + $0x340] sm:$0xff]  ;;  %v21_v16 = vld [vmem:[%s4558_s0 + $0x38] sm:$0xff]  ;;  %v119_v17 = vld [vmem:[%s4558_s0 + $0x348] sm:$0xff] }
   0x7   :  { %2459 = vmatmul.mubr.msk.f32.vlgmr.msra.gmra.mxu0 %vm219_vm1, %v15_v4  ;;  %2606 = vmatmul.mubr.msk.f32.vlgmr.msra.gmra.mxu1 %vm219_vm1, %v113_v5  ;;  %v22_v18 = vld [vmem:[%s4558_s0 + $0x40] sm:$0xff]  ;;  %v120_v19 = vld [vmem:[%s4558_s0 + $0x350] sm:$0xff]  ;;  %v23_v20 = vld [vmem:[%s4558_s0 + $0x48] sm:$0xff] }
   0x8   :  { %2461 = vmatprep.mubr.msk.f32.mxu0 %vm219_vm1, %v16_v6  ;;  %2608 = vmatprep.mubr.msk.f32.mxu1 %vm219_vm1, %v114_v7  ;;  %v121_v21 = vld [vmem:[%s4558_s0 + $0x358] sm:$0xff]  ;;  %v24_v22 = vld [vmem:[%s4558_s0 + $0x50] sm:$0xff]  ;;  %v122_v23 = vld [vmem:[%s4558_s0 + $0x360] sm:$0xff] }
   0x9   :  { %v25_v24 = vld [vmem:[%s4558_s0 + $0x58] sm:$0xff]  ;;  %v123_v25 = vld [vmem:[%s4558_s0 + $0x368] sm:$0xff]  ;;  %v26_v26 = vld [vmem:[%s4558_s0 + $0x60] sm:$0xff] }
   0xa   :  { %v124_v27 = vld [vmem:[%s4558_s0 + $0x370] sm:$0xff]  ;;  %v27_v28 = vld [vmem:[%s4558_s0 + $0x68] sm:$0xff]  ;;  %v125_v29 = vld [vmem:[%s4558_s0 + $0x378] sm:$0xff] }
   0xb   :  { %2462 = vmatmul.mubr.msk.f32.gmra.mxu0 %vm219_vm1, %v17_v8  ;;  %2609 = vmatmul.mubr.msk.f32.gmra.mxu1 %vm219_vm1, %v115_v9  ;;  %v28_v30 = vld [vmem:[%s4558_s0 + $0x70] sm:$0xff]  ;;  %v126_v31 = vld [vmem:[%s4558_s0 + $0x380] sm:$0xff]  ;;  %v29_v32 = vld [vmem:[%s4558_s0 + $0x78] sm:$0xff] }
   0xc   :  { %2464 = vmatprep.mubr.msk.f32.mxu0 %vm219_vm1, %v18_v10  ;;  %2611 = vmatprep.mubr.msk.f32.mxu1 %vm219_vm1, %v116_v11  ;;  %v127_v33 = vld [vmem:[%s4558_s0 + $0x388] sm:$0xff]  ;;  %v30_v34 = vld [vmem:[%s4558_s0 + $0x80] sm:$0xff]  ;;  %v128_v35 = vld [vmem:[%s4558_s0 + $0x390] sm:$0xff] }
   0xd   :  { %v31_v36 = vld [vmem:[%s4558_s0 + $0x88] sm:$0xff]  ;;  %v129_v37 = vld [vmem:[%s4558_s0 + $0x398] sm:$0xff]  ;;  %v32_v38 = vld [vmem:[%s4558_s0 + $0x90] sm:$0xff] }
   0xe   :  { %v130_v39 = vld [vmem:[%s4558_s0 + $0x3a0] sm:$0xff]  ;;  %v33_v40 = vld [vmem:[%s4558_s0 + $0x98] sm:$0xff]  ;;  %v131_v41 = vld [vmem:[%s4558_s0 + $0x3a8] sm:$0xff] }
   0xf   :  { %2465 = vmatmul.mubr.msk.f32.gmra.mxu0 %vm219_vm1, %v19_v12  ;;  %2612 = vmatmul.mubr.msk.f32.gmra.mxu1 %vm219_vm1, %v117_v13  ;;  %v34_v42 = vld [vmem:[%s4558_s0 + $0xa0] sm:$0xff]  ;;  %v132_v43 = vld [vmem:[%s4558_s0 + $0x3b0] sm:$0xff]  ;;  %v35_v44 = vld [vmem:[%s4558_s0 + $0xa8] sm:$0xff] }
  0x10   :  { %2467 = vmatprep.mubr.msk.f32.mxu0 %vm219_vm1, %v20_v14  ;;  %2614 = vmatprep.mubr.msk.f32.mxu1 %vm219_vm1, %v118_v15  ;;  %v133_v45 = vld [vmem:[%s4558_s0 + $0x3b8] sm:$0xff]  ;;  %v36_v46 = vld [vmem:[%s4558_s0 + $0xb0] sm:$0xff]  ;;  %v134_v47 = vld [vmem:[%s4558_s0 + $0x3c0] sm:$0xff] }
  0x11   :  { %v37_v48 = vld [vmem:[%s4558_s0 + $0xb8] sm:$0xff]  ;;  %v135_v49 = vld [vmem:[%s4558_s0 + $0x3c8] sm:$0xff]  ;;  %v38_v50 = vld [vmem:[%s4558_s0 + $0xc0] sm:$0xff] }
  0x12   :  { %v136_v51 = vld [vmem:[%s4558_s0 + $0x3d0] sm:$0xff]  ;;  %v39_v52 = vld [vmem:[%s4558_s0 + $0xc8] sm:$0xff]  ;;  %v137_v53 = vld [vmem:[%s4558_s0 + $0x3d8] sm:$0xff] }
  0x13   :  { %2468 = vmatmul.mubr.msk.f32.gmra.mxu0 %vm219_vm1, %v21_v16  ;;  %2615 = vmatmul.mubr.msk.f32.gmra.mxu1 %vm219_vm1, %v119_v17  ;;  %v40_v54 = vld [vmem:[%s4558_s0 + $0xd0] sm:$0xff]  ;;  %v138_v55 = vld [vmem:[%s4558_s0 + $0x3e0] sm:$0xff]  ;;  %v41_v56 = vld [vmem:[%s4558_s0 + $0xd8] sm:$0xff] }
  0x14   :  { %2470 = vmatprep.mubr.msk.f32.mxu0 %vm219_vm1, %v22_v18  ;;  %2617 = vmatprep.mubr.msk.f32.mxu1 %vm219_vm1, %v120_v19  ;;  %v139_v57 = vld [vmem:[%s4558_s0 + $0x3e8] sm:$0xff]  ;;  %v42_v58 = vld [vmem:[%s4558_s0 + $0xe0] sm:$0xff]  ;;  %v140_v59 = vld [vmem:[%s4558_s0 + $0x3f0] sm:$0xff] }
  0x15   :  { %v43_v60 = vld [vmem:[%s4558_s0 + $0xe8] sm:$0xff]  ;;  %v141_v61 = vld [vmem:[%s4558_s0 + $0x3f8] sm:$0xff]  ;;  %v44_v62 = vld [vmem:[%s4558_s0 + $0xf0] sm:$0xff] }
  0x16   :  { %v142_v63 = vld [vmem:[%s4558_s0 + $0x400] sm:$0xff]  ;;  %v45_v0 = vld [vmem:[%s4558_s0 + $0xf8] sm:$0xff]  ;;  %v143_v1 = vld [vmem:[%s4558_s0 + $0x408] sm:$0xff] }
  0x17   :  { %2471 = vmatmul.mubr.msk.f32.gmra.mxu0 %vm219_vm1, %v23_v20  ;;  %2618 = vmatmul.mubr.msk.f32.gmra.mxu1 %vm219_vm1, %v121_v21  ;;  %v46_v2 = vld [vmem:[%s4558_s0 + $0x100] sm:$0xff]  ;;  %v144_v3 = vld [vmem:[%s4558_s0 + $0x410] sm:$0xff]  ;;  %v47_v4 = vld [vmem:[%s4558_s0 + $0x108] sm:$0xff] }
  0x18   :  { %2473 = vmatprep.mubr.msk.f32.mxu0 %vm219_vm1, %v24_v22  ;;  %2620 = vmatprep.mubr.msk.f32.mxu1 %vm219_vm1, %v122_v23  ;;  %v145_v5 = vld [vmem:[%s4558_s0 + $0x418] sm:$0xff]  ;;  %v48_v6 = vld [vmem:[%s4558_s0 + $0x110] sm:$0xff]  ;;  %v146_v7 = vld [vmem:[%s4558_s0 + $0x420] sm:$0xff] }
  0x19   :  { %v49_v8 = vld [vmem:[%s4558_s0 + $0x118] sm:$0xff]  ;;  %v147_v9 = vld [vmem:[%s4558_s0 + $0x428] sm:$0xff]  ;;  %v50_v10 = vld [vmem:[%s4558_s0 + $0x120] sm:$0xff] }
  0x1a   :  { %v148_v11 = vld [vmem:[%s4558_s0 + $0x430] sm:$0xff]  ;;  %v51_v12 = vld [vmem:[%s4558_s0 + $0x128] sm:$0xff]  ;;  %v149_v13 = vld [vmem:[%s4558_s0 + $0x438] sm:$0xff] }
  0x1b   :  { %2474 = vmatmul.mubr.msk.f32.gmra.mxu0 %vm219_vm1, %v25_v24  ;;  %2621 = vmatmul.mubr.msk.f32.gmra.mxu1 %vm219_vm1, %v123_v25  ;;  %v52_v14 = vld [vmem:[%s4558_s0 + $0x130] sm:$0xff]  ;;  %v150_v15 = vld [vmem:[%s4558_s0 + $0x440] sm:$0xff]  ;;  %v53_v16 = vld [vmem:[%s4558_s0 + $0x138] sm:$0xff] }
  0x1c   :  { %2476 = vmatprep.mubr.msk.f32.mxu0 %vm219_vm1, %v26_v26  ;;  %2623 = vmatprep.mubr.msk.f32.mxu1 %vm219_vm1, %v124_v27  ;;  %v151_v17 = vld [vmem:[%s4558_s0 + $0x448] sm:$0xff]  ;;  %v54_v18 = vld [vmem:[%s4558_s0 + $0x140] sm:$0xff]  ;;  %v152_v19 = vld [vmem:[%s4558_s0 + $0x450] sm:$0xff] }
  0x1d   :  { %v55_v20 = vld [vmem:[%s4558_s0 + $0x148] sm:$0xff]  ;;  %v153_v21 = vld [vmem:[%s4558_s0 + $0x458] sm:$0xff]  ;;  %v56_v22 = vld [vmem:[%s4558_s0 + $0x150] sm:$0xff] }
  0x1e   :  { %v154_v23 = vld [vmem:[%s4558_s0 + $0x460] sm:$0xff]  ;;  %v57_v24 = vld [vmem:[%s4558_s0 + $0x158] sm:$0xff]  ;;  %v155_v25 = vld [vmem:[%s4558_s0 + $0x468] sm:$0xff] }
  0x1f   :  { %2477 = vmatmul.mubr.msk.f32.gmra.mxu0 %vm219_vm1, %v27_v28  ;;  %2624 = vmatmul.mubr.msk.f32.gmra.mxu1 %vm219_vm1, %v125_v29  ;;  %v58_v26 = vld [vmem:[%s4558_s0 + $0x160] sm:$0xff]  ;;  %v156_v27 = vld [vmem:[%s4558_s0 + $0x470] sm:$0xff]  ;;  %v59_v28 = vld [vmem:[%s4558_s0 + $0x168] sm:$0xff] }
  0x20   :  { %2479 = vmatprep.mubr.msk.f32.mxu0 %vm219_vm1, %v28_v30  ;;  %2626 = vmatprep.mubr.msk.f32.mxu1 %vm219_vm1, %v126_v31  ;;  %v157_v29 = vld [vmem:[%s4558_s0 + $0x478] sm:$0xff]  ;;  %v60_v30 = vld [vmem:[%s4558_s0 + $0x170] sm:$0xff]  ;;  %v158_v31 = vld [vmem:[%s4558_s0 + $0x480] sm:$0xff] }
  0x23   :  { %2480 = vmatmul.mubr.msk.f32.gmra.mxu0 %vm219_vm1, %v29_v32  ;;  %2627 = vmatmul.mubr.msk.f32.gmra.mxu1 %vm219_vm1, %v127_v33  ;;  %v61_v32 = vld [vmem:[%s4558_s0 + $0x178] sm:$0xff]  ;;  %v159_v33 = vld [vmem:[%s4558_s0 + $0x488] sm:$0xff] }
  0x24   :  { %2482 = vmatprep.mubr.msk.f32.mxu0 %vm219_vm1, %v30_v34  ;;  %2629 = vmatprep.mubr.msk.f32.mxu1 %vm219_vm1, %v128_v35  ;;  %v62_v34 = vld [vmem:[%s4558_s0 + $0x180] sm:$0xff]  ;;  %v160_v35 = vld [vmem:[%s4558_s0 + $0x490] sm:$0xff] }
  0x27   :  { %2483 = vmatmul.mubr.msk.f32.gmra.mxu0 %vm219_vm1, %v31_v36  ;;  %2630 = vmatmul.mubr.msk.f32.gmra.mxu1 %vm219_vm1, %v129_v37  ;;  %v63_v36 = vld [vmem:[%s4558_s0 + $0x188] sm:$0xff]  ;;  %v161_v37 = vld [vmem:[%s4558_s0 + $0x498] sm:$0xff] }
  0x28   :  { %2485 = vmatprep.mubr.msk.f32.mxu0 %vm219_vm1, %v32_v38  ;;  %2632 = vmatprep.mubr.msk.f32.mxu1 %vm219_vm1, %v130_v39  ;;  %v64_v38 = vld [vmem:[%s4558_s0 + $0x190] sm:$0xff]  ;;  %v162_v39 = vld [vmem:[%s4558_s0 + $0x4a0] sm:$0xff] }
  0x2b   :  { %2486 = vmatmul.mubr.msk.f32.gmra.mxu0 %vm219_vm1, %v33_v40  ;;  %2633 = vmatmul.mubr.msk.f32.gmra.mxu1 %vm219_vm1, %v131_v41  ;;  %v65_v40 = vld [vmem:[%s4558_s0 + $0x198] sm:$0xff]  ;;  %v163_v41 = vld [vmem:[%s4558_s0 + $0x4a8] sm:$0xff] }
  0x2c   :  { %2488 = vmatprep.mubr.msk.f32.mxu0 %vm219_vm1, %v34_v42  ;;  %2635 = vmatprep.mubr.msk.f32.mxu1 %vm219_vm1, %v132_v43  ;;  %v66_v42 = vld [vmem:[%s4558_s0 + $0x1a0] sm:$0xff]  ;;  %v164_v43 = vld [vmem:[%s4558_s0 + $0x4b0] sm:$0xff] }
  0x2f   :  { %2489 = vmatmul.mubr.msk.f32.gmra.mxu0 %vm219_vm1, %v35_v44  ;;  %2636 = vmatmul.mubr.msk.f32.gmra.mxu1 %vm219_vm1, %v133_v45  ;;  %v67_v44 = vld [vmem:[%s4558_s0 + $0x1a8] sm:$0xff]  ;;  %v165_v45 = vld [vmem:[%s4558_s0 + $0x4b8] sm:$0xff] }
  0x30   :  { %2491 = vmatprep.mubr.msk.f32.mxu0 %vm219_vm1, %v36_v46  ;;  %2638 = vmatprep.mubr.msk.f32.mxu1 %vm219_vm1, %v134_v47  ;;  %v68_v46 = vld [vmem:[%s4558_s0 + $0x1b0] sm:$0xff]  ;;  %v166_v47 = vld [vmem:[%s4558_s0 + $0x4c0] sm:$0xff] }
  0x33   :  { %2492 = vmatmul.mubr.msk.f32.gmra.mxu0 %vm219_vm1, %v37_v48  ;;  %2639 = vmatmul.mubr.msk.f32.gmra.mxu1 %vm219_vm1, %v135_v49  ;;  %v69_v48 = vld [vmem:[%s4558_s0 + $0x1b8] sm:$0xff]  ;;  %v167_v49 = vld [vmem:[%s4558_s0 + $0x4c8] sm:$0xff] }
  0x34   :  { %2494 = vmatprep.mubr.msk.f32.mxu0 %vm219_vm1, %v38_v50  ;;  %2641 = vmatprep.mubr.msk.f32.mxu1 %vm219_vm1, %v136_v51  ;;  %v70_v50 = vld [vmem:[%s4558_s0 + $0x1c0] sm:$0xff]  ;;  %v168_v51 = vld [vmem:[%s4558_s0 + $0x4d0] sm:$0xff] }
  0x37   :  { %2495 = vmatmul.mubr.msk.f32.gmra.mxu0 %vm219_vm1, %v39_v52  ;;  %2642 = vmatmul.mubr.msk.f32.gmra.mxu1 %vm219_vm1, %v137_v53  ;;  %v71_v52 = vld [vmem:[%s4558_s0 + $0x1c8] sm:$0xff]  ;;  %v169_v53 = vld [vmem:[%s4558_s0 + $0x4d8] sm:$0xff] }
  0x38   :  { %2497 = vmatprep.mubr.msk.f32.mxu0 %vm219_vm1, %v40_v54  ;;  %2644 = vmatprep.mubr.msk.f32.mxu1 %vm219_vm1, %v138_v55  ;;  %v72_v54 = vld [vmem:[%s4558_s0 + $0x1d0] sm:$0xff]  ;;  %v170_v55 = vld [vmem:[%s4558_s0 + $0x4e0] sm:$0xff] }
  0x3b   :  { %2498 = vmatmul.mubr.msk.f32.gmra.mxu0 %vm219_vm1, %v41_v56  ;;  %2645 = vmatmul.mubr.msk.f32.gmra.mxu1 %vm219_vm1, %v139_v57  ;;  %v73_v56 = vld [vmem:[%s4558_s0 + $0x1d8] sm:$0xff]  ;;  %v171_v57 = vld [vmem:[%s4558_s0 + $0x4e8] sm:$0xff] }
  0x3c   :  { %2500 = vmatprep.mubr.msk.f32.mxu0 %vm219_vm1, %v42_v58  ;;  %2647 = vmatprep.mubr.msk.f32.mxu1 %vm219_vm1, %v140_v59  ;;  %v74_v58 = vld [vmem:[%s4558_s0 + $0x1e0] sm:$0xff]  ;;  %v172_v59 = vld [vmem:[%s4558_s0 + $0x4f0] sm:$0xff] }
  0x3f   :  { %2501 = vmatmul.mubr.msk.f32.gmra.mxu0 %vm219_vm1, %v43_v60  ;;  %2648 = vmatmul.mubr.msk.f32.gmra.mxu1 %vm219_vm1, %v141_v61  ;;  %v75_v60 = vld [vmem:[%s4558_s0 + $0x1e8] sm:$0xff]  ;;  %v173_v61 = vld [vmem:[%s4558_s0 + $0x4f8] sm:$0xff] }
  0x40   :  { %2503 = vmatprep.mubr.msk.f32.mxu0 %vm219_vm1, %v44_v62  ;;  %2650 = vmatprep.mubr.msk.f32.mxu1 %vm219_vm1, %v142_v63  ;;  %v76_v62 = vld [vmem:[%s4558_s0 + $0x1f0] sm:$0xff]  ;;  %v174_v63 = vld [vmem:[%s4558_s0 + $0x500] sm:$0xff] }
  0x43   :  { %2504 = vmatmul.mubr.msk.f32.gmra.mxu0 %vm219_vm1, %v45_v0  ;;  %2651 = vmatmul.mubr.msk.f32.gmra.mxu1 %vm219_vm1, %v143_v1  ;;  %v77_v0 = vld [vmem:[%s4558_s0 + $0x1f8] sm:$0xff]  ;;  %v175_v1 = vld [vmem:[%s4558_s0 + $0x508] sm:$0xff] }
  0x44   :  { %2506 = vmatprep.mubr.msk.f32.mxu0 %vm219_vm1, %v46_v2  ;;  %2653 = vmatprep.mubr.msk.f32.mxu1 %vm219_vm1, %v144_v3  ;;  %v78_v2 = vld [vmem:[%s4558_s0 + $0x200] sm:$0xff]  ;;  %v176_v3 = vld [vmem:[%s4558_s0 + $0x510] sm:$0xff] }
  0x47   :  { %2507 = vmatmul.mubr.msk.f32.gmra.mxu0 %vm219_vm1, %v47_v4  ;;  %2654 = vmatmul.mubr.msk.f32.gmra.mxu1 %vm219_vm1, %v145_v5  ;;  %v79_v4 = vld [vmem:[%s4558_s0 + $0x208] sm:$0xff]  ;;  %v177_v5 = vld [vmem:[%s4558_s0 + $0x518] sm:$0xff] }
  0x48   :  { %2509 = vmatprep.mubr.msk.f32.mxu0 %vm219_vm1, %v48_v6  ;;  %2656 = vmatprep.mubr.msk.f32.mxu1 %vm219_vm1, %v146_v7  ;;  %v80_v6 = vld [vmem:[%s4558_s0 + $0x210] sm:$0xff]  ;;  %v178_v7 = vld [vmem:[%s4558_s0 + $0x520] sm:$0xff] }
  0x4b   :  { %2510 = vmatmul.mubr.msk.f32.gmra.mxu0 %vm219_vm1, %v49_v8  ;;  %2657 = vmatmul.mubr.msk.f32.gmra.mxu1 %vm219_vm1, %v147_v9  ;;  %v81_v8 = vld [vmem:[%s4558_s0 + $0x218] sm:$0xff]  ;;  %v179_v9 = vld [vmem:[%s4558_s0 + $0x528] sm:$0xff] }
  0x4c   :  { %2512 = vmatprep.mubr.msk.f32.mxu0 %vm219_vm1, %v50_v10  ;;  %2659 = vmatprep.mubr.msk.f32.mxu1 %vm219_vm1, %v148_v11  ;;  %v82_v10 = vld [vmem:[%s4558_s0 + $0x220] sm:$0xff]  ;;  %v180_v11 = vld [vmem:[%s4558_s0 + $0x530] sm:$0xff] }
  0x4f   :  { %2513 = vmatmul.mubr.msk.f32.gmra.mxu0 %vm219_vm1, %v51_v12  ;;  %2660 = vmatmul.mubr.msk.f32.gmra.mxu1 %vm219_vm1, %v149_v13  ;;  %v83_v12 = vld [vmem:[%s4558_s0 + $0x228] sm:$0xff]  ;;  %v181_v13 = vld [vmem:[%s4558_s0 + $0x538] sm:$0xff] }
  0x50   :  { %2515 = vmatprep.mubr.msk.f32.mxu0 %vm219_vm1, %v52_v14  ;;  %2662 = vmatprep.mubr.msk.f32.mxu1 %vm219_vm1, %v150_v15  ;;  %v84_v14 = vld [vmem:[%s4558_s0 + $0x230] sm:$0xff]  ;;  %v182_v15 = vld [vmem:[%s4558_s0 + $0x540] sm:$0xff] }
  0x53   :  { %2516 = vmatmul.mubr.msk.f32.gmra.mxu0 %vm219_vm1, %v53_v16  ;;  %2663 = vmatmul.mubr.msk.f32.gmra.mxu1 %vm219_vm1, %v151_v17  ;;  %v85_v16 = vld [vmem:[%s4558_s0 + $0x238] sm:$0xff]  ;;  %v183_v17 = vld [vmem:[%s4558_s0 + $0x548] sm:$0xff] }
  0x54   :  { %2518 = vmatprep.mubr.msk.f32.mxu0 %vm219_vm1, %v54_v18  ;;  %2665 = vmatprep.mubr.msk.f32.mxu1 %vm219_vm1, %v152_v19  ;;  %v86_v18 = vld [vmem:[%s4558_s0 + $0x240] sm:$0xff]  ;;  %v184_v19 = vld [vmem:[%s4558_s0 + $0x550] sm:$0xff] }
  0x57   :  { %2519 = vmatmul.mubr.msk.f32.gmra.mxu0 %vm219_vm1, %v55_v20  ;;  %2666 = vmatmul.mubr.msk.f32.gmra.mxu1 %vm219_vm1, %v153_v21  ;;  %v87_v20 = vld [vmem:[%s4558_s0 + $0x248] sm:$0xff]  ;;  %v185_v21 = vld [vmem:[%s4558_s0 + $0x558] sm:$0xff] }
  0x58   :  { %2521 = vmatprep.mubr.msk.f32.mxu0 %vm219_vm1, %v56_v22  ;;  %2668 = vmatprep.mubr.msk.f32.mxu1 %vm219_vm1, %v154_v23  ;;  %v88_v22 = vld [vmem:[%s4558_s0 + $0x250] sm:$0xff]  ;;  %v186_v23 = vld [vmem:[%s4558_s0 + $0x560] sm:$0xff] }
  0x5b   :  { %2522 = vmatmul.mubr.msk.f32.gmra.mxu0 %vm219_vm1, %v57_v24  ;;  %2669 = vmatmul.mubr.msk.f32.gmra.mxu1 %vm219_vm1, %v155_v25  ;;  %v89_v24 = vld [vmem:[%s4558_s0 + $0x258] sm:$0xff]  ;;  %v187_v25 = vld [vmem:[%s4558_s0 + $0x568] sm:$0xff] }
  0x5c   :  { %2524 = vmatprep.mubr.msk.f32.mxu0 %vm219_vm1, %v58_v26  ;;  %2671 = vmatprep.mubr.msk.f32.mxu1 %vm219_vm1, %v156_v27  ;;  %v90_v26 = vld [vmem:[%s4558_s0 + $0x260] sm:$0xff]  ;;  %v188_v27 = vld [vmem:[%s4558_s0 + $0x570] sm:$0xff] }
  0x5f   :  { %2525 = vmatmul.mubr.msk.f32.gmra.mxu0 %vm219_vm1, %v59_v28  ;;  %2672 = vmatmul.mubr.msk.f32.gmra.mxu1 %vm219_vm1, %v157_v29  ;;  %v91_v28 = vld [vmem:[%s4558_s0 + $0x268] sm:$0xff]  ;;  %v189_v29 = vld [vmem:[%s4558_s0 + $0x578] sm:$0xff] }
  0x60   :  { %2527 = vmatprep.mubr.msk.f32.mxu0 %vm219_vm1, %v60_v30  ;;  %2674 = vmatprep.mubr.msk.f32.mxu1 %vm219_vm1, %v158_v31  ;;  %v92_v30 = vld [vmem:[%s4558_s0 + $0x270] sm:$0xff]  ;;  %v190_v31 = vld [vmem:[%s4558_s0 + $0x580] sm:$0xff] }
  0x63   :  { %2528 = vmatmul.mubr.msk.f32.gmra.mxu0 %vm219_vm1, %v61_v32  ;;  %2675 = vmatmul.mubr.msk.f32.gmra.mxu1 %vm219_vm1, %v159_v33  ;;  %v93_v32 = vld [vmem:[%s4558_s0 + $0x278] sm:$0xff]  ;;  %v191_v33 = vld [vmem:[%s4558_s0 + $0x588] sm:$0xff] }
  0x64   :  { %2530 = vmatprep.mubr.msk.f32.mxu0 %vm219_vm1, %v62_v34  ;;  %2677 = vmatprep.mubr.msk.f32.mxu1 %vm219_vm1, %v160_v35  ;;  %v94_v34 = vld [vmem:[%s4558_s0 + $0x280] sm:$0xff]  ;;  %v192_v35 = vld [vmem:[%s4558_s0 + $0x590] sm:$0xff] }
  0x67   :  { %2531 = vmatmul.mubr.msk.f32.gmra.mxu0 %vm219_vm1, %v63_v36  ;;  %2678 = vmatmul.mubr.msk.f32.gmra.mxu1 %vm219_vm1, %v161_v37  ;;  %v95_v36 = vld [vmem:[%s4558_s0 + $0x288] sm:$0xff]  ;;  %v193_v37 = vld [vmem:[%s4558_s0 + $0x598] sm:$0xff] }
  0x68   :  { %2533 = vmatprep.mubr.msk.f32.mxu0 %vm219_vm1, %v64_v38  ;;  %2680 = vmatprep.mubr.msk.f32.mxu1 %vm219_vm1, %v162_v39  ;;  %v96_v38 = vld [vmem:[%s4558_s0 + $0x290] sm:$0xff]  ;;  %v194_v39 = vld [vmem:[%s4558_s0 + $0x5a0] sm:$0xff] }
  0x6b   :  { %2534 = vmatmul.mubr.msk.f32.gmra.mxu0 %vm219_vm1, %v65_v40  ;;  %2681 = vmatmul.mubr.msk.f32.gmra.mxu1 %vm219_vm1, %v163_v41  ;;  %v97_v40 = vld [vmem:[%s4558_s0 + $0x298] sm:$0xff]  ;;  %v195_v41 = vld [vmem:[%s4558_s0 + $0x5a8] sm:$0xff] }
  0x6c   :  { %2536 = vmatprep.mubr.msk.f32.mxu0 %vm219_vm1, %v66_v42  ;;  %2683 = vmatprep.mubr.msk.f32.mxu1 %vm219_vm1, %v164_v43  ;;  %v98_v42 = vld [vmem:[%s4558_s0 + $0x2a0] sm:$0xff]  ;;  %v196_v43 = vld [vmem:[%s4558_s0 + $0x5b0] sm:$0xff] }
  0x6f   :  { %2537 = vmatmul.mubr.msk.f32.gmra.mxu0 %vm219_vm1, %v67_v44  ;;  %2684 = vmatmul.mubr.msk.f32.gmra.mxu1 %vm219_vm1, %v165_v45  ;;  %v99_v44 = vld [vmem:[%s4558_s0 + $0x2a8] sm:$0xff]  ;;  %v197_v45 = vld [vmem:[%s4558_s0 + $0x5b8] sm:$0xff] }
  0x70   :  { %2539 = vmatprep.mubr.msk.f32.mxu0 %vm219_vm1, %v68_v46  ;;  %2686 = vmatprep.mubr.msk.f32.mxu1 %vm219_vm1, %v166_v47  ;;  %v100_v46 = vld [vmem:[%s4558_s0 + $0x2b0] sm:$0xff]  ;;  %v198_v47 = vld [vmem:[%s4558_s0 + $0x5c0] sm:$0xff] }
  0x73   :  { %2540 = vmatmul.mubr.msk.f32.gmra.mxu0 %vm219_vm1, %v69_v48  ;;  %2687 = vmatmul.mubr.msk.f32.gmra.mxu1 %vm219_vm1, %v167_v49  ;;  %v101_v48 = vld [vmem:[%s4558_s0 + $0x2b8] sm:$0xff]  ;;  %v199_v49 = vld [vmem:[%s4558_s0 + $0x5c8] sm:$0xff] }
  0x74   :  { %2542 = vmatprep.mubr.msk.f32.mxu0 %vm219_vm1, %v70_v50  ;;  %2689 = vmatprep.mubr.msk.f32.mxu1 %vm219_vm1, %v168_v51  ;;  %v102_v50 = vld [vmem:[%s4558_s0 + $0x2c0] sm:$0xff]  ;;  %v200_v51 = vld [vmem:[%s4558_s0 + $0x5d0] sm:$0xff] }
  0x77   :  { %2543 = vmatmul.mubr.msk.f32.gmra.mxu0 %vm219_vm1, %v71_v52  ;;  %2690 = vmatmul.mubr.msk.f32.gmra.mxu1 %vm219_vm1, %v169_v53  ;;  %v103_v52 = vld [vmem:[%s4558_s0 + $0x2c8] sm:$0xff]  ;;  %v201_v53 = vld [vmem:[%s4558_s0 + $0x5d8] sm:$0xff] }
  0x78   :  { %2545 = vmatprep.mubr.msk.f32.mxu0 %vm219_vm1, %v72_v54  ;;  %2692 = vmatprep.mubr.msk.f32.mxu1 %vm219_vm1, %v170_v55  ;;  %v104_v54 = vld [vmem:[%s4558_s0 + $0x2d0] sm:$0xff]  ;;  %v202_v55 = vld [vmem:[%s4558_s0 + $0x5e0] sm:$0xff] }
  0x7b   :  { %2546 = vmatmul.mubr.msk.f32.gmra.mxu0 %vm219_vm1, %v73_v56  ;;  %2693 = vmatmul.mubr.msk.f32.gmra.mxu1 %vm219_vm1, %v171_v57  ;;  %v105_v56 = vld [vmem:[%s4558_s0 + $0x2d8] sm:$0xff]  ;;  %v203_v57 = vld [vmem:[%s4558_s0 + $0x5e8] sm:$0xff] }
  0x7c   :  { %2548 = vmatprep.mubr.msk.f32.mxu0 %vm219_vm1, %v74_v58  ;;  %2695 = vmatprep.mubr.msk.f32.mxu1 %vm219_vm1, %v172_v59  ;;  %v106_v58 = vld [vmem:[%s4558_s0 + $0x2e0] sm:$0xff]  ;;  %v204_v59 = vld [vmem:[%s4558_s0 + $0x5f0] sm:$0xff] }
  0x7f   :  { %2549 = vmatmul.mubr.msk.f32.gmra.mxu0 %vm219_vm1, %v75_v60  ;;  %2696 = vmatmul.mubr.msk.f32.gmra.mxu1 %vm219_vm1, %v173_v61  ;;  %v107_v60 = vld [vmem:[%s4558_s0 + $0x2e8] sm:$0xff]  ;;  %v205_v61 = vld [vmem:[%s4558_s0 + $0x5f8] sm:$0xff] }
  0x80   :  { %2551 = vmatprep.mubr.msk.f32.mxu0 %vm219_vm1, %v76_v62  ;;  %2698 = vmatprep.mubr.msk.f32.mxu1 %vm219_vm1, %v174_v63  ;;  %v108_v62 = vld [vmem:[%s4558_s0 + $0x2f0] sm:$0xff]  ;;  %v206_v63 = vld [vmem:[%s4558_s0 + $0x600] sm:$0xff] }
  0x83   :  { %2552 = vmatmul.mubr.msk.f32.gmra.mxu0 %vm219_vm1, %v77_v0  ;;  %2699 = vmatmul.mubr.msk.f32.gmra.mxu1 %vm219_vm1, %v175_v1  ;;  %v109_v0 = vld [vmem:[%s4558_s0 + $0x2f8] sm:$0xff]  ;;  %v207_v1 = vld [vmem:[%s4558_s0 + $0x608] sm:$0xff] }
  0x84   :  { %2554 = vmatprep.mubr.msk.f32.mxu0 %vm219_vm1, %v78_v2  ;;  %2701 = vmatprep.mubr.msk.f32.mxu1 %vm219_vm1, %v176_v3  ;;  %v110_v2 = vld [vmem:[%s4558_s0 + $0x300] sm:$0xff]  ;;  %v208_v3 = vld [vmem:[%s4558_s0 + $0x610] sm:$0xff] }
  0x87   :  { %2555 = vmatmul.mubr.msk.f32.gmra.mxu0 %vm219_vm1, %v79_v4  ;;  %2702 = vmatmul.mubr.msk.f32.gmra.mxu1 %vm219_vm1, %v177_v5  ;;  %v111_v4 = vld [vmem:[%s4558_s0 + $0x308] sm:$0xff]  ;;  %v209_v5 = vld [vmem:[%s4558_s0 + $0x618] sm:$0xff] }
  0x88   :  { %2557 = vmatprep.mubr.msk.f32.mxu0 %vm219_vm1, %v80_v6  ;;  %2704 = vmatprep.mubr.msk.f32.mxu1 %vm219_vm1, %v178_v7  ;;  %v3568_v6 = vld [vmem:[%s4559_s2] ss:$0 sm:$0xff] }
  0x8b   :  { %2558 = vmatmul.mubr.msk.f32.gmra.mxu0 %vm219_vm1, %v81_v8  ;;  %2705 = vmatmul.mubr.msk.f32.gmra.mxu1 %vm219_vm1, %v179_v9 }
  0x8c   :  { %2560 = vmatprep.mubr.msk.f32.mxu0 %vm219_vm1, %v82_v10  ;;  %2707 = vmatprep.mubr.msk.f32.mxu1 %vm219_vm1, %v180_v11 }
  0x8f   :  { %2561 = vmatmul.mubr.msk.f32.gmra.mxu0 %vm219_vm1, %v83_v12  ;;  %2708 = vmatmul.mubr.msk.f32.gmra.mxu1 %vm219_vm1, %v181_v13 }
  0x90   :  { %2563 = vmatprep.mubr.msk.f32.mxu0 %vm219_vm1, %v84_v14  ;;  %2710 = vmatprep.mubr.msk.f32.mxu1 %vm219_vm1, %v182_v15 }
  0x93   :  { %2564 = vmatmul.mubr.msk.f32.gmra.mxu0 %vm219_vm1, %v85_v16  ;;  %2711 = vmatmul.mubr.msk.f32.gmra.mxu1 %vm219_vm1, %v183_v17 }
  0x94   :  { %2566 = vmatprep.mubr.msk.f32.mxu0 %vm219_vm1, %v86_v18  ;;  %2713 = vmatprep.mubr.msk.f32.mxu1 %vm219_vm1, %v184_v19 }
  0x97   :  { %2567 = vmatmul.mubr.msk.f32.gmra.mxu0 %vm219_vm1, %v87_v20  ;;  %2714 = vmatmul.mubr.msk.f32.gmra.mxu1 %vm219_vm1, %v185_v21 }
  0x98   :  { %2569 = vmatprep.mubr.msk.f32.mxu0 %vm219_vm1, %v88_v22  ;;  %2716 = vmatprep.mubr.msk.f32.mxu1 %vm219_vm1, %v186_v23 }
  0x9b   :  { %2570 = vmatmul.mubr.msk.f32.gmra.mxu0 %vm219_vm1, %v89_v24  ;;  %2717 = vmatmul.mubr.msk.f32.gmra.mxu1 %vm219_vm1, %v187_v25 }
  0x9c   :  { %2572 = vmatprep.mubr.msk.f32.mxu0 %vm219_vm1, %v90_v26  ;;  %2719 = vmatprep.mubr.msk.f32.mxu1 %vm219_vm1, %v188_v27 }
  0x9f   :  { %2573 = vmatmul.mubr.msk.f32.gmra.mxu0 %vm219_vm1, %v91_v28  ;;  %2720 = vmatmul.mubr.msk.f32.gmra.mxu1 %vm219_vm1, %v189_v29 }
  0xa0   :  { %2575 = vmatprep.mubr.msk.f32.mxu0 %vm219_vm1, %v92_v30  ;;  %2722 = vmatprep.mubr.msk.f32.mxu1 %vm219_vm1, %v190_v31 }
  0xa3   :  { %2576 = vmatmul.mubr.msk.f32.gmra.mxu0 %vm219_vm1, %v93_v32  ;;  %2723 = vmatmul.mubr.msk.f32.gmra.mxu1 %vm219_vm1, %v191_v33 }
  0xa4   :  { %2578 = vmatprep.mubr.msk.f32.mxu0 %vm219_vm1, %v94_v34  ;;  %2725 = vmatprep.mubr.msk.f32.mxu1 %vm219_vm1, %v192_v35 }
  0xa7   :  { %2579 = vmatmul.mubr.msk.f32.gmra.mxu0 %vm219_vm1, %v95_v36  ;;  %2726 = vmatmul.mubr.msk.f32.gmra.mxu1 %vm219_vm1, %v193_v37 }
  0xa8   :  { %2581 = vmatprep.mubr.msk.f32.mxu0 %vm219_vm1, %v96_v38  ;;  %2728 = vmatprep.mubr.msk.f32.mxu1 %vm219_vm1, %v194_v39 }
  0xab   :  { %2582 = vmatmul.mubr.msk.f32.gmra.mxu0 %vm219_vm1, %v97_v40  ;;  %2729 = vmatmul.mubr.msk.f32.gmra.mxu1 %vm219_vm1, %v195_v41 }
  0xac   :  { %2584 = vmatprep.mubr.msk.f32.mxu0 %vm219_vm1, %v98_v42  ;;  %2731 = vmatprep.mubr.msk.f32.mxu1 %vm219_vm1, %v196_v43 }
  0xaf   :  { %2585 = vmatmul.mubr.msk.f32.gmra.mxu0 %vm219_vm1, %v99_v44  ;;  %2732 = vmatmul.mubr.msk.f32.gmra.mxu1 %vm219_vm1, %v197_v45 }
  0xb0   :  { %2587 = vmatprep.mubr.msk.f32.mxu0 %vm219_vm1, %v100_v46  ;;  %2734 = vmatprep.mubr.msk.f32.mxu1 %vm219_vm1, %v198_v47 }
  0xb3   :  { %2588 = vmatmul.mubr.msk.f32.gmra.mxu0 %vm219_vm1, %v101_v48  ;;  %2735 = vmatmul.mubr.msk.f32.gmra.mxu1 %vm219_vm1, %v199_v49 }
  0xb4   :  { %2590 = vmatprep.mubr.msk.f32.mxu0 %vm219_vm1, %v102_v50  ;;  %2737 = vmatprep.mubr.msk.f32.mxu1 %vm219_vm1, %v200_v51 }
  0xb7   :  { %2591 = vmatmul.mubr.msk.f32.gmra.mxu0 %vm219_vm1, %v103_v52  ;;  %2738 = vmatmul.mubr.msk.f32.gmra.mxu1 %vm219_vm1, %v201_v53 }
  0xb8   :  { %2593 = vmatprep.mubr.msk.f32.mxu0 %vm219_vm1, %v104_v54  ;;  %2740 = vmatprep.mubr.msk.f32.mxu1 %vm219_vm1, %v202_v55 }
  0xbb   :  { %2594 = vmatmul.mubr.msk.f32.gmra.mxu0 %vm219_vm1, %v105_v56  ;;  %2741 = vmatmul.mubr.msk.f32.gmra.mxu1 %vm219_vm1, %v203_v57 }
  0xbc   :  { %2596 = vmatprep.mubr.msk.f32.mxu0 %vm219_vm1, %v106_v58  ;;  %2743 = vmatprep.mubr.msk.f32.mxu1 %vm219_vm1, %v204_v59 }
  0xbf   :  { %2597 = vmatmul.mubr.msk.f32.gmra.mxu0 %vm219_vm1, %v107_v60  ;;  %2744 = vmatmul.mubr.msk.f32.gmra.mxu1 %vm219_vm1, %v205_v61 }
  0xc0   :  { %2599 = vmatprep.mubr.msk.f32.mxu0 %vm219_vm1, %v108_v62  ;;  %2746 = vmatprep.mubr.msk.f32.mxu1 %vm219_vm1, %v206_v63 }
  0xc3   :  { %2600 = vmatmul.mubr.msk.f32.gmra.mxu0 %vm219_vm1, %v109_v0  ;;  %2747 = vmatmul.mubr.msk.f32.gmra.mxu1 %vm219_vm1, %v207_v1 }
  0xc4   :  { %2602 = vmatprep.mubr.msk.f32.mxu0 %vm219_vm1, %v110_v2  ;;  %2749 = vmatprep.mubr.msk.f32.mxu1 %vm219_vm1, %v208_v3 }
  0xc7   :  { %v2460_v7 = vpop.f32.mrf.mxu0  ;;  %2603 = vmatmul.mubr.msk.f32.gmra.mxu0 %vm219_vm1, %v111_v4  ;;  %v2607_v8 = vpop.f32.mrf.mxu1  ;;  %2750 = vmatmul.mubr.msk.f32.gmra.mxu1 %vm219_vm1, %v209_v5 }
  0xc8   :  { %v884_v9 = vadd.f32 %v2460_v7, %v3568_v6  ;;  %v1374_v10 = vadd.f32 %v2607_v8, %v3568_v6 }
  0xc9   :  { %v878_v11 = vpop.f32.mrf.mxu0  ;;  %v1368_v12 = vpop.f32.mrf.mxu1 }
  0xca   :  { %1859 = vst.msk [vmem:[%s4560_s3 + $0x8] sm:$0xff] %vm1857_vm2, %v884_v9  ;;  %1957 = vst.msk [vmem:[%s4560_s3 + $0x318] sm:$0xff] %vm1857_vm2, %v1374_v10  ;;  %v879_v13 = vadd.f32 %v3568_v6, %v878_v11  ;;  %v1369_v14 = vadd.f32 %v3568_v6, %v1368_v12 }
  0xcb   :  { %v2463_v15 = vpop.f32.mrf.mxu0  ;;  %v2610_v16 = vpop.f32.mrf.mxu1 }
  0xcc   :  { %1858 = vst.msk [vmem:[%s4560_s3] sm:$0xff] %vm1857_vm2, %v879_v13  ;;  %1956 = vst.msk [vmem:[%s4560_s3 + $0x310] sm:$0xff] %vm1857_vm2, %v1369_v14  ;;  %v894_v17 = vadd.f32 %v2463_v15, %v3568_v6  ;;  %v1384_v18 = vadd.f32 %v2610_v16, %v3568_v6 }
  0xcd   :  { %v888_v19 = vpop.f32.mrf.mxu0  ;;  %v1378_v20 = vpop.f32.mrf.mxu1 }
  0xce   :  { %1861 = vst.msk [vmem:[%s4560_s3 + $0x18] sm:$0xff] %vm1857_vm2, %v894_v17  ;;  %1959 = vst.msk [vmem:[%s4560_s3 + $0x328] sm:$0xff] %vm1857_vm2, %v1384_v18  ;;  %v889_v21 = vadd.f32 %v3568_v6, %v888_v19  ;;  %v1379_v22 = vadd.f32 %v3568_v6, %v1378_v20 }
  0xcf   :  { %v2466_v23 = vpop.f32.mrf.mxu0  ;;  %v2613_v24 = vpop.f32.mrf.mxu1 }
  0xd0   :  { %1860 = vst.msk [vmem:[%s4560_s3 + $0x10] sm:$0xff] %vm1857_vm2, %v889_v21  ;;  %1958 = vst.msk [vmem:[%s4560_s3 + $0x320] sm:$0xff] %vm1857_vm2, %v1379_v22  ;;  %v904_v25 = vadd.f32 %v2466_v23, %v3568_v6  ;;  %v1394_v26 = vadd.f32 %v2613_v24, %v3568_v6 }
  0xd1   :  { %v898_v27 = vpop.f32.mrf.mxu0  ;;  %v1388_v28 = vpop.f32.mrf.mxu1 }
  0xd2   :  { %1863 = vst.msk [vmem:[%s4560_s3 + $0x28] sm:$0xff] %vm1857_vm2, %v904_v25  ;;  %1961 = vst.msk [vmem:[%s4560_s3 + $0x338] sm:$0xff] %vm1857_vm2, %v1394_v26  ;;  %v899_v29 = vadd.f32 %v3568_v6, %v898_v27  ;;  %v1389_v30 = vadd.f32 %v3568_v6, %v1388_v28 }
  0xd3   :  { %v2469_v31 = vpop.f32.mrf.mxu0  ;;  %v2616_v32 = vpop.f32.mrf.mxu1 }
  0xd4   :  { %1862 = vst.msk [vmem:[%s4560_s3 + $0x20] sm:$0xff] %vm1857_vm2, %v899_v29  ;;  %1960 = vst.msk [vmem:[%s4560_s3 + $0x330] sm:$0xff] %vm1857_vm2, %v1389_v30  ;;  %v914_v33 = vadd.f32 %v2469_v31, %v3568_v6  ;;  %v1404_v34 = vadd.f32 %v2616_v32, %v3568_v6 }
  0xd5   :  { %v908_v35 = vpop.f32.mrf.mxu0  ;;  %v1398_v36 = vpop.f32.mrf.mxu1 }
  0xd6   :  { %1865 = vst.msk [vmem:[%s4560_s3 + $0x38] sm:$0xff] %vm1857_vm2, %v914_v33  ;;  %1963 = vst.msk [vmem:[%s4560_s3 + $0x348] sm:$0xff] %vm1857_vm2, %v1404_v34  ;;  %v909_v37 = vadd.f32 %v3568_v6, %v908_v35  ;;  %v1399_v38 = vadd.f32 %v3568_v6, %v1398_v36 }
  0xd7   :  { %v2472_v39 = vpop.f32.mrf.mxu0  ;;  %v2619_v40 = vpop.f32.mrf.mxu1 }
  0xd8   :  { %1864 = vst.msk [vmem:[%s4560_s3 + $0x30] sm:$0xff] %vm1857_vm2, %v909_v37  ;;  %1962 = vst.msk [vmem:[%s4560_s3 + $0x340] sm:$0xff] %vm1857_vm2, %v1399_v38  ;;  %v924_v41 = vadd.f32 %v2472_v39, %v3568_v6  ;;  %v1414_v42 = vadd.f32 %v2619_v40, %v3568_v6 }
  0xd9   :  { %v918_v43 = vpop.f32.mrf.mxu0  ;;  %v1408_v44 = vpop.f32.mrf.mxu1 }
  0xda   :  { %1867 = vst.msk [vmem:[%s4560_s3 + $0x48] sm:$0xff] %vm1857_vm2, %v924_v41  ;;  %1965 = vst.msk [vmem:[%s4560_s3 + $0x358] sm:$0xff] %vm1857_vm2, %v1414_v42  ;;  %v919_v45 = vadd.f32 %v3568_v6, %v918_v43  ;;  %v1409_v46 = vadd.f32 %v3568_v6, %v1408_v44 }
  0xdb   :  { %v2475_v47 = vpop.f32.mrf.mxu0  ;;  %v2622_v48 = vpop.f32.mrf.mxu1 }
  0xdc   :  { %1866 = vst.msk [vmem:[%s4560_s3 + $0x40] sm:$0xff] %vm1857_vm2, %v919_v45  ;;  %1964 = vst.msk [vmem:[%s4560_s3 + $0x350] sm:$0xff] %vm1857_vm2, %v1409_v46  ;;  %v934_v49 = vadd.f32 %v2475_v47, %v3568_v6  ;;  %v1424_v50 = vadd.f32 %v2622_v48, %v3568_v6 }
  0xdd   :  { %v928_v51 = vpop.f32.mrf.mxu0  ;;  %v1418_v52 = vpop.f32.mrf.mxu1 }
  0xde   :  { %1869 = vst.msk [vmem:[%s4560_s3 + $0x58] sm:$0xff] %vm1857_vm2, %v934_v49  ;;  %1967 = vst.msk [vmem:[%s4560_s3 + $0x368] sm:$0xff] %vm1857_vm2, %v1424_v50  ;;  %v929_v53 = vadd.f32 %v3568_v6, %v928_v51  ;;  %v1419_v54 = vadd.f32 %v3568_v6, %v1418_v52 }
  0xdf   :  { %v2478_v55 = vpop.f32.mrf.mxu0  ;;  %v2625_v56 = vpop.f32.mrf.mxu1 }
  0xe0   :  { %1868 = vst.msk [vmem:[%s4560_s3 + $0x50] sm:$0xff] %vm1857_vm2, %v929_v53  ;;  %1966 = vst.msk [vmem:[%s4560_s3 + $0x360] sm:$0xff] %vm1857_vm2, %v1419_v54  ;;  %v944_v57 = vadd.f32 %v2478_v55, %v3568_v6  ;;  %v1434_v58 = vadd.f32 %v2625_v56, %v3568_v6 }
  0xe1   :  { %v938_v59 = vpop.f32.mrf.mxu0  ;;  %v1428_v60 = vpop.f32.mrf.mxu1 }
  0xe2   :  { %1871 = vst.msk [vmem:[%s4560_s3 + $0x68] sm:$0xff] %vm1857_vm2, %v944_v57  ;;  %1969 = vst.msk [vmem:[%s4560_s3 + $0x378] sm:$0xff] %vm1857_vm2, %v1434_v58  ;;  %v939_v61 = vadd.f32 %v3568_v6, %v938_v59  ;;  %v1429_v62 = vadd.f32 %v3568_v6, %v1428_v60 }
  0xe3   :  { %v2481_v63 = vpop.f32.mrf.mxu0  ;;  %v2628_v0 = vpop.f32.mrf.mxu1 }
  0xe4   :  { %1870 = vst.msk [vmem:[%s4560_s3 + $0x60] sm:$0xff] %vm1857_vm2, %v939_v61  ;;  %1968 = vst.msk [vmem:[%s4560_s3 + $0x370] sm:$0xff] %vm1857_vm2, %v1429_v62  ;;  %v954_v1 = vadd.f32 %v2481_v63, %v3568_v6  ;;  %v1444_v2 = vadd.f32 %v2628_v0, %v3568_v6 }
  0xe5   :  { %v948_v3 = vpop.f32.mrf.mxu0  ;;  %v1438_v4 = vpop.f32.mrf.mxu1 }
  0xe6   :  { %1873 = vst.msk [vmem:[%s4560_s3 + $0x78] sm:$0xff] %vm1857_vm2, %v954_v1  ;;  %1971 = vst.msk [vmem:[%s4560_s3 + $0x388] sm:$0xff] %vm1857_vm2, %v1444_v2  ;;  %v949_v5 = vadd.f32 %v3568_v6, %v948_v3  ;;  %v1439_v7 = vadd.f32 %v3568_v6, %v1438_v4 }
  0xe7   :  { %v2484_v8 = vpop.f32.mrf.mxu0  ;;  %v2631_v9 = vpop.f32.mrf.mxu1 }
  0xe8   :  { %1872 = vst.msk [vmem:[%s4560_s3 + $0x70] sm:$0xff] %vm1857_vm2, %v949_v5  ;;  %1970 = vst.msk [vmem:[%s4560_s3 + $0x380] sm:$0xff] %vm1857_vm2, %v1439_v7  ;;  %v964_v10 = vadd.f32 %v2484_v8, %v3568_v6  ;;  %v1454_v11 = vadd.f32 %v2631_v9, %v3568_v6 }
  0xe9   :  { %v958_v12 = vpop.f32.mrf.mxu0  ;;  %v1448_v13 = vpop.f32.mrf.mxu1 }
  0xea   :  { %1875 = vst.msk [vmem:[%s4560_s3 + $0x88] sm:$0xff] %vm1857_vm2, %v964_v10  ;;  %1973 = vst.msk [vmem:[%s4560_s3 + $0x398] sm:$0xff] %vm1857_vm2, %v1454_v11  ;;  %v959_v14 = vadd.f32 %v3568_v6, %v958_v12  ;;  %v1449_v15 = vadd.f32 %v3568_v6, %v1448_v13 }
  0xeb   :  { %v2487_v16 = vpop.f32.mrf.mxu0  ;;  %v2634_v17 = vpop.f32.mrf.mxu1 }
  0xec   :  { %1874 = vst.msk [vmem:[%s4560_s3 + $0x80] sm:$0xff] %vm1857_vm2, %v959_v14  ;;  %1972 = vst.msk [vmem:[%s4560_s3 + $0x390] sm:$0xff] %vm1857_vm2, %v1449_v15  ;;  %v974_v18 = vadd.f32 %v2487_v16, %v3568_v6  ;;  %v1464_v19 = vadd.f32 %v2634_v17, %v3568_v6 }
  0xed   :  { %v968_v20 = vpop.f32.mrf.mxu0  ;;  %v1458_v21 = vpop.f32.mrf.mxu1 }
  0xee   :  { %1877 = vst.msk [vmem:[%s4560_s3 + $0x98] sm:$0xff] %vm1857_vm2, %v974_v18  ;;  %1975 = vst.msk [vmem:[%s4560_s3 + $0x3a8] sm:$0xff] %vm1857_vm2, %v1464_v19  ;;  %v969_v22 = vadd.f32 %v3568_v6, %v968_v20  ;;  %v1459_v23 = vadd.f32 %v3568_v6, %v1458_v21 }
  0xef   :  { %v2490_v24 = vpop.f32.mrf.mxu0  ;;  %v2637_v25 = vpop.f32.mrf.mxu1 }
  0xf0   :  { %1876 = vst.msk [vmem:[%s4560_s3 + $0x90] sm:$0xff] %vm1857_vm2, %v969_v22  ;;  %1974 = vst.msk [vmem:[%s4560_s3 + $0x3a0] sm:$0xff] %vm1857_vm2, %v1459_v23  ;;  %v984_v26 = vadd.f32 %v2490_v24, %v3568_v6  ;;  %v1474_v27 = vadd.f32 %v2637_v25, %v3568_v6 }
  0xf1   :  { %v978_v28 = vpop.f32.mrf.mxu0  ;;  %v1468_v29 = vpop.f32.mrf.mxu1 }
  0xf2   :  { %1879 = vst.msk [vmem:[%s4560_s3 + $0xa8] sm:$0xff] %vm1857_vm2, %v984_v26  ;;  %1977 = vst.msk [vmem:[%s4560_s3 + $0x3b8] sm:$0xff] %vm1857_vm2, %v1474_v27  ;;  %v979_v30 = vadd.f32 %v3568_v6, %v978_v28  ;;  %v1469_v31 = vadd.f32 %v3568_v6, %v1468_v29 }
  0xf3   :  { %v2493_v32 = vpop.f32.mrf.mxu0  ;;  %v2640_v33 = vpop.f32.mrf.mxu1 }
  0xf4   :  { %1878 = vst.msk [vmem:[%s4560_s3 + $0xa0] sm:$0xff] %vm1857_vm2, %v979_v30  ;;  %1976 = vst.msk [vmem:[%s4560_s3 + $0x3b0] sm:$0xff] %vm1857_vm2, %v1469_v31  ;;  %v994_v34 = vadd.f32 %v2493_v32, %v3568_v6  ;;  %v1484_v35 = vadd.f32 %v2640_v33, %v3568_v6 }
  0xf5   :  { %v988_v36 = vpop.f32.mrf.mxu0  ;;  %v1478_v37 = vpop.f32.mrf.mxu1 }
  0xf6   :  { %1881 = vst.msk [vmem:[%s4560_s3 + $0xb8] sm:$0xff] %vm1857_vm2, %v994_v34  ;;  %1979 = vst.msk [vmem:[%s4560_s3 + $0x3c8] sm:$0xff] %vm1857_vm2, %v1484_v35  ;;  %v989_v38 = vadd.f32 %v3568_v6, %v988_v36  ;;  %v1479_v39 = vadd.f32 %v3568_v6, %v1478_v37 }
  0xf7   :  { %v2496_v40 = vpop.f32.mrf.mxu0  ;;  %v2643_v41 = vpop.f32.mrf.mxu1 }
  0xf8   :  { %1880 = vst.msk [vmem:[%s4560_s3 + $0xb0] sm:$0xff] %vm1857_vm2, %v989_v38  ;;  %1978 = vst.msk [vmem:[%s4560_s3 + $0x3c0] sm:$0xff] %vm1857_vm2, %v1479_v39  ;;  %v1004_v42 = vadd.f32 %v2496_v40, %v3568_v6  ;;  %v1494_v43 = vadd.f32 %v2643_v41, %v3568_v6 }
  0xf9   :  { %v998_v44 = vpop.f32.mrf.mxu0  ;;  %v1488_v45 = vpop.f32.mrf.mxu1 }
  0xfa   :  { %1883 = vst.msk [vmem:[%s4560_s3 + $0xc8] sm:$0xff] %vm1857_vm2, %v1004_v42  ;;  %1981 = vst.msk [vmem:[%s4560_s3 + $0x3d8] sm:$0xff] %vm1857_vm2, %v1494_v43  ;;  %v999_v46 = vadd.f32 %v3568_v6, %v998_v44  ;;  %v1489_v47 = vadd.f32 %v3568_v6, %v1488_v45 }
  0xfb   :  { %v2499_v48 = vpop.f32.mrf.mxu0  ;;  %v2646_v49 = vpop.f32.mrf.mxu1 }
  0xfc   :  { %1882 = vst.msk [vmem:[%s4560_s3 + $0xc0] sm:$0xff] %vm1857_vm2, %v999_v46  ;;  %1980 = vst.msk [vmem:[%s4560_s3 + $0x3d0] sm:$0xff] %vm1857_vm2, %v1489_v47  ;;  %v1014_v50 = vadd.f32 %v2499_v48, %v3568_v6  ;;  %v1504_v51 = vadd.f32 %v2646_v49, %v3568_v6 }
  0xfd   :  { %v1008_v52 = vpop.f32.mrf.mxu0  ;;  %v1498_v53 = vpop.f32.mrf.mxu1 }
  0xfe   :  { %1885 = vst.msk [vmem:[%s4560_s3 + $0xd8] sm:$0xff] %vm1857_vm2, %v1014_v50  ;;  %1983 = vst.msk [vmem:[%s4560_s3 + $0x3e8] sm:$0xff] %vm1857_vm2, %v1504_v51  ;;  %v1009_v54 = vadd.f32 %v3568_v6, %v1008_v52  ;;  %v1499_v55 = vadd.f32 %v3568_v6, %v1498_v53 }
  0xff   :  { %v2502_v56 = vpop.f32.mrf.mxu0  ;;  %v2649_v57 = vpop.f32.mrf.mxu1 }
 0x100   :  { %1884 = vst.msk [vmem:[%s4560_s3 + $0xd0] sm:$0xff] %vm1857_vm2, %v1009_v54  ;;  %1982 = vst.msk [vmem:[%s4560_s3 + $0x3e0] sm:$0xff] %vm1857_vm2, %v1499_v55  ;;  %v1024_v58 = vadd.f32 %v2502_v56, %v3568_v6  ;;  %v1514_v59 = vadd.f32 %v2649_v57, %v3568_v6 }
 0x101   :  { %v1018_v60 = vpop.f32.mrf.mxu0  ;;  %v1508_v61 = vpop.f32.mrf.mxu1 }
 0x102   :  { %1887 = vst.msk [vmem:[%s4560_s3 + $0xe8] sm:$0xff] %vm1857_vm2, %v1024_v58  ;;  %1985 = vst.msk [vmem:[%s4560_s3 + $0x3f8] sm:$0xff] %vm1857_vm2, %v1514_v59  ;;  %v1019_v62 = vadd.f32 %v3568_v6, %v1018_v60  ;;  %v1509_v63 = vadd.f32 %v3568_v6, %v1508_v61 }
 0x103   :  { %v2505_v0 = vpop.f32.mrf.mxu0  ;;  %v2652_v1 = vpop.f32.mrf.mxu1 }
 0x104   :  { %1886 = vst.msk [vmem:[%s4560_s3 + $0xe0] sm:$0xff] %vm1857_vm2, %v1019_v62  ;;  %1984 = vst.msk [vmem:[%s4560_s3 + $0x3f0] sm:$0xff] %vm1857_vm2, %v1509_v63  ;;  %v1034_v2 = vadd.f32 %v2505_v0, %v3568_v6  ;;  %v1524_v3 = vadd.f32 %v2652_v1, %v3568_v6 }
 0x105   :  { %v1028_v4 = vpop.f32.mrf.mxu0  ;;  %v1518_v5 = vpop.f32.mrf.mxu1 }
 0x106   :  { %1889 = vst.msk [vmem:[%s4560_s3 + $0xf8] sm:$0xff] %vm1857_vm2, %v1034_v2  ;;  %1987 = vst.msk [vmem:[%s4560_s3 + $0x408] sm:$0xff] %vm1857_vm2, %v1524_v3  ;;  %v1029_v7 = vadd.f32 %v3568_v6, %v1028_v4  ;;  %v1519_v8 = vadd.f32 %v3568_v6, %v1518_v5 }
 0x107   :  { %v2508_v9 = vpop.f32.mrf.mxu0  ;;  %v2655_v10 = vpop.f32.mrf.mxu1 }
 0x108   :  { %1888 = vst.msk [vmem:[%s4560_s3 + $0xf0] sm:$0xff] %vm1857_vm2, %v1029_v7  ;;  %1986 = vst.msk [vmem:[%s4560_s3 + $0x400] sm:$0xff] %vm1857_vm2, %v1519_v8  ;;  %v1044_v11 = vadd.f32 %v2508_v9, %v3568_v6  ;;  %v1534_v12 = vadd.f32 %v2655_v10, %v3568_v6 }
 0x109   :  { %v1038_v13 = vpop.f32.mrf.mxu0  ;;  %v1528_v14 = vpop.f32.mrf.mxu1 }
 0x10a   :  { %1891 = vst.msk [vmem:[%s4560_s3 + $0x108] sm:$0xff] %vm1857_vm2, %v1044_v11  ;;  %1989 = vst.msk [vmem:[%s4560_s3 + $0x418] sm:$0xff] %vm1857_vm2, %v1534_v12  ;;  %v1039_v15 = vadd.f32 %v3568_v6, %v1038_v13  ;;  %v1529_v16 = vadd.f32 %v3568_v6, %v1528_v14 }
 0x10b   :  { %v2511_v17 = vpop.f32.mrf.mxu0  ;;  %v2658_v18 = vpop.f32.mrf.mxu1 }
 0x10c   :  { %1890 = vst.msk [vmem:[%s4560_s3 + $0x100] sm:$0xff] %vm1857_vm2, %v1039_v15  ;;  %1988 = vst.msk [vmem:[%s4560_s3 + $0x410] sm:$0xff] %vm1857_vm2, %v1529_v16  ;;  %v1054_v19 = vadd.f32 %v2511_v17, %v3568_v6  ;;  %v1544_v20 = vadd.f32 %v2658_v18, %v3568_v6 }
 0x10d   :  { %v1048_v21 = vpop.f32.mrf.mxu0  ;;  %v1538_v22 = vpop.f32.mrf.mxu1 }
 0x10e   :  { %1893 = vst.msk [vmem:[%s4560_s3 + $0x118] sm:$0xff] %vm1857_vm2, %v1054_v19  ;;  %1991 = vst.msk [vmem:[%s4560_s3 + $0x428] sm:$0xff] %vm1857_vm2, %v1544_v20  ;;  %v1049_v23 = vadd.f32 %v3568_v6, %v1048_v21  ;;  %v1539_v24 = vadd.f32 %v3568_v6, %v1538_v22 }
 0x10f   :  { %v2514_v25 = vpop.f32.mrf.mxu0  ;;  %v2661_v26 = vpop.f32.mrf.mxu1 }
 0x110   :  { %1892 = vst.msk [vmem:[%s4560_s3 + $0x110] sm:$0xff] %vm1857_vm2, %v1049_v23  ;;  %1990 = vst.msk [vmem:[%s4560_s3 + $0x420] sm:$0xff] %vm1857_vm2, %v1539_v24  ;;  %v1064_v27 = vadd.f32 %v2514_v25, %v3568_v6  ;;  %v1554_v28 = vadd.f32 %v2661_v26, %v3568_v6 }
 0x111   :  { %v1058_v29 = vpop.f32.mrf.mxu0  ;;  %v1548_v30 = vpop.f32.mrf.mxu1 }
 0x112   :  { %1895 = vst.msk [vmem:[%s4560_s3 + $0x128] sm:$0xff] %vm1857_vm2, %v1064_v27  ;;  %1993 = vst.msk [vmem:[%s4560_s3 + $0x438] sm:$0xff] %vm1857_vm2, %v1554_v28  ;;  %v1059_v31 = vadd.f32 %v3568_v6, %v1058_v29  ;;  %v1549_v32 = vadd.f32 %v3568_v6, %v1548_v30 }
 0x113   :  { %v2517_v33 = vpop.f32.mrf.mxu0  ;;  %v2664_v34 = vpop.f32.mrf.mxu1 }
 0x114   :  { %1894 = vst.msk [vmem:[%s4560_s3 + $0x120] sm:$0xff] %vm1857_vm2, %v1059_v31  ;;  %1992 = vst.msk [vmem:[%s4560_s3 + $0x430] sm:$0xff] %vm1857_vm2, %v1549_v32  ;;  %v1074_v35 = vadd.f32 %v2517_v33, %v3568_v6  ;;  %v1564_v36 = vadd.f32 %v2664_v34, %v3568_v6 }
 0x115   :  { %v1068_v37 = vpop.f32.mrf.mxu0  ;;  %v1558_v38 = vpop.f32.mrf.mxu1 }
 0x116   :  { %1897 = vst.msk [vmem:[%s4560_s3 + $0x138] sm:$0xff] %vm1857_vm2, %v1074_v35  ;;  %1995 = vst.msk [vmem:[%s4560_s3 + $0x448] sm:$0xff] %vm1857_vm2, %v1564_v36  ;;  %v1069_v39 = vadd.f32 %v3568_v6, %v1068_v37  ;;  %v1559_v40 = vadd.f32 %v3568_v6, %v1558_v38 }
 0x117   :  { %v2520_v41 = vpop.f32.mrf.mxu0  ;;  %v2667_v42 = vpop.f32.mrf.mxu1 }
 0x118   :  { %1896 = vst.msk [vmem:[%s4560_s3 + $0x130] sm:$0xff] %vm1857_vm2, %v1069_v39  ;;  %1994 = vst.msk [vmem:[%s4560_s3 + $0x440] sm:$0xff] %vm1857_vm2, %v1559_v40  ;;  %v1084_v43 = vadd.f32 %v2520_v41, %v3568_v6  ;;  %v1574_v44 = vadd.f32 %v2667_v42, %v3568_v6 }
 0x119   :  { %v1078_v45 = vpop.f32.mrf.mxu0  ;;  %v1568_v46 = vpop.f32.mrf.mxu1 }
 0x11a   :  { %1899 = vst.msk [vmem:[%s4560_s3 + $0x148] sm:$0xff] %vm1857_vm2, %v1084_v43  ;;  %1997 = vst.msk [vmem:[%s4560_s3 + $0x458] sm:$0xff] %vm1857_vm2, %v1574_v44  ;;  %v1079_v47 = vadd.f32 %v3568_v6, %v1078_v45  ;;  %v1569_v48 = vadd.f32 %v3568_v6, %v1568_v46 }
 0x11b   :  { %v2523_v49 = vpop.f32.mrf.mxu0  ;;  %v2670_v50 = vpop.f32.mrf.mxu1 }
 0x11c   :  { %1898 = vst.msk [vmem:[%s4560_s3 + $0x140] sm:$0xff] %vm1857_vm2, %v1079_v47  ;;  %1996 = vst.msk [vmem:[%s4560_s3 + $0x450] sm:$0xff] %vm1857_vm2, %v1569_v48  ;;  %v1094_v51 = vadd.f32 %v2523_v49, %v3568_v6  ;;  %v1584_v52 = vadd.f32 %v2670_v50, %v3568_v6 }
 0x11d   :  { %v1088_v53 = vpop.f32.mrf.mxu0  ;;  %v1578_v54 = vpop.f32.mrf.mxu1 }
 0x11e   :  { %1901 = vst.msk [vmem:[%s4560_s3 + $0x158] sm:$0xff] %vm1857_vm2, %v1094_v51  ;;  %1999 = vst.msk [vmem:[%s4560_s3 + $0x468] sm:$0xff] %vm1857_vm2, %v1584_v52  ;;  %v1089_v55 = vadd.f32 %v3568_v6, %v1088_v53  ;;  %v1579_v56 = vadd.f32 %v3568_v6, %v1578_v54 }
 0x11f   :  { %v2526_v57 = vpop.f32.mrf.mxu0  ;;  %v2673_v58 = vpop.f32.mrf.mxu1 }
 0x120   :  { %1900 = vst.msk [vmem:[%s4560_s3 + $0x150] sm:$0xff] %vm1857_vm2, %v1089_v55  ;;  %1998 = vst.msk [vmem:[%s4560_s3 + $0x460] sm:$0xff] %vm1857_vm2, %v1579_v56  ;;  %v1104_v59 = vadd.f32 %v2526_v57, %v3568_v6  ;;  %v1594_v60 = vadd.f32 %v2673_v58, %v3568_v6 }
 0x121   :  { %v1098_v61 = vpop.f32.mrf.mxu0  ;;  %v1588_v62 = vpop.f32.mrf.mxu1 }
 0x122   :  { %1903 = vst.msk [vmem:[%s4560_s3 + $0x168] sm:$0xff] %vm1857_vm2, %v1104_v59  ;;  %2001 = vst.msk [vmem:[%s4560_s3 + $0x478] sm:$0xff] %vm1857_vm2, %v1594_v60  ;;  %v1099_v63 = vadd.f32 %v3568_v6, %v1098_v61  ;;  %v1589_v0 = vadd.f32 %v3568_v6, %v1588_v62 }
 0x123   :  { %v2529_v1 = vpop.f32.mrf.mxu0  ;;  %v2676_v2 = vpop.f32.mrf.mxu1 }
 0x124   :  { %1902 = vst.msk [vmem:[%s4560_s3 + $0x160] sm:$0xff] %vm1857_vm2, %v1099_v63  ;;  %2000 = vst.msk [vmem:[%s4560_s3 + $0x470] sm:$0xff] %vm1857_vm2, %v1589_v0  ;;  %v1114_v3 = vadd.f32 %v2529_v1, %v3568_v6  ;;  %v1604_v4 = vadd.f32 %v2676_v2, %v3568_v6 }
 0x125   :  { %v1108_v5 = vpop.f32.mrf.mxu0  ;;  %v1598_v7 = vpop.f32.mrf.mxu1 }
 0x126   :  { %1905 = vst.msk [vmem:[%s4560_s3 + $0x178] sm:$0xff] %vm1857_vm2, %v1114_v3  ;;  %2003 = vst.msk [vmem:[%s4560_s3 + $0x488] sm:$0xff] %vm1857_vm2, %v1604_v4  ;;  %v1109_v8 = vadd.f32 %v3568_v6, %v1108_v5  ;;  %v1599_v9 = vadd.f32 %v3568_v6, %v1598_v7 }
 0x127   :  { %v2532_v10 = vpop.f32.mrf.mxu0  ;;  %v2679_v11 = vpop.f32.mrf.mxu1 }
 0x128   :  { %1904 = vst.msk [vmem:[%s4560_s3 + $0x170] sm:$0xff] %vm1857_vm2, %v1109_v8  ;;  %2002 = vst.msk [vmem:[%s4560_s3 + $0x480] sm:$0xff] %vm1857_vm2, %v1599_v9  ;;  %v1124_v12 = vadd.f32 %v2532_v10, %v3568_v6  ;;  %v1614_v13 = vadd.f32 %v2679_v11, %v3568_v6 }
 0x129   :  { %v1118_v14 = vpop.f32.mrf.mxu0  ;;  %v1608_v15 = vpop.f32.mrf.mxu1 }
 0x12a   :  { %1907 = vst.msk [vmem:[%s4560_s3 + $0x188] sm:$0xff] %vm1857_vm2, %v1124_v12  ;;  %2005 = vst.msk [vmem:[%s4560_s3 + $0x498] sm:$0xff] %vm1857_vm2, %v1614_v13  ;;  %v1119_v16 = vadd.f32 %v3568_v6, %v1118_v14  ;;  %v1609_v17 = vadd.f32 %v3568_v6, %v1608_v15 }
 0x12b   :  { %v2535_v18 = vpop.f32.mrf.mxu0  ;;  %v2682_v19 = vpop.f32.mrf.mxu1 }
 0x12c   :  { %1906 = vst.msk [vmem:[%s4560_s3 + $0x180] sm:$0xff] %vm1857_vm2, %v1119_v16  ;;  %2004 = vst.msk [vmem:[%s4560_s3 + $0x490] sm:$0xff] %vm1857_vm2, %v1609_v17  ;;  %v1134_v20 = vadd.f32 %v2535_v18, %v3568_v6  ;;  %v1624_v21 = vadd.f32 %v2682_v19, %v3568_v6 }
 0x12d   :  { %v1128_v22 = vpop.f32.mrf.mxu0  ;;  %v1618_v23 = vpop.f32.mrf.mxu1 }
 0x12e   :  { %1909 = vst.msk [vmem:[%s4560_s3 + $0x198] sm:$0xff] %vm1857_vm2, %v1134_v20  ;;  %2007 = vst.msk [vmem:[%s4560_s3 + $0x4a8] sm:$0xff] %vm1857_vm2, %v1624_v21  ;;  %v1129_v24 = vadd.f32 %v3568_v6, %v1128_v22  ;;  %v1619_v25 = vadd.f32 %v3568_v6, %v1618_v23 }
 0x12f   :  { %v2538_v26 = vpop.f32.mrf.mxu0  ;;  %v2685_v27 = vpop.f32.mrf.mxu1 }
 0x130   :  { %1908 = vst.msk [vmem:[%s4560_s3 + $0x190] sm:$0xff] %vm1857_vm2, %v1129_v24  ;;  %2006 = vst.msk [vmem:[%s4560_s3 + $0x4a0] sm:$0xff] %vm1857_vm2, %v1619_v25  ;;  %v1144_v28 = vadd.f32 %v2538_v26, %v3568_v6  ;;  %v1634_v29 = vadd.f32 %v2685_v27, %v3568_v6 }
 0x131   :  { %v1138_v30 = vpop.f32.mrf.mxu0  ;;  %v1628_v31 = vpop.f32.mrf.mxu1 }
 0x132   :  { %1911 = vst.msk [vmem:[%s4560_s3 + $0x1a8] sm:$0xff] %vm1857_vm2, %v1144_v28  ;;  %2009 = vst.msk [vmem:[%s4560_s3 + $0x4b8] sm:$0xff] %vm1857_vm2, %v1634_v29  ;;  %v1139_v32 = vadd.f32 %v3568_v6, %v1138_v30  ;;  %v1629_v33 = vadd.f32 %v3568_v6, %v1628_v31 }
 0x133   :  { %v2541_v34 = vpop.f32.mrf.mxu0  ;;  %v2688_v35 = vpop.f32.mrf.mxu1 }
 0x134   :  { %1910 = vst.msk [vmem:[%s4560_s3 + $0x1a0] sm:$0xff] %vm1857_vm2, %v1139_v32  ;;  %2008 = vst.msk [vmem:[%s4560_s3 + $0x4b0] sm:$0xff] %vm1857_vm2, %v1629_v33  ;;  %v1154_v36 = vadd.f32 %v2541_v34, %v3568_v6  ;;  %v1644_v37 = vadd.f32 %v2688_v35, %v3568_v6 }
 0x135   :  { %v1148_v38 = vpop.f32.mrf.mxu0  ;;  %v1638_v39 = vpop.f32.mrf.mxu1 }
 0x136   :  { %1913 = vst.msk [vmem:[%s4560_s3 + $0x1b8] sm:$0xff] %vm1857_vm2, %v1154_v36  ;;  %2011 = vst.msk [vmem:[%s4560_s3 + $0x4c8] sm:$0xff] %vm1857_vm2, %v1644_v37  ;;  %v1149_v40 = vadd.f32 %v3568_v6, %v1148_v38  ;;  %v1639_v41 = vadd.f32 %v3568_v6, %v1638_v39 }
 0x137   :  { %v2544_v42 = vpop.f32.mrf.mxu0  ;;  %v2691_v43 = vpop.f32.mrf.mxu1 }
 0x138   :  { %1912 = vst.msk [vmem:[%s4560_s3 + $0x1b0] sm:$0xff] %vm1857_vm2, %v1149_v40  ;;  %2010 = vst.msk [vmem:[%s4560_s3 + $0x4c0] sm:$0xff] %vm1857_vm2, %v1639_v41  ;;  %v1164_v44 = vadd.f32 %v2544_v42, %v3568_v6  ;;  %v1654_v45 = vadd.f32 %v2691_v43, %v3568_v6 }
 0x139   :  { %v1158_v46 = vpop.f32.mrf.mxu0  ;;  %v1648_v47 = vpop.f32.mrf.mxu1 }
 0x13a   :  { %1915 = vst.msk [vmem:[%s4560_s3 + $0x1c8] sm:$0xff] %vm1857_vm2, %v1164_v44  ;;  %2013 = vst.msk [vmem:[%s4560_s3 + $0x4d8] sm:$0xff] %vm1857_vm2, %v1654_v45  ;;  %v1159_v48 = vadd.f32 %v3568_v6, %v1158_v46  ;;  %v1649_v49 = vadd.f32 %v3568_v6, %v1648_v47 }
 0x13b   :  { %v2547_v50 = vpop.f32.mrf.mxu0  ;;  %v2694_v51 = vpop.f32.mrf.mxu1 }
 0x13c   :  { %1914 = vst.msk [vmem:[%s4560_s3 + $0x1c0] sm:$0xff] %vm1857_vm2, %v1159_v48  ;;  %2012 = vst.msk [vmem:[%s4560_s3 + $0x4d0] sm:$0xff] %vm1857_vm2, %v1649_v49  ;;  %v1174_v52 = vadd.f32 %v2547_v50, %v3568_v6  ;;  %v1664_v53 = vadd.f32 %v2694_v51, %v3568_v6 }
 0x13d   :  { %v1168_v54 = vpop.f32.mrf.mxu0  ;;  %v1658_v55 = vpop.f32.mrf.mxu1 }
 0x13e   :  { %1917 = vst.msk [vmem:[%s4560_s3 + $0x1d8] sm:$0xff] %vm1857_vm2, %v1174_v52  ;;  %2015 = vst.msk [vmem:[%s4560_s3 + $0x4e8] sm:$0xff] %vm1857_vm2, %v1664_v53  ;;  %v1169_v56 = vadd.f32 %v3568_v6, %v1168_v54  ;;  %v1659_v57 = vadd.f32 %v3568_v6, %v1658_v55 }
 0x13f   :  { %v2550_v58 = vpop.f32.mrf.mxu0  ;;  %v2697_v59 = vpop.f32.mrf.mxu1 }
 0x140   :  { %1916 = vst.msk [vmem:[%s4560_s3 + $0x1d0] sm:$0xff] %vm1857_vm2, %v1169_v56  ;;  %2014 = vst.msk [vmem:[%s4560_s3 + $0x4e0] sm:$0xff] %vm1857_vm2, %v1659_v57  ;;  %v1184_v60 = vadd.f32 %v2550_v58, %v3568_v6  ;;  %v1674_v61 = vadd.f32 %v2697_v59, %v3568_v6 }
 0x141   :  { %v1178_v62 = vpop.f32.mrf.mxu0  ;;  %v1668_v63 = vpop.f32.mrf.mxu1 }
 0x142   :  { %1919 = vst.msk [vmem:[%s4560_s3 + $0x1e8] sm:$0xff] %vm1857_vm2, %v1184_v60  ;;  %2017 = vst.msk [vmem:[%s4560_s3 + $0x4f8] sm:$0xff] %vm1857_vm2, %v1674_v61  ;;  %v1179_v0 = vadd.f32 %v3568_v6, %v1178_v62  ;;  %v1669_v1 = vadd.f32 %v3568_v6, %v1668_v63 }
 0x143   :  { %v2553_v2 = vpop.f32.mrf.mxu0  ;;  %v2700_v3 = vpop.f32.mrf.mxu1 }
 0x144   :  { %1918 = vst.msk [vmem:[%s4560_s3 + $0x1e0] sm:$0xff] %vm1857_vm2, %v1179_v0  ;;  %2016 = vst.msk [vmem:[%s4560_s3 + $0x4f0] sm:$0xff] %vm1857_vm2, %v1669_v1  ;;  %v1194_v4 = vadd.f32 %v2553_v2, %v3568_v6  ;;  %v1684_v5 = vadd.f32 %v2700_v3, %v3568_v6 }
 0x145   :  { %v1188_v7 = vpop.f32.mrf.mxu0  ;;  %v1678_v8 = vpop.f32.mrf.mxu1 }
 0x146   :  { %1921 = vst.msk [vmem:[%s4560_s3 + $0x1f8] sm:$0xff] %vm1857_vm2, %v1194_v4  ;;  %2019 = vst.msk [vmem:[%s4560_s3 + $0x508] sm:$0xff] %vm1857_vm2, %v1684_v5  ;;  %v1189_v9 = vadd.f32 %v3568_v6, %v1188_v7  ;;  %v1679_v10 = vadd.f32 %v3568_v6, %v1678_v8 }
 0x147   :  { %v2556_v11 = vpop.f32.mrf.mxu0  ;;  %v2703_v12 = vpop.f32.mrf.mxu1 }
 0x148   :  { %1920 = vst.msk [vmem:[%s4560_s3 + $0x1f0] sm:$0xff] %vm1857_vm2, %v1189_v9  ;;  %2018 = vst.msk [vmem:[%s4560_s3 + $0x500] sm:$0xff] %vm1857_vm2, %v1679_v10  ;;  %v1204_v13 = vadd.f32 %v2556_v11, %v3568_v6  ;;  %v1694_v14 = vadd.f32 %v2703_v12, %v3568_v6 }
 0x149   :  { %v1198_v15 = vpop.f32.mrf.mxu0  ;;  %v1688_v16 = vpop.f32.mrf.mxu1 }
 0x14a   :  { %1923 = vst.msk [vmem:[%s4560_s3 + $0x208] sm:$0xff] %vm1857_vm2, %v1204_v13  ;;  %2021 = vst.msk [vmem:[%s4560_s3 + $0x518] sm:$0xff] %vm1857_vm2, %v1694_v14  ;;  %v1199_v17 = vadd.f32 %v3568_v6, %v1198_v15  ;;  %v1689_v18 = vadd.f32 %v3568_v6, %v1688_v16 }
 0x14b   :  { %v2559_v19 = vpop.f32.mrf.mxu0  ;;  %v2706_v20 = vpop.f32.mrf.mxu1 }
 0x14c   :  { %1922 = vst.msk [vmem:[%s4560_s3 + $0x200] sm:$0xff] %vm1857_vm2, %v1199_v17  ;;  %2020 = vst.msk [vmem:[%s4560_s3 + $0x510] sm:$0xff] %vm1857_vm2, %v1689_v18  ;;  %v1214_v21 = vadd.f32 %v2559_v19, %v3568_v6  ;;  %v1704_v22 = vadd.f32 %v2706_v20, %v3568_v6 }
 0x14d   :  { %v1208_v23 = vpop.f32.mrf.mxu0  ;;  %v1698_v24 = vpop.f32.mrf.mxu1 }
 0x14e   :  { %1925 = vst.msk [vmem:[%s4560_s3 + $0x218] sm:$0xff] %vm1857_vm2, %v1214_v21  ;;  %2023 = vst.msk [vmem:[%s4560_s3 + $0x528] sm:$0xff] %vm1857_vm2, %v1704_v22  ;;  %v1209_v25 = vadd.f32 %v3568_v6, %v1208_v23  ;;  %v1699_v26 = vadd.f32 %v3568_v6, %v1698_v24 }
 0x14f   :  { %v2562_v27 = vpop.f32.mrf.mxu0  ;;  %v2709_v28 = vpop.f32.mrf.mxu1 }
 0x150   :  { %1924 = vst.msk [vmem:[%s4560_s3 + $0x210] sm:$0xff] %vm1857_vm2, %v1209_v25  ;;  %2022 = vst.msk [vmem:[%s4560_s3 + $0x520] sm:$0xff] %vm1857_vm2, %v1699_v26  ;;  %v1224_v29 = vadd.f32 %v2562_v27, %v3568_v6  ;;  %v1714_v30 = vadd.f32 %v2709_v28, %v3568_v6 }
 0x151   :  { %v1218_v31 = vpop.f32.mrf.mxu0  ;;  %v1708_v32 = vpop.f32.mrf.mxu1 }
 0x152   :  { %1927 = vst.msk [vmem:[%s4560_s3 + $0x228] sm:$0xff] %vm1857_vm2, %v1224_v29  ;;  %2025 = vst.msk [vmem:[%s4560_s3 + $0x538] sm:$0xff] %vm1857_vm2, %v1714_v30  ;;  %v1219_v33 = vadd.f32 %v3568_v6, %v1218_v31  ;;  %v1709_v34 = vadd.f32 %v3568_v6, %v1708_v32  ;;  %v4416_v31 = vld [vmem:[%s4559_s2] ss:$0 sm:$0xff] }
 0x153   :  { %v2565_v35 = vpop.f32.mrf.mxu0  ;;  %v2712_v36 = vpop.f32.mrf.mxu1 }
 0x154   :  { %1926 = vst.msk [vmem:[%s4560_s3 + $0x220] sm:$0xff] %vm1857_vm2, %v1219_v33  ;;  %2024 = vst.msk [vmem:[%s4560_s3 + $0x530] sm:$0xff] %vm1857_vm2, %v1709_v34  ;;  %v1234_v37 = vadd.f32 %v2565_v35, %v3568_v6  ;;  %v1724_v38 = vadd.f32 %v2712_v36, %v3568_v6 }
 0x155   :  { %v1228_v39 = vpop.f32.mrf.mxu0  ;;  %v1718_v40 = vpop.f32.mrf.mxu1 }
 0x156   :  { %1929 = vst.msk [vmem:[%s4560_s3 + $0x238] sm:$0xff] %vm1857_vm2, %v1234_v37  ;;  %2027 = vst.msk [vmem:[%s4560_s3 + $0x548] sm:$0xff] %vm1857_vm2, %v1724_v38  ;;  %v1229_v41 = vadd.f32 %v3568_v6, %v1228_v39  ;;  %v1719_v42 = vadd.f32 %v3568_v6, %v1718_v40 }
 0x157   :  { %v2568_v43 = vpop.f32.mrf.mxu0  ;;  %v2715_v44 = vpop.f32.mrf.mxu1 }
 0x158   :  { %1928 = vst.msk [vmem:[%s4560_s3 + $0x230] sm:$0xff] %vm1857_vm2, %v1229_v41  ;;  %2026 = vst.msk [vmem:[%s4560_s3 + $0x540] sm:$0xff] %vm1857_vm2, %v1719_v42  ;;  %v1244_v45 = vadd.f32 %v2568_v43, %v3568_v6  ;;  %v1734_v46 = vadd.f32 %v2715_v44, %v3568_v6 }
 0x159   :  { %v1238_v47 = vpop.f32.mrf.mxu0  ;;  %v1728_v48 = vpop.f32.mrf.mxu1 }
 0x15a   :  { %1931 = vst.msk [vmem:[%s4560_s3 + $0x248] sm:$0xff] %vm1857_vm2, %v1244_v45  ;;  %2029 = vst.msk [vmem:[%s4560_s3 + $0x558] sm:$0xff] %vm1857_vm2, %v1734_v46  ;;  %v1239_v49 = vadd.f32 %v3568_v6, %v1238_v47  ;;  %v1729_v50 = vadd.f32 %v3568_v6, %v1728_v48 }
 0x15b   :  { %v2571_v51 = vpop.f32.mrf.mxu0  ;;  %v2718_v52 = vpop.f32.mrf.mxu1 }
 0x15c   :  { %1930 = vst.msk [vmem:[%s4560_s3 + $0x240] sm:$0xff] %vm1857_vm2, %v1239_v49  ;;  %2028 = vst.msk [vmem:[%s4560_s3 + $0x550] sm:$0xff] %vm1857_vm2, %v1729_v50  ;;  %v1254_v53 = vadd.f32 %v2571_v51, %v3568_v6  ;;  %v1744_v54 = vadd.f32 %v2718_v52, %v3568_v6 }
 0x15d   :  { %v1248_v55 = vpop.f32.mrf.mxu0  ;;  %v1738_v56 = vpop.f32.mrf.mxu1 }
 0x15e   :  { %1933 = vst.msk [vmem:[%s4560_s3 + $0x258] sm:$0xff] %vm1857_vm2, %v1254_v53  ;;  %2031 = vst.msk [vmem:[%s4560_s3 + $0x568] sm:$0xff] %vm1857_vm2, %v1744_v54  ;;  %v1249_v57 = vadd.f32 %v3568_v6, %v1248_v55  ;;  %v1739_v58 = vadd.f32 %v3568_v6, %v1738_v56 }
 0x15f   :  { %v2574_v59 = vpop.f32.mrf.mxu0  ;;  %v2721_v60 = vpop.f32.mrf.mxu1 }
 0x160   :  { %1932 = vst.msk [vmem:[%s4560_s3 + $0x250] sm:$0xff] %vm1857_vm2, %v1249_v57  ;;  %2030 = vst.msk [vmem:[%s4560_s3 + $0x560] sm:$0xff] %vm1857_vm2, %v1739_v58  ;;  %v1264_v61 = vadd.f32 %v2574_v59, %v3568_v6  ;;  %v1754_v62 = vadd.f32 %v2721_v60, %v3568_v6 }
 0x161   :  { %v1258_v63 = vpop.f32.mrf.mxu0  ;;  %v1748_v0 = vpop.f32.mrf.mxu1 }
 0x162   :  { %1935 = vst.msk [vmem:[%s4560_s3 + $0x268] sm:$0xff] %vm1857_vm2, %v1264_v61  ;;  %2033 = vst.msk [vmem:[%s4560_s3 + $0x578] sm:$0xff] %vm1857_vm2, %v1754_v62  ;;  %v1259_v1 = vadd.f32 %v3568_v6, %v1258_v63  ;;  %v1749_v2 = vadd.f32 %v3568_v6, %v1748_v0 }
 0x163   :  { %v2577_v3 = vpop.f32.mrf.mxu0  ;;  %v2724_v4 = vpop.f32.mrf.mxu1 }
 0x164   :  { %1934 = vst.msk [vmem:[%s4560_s3 + $0x260] sm:$0xff] %vm1857_vm2, %v1259_v1  ;;  %2032 = vst.msk [vmem:[%s4560_s3 + $0x570] sm:$0xff] %vm1857_vm2, %v1749_v2  ;;  %v1274_v5 = vadd.f32 %v2577_v3, %v3568_v6  ;;  %v1764_v7 = vadd.f32 %v2724_v4, %v3568_v6 }
 0x165   :  { %v1268_v8 = vpop.f32.mrf.mxu0  ;;  %v1758_v9 = vpop.f32.mrf.mxu1 }
 0x166   :  { %1937 = vst.msk [vmem:[%s4560_s3 + $0x278] sm:$0xff] %vm1857_vm2, %v1274_v5  ;;  %2035 = vst.msk [vmem:[%s4560_s3 + $0x588] sm:$0xff] %vm1857_vm2, %v1764_v7  ;;  %v1269_v10 = vadd.f32 %v3568_v6, %v1268_v8  ;;  %v1759_v11 = vadd.f32 %v3568_v6, %v1758_v9 }
 0x167   :  { %v2580_v12 = vpop.f32.mrf.mxu0  ;;  %v2727_v13 = vpop.f32.mrf.mxu1 }
 0x168   :  { %1936 = vst.msk [vmem:[%s4560_s3 + $0x270] sm:$0xff] %vm1857_vm2, %v1269_v10  ;;  %2034 = vst.msk [vmem:[%s4560_s3 + $0x580] sm:$0xff] %vm1857_vm2, %v1759_v11  ;;  %v1284_v14 = vadd.f32 %v2580_v12, %v3568_v6  ;;  %v1774_v15 = vadd.f32 %v2727_v13, %v3568_v6 }
 0x169   :  { %v1278_v16 = vpop.f32.mrf.mxu0  ;;  %v1768_v17 = vpop.f32.mrf.mxu1 }
 0x16a   :  { %1939 = vst.msk [vmem:[%s4560_s3 + $0x288] sm:$0xff] %vm1857_vm2, %v1284_v14  ;;  %2037 = vst.msk [vmem:[%s4560_s3 + $0x598] sm:$0xff] %vm1857_vm2, %v1774_v15  ;;  %v1279_v18 = vadd.f32 %v3568_v6, %v1278_v16  ;;  %v1769_v19 = vadd.f32 %v3568_v6, %v1768_v17 }
 0x16b   :  { %v2583_v20 = vpop.f32.mrf.mxu0  ;;  %v2730_v21 = vpop.f32.mrf.mxu1 }
 0x16c   :  { %1938 = vst.msk [vmem:[%s4560_s3 + $0x280] sm:$0xff] %vm1857_vm2, %v1279_v18  ;;  %2036 = vst.msk [vmem:[%s4560_s3 + $0x590] sm:$0xff] %vm1857_vm2, %v1769_v19  ;;  %v1294_v22 = vadd.f32 %v2583_v20, %v3568_v6  ;;  %v1784_v23 = vadd.f32 %v2730_v21, %v3568_v6 }
 0x16d   :  { %v1288_v24 = vpop.f32.mrf.mxu0  ;;  %v1778_v25 = vpop.f32.mrf.mxu1 }
 0x16e   :  { %1941 = vst.msk [vmem:[%s4560_s3 + $0x298] sm:$0xff] %vm1857_vm2, %v1294_v22  ;;  %2039 = vst.msk [vmem:[%s4560_s3 + $0x5a8] sm:$0xff] %vm1857_vm2, %v1784_v23  ;;  %v1289_v26 = vadd.f32 %v3568_v6, %v1288_v24  ;;  %v1779_v27 = vadd.f32 %v3568_v6, %v1778_v25 }
 0x16f   :  { %v2586_v28 = vpop.f32.mrf.mxu0  ;;  %v2733_v29 = vpop.f32.mrf.mxu1 }
 0x170   :  { %1940 = vst.msk [vmem:[%s4560_s3 + $0x290] sm:$0xff] %vm1857_vm2, %v1289_v26  ;;  %2038 = vst.msk [vmem:[%s4560_s3 + $0x5a0] sm:$0xff] %vm1857_vm2, %v1779_v27  ;;  %v1304_v30 = vadd.f32 %v2586_v28, %v3568_v6  ;;  %v1794_v32 = vadd.f32 %v4416_v31, %v2733_v29 }
 0x171   :  { %v1298_v33 = vpop.f32.mrf.mxu0  ;;  %v1788_v34 = vpop.f32.mrf.mxu1 }
 0x172   :  { %1943 = vst.msk [vmem:[%s4560_s3 + $0x2a8] sm:$0xff] %vm1857_vm2, %v1304_v30  ;;  %2041 = vst.msk [vmem:[%s4560_s3 + $0x5b8] sm:$0xff] %vm1857_vm2, %v1794_v32  ;;  %v1299_v6 = vadd.f32 %v4416_v31, %v1298_v33  ;;  %v1789_v35 = vadd.f32 %v4416_v31, %v1788_v34 }
 0x173   :  { %v2589_v36 = vpop.f32.mrf.mxu0  ;;  %v2736_v37 = vpop.f32.mrf.mxu1 }
 0x174   :  { %1942 = vst.msk [vmem:[%s4560_s3 + $0x2a0] sm:$0xff] %vm1857_vm2, %v1299_v6  ;;  %2040 = vst.msk [vmem:[%s4560_s3 + $0x5b0] sm:$0xff] %vm1857_vm2, %v1789_v35  ;;  %v1314_v38 = vadd.f32 %v4416_v31, %v2589_v36  ;;  %v1804_v39 = vadd.f32 %v4416_v31, %v2736_v37 }
 0x175   :  { %v1308_v40 = vpop.f32.mrf.mxu0  ;;  %v1798_v41 = vpop.f32.mrf.mxu1 }
 0x176   :  { %1945 = vst.msk [vmem:[%s4560_s3 + $0x2b8] sm:$0xff] %vm1857_vm2, %v1314_v38  ;;  %2043 = vst.msk [vmem:[%s4560_s3 + $0x5c8] sm:$0xff] %vm1857_vm2, %v1804_v39  ;;  %v1309_v42 = vadd.f32 %v4416_v31, %v1308_v40  ;;  %v1799_v43 = vadd.f32 %v4416_v31, %v1798_v41 }
 0x177   :  { %v2592_v44 = vpop.f32.mrf.mxu0  ;;  %v2739_v45 = vpop.f32.mrf.mxu1 }
 0x178   :  { %1944 = vst.msk [vmem:[%s4560_s3 + $0x2b0] sm:$0xff] %vm1857_vm2, %v1309_v42  ;;  %2042 = vst.msk [vmem:[%s4560_s3 + $0x5c0] sm:$0xff] %vm1857_vm2, %v1799_v43  ;;  %v1324_v46 = vadd.f32 %v4416_v31, %v2592_v44  ;;  %v1814_v47 = vadd.f32 %v4416_v31, %v2739_v45 }
 0x179   :  { %v1318_v48 = vpop.f32.mrf.mxu0  ;;  %v1808_v49 = vpop.f32.mrf.mxu1 }
 0x17a   :  { %1947 = vst.msk [vmem:[%s4560_s3 + $0x2c8] sm:$0xff] %vm1857_vm2, %v1324_v46  ;;  %2045 = vst.msk [vmem:[%s4560_s3 + $0x5d8] sm:$0xff] %vm1857_vm2, %v1814_v47  ;;  %v1319_v50 = vadd.f32 %v4416_v31, %v1318_v48  ;;  %v1809_v51 = vadd.f32 %v4416_v31, %v1808_v49 }
 0x17b   :  { %v2595_v52 = vpop.f32.mrf.mxu0  ;;  %v2742_v53 = vpop.f32.mrf.mxu1 }
 0x17c   :  { %1946 = vst.msk [vmem:[%s4560_s3 + $0x2c0] sm:$0xff] %vm1857_vm2, %v1319_v50  ;;  %2044 = vst.msk [vmem:[%s4560_s3 + $0x5d0] sm:$0xff] %vm1857_vm2, %v1809_v51  ;;  %v1334_v54 = vadd.f32 %v4416_v31, %v2595_v52  ;;  %v1824_v55 = vadd.f32 %v4416_v31, %v2742_v53 }
 0x17d   :  { %v1328_v56 = vpop.f32.mrf.mxu0  ;;  %v1818_v57 = vpop.f32.mrf.mxu1 }
 0x17e   :  { %1949 = vst.msk [vmem:[%s4560_s3 + $0x2d8] sm:$0xff] %vm1857_vm2, %v1334_v54  ;;  %2047 = vst.msk [vmem:[%s4560_s3 + $0x5e8] sm:$0xff] %vm1857_vm2, %v1824_v55  ;;  %v1329_v58 = vadd.f32 %v4416_v31, %v1328_v56  ;;  %v1819_v59 = vadd.f32 %v4416_v31, %v1818_v57 }
 0x17f   :  { %v2598_v60 = vpop.f32.mrf.mxu0  ;;  %v2745_v61 = vpop.f32.mrf.mxu1 }
 0x180   :  { %1948 = vst.msk [vmem:[%s4560_s3 + $0x2d0] sm:$0xff] %vm1857_vm2, %v1329_v58  ;;  %2046 = vst.msk [vmem:[%s4560_s3 + $0x5e0] sm:$0xff] %vm1857_vm2, %v1819_v59  ;;  %v1344_v62 = vadd.f32 %v4416_v31, %v2598_v60  ;;  %v1834_v63 = vadd.f32 %v4416_v31, %v2745_v61 }
 0x181   :  { %v1338_v0 = vpop.f32.mrf.mxu0  ;;  %v1828_v1 = vpop.f32.mrf.mxu1 }
 0x182   :  { %1951 = vst.msk [vmem:[%s4560_s3 + $0x2e8] sm:$0xff] %vm1857_vm2, %v1344_v62  ;;  %2049 = vst.msk [vmem:[%s4560_s3 + $0x5f8] sm:$0xff] %vm1857_vm2, %v1834_v63  ;;  %v1339_v2 = vadd.f32 %v4416_v31, %v1338_v0  ;;  %v1829_v3 = vadd.f32 %v4416_v31, %v1828_v1 }
 0x183   :  { %v2601_v4 = vpop.f32.mrf.mxu0  ;;  %v2748_v5 = vpop.f32.mrf.mxu1 }
 0x184   :  { %1950 = vst.msk [vmem:[%s4560_s3 + $0x2e0] sm:$0xff] %vm1857_vm2, %v1339_v2  ;;  %2048 = vst.msk [vmem:[%s4560_s3 + $0x5f0] sm:$0xff] %vm1857_vm2, %v1829_v3  ;;  %v1354_v7 = vadd.f32 %v4416_v31, %v2601_v4  ;;  %v1844_v8 = vadd.f32 %v4416_v31, %v2748_v5 }
 0x185   :  { %v1348_v9 = vpop.f32.mrf.mxu0  ;;  %v1838_v10 = vpop.f32.mrf.mxu1 }
 0x186   :  { %1953 = vst.msk [vmem:[%s4560_s3 + $0x2f8] sm:$0xff] %vm1857_vm2, %v1354_v7  ;;  %2051 = vst.msk [vmem:[%s4560_s3 + $0x608] sm:$0xff] %vm1857_vm2, %v1844_v8  ;;  %v1349_v11 = vadd.f32 %v4416_v31, %v1348_v9  ;;  %v1839_v12 = vadd.f32 %v4416_v31, %v1838_v10 }
 0x187   :  { %v2604_v13 = vpop.f32.mrf.mxu0  ;;  %v2751_v14 = vpop.f32.mrf.mxu1 }
 0x188   :  { %1952 = vst.msk [vmem:[%s4560_s3 + $0x2f0] sm:$0xff] %vm1857_vm2, %v1349_v11  ;;  %2050 = vst.msk [vmem:[%s4560_s3 + $0x600] sm:$0xff] %vm1857_vm2, %v1839_v12  ;;  %v1364_v15 = vadd.f32 %v4416_v31, %v2604_v13  ;;  %v1854_v16 = vadd.f32 %v4416_v31, %v2751_v14 }
 0x189   :  { %v1358_v17 = vpop.f32.mrf.mxu0  ;;  %v1848_v18 = vpop.f32.mrf.mxu1 }
 0x18a   :  { %1955 = vst.msk [vmem:[%s4560_s3 + $0x308] sm:$0xff] %vm1857_vm2, %v1364_v15  ;;  %2053 = vst.msk [vmem:[%s4560_s3 + $0x618] sm:$0xff] %vm1857_vm2, %v1854_v16  ;;  %v1359_v19 = vadd.f32 %v4416_v31, %v1358_v17  ;;  %v1849_v20 = vadd.f32 %v4416_v31, %v1848_v18 }
 0x18c   :  { %1954 = vst.msk [vmem:[%s4560_s3 + $0x300] sm:$0xff] %vm1857_vm2, %v1359_v19  ;;  %2052 = vst.msk [vmem:[%s4560_s3 + $0x610] sm:$0xff] %vm1857_vm2, %v1849_v20 }

// kernel: tile.8
= control target key start
LH: loop header
LB: loop body
LE: loop exit
PB: predicated region body
PF: predicated region fallthrough
CT: control target
= control target key end

     0   :  { %s28_s0 = inlined_call_operand.vmem [shape: f32[64], index: 0, kind: input, shape index: {}]   ;;  %s29_s1 = inlined_call_operand.vmem [shape: f32[16,64], index: 1, kind: output, shape index: {}]  }
   0x1   :  { %v4_v0 = vld [vmem:[%s28_s0] ss:$0 sm:$0xff] }
   0x2   :  { %5 = vst [vmem:[%s29_s1] sm:$0xff] %v4_v0  ;;  %8 = vst [vmem:[%s29_s1 + $0x8] sm:$0xff] %v4_v0 }

// kernel: tile.9
= control target key start
LH: loop header
LB: loop body
LE: loop exit
PB: predicated region body
PF: predicated region fallthrough
CT: control target
= control target key end

     0   :  { %vm3_vm0 = vcmask 523264   ;;  %vm10_vm1 = vcmask 1048064   ;;  %s125_s0 = inlined_call_operand.vmem [shape: f32[16,64], index: 0, kind: input, shape index: {}]   ;;  %s126_s1 = inlined_call_operand.vmem [shape: f32[1,1024], index: 1, kind: output, shape index: {}]  }
   0x1   :  { %v75_v0 = vld [vmem:[%s125_s0 + $0x1] ss:$2 sm:$0xff]   ;;  %v2_v1 = vld [vmem:[%s125_s0] ss:$2 sm:$0xff]   ;;  %s84_s0 = smov 64  }
   0x2   :  { %8 = vrot.lane.b32.xlu0 %v75_v0, %s84_s0  ;;  %4 = vst.msk [vmem:[#allocation0] ss:$8 sm:$0xf] %vm3_vm0, %v2_v1   ;;  %5 = vst.msk [vmem:[#allocation0] ss:$8 sm:$0xf0] %vm3_vm0, %v2_v1  }
  0x74   :  { %v9_v2 = vpop.permute.xlu0 %8  }
  0x75   :  { %11 = vst.msk [vmem:[#allocation0] ss:$8 sm:$0xf] %vm10_vm1, %v9_v2   ;;  %12 = vst.msk [vmem:[#allocation0] ss:$8 sm:$0xf0] %vm10_vm1, %v9_v2  }
  0x7c   :  { %v17_v3 = vld [vmem:[#allocation0] sm:$0x1]  ;;  %v22_v4 = vld [vmem:[#allocation0 + $0x8] sm:$0x1]  ;;  %v28_v5 = vld [vmem:[#allocation0 + $0x10] sm:$0x1] }
  0x7d   :  { %20 = vst [vmem:[%s126_s1] sm:$0x1] %v17_v3  ;;  %76 = vst [vmem:[%s126_s1 + $0x1] sm:$0x1] %v22_v4  ;;  %v35_v6 = vld [vmem:[#allocation0 + $0x18] sm:$0x1] }
  0x7e   :  { %77 = vst [vmem:[%s126_s1 + $0x2] sm:$0x1] %v28_v5  ;;  %v42_v7 = vld [vmem:[#allocation0 + $0x20] sm:$0x1]  ;;  %v49_v8 = vld [vmem:[#allocation0 + $0x28] sm:$0x1] }
  0x7f   :  { %78 = vst [vmem:[%s126_s1 + $0x3] sm:$0x1] %v35_v6  ;;  %79 = vst [vmem:[%s126_s1 + $0x4] sm:$0x1] %v42_v7  ;;  %v56_v9 = vld [vmem:[#allocation0 + $0x30] sm:$0x1] }
  0x80   :  { %80 = vst [vmem:[%s126_s1 + $0x5] sm:$0x1] %v49_v8  ;;  %v63_v10 = vld [vmem:[#allocation0 + $0x38] sm:$0x1]  ;;  %81 = vst [vmem:[%s126_s1 + $0x6] sm:$0x1] %v56_v9 }
  0x81   :  { %82 = vst [vmem:[%s126_s1 + $0x7] sm:$0x1] %v63_v10 }

// kernel: wu_spatial_cnn_forward.3
= control target key start
LH: loop header
LB: loop body
LE: loop exit
PB: predicated region body
PF: predicated region fallthrough
CT: control target
= control target key end

     0   :  { %19 = vsyncpa [#allocation7], 0  ;;  %s11240_s29 = smov 0   ;;  %s17432_s0 = inlined_call_operand.vmem [shape: f32[4,32,512], index: 0, kind: input, shape index: {}]   ;;  %s17433_s1 = inlined_call_operand.vmem [shape: bf16[512,1024], index: 1, kind: input, shape index: {}]   ;;  %s17434_s2 = inlined_call_operand.vmem [shape: bf16[512,1024], index: 2, kind: input, shape index: {}]   ;;  %s17435_s3 = inlined_call_operand.vmem [shape: bf16[512,1024], index: 3, kind: input, shape index: {}]   ;;  %s17436_s4 = inlined_call_operand.vmem [shape: f32[32,32], index: 4, kind: input, shape index: {}]   ;;  %s17437_s5 = inlined_call_operand.vmem [shape: f32[32,32], index: 5, kind: input, shape index: {}]   ;;  %s17438_s6 = inlined_call_operand.vmem [shape: f32[1,1024], index: 6, kind: input, shape index: {}]   ;;  %s17439_s7 = inlined_call_operand.vmem [shape: f32[14,32], index: 7, kind: input, shape index: {}]   ;;  %s17440_s8 = inlined_call_operand.vmem [shape: f32[1024,448], index: 8, kind: input, shape index: {}]   ;;  %s17441_s9 = inlined_call_operand.vmem [shape: f32[448,70], index: 9, kind: input, shape index: {}]   ;;  %s17442_s10 = inlined_call_operand.vmem [shape: f32[14,70], index: 10, kind: input, shape index: {}]   ;;  %s17443_s11 = inlined_call_operand.vmem [shape: f32[2,14], index: 11, kind: input, shape index: {}]   ;;  %s17444_s12 = inlined_call_operand.vmem [shape: f32[70,10], index: 12, kind: input, shape index: {}]   ;;  %s17445_s13 = inlined_call_operand.vmem [shape: f32[1,10], index: 13, kind: input, shape index: {}]   ;;  %s17446_s14 = inlined_call_operand.hbm [shape: f32[2,10], index: 14, kind: output, shape index: {}]  }
   0x1 LB: > { %s10060_s30 = sadd.s32 4294967295, %s11158_s29   ;;  %p10062_p0 = scmp.ge.s32.totalorder %s11158_s29, 1  ;;  %s11158_s29 = sphi %s11240_s29, %s25_s29  }
   0x2   : > { %p398_p1 = scmp.lt.s32.totalorder %s11158_s29, 5 }
   0x4   : > { %p399_p2 = pnand %p10062_p0, %p398_p1 }
   0x6   : > { %402 = sbr.rel (%p399_p2) target bundleno = 2499 (0x9c3), region = 76 }
   0xb   : > { %p10063_p3 = scmp.ne.s32.totalorder %s10060_s30, 0 }
   0xd   : > { %437 = sbr.rel (%p10063_p3) target bundleno = 68 (0x44), region = 80 }
  0x12   : > { %vm534_vm0 = vcmask 74752   ;;  %v11160_v0 = vmov 0.0  }
  0x13   : > { %438 = vst [vmem:[#allocation2 + $0xb0] sm:$0xff] %v11160_v0  ;;  %439 = vst [vmem:[#allocation2 + $0x1b0] sm:$0xff] %v11160_v0 }
  0x14   : > { %440 = vst [vmem:[#allocation2 + $0xd8] sm:$0xff] %v11160_v0  ;;  %441 = vst [vmem:[#allocation2 + $0x18] sm:$0xff] %v11160_v0 }
  0x15   : > { %442 = vst [vmem:[#allocation2 + $0x50] sm:$0xff] %v11160_v0  ;;  %443 = vst [vmem:[#allocation2 + $0x168] sm:$0xff] %v11160_v0 }
  0x16   : > { %444 = vst [vmem:[#allocation2 + $0x130] sm:$0xff] %v11160_v0  ;;  %445 = vst [vmem:[#allocation2 + $0x48] sm:$0xff] %v11160_v0 }
  0x17   : > { %446 = vst [vmem:[#allocation2 + $0x180] sm:$0xff] %v11160_v0  ;;  %447 = vst [vmem:[#allocation2 + $0x110] sm:$0xff] %v11160_v0 }
  0x18   : > { %448 = vst [vmem:[#allocation2 + $0x118] sm:$0xff] %v11160_v0  ;;  %449 = vst [vmem:[#allocation2 + $0x98] sm:$0xff] %v11160_v0 }
  0x19   : > { %450 = vst [vmem:[#allocation2 + $0x120] sm:$0xff] %v11160_v0  ;;  %451 = vst [vmem:[#allocation2 + $0x150] sm:$0xff] %v11160_v0 }
  0x1a   : > { %452 = vst [vmem:[#allocation2 + $0x108] sm:$0xff] %v11160_v0  ;;  %453 = vst [vmem:[#allocation2 + $0x60] sm:$0xff] %v11160_v0 }
  0x1b   : > { %454 = vst [vmem:[#allocation2 + $0xe0] sm:$0xff] %v11160_v0  ;;  %455 = vst [vmem:[#allocation2 + $0x188] sm:$0xff] %v11160_v0 }
  0x1c   : > { %456 = vst [vmem:[#allocation2 + $0x138] sm:$0xff] %v11160_v0  ;;  %457 = vst [vmem:[#allocation2 + $0x140] sm:$0xff] %v11160_v0 }
  0x1d   : > { %458 = vst [vmem:[#allocation2 + $0x80] sm:$0xff] %v11160_v0  ;;  %459 = vst [vmem:[#allocation2 + $0x1a8] sm:$0xff] %v11160_v0 }
  0x1e   : > { %460 = vst [vmem:[#allocation2 + $0x1b8] sm:$0xff] %v11160_v0  ;;  %461 = vst [vmem:[#allocation2 + $0x28] sm:$0xff] %v11160_v0 }
  0x1f   : > { %462 = vst [vmem:[#allocation2 + $0x1e8] sm:$0xff] %v11160_v0  ;;  %463 = vst [vmem:[#allocation2 + $0xf8] sm:$0xff] %v11160_v0 }
  0x20   : > { %464 = vst [vmem:[#allocation2 + $0x160] sm:$0xff] %v11160_v0  ;;  %465 = vst [vmem:[#allocation2 + $0x30] sm:$0xff] %v11160_v0 }
  0x21   : > { %466 = vst [vmem:[#allocation2 + $0x1e0] sm:$0xff] %v11160_v0  ;;  %467 = vst [vmem:[#allocation2] sm:$0xff] %v11160_v0 }
  0x22   : > { %468 = vst [vmem:[#allocation2 + $0xf0] sm:$0xff] %v11160_v0  ;;  %469 = vst [vmem:[#allocation2 + $0x8] sm:$0xff] %v11160_v0 }
  0x23   : > { %470 = vst [vmem:[#allocation2 + $0x148] sm:$0xff] %v11160_v0  ;;  %471 = vst [vmem:[#allocation2 + $0x1d0] sm:$0xff] %v11160_v0 }
  0x24   : > { %472 = vst [vmem:[#allocation2 + $0x100] sm:$0xff] %v11160_v0  ;;  %473 = vst [vmem:[#allocation2 + $0xc8] sm:$0xff] %v11160_v0 }
  0x25   : > { %474 = vst [vmem:[#allocation2 + $0x40] sm:$0xff] %v11160_v0  ;;  %475 = vst [vmem:[#allocation2 + $0x1f8] sm:$0xff] %v11160_v0 }
  0x26   : > { %476 = vst [vmem:[#allocation2 + $0x20] sm:$0xff] %v11160_v0  ;;  %477 = vst [vmem:[#allocation2 + $0x128] sm:$0xff] %v11160_v0 }
  0x27   : > { %478 = vst [vmem:[#allocation2 + $0x1a0] sm:$0xff] %v11160_v0  ;;  %479 = vst [vmem:[#allocation2 + $0x1f0] sm:$0xff] %v11160_v0 }
  0x28   : > { %480 = vst [vmem:[#allocation2 + $0xe8] sm:$0xff] %v11160_v0  ;;  %481 = vst [vmem:[#allocation2 + $0x78] sm:$0xff] %v11160_v0 }
  0x29   : > { %482 = vst [vmem:[#allocation2 + $0x70] sm:$0xff] %v11160_v0  ;;  %483 = vst [vmem:[#allocation2 + $0x90] sm:$0xff] %v11160_v0 }
  0x2a   : > { %484 = vst [vmem:[#allocation2 + $0x1d8] sm:$0xff] %v11160_v0  ;;  %485 = vst [vmem:[#allocation2 + $0xd0] sm:$0xff] %v11160_v0 }
  0x2b   : > { %486 = vst [vmem:[#allocation2 + $0xb8] sm:$0xff] %v11160_v0  ;;  %487 = vst [vmem:[#allocation2 + $0x88] sm:$0xff] %v11160_v0 }
  0x2c   : > { %488 = vst [vmem:[#allocation2 + $0xa8] sm:$0xff] %v11160_v0  ;;  %489 = vst [vmem:[#allocation2 + $0x1c8] sm:$0xff] %v11160_v0 }
  0x2d   : > { %490 = vst [vmem:[#allocation2 + $0x170] sm:$0xff] %v11160_v0  ;;  %491 = vst [vmem:[#allocation2 + $0x178] sm:$0xff] %v11160_v0 }
  0x2e   : > { %492 = vst [vmem:[#allocation2 + $0x68] sm:$0xff] %v11160_v0  ;;  %493 = vst [vmem:[#allocation2 + $0x190] sm:$0xff] %v11160_v0 }
  0x2f   : > { %494 = vst [vmem:[#allocation2 + $0x198] sm:$0xff] %v11160_v0  ;;  %495 = vst [vmem:[#allocation2 + $0x38] sm:$0xff] %v11160_v0 }
  0x30   : > { %496 = vst [vmem:[#allocation2 + $0xc0] sm:$0xff] %v11160_v0  ;;  %497 = vst [vmem:[#allocation2 + $0x1c0] sm:$0xff] %v11160_v0 }
  0x31   : > { %498 = vst [vmem:[#allocation2 + $0x158] sm:$0xff] %v11160_v0  ;;  %499 = vst [vmem:[#allocation2 + $0x10] sm:$0xff] %v11160_v0 }
  0x32   : > { %500 = vst [vmem:[#allocation2 + $0x58] sm:$0xff] %v11160_v0  ;;  %501 = vst [vmem:[#allocation2 + $0xa0] sm:$0xff] %v11160_v0 }
  0x33   : > { %502 = vst [vmem:[#allocation3 + $0x68] sm:$0xff] %v11160_v0  ;;  %503 = vst [vmem:[#allocation3 + $0x50] sm:$0xff] %v11160_v0 }
  0x34   : > { %504 = vst [vmem:[#allocation3 + $0x70] sm:$0xff] %v11160_v0  ;;  %505 = vst [vmem:[#allocation3 + $0x60] sm:$0xff] %v11160_v0 }
  0x35   : > { %506 = vst [vmem:[#allocation3 + $0xd0] sm:$0xff] %v11160_v0  ;;  %507 = vst [vmem:[#allocation3 + $0xd8] sm:$0xff] %v11160_v0 }
  0x36   : > { %508 = vst [vmem:[#allocation3 + $0xe0] sm:$0xff] %v11160_v0  ;;  %509 = vst [vmem:[#allocation3 + $0x30] sm:$0xff] %v11160_v0 }
  0x37   : > { %510 = vst [vmem:[#allocation3 + $0x48] sm:$0xff] %v11160_v0  ;;  %511 = vst [vmem:[#allocation3 + $0x8] sm:$0xff] %v11160_v0 }
  0x38   : > { %512 = vst [vmem:[#allocation3 + $0xf0] sm:$0xff] %v11160_v0  ;;  %513 = vst [vmem:[#allocation3 + $0x88] sm:$0xff] %v11160_v0 }
  0x39   : > { %514 = vst [vmem:[#allocation3 + $0x78] sm:$0xff] %v11160_v0  ;;  %515 = vst [vmem:[#allocation3 + $0x20] sm:$0xff] %v11160_v0 }
  0x3a   : > { %516 = vst [vmem:[#allocation3] sm:$0xff] %v11160_v0  ;;  %517 = vst [vmem:[#allocation3 + $0x18] sm:$0xff] %v11160_v0 }
  0x3b   : > { %518 = vst [vmem:[#allocation3 + $0x98] sm:$0xff] %v11160_v0  ;;  %519 = vst [vmem:[#allocation3 + $0xa0] sm:$0xff] %v11160_v0 }
  0x3c   : > { %520 = vst [vmem:[#allocation3 + $0xf8] sm:$0xff] %v11160_v0  ;;  %521 = vst [vmem:[#allocation3 + $0x58] sm:$0xff] %v11160_v0 }
  0x3d   : > { %522 = vst [vmem:[#allocation3 + $0xc0] sm:$0xff] %v11160_v0  ;;  %523 = vst [vmem:[#allocation3 + $0x38] sm:$0xff] %v11160_v0 }
  0x3e   : > { %524 = vst [vmem:[#allocation3 + $0x28] sm:$0xff] %v11160_v0  ;;  %525 = vst [vmem:[#allocation3 + $0xa8] sm:$0xff] %v11160_v0 }
  0x3f   : > { %526 = vst [vmem:[#allocation3 + $0xe8] sm:$0xff] %v11160_v0  ;;  %527 = vst [vmem:[#allocation3 + $0xb0] sm:$0xff] %v11160_v0 }
  0x40   : > { %528 = vst [vmem:[#allocation3 + $0x90] sm:$0xff] %v11160_v0  ;;  %529 = vst [vmem:[#allocation3 + $0xb8] sm:$0xff] %v11160_v0 }
  0x41   : > { %530 = vst [vmem:[#allocation3 + $0x10] sm:$0xff] %v11160_v0  ;;  %531 = vst [vmem:[#allocation3 + $0x80] sm:$0xff] %v11160_v0 }
  0x42   : > { %532 = vst [vmem:[#allocation3 + $0x40] sm:$0xff] %v11160_v0  ;;  %533 = vst [vmem:[#allocation3 + $0xc8] sm:$0xff] %v11160_v0 }
  0x43   : > { %535 = vst.msk [vmem:[#allocation4] sm:$0x3] %vm534_vm0, %v11160_v0  ;;  %536 = vst.msk [vmem:[#allocation5] sm:$0x3] %vm534_vm0, %v11160_v0 }
  0x44 PF: > { %v1225_v1 = vld [vmem:[%s17433_s1 + $0x1c0] sm:$0xff]  ;;  %s11164_s21 = smov [#allocation6]   ;;  %p17411_p4 = scmp.eq.s32.totalorder %s10060_s30, 3 }
  0x45   : > { %v1229_v2 = vld [vmem:[%s17433_s1 + $0x1e0] sm:$0xff]  ;;  %s10033_s22 = sshll.u32 %s11164_s21, 4  ;;  %s10034_s22 = int_to_ptr.vmem [resolvable:$true] %s10033_s22 }
  0x46   : > { %v1353_v3 = vld [vmem:[%s17433_s1 + $0x5c0] sm:$0xff]  ;;  %v10185_v4 = vcombine.high %v1225_v1, %v1229_v2  ;;  %v10184_v6 = vcombine.low %v1225_v1, %v1229_v2  ;;  %s11124_s24 = scalar_lea.vmem %s10034_s22, 32  ;;  %p11131_p8 = scmp.lt.s32.totalorder %s10034_s22, %s10034_s22 }
  0x47   : > { %v1357_v5 = vld [vmem:[%s17433_s1 + $0x5e0] sm:$0xff]  ;;  %p11125_p5 = scmp.ne.s32.totalorder %s10034_s22, %s11124_s24  ;;  %p11132_p9 = scmp.lt.s32.totalorder %s11124_s24, %s11124_s24 }
  0x48   : > { %v1217_v7 = vld [vmem:[%s17433_s1 + $0x180] sm:$0xff]  ;;  %v10313_v9 = vcombine.high %v1353_v3, %v1357_v5  ;;  %v10312_v10 = vcombine.low %v1353_v3, %v1357_v5  ;;  %2705 = vmatprep.subr.bf16.mxu0 %v10185_v4 }
  0x49   : > { %v1221_v8 = vld [vmem:[%s17433_s1 + $0x1a0] sm:$0xff]  ;;  %2706 = vmatpush1.bf16.msra.mxu0 %v10184_v6  ;;  %p11126_p6 = pnand %p11125_p5, %p17411_p4  ;;  %p11133_p10 = por %p11132_p9, %p11131_p8 }
  0x4a   : > { %v10177_v11 = vcombine.high %v1217_v7, %v1221_v8  ;;  %v1345_v12 = vld [vmem:[%s17433_s1 + $0x580] sm:$0xff]  ;;  %2758 = vmatprep.subr.bf16.mxu1 %v10313_v9  ;;  %v10176_v19 = vcombine.low %v1217_v7, %v1221_v8 }
  0x4b   : > { %v1349_v13 = vld [vmem:[%s17433_s1 + $0x5a0] sm:$0xff]  ;;  %2759 = vmatpush1.bf16.msra.mxu1 %v10312_v10  ;;  %p11127_p7 = pneg %p11126_p6 }
  0x4c   : > { %v1209_v14 = vld [vmem:[%s17433_s1 + $0x140] sm:$0xff]  ;;  %v10305_v15 = vcombine.high %v1345_v12, %v1349_v13  ;;  %2707 = vmatprep.subr.bf16.mxu0 %v10177_v11  ;;  %v10304_v20 = vcombine.low %v1345_v12, %v1349_v13 }
  0x4d   : > { %v1213_v16 = vld [vmem:[%s17433_s1 + $0x160] sm:$0xff]  ;;  %2708 = vmatpush1.bf16.msra.mxu0 %v10176_v19  ;;  %p11134_p11 = pnand %p11133_p10, %p11127_p7 }
  0x4e   : > { %v1337_v17 = vld [vmem:[%s17433_s1 + $0x540] sm:$0xff]  ;;  %v10169_v21 = vcombine.high %v1209_v14, %v1213_v16  ;;  %2760 = vmatprep.subr.bf16.mxu1 %v10305_v15  ;;  %v10168_v29 = vcombine.low %v1209_v14, %v1213_v16  ;;  %v574_v15 = vld [vmem:[#allocation2 + $0x1f8] sm:$0xff] }
  0x4f   : > { %v1341_v18 = vld [vmem:[%s17433_s1 + $0x560] sm:$0xff]  ;;  %2761 = vmatpush1.bf16.msra.mxu1 %v10304_v20  ;;  %v590_v14 = vld [vmem:[#allocation2 + $0x178] sm:$0xff] }
  0x50   : > { %v10297_v22 = vcombine.high %v1337_v17, %v1341_v18  ;;  %v11389_v23 = vld [vmem:[%s17433_s1 + $0x100] sm:$0xff]  ;;  %2709 = vmatprep.subr.bf16.mxu0 %v10169_v21  ;;  %v10296_v34 = vcombine.low %v1337_v17, %v1341_v18  ;;  %v558_v21 = vld [vmem:[#allocation2 + $0x1a8] sm:$0xff]  ;;  %v570_v17 = vld [vmem:[#allocation2 + $0x1d0] sm:$0xff] }
  0x51   : > { %v1205_v24 = vld [vmem:[%s17433_s1 + $0x120] sm:$0xff]  ;;  %2710 = vmatpush1.bf16.msra.mxu0 %v10168_v29  ;;  %v554_v29 = vld [vmem:[#allocation2 + $0x188] sm:$0xff] }
  0x52   : > { %v11397_v25 = vld [vmem:[%s17433_s1 + $0x500] sm:$0xff]  ;;  %v10161_v35 = vcombine.high %v11389_v23, %v1205_v24  ;;  %2762 = vmatprep.subr.bf16.mxu1 %v10297_v22  ;;  %v10160_v48 = vcombine.low %v11389_v23, %v1205_v24  ;;  %v538_v23 = vld [vmem:[#allocation2 + $0x1b0] sm:$0xff]  ;;  %v542_v22 = vld [vmem:[#allocation2 + $0x168] sm:$0xff] }
  0x53   : > { %v11402_v26 = vld [vmem:[%s17433_s1 + $0x520] sm:$0xff]  ;;  %2763 = vmatpush1.bf16.msra.mxu1 %v10296_v34 }
  0x54   : > { %v11407_v27 = vld [vmem:[%s17433_s1 + $0xc0] sm:$0xff]  ;;  %v10289_v40 = vcombine.high %v11397_v25, %v11402_v26  ;;  %v10288_v49 = vcombine.low %v11397_v25, %v11402_v26  ;;  %2711 = vmatprep.subr.bf16.mxu0 %v10161_v35 }
  0x55   : > { %v11412_v28 = vld [vmem:[%s17433_s1 + $0xe0] sm:$0xff]  ;;  %2712 = vmatpush1.bf16.msra.mxu0 %v10160_v48 }
  0x56   : > { %v11417_v30 = vld [vmem:[%s17433_s1 + $0x4c0] sm:$0xff]  ;;  %v10153_v50 = vcombine.high %v11407_v27, %v11412_v28  ;;  %v10152_v51 = vcombine.low %v11407_v27, %v11412_v28  ;;  %2764 = vmatprep.subr.bf16.mxu1 %v10289_v40  ;;  %v586_v40 = vld [vmem:[#allocation2 + $0x88] sm:$0xff] }
  0x57   : > { %v11422_v31 = vld [vmem:[%s17433_s1 + $0x4e0] sm:$0xff]  ;;  %2765 = vmatpush1.bf16.msra.mxu1 %v10288_v49 }
  0x58   : > { %v11427_v32 = vld [vmem:[%s17433_s1 + $0x80] sm:$0xff]  ;;  %v10281_v55 = vcombine.high %v11417_v30, %v11422_v31  ;;  %v10280_v56 = vcombine.low %v11417_v30, %v11422_v31  ;;  %2713 = vmatprep.subr.bf16.mxu0 %v10153_v50 }
  0x59   : > { %v11432_v33 = vld [vmem:[%s17433_s1 + $0xa0] sm:$0xff]  ;;  %2714 = vmatpush1.bf16.msra.mxu0 %v10152_v51 }
  0x5a   : > { %v11438_v36 = vld [vmem:[%s17433_s1 + $0x480] sm:$0xff]  ;;  %v10145_v57 = vcombine.high %v11427_v32, %v11432_v33  ;;  %v10144_v63 = vcombine.low %v11427_v32, %v11432_v33  ;;  %2766 = vmatprep.subr.bf16.mxu1 %v10281_v55  ;;  %v606_v32 = vld [vmem:[%s17432_s0 + $0x28] sm:$0xff] }
  0x5b   : > { %v11443_v37 = vld [vmem:[%s17433_s1 + $0x4a0] sm:$0xff]  ;;  %2767 = vmatpush1.bf16.msra.mxu1 %v10280_v56  ;;  %v618_v33 = vld [vmem:[%s17432_s0 + $0x88] sm:$0xff]  ;;  %v670_v49 = vadd.f32 %v606_v32, %v542_v22  ;;  %v540_v32 = vld [vmem:[#allocation2 + $0x18] sm:$0xff] }
  0x5c   : > { %v11448_v38 = vld [vmem:[%s17433_s1 + $0x40] sm:$0xff]  ;;  %v10273_v62 = vcombine.high %v11438_v36, %v11443_v37  ;;  %v10272_v0 = vcombine.low %v11438_v36, %v11443_v37  ;;  %2715 = vmatprep.subr.bf16.mxu0 %v10145_v57  ;;  %v602_v57 = vld [vmem:[%s17432_s0 + $0x8] sm:$0xff]  ;;  %v682_v36 = vadd.f32 %v618_v33, %v554_v29 }
  0x5d   : > { %v11453_v39 = vld [vmem:[%s17433_s1 + $0x60] sm:$0xff]  ;;  %2716 = vmatpush1.bf16.msra.mxu0 %v10144_v63  ;;  %v622_v63 = vld [vmem:[%s17432_s0 + $0xa8] sm:$0xff]  ;;  %v666_v16 = vadd.f32 %v602_v57, %v538_v23  ;;  %vm734_vm2 = vcmp.ge.f32.partialorder %v670_v49, 1.0 }
  0x5e   : > { %v11460_v41 = vld [vmem:[%s17433_s1 + $0x440] sm:$0xff]  ;;  %v10137_v1 = vcombine.high %v11448_v38, %v11453_v39  ;;  %v10136_v7 = vcombine.low %v11448_v38, %v11453_v39  ;;  %2768 = vmatprep.subr.bf16.mxu1 %v10273_v62  ;;  %v634_v56 = vld [vmem:[%s17432_s0 + $0x108] sm:$0xff]  ;;  %v686_v9 = vadd.f32 %v622_v63, %v558_v21  ;;  %vm746_vm3 = vcmp.ge.f32.partialorder %v682_v36, 1.0 }
  0x5f   : > { %v11465_v42 = vld [vmem:[%s17433_s1 + $0x460] sm:$0xff]  ;;  %2769 = vmatpush1.bf16.msra.mxu1 %v10272_v0  ;;  %v638_v62 = vld [vmem:[%s17432_s0 + $0x128] sm:$0xff]  ;;  %v698_v8 = vadd.f32 %v634_v56, %v570_v17  ;;  %vm730_vm1 = vcmp.ge.f32.partialorder %v666_v16, 1.0 }
  0x60   : > { %v11470_v43 = vld [vmem:[%s17433_s1] sm:$0xff]  ;;  %v10265_v6 = vcombine.high %v11460_v41, %v11465_v42  ;;  %2717 = vmatprep.subr.bf16.mxu0 %v10137_v1  ;;  %v650_v0 = vld [vmem:[%s17432_s0 + $0x188] sm:$0xff]  ;;  %v702_v23 = vadd.f32 %v638_v62, %v574_v15  ;;  %vm750_vm4 = vcmp.ge.f32.partialorder %v686_v9, 1.0 }
  0x61   : > { %v11475_v44 = vld [vmem:[%s17433_s1 + $0x20] sm:$0xff]  ;;  %v654_v1 = vld [vmem:[%s17432_s0 + $0x1a8] sm:$0xff]  ;;  %v714_v22 = vadd.f32 %v650_v0, %v586_v40  ;;  %2718 = vmatpush1.bf16.msra.mxu0 %v10136_v7  ;;  %vm762_vm5 = vcmp.ge.f32.partialorder %v698_v8, 1.0 }
  0x62   : > { %v11480_v45 = vld [vmem:[%s17433_s1 + $0x400] sm:$0xff]  ;;  %2770 = vmatprep.subr.bf16.mxu1 %v10265_v6  ;;  %v718_v29 = vadd.f32 %v654_v1, %v590_v14  ;;  %vm766_vm6 = vcmp.ge.f32.partialorder %v702_v23, 1.0  ;;  %v17497_v6 = vcombine.low %v11460_v41, %v11465_v42  ;;  %v17498_v17 = vcombine.high %v11470_v43, %v11475_v44  ;;  %v544_v33 = vld [vmem:[#allocation2 + $0x48] sm:$0xff] }
  0x63   : > { %v11485_v46 = vld [vmem:[%s17433_s1 + $0x420] sm:$0xff]  ;;  %vm778_vm7 = vcmp.ge.f32.partialorder %v714_v22, 1.0  ;;  %v17449_v14 = vmov 0.0   ;;  %v17500_v63 = vcombine.low %v11470_v43, %v11475_v44  ;;  %v560_v37 = vld [vmem:[#allocation2 + $0x28] sm:$0xff] }
  0x64   : > { %v11490_v47 = vld [vmem:[%s17433_s1 + $0x3c0] sm:$0xff]  ;;  %2771 = vmatpush1.bf16.msra.mxu1 %v17497_v6  ;;  %2719 = vmatprep.subr.bf16.mxu0 %v17498_v17  ;;  %vm782_vm8 = vcmp.ge.f32.partialorder %v718_v29, 1.0  ;;  %v11792_v15 = vsel %vm730_vm1, 1.0, %v17449_v14  ;;  %v11795_v38 = vsel %vm734_vm2, 1.0, %v17449_v14  ;;  %v17499_v39 = vcombine.high %v11480_v45, %v11485_v46 }
  0x65   : > { %v11502_v52 = vld [vmem:[%s17433_s1 + $0x3e0] sm:$0xff]  ;;  %v11801_v41 = vsel %vm746_vm3, 1.0, %v17449_v14  ;;  %v11804_v42 = vsel %vm750_vm4, 1.0, %v17449_v14  ;;  %v10097_v7 = vsel %vm762_vm5, 1.0, %v17449_v14  ;;  %v10101_v21 = vsel %vm766_vm6, 1.0, %v17449_v14  ;;  %2720 = vmatpush1.bf16.msra.mxu0 %v17500_v63 }
  0x66   : > { %v11507_v53 = vld [vmem:[%s17433_s1 + $0x7c0] sm:$0xff]  ;;  %2772 = vmatprep.subr.bf16.mxu1 %v17499_v39  ;;  %v10113_v40 = vsel %vm778_vm7, 1.0, %v17449_v14  ;;  %v10117_v56 = vsel %vm782_vm8, 1.0, %v17449_v14  ;;  %v922_v57 = vsub.f32 1.0, %v11792_v15  ;;  %v926_v62 = vsub.f32 1.0, %v11795_v38 }
  0x67   : > { %v11512_v54 = vld [vmem:[%s17433_s1 + $0x7e0] sm:$0xff]  ;;  %v938_v0 = vsub.f32 1.0, %v11801_v41  ;;  %v942_v1 = vsub.f32 1.0, %v11804_v42  ;;  %v954_v6 = vsub.f32 1.0, %v10097_v7  ;;  %v958_v17 = vsub.f32 1.0, %v10101_v21 }
  0x68   : > { %v11523_v58 = vld [vmem:[%s17433_s1 + $0x380] sm:$0xff]  ;;  %v17501_v14 = vcombine.low %v11480_v45, %v11485_v46  ;;  %v974_v43 = vsub.f32 1.0, %v10117_v56  ;;  %v986_v44 = vmul.f32 %v922_v57, %v666_v16  ;;  %v990_v63 = vmul.f32 %v926_v62, %v670_v49  ;;  %v620_v16 = vld [vmem:[%s17432_s0 + $0x98] sm:$0xff] }
  0x69   : > { %v11528_v59 = vld [vmem:[%s17433_s1 + $0x3a0] sm:$0xff]  ;;  %v17503_v45 = vcombine.high %v11507_v53, %v11512_v54  ;;  %v1002_v46 = vmul.f32 %v938_v0, %v682_v36  ;;  %v624_v49 = vld [vmem:[%s17432_s0 + $0xb8] sm:$0xff]  ;;  %v588_v36 = vld [vmem:[#allocation2 + $0x1c8] sm:$0xff] }
  0x6a   : > { %v11533_v60 = vld [vmem:[%s17433_s1 + $0x780] sm:$0xff]  ;;  %2773 = vmatpush1.bf16.msra.mxu1 %v17501_v14  ;;  %v1006_v14 = vmul.f32 %v942_v1, %v686_v9  ;;  %v636_v57 = vld [vmem:[%s17432_s0 + $0x118] sm:$0xff]  ;;  %1050 = vst [vmem:[#allocation2 + $0x1b0] sm:$0xff] %v986_v44  ;;  %1054 = vst [vmem:[#allocation2 + $0x168] sm:$0xff] %v990_v63  ;;  %v1118_v9 = vmax.f32 %v11795_v38, %v11804_v42  ;;  %v17505_v1 = vcombine.low %v11507_v53, %v11512_v54 }
  0x6b   : > { %v11538_v61 = vld [vmem:[%s17433_s1 + $0x7a0] sm:$0xff]  ;;  %2774 = vmatprep.subr.bf16.mxu1 %v17503_v45  ;;  %v652_v0 = vld [vmem:[%s17432_s0 + $0x198] sm:$0xff]  ;;  %1066 = vst [vmem:[#allocation2 + $0x188] sm:$0xff] %v1002_v46  ;;  %v17508_v53 = vcombine.low %v11523_v58, %v11528_v59  ;;  %v537_v63 = vld [vmem:[#allocation2 + $0xb0] sm:$0xff] }
  0x6c   : > { %v11551_v2 = vld [vmem:[%s17433_s1 + $0x340] sm:$0xff]  ;;  %1070 = vst [vmem:[#allocation2 + $0x1a8] sm:$0xff] %v1006_v14  ;;  %v656_v38 = vld [vmem:[%s17432_s0 + $0x1b8] sm:$0xff]  ;;  %v541_v45 = vld [vmem:[#allocation2 + $0x50] sm:$0xff] }
  0x6d   : > { %v11556_v3 = vld [vmem:[%s17433_s1 + $0x360] sm:$0xff] }
  0x6e   : > { %v11561_v4 = vld [vmem:[%s17433_s1 + $0x740] sm:$0xff]  ;;  %2775 = vmatpush2.bf16.msra.mxu1 %v17505_v1  ;;  %v17514_v46 = vcombine.low %v11551_v2, %v11556_v3 }
  0x6f   : > { %v11566_v5 = vld [vmem:[%s17433_s1 + $0x760] sm:$0xff] }
  0x70   : > { %v11579_v10 = vld [vmem:[%s17433_s1 + $0x300] sm:$0xff] }
  0x71   : > { %v11584_v11 = vld [vmem:[%s17433_s1 + $0x320] sm:$0xff] }
  0x72   : > { %v11589_v12 = vld [vmem:[%s17433_s1 + $0x700] sm:$0xff] }
  0x73   : > { %v11594_v13 = vld [vmem:[%s17433_s1 + $0x720] sm:$0xff] }
  0x74   : > { %v11607_v18 = vld [vmem:[%s17433_s1 + $0x2c0] sm:$0xff] }
  0x75   : > { %v11612_v19 = vld [vmem:[%s17433_s1 + $0x2e0] sm:$0xff] }
  0x76   : > { %v11617_v20 = vld [vmem:[%s17433_s1 + $0x6c0] sm:$0xff] }
  0x77   : > { %v11628_v24 = vld [vmem:[%s17433_s1 + $0x6e0] sm:$0xff] }
  0x78   : > { %v11633_v25 = vld [vmem:[%s17433_s1 + $0x280] sm:$0xff] }
  0x79   : > { %v11638_v26 = vld [vmem:[%s17433_s1 + $0x2a0] sm:$0xff] }
  0x7a   : > { %v11651_v31 = vld [vmem:[%s17433_s1 + $0x680] sm:$0xff] }
  0x7b   : > { %v11656_v34 = vld [vmem:[%s17433_s1 + $0x6a0] sm:$0xff] }
  0x7c   : > { %v11661_v35 = vld [vmem:[%s17433_s1 + $0x240] sm:$0xff] }
  0x7d   : > { %17489 = vst [vmem:[#allocation9_spill] sm:$0xff] %v11661_v35  ;;  %v11674_v55 = vld [vmem:[%s17433_s1 + $0x260] sm:$0xff]  ;;  %v1038_v35 = vmul.f32 %v974_v43, %v718_v29  ;;  %v1134_v29 = vmax.f32 %v10101_v21, %v10117_v56  ;;  %v17507_v21 = vcombine.high %v11533_v60, %v11538_v61  ;;  %v716_v56 = vadd.f32 %v652_v0, %v588_v36 }
  0x7e   : > { %17490 = vst [vmem:[#allocation10_spill] sm:$0xff] %v11674_v55  ;;  %v11679_v30 = vld [vmem:[%s17433_s1 + $0x640] sm:$0xff]  ;;  %v1022_v55 = vmul.f32 %v958_v17, %v702_v23  ;;  %v640_v23 = vld [vmem:[%s17432_s0 + $0x138] sm:$0xff]  ;;  %v17516_v36 = vcombine.high %v11579_v10, %v11584_v11 }
  0x7f   : > { %17491 = vst [vmem:[#allocation11_spill] sm:$0xff] %v11679_v30  ;;  %v11684_v48 = vld [vmem:[%s17433_s1 + $0x660] sm:$0xff]  ;;  %v608_v30 = vld [vmem:[%s17432_s0 + $0x38] sm:$0xff]  ;;  %1102 = vst [vmem:[#allocation2 + $0x178] sm:$0xff] %v1038_v35  ;;  %2776 = vmatprep.subr.bf16.mxu1 %v17507_v21  ;;  %vm780_vm15 = vcmp.ge.f32.partialorder %v716_v56, 1.0  ;;  %v17512_v35 = vmov 0.0  }
  0x80   : > { %17492 = vst [vmem:[#allocation12_spill] sm:$0xff] %v11684_v48  ;;  %v11697_v28 = vld [vmem:[%s17433_s1 + $0x200] sm:$0xff]  ;;  %v604_v48 = vld [vmem:[%s17432_s0 + $0x18] sm:$0xff]  ;;  %1086 = vst [vmem:[#allocation2 + $0x1f8] sm:$0xff] %v1022_v55  ;;  %v672_v42 = vadd.f32 %v608_v30, %v544_v33  ;;  %v688_v55 = vadd.f32 %v624_v49, %v560_v37  ;;  %v10115_v17 = vsel %vm780_vm15, 1.0, %v17512_v35 }
  0x81   : > { %17493 = vst [vmem:[#allocation13_spill] sm:$0xff] %v11697_v28  ;;  %v11702_v51 = vld [vmem:[%s17433_s1 + $0x220] sm:$0xff]  ;;  %v576_v28 = vld [vmem:[#allocation2 + $0x128] sm:$0xff] }
  0x82   : > { %17494 = vst [vmem:[#allocation14_spill] sm:$0xff] %v11702_v51  ;;  %v11707_v50 = vld [vmem:[%s17433_s1 + $0x600] sm:$0xff]  ;;  %v970_v51 = vsub.f32 1.0, %v10113_v40  ;;  %v704_v30 = vadd.f32 %v640_v23, %v576_v28  ;;  %vm736_vm10 = vcmp.ge.f32.partialorder %v672_v42, 1.0  ;;  %vm752_vm12 = vcmp.ge.f32.partialorder %v688_v55, 1.0 }
  0x83   : > { %17495 = vst [vmem:[#allocation15_spill] sm:$0xff] %v11707_v50  ;;  %v11718_v27 = vld [vmem:[%s17433_s1 + $0x620] sm:$0xff]  ;;  %v17502_v50 = vcombine.high %v11490_v47, %v11502_v52  ;;  %v17511_v28 = vcombine.high %v11551_v2, %v11556_v3  ;;  %v972_v23 = vsub.f32 1.0, %v10115_v17 }
  0x84   : > { %17496 = vst [vmem:[#allocation16_spill] sm:$0xff] %v11718_v27  ;;  %v556_v39 = vld [vmem:[#allocation2 + $0x140] sm:$0xff]  ;;  %v572_v27 = vld [vmem:[#allocation2 + $0xc8] sm:$0xff]  ;;  %v1034_v62 = vmul.f32 %v970_v51, %v714_v22  ;;  %v17504_v51 = vcombine.low %v11490_v47, %v11502_v52  ;;  %v1130_v22 = vmax.f32 %v10097_v7, %v10113_v40  ;;  %v17506_v47 = vcombine.high %v11523_v58, %v11528_v59 }
  0x85   : > { %2721 = vmatprep.subr.bf16.mxu0 %v17502_v50  ;;  %v1018_v50 = vmul.f32 %v954_v6, %v698_v8  ;;  %v1114_v8 = vmax.f32 %v11792_v15, %v11801_v41  ;;  %v592_v15 = vld [vmem:[#allocation2 + $0x190] sm:$0xff]  ;;  %v668_v41 = vadd.f32 %v604_v48, %v540_v32  ;;  %v684_v52 = vadd.f32 %v620_v16, %v556_v39 }
  0x86   : > { %2722 = vmatpush2.bf16.msra.mxu0 %v17504_v51  ;;  %1098 = vst [vmem:[#allocation2 + $0x88] sm:$0xff] %v1034_v62  ;;  %v700_v7 = vadd.f32 %v636_v57, %v572_v27  ;;  %v1150_v48 = vmax.f32 %v1118_v9, %v1134_v29  ;;  %v720_v32 = vadd.f32 %v656_v38, %v592_v15  ;;  %vm768_vm14 = vcmp.ge.f32.partialorder %v704_v30, 1.0  ;;  %v553_v57 = vld [vmem:[#allocation2 + $0xe0] sm:$0xff] }
  0x87   : > { %1082 = vst [vmem:[#allocation2 + $0x1d0] sm:$0xff] %v1018_v50  ;;  %2723 = vmatprep.subr.bf16.mxu0 %v17506_v47  ;;  %v1146_v40 = vmax.f32 %v1114_v8, %v1130_v22  ;;  %vm732_vm9 = vcmp.ge.f32.partialorder %v668_v41, 1.0  ;;  %vm748_vm11 = vcmp.ge.f32.partialorder %v684_v52, 1.0  ;;  %v17510_v27 = vcombine.low %v11533_v60, %v11538_v61  ;;  %v557_v62 = vld [vmem:[#allocation2 + $0x80] sm:$0xff]  ;;  %v569_v8 = vld [vmem:[#allocation2 + $0x148] sm:$0xff] }
  0x88   : > { %vm764_vm13 = vcmp.ge.f32.partialorder %v700_v7, 1.0  ;;  %vm784_vm0 = vcmp.ge.f32.partialorder %v720_v32, 1.0  ;;  %v11878_v37 = vsel %vm732_vm9, 1.0, %v17512_v35  ;;  %v11881_v58 = vsel %vm736_vm10, 1.0, %v17512_v35  ;;  %v573_v51 = vld [vmem:[#allocation2 + $0x40] sm:$0xff] }
  0x89   : > { %v11869_v54 = vpack.c.bf16 %v1150_v48, %v1146_v40  ;;  %2777 = vmatpush2.bf16.msra.mxu1 %v17510_v27  ;;  %v17513_v59 = vcombine.high %v11561_v4, %v11566_v5  ;;  %v11888_v60 = vsel %vm748_vm11, 1.0, %v17512_v35  ;;  %v11891_v61 = vsel %vm752_vm12, 1.0, %v17512_v35  ;;  %v601_v22 = vld [vmem:[%s17432_s0] sm:$0xff]  ;;  %v589_v27 = vld [vmem:[#allocation2 + $0x170] sm:$0xff] }
  0x8a   : > { %2724 = vmatpush2.bf16.msra.mxu0 %v17508_v53  ;;  %v10099_v33 = vsel %vm764_vm13, 1.0, %v17512_v35  ;;  %v10103_v6 = vsel %vm768_vm14, 1.0, %v17512_v35  ;;  %v10119_v39 = vsel %vm784_vm0, 1.0, %v17512_v35  ;;  %v924_v43 = vsub.f32 1.0, %v11878_v37  ;;  %v605_v29 = vld [vmem:[%s17432_s0 + $0x20] sm:$0xff] }
  0x8b   : > { %17509 = vst [vmem:[#allocation17_spill] sm:$0xff] %v11869_v54  ;;  %2725 = vmatprep.subr.bf16.mxu0 %v17511_v28  ;;  %2778 = vmatprep.subr.bf16.mxu1 %v17513_v59  ;;  %v928_v44 = vsub.f32 1.0, %v11881_v58  ;;  %v940_v14 = vsub.f32 1.0, %v11888_v60  ;;  %v944_v50 = vsub.f32 1.0, %v11891_v61  ;;  %v956_v16 = vsub.f32 1.0, %v10099_v33  ;;  %v633_v47 = vld [vmem:[%s17432_s0 + $0x100] sm:$0xff] }
  0x8c   : > { %2737 = vmatprep.mubr.bf16.mxu0 %v11869_v54  ;;  %v960_v49 = vsub.f32 1.0, %v10103_v6  ;;  %v17515_v9 = vcombine.low %v11561_v4, %v11566_v5  ;;  %v976_v2 = vsub.f32 1.0, %v10119_v39  ;;  %v988_v3 = vmul.f32 %v924_v43, %v668_v41  ;;  %v617_v41 = vld [vmem:[%s17432_s0 + $0x80] sm:$0xff] }
  0x8d   : > { %v992_v0 = vmul.f32 %v928_v44, %v672_v42  ;;  %v17517_v4 = vcombine.high %v11589_v12, %v11594_v13  ;;  %v1004_v5 = vmul.f32 %v940_v14, %v684_v52  ;;  %v1008_v15 = vmul.f32 %v944_v50, %v688_v55  ;;  %v621_v42 = vld [vmem:[%s17432_s0 + $0xa0] sm:$0xff] }
  0x8e   : > { %2726 = vmatpush2.bf16.msra.mxu0 %v17514_v46  ;;  %2779 = vmatpush2.bf16.msra.mxu1 %v17515_v9  ;;  %v1020_v38 = vmul.f32 %v956_v16, %v700_v7  ;;  %v1024_v1 = vmul.f32 %v960_v49, %v704_v30  ;;  %v1036_v21 = vmul.f32 %v972_v23, %v716_v56  ;;  %v585_v7 = vld [vmem:[#allocation2 + $0xb8] sm:$0xff]  ;;  %v637_v48 = vld [vmem:[%s17432_s0 + $0x120] sm:$0xff]  ;;  %v543_v9 = vld [vmem:[#allocation2 + $0x130] sm:$0xff] }
  0x8f   : > { %2727 = vmatprep.subr.bf16.mxu0 %v17516_v36  ;;  %2780 = vmatprep.subr.bf16.mxu1 %v17517_v4  ;;  %v1040_v40 = vmul.f32 %v976_v2, %v720_v32  ;;  %1052 = vst [vmem:[#allocation2 + $0x18] sm:$0xff] %v988_v3  ;;  %1056 = vst [vmem:[#allocation2 + $0x48] sm:$0xff] %v992_v0  ;;  %v1116_v52 = vmax.f32 %v11878_v37, %v11888_v60  ;;  %v649_v30 = vld [vmem:[%s17432_s0 + $0x180] sm:$0xff] }
  0x90   : > { %v1120_v55 = vmax.f32 %v11881_v58, %v11891_v61  ;;  %v17518_v56 = vcombine.low %v11579_v10, %v11584_v11  ;;  %1068 = vst [vmem:[#allocation2 + $0x140] sm:$0xff] %v1004_v5  ;;  %1072 = vst [vmem:[#allocation2 + $0x28] sm:$0xff] %v1008_v15  ;;  %v1132_v32 = vmax.f32 %v10099_v33, %v10115_v17  ;;  %v653_v28 = vld [vmem:[%s17432_s0 + $0x1a0] sm:$0xff]  ;;  %v17530_v15 = vld [vmem:[#allocation10_spill] sm:$0xff] }
  0x91   : > { %1084 = vst [vmem:[#allocation2 + $0xc8] sm:$0xff] %v1020_v38  ;;  %1088 = vst [vmem:[#allocation2 + $0x128] sm:$0xff] %v1024_v1  ;;  %v1136_v53 = vmax.f32 %v10103_v6, %v10119_v39  ;;  %v665_v37 = vadd.f32 %v601_v22, %v537_v63  ;;  %v669_v58 = vadd.f32 %v605_v29, %v541_v45  ;;  %v559_v22 = vld [vmem:[#allocation2 + $0x1b8] sm:$0xff]  ;;  %v571_v29 = vld [vmem:[#allocation2 + $0x100] sm:$0xff] }
  0x92   : > { %2728 = vmatpush2.bf16.msra.mxu0 %v17518_v56  ;;  %v17519_v59 = vcombine.low %v11589_v12, %v11594_v13  ;;  %v17520_v10 = vcombine.high %v11607_v18, %v11612_v19  ;;  %1100 = vst [vmem:[#allocation2 + $0x1c8] sm:$0xff] %v1036_v21  ;;  %1104 = vst [vmem:[#allocation2 + $0x190] sm:$0xff] %v1040_v40  ;;  %v681_v11 = vadd.f32 %v617_v41, %v553_v57  ;;  %v17529_v5 = vld [vmem:[#allocation9_spill] sm:$0xff]  ;;  %v607_v21 = vld [vmem:[%s17432_s0 + $0x30] sm:$0xff] }
  0x93   : > { %v685_v60 = vadd.f32 %v621_v42, %v557_v62  ;;  %v697_v61 = vadd.f32 %v633_v47, %v569_v8  ;;  %v17521_v33 = vcombine.high %v11617_v20, %v11628_v24  ;;  %v1148_v6 = vmax.f32 %v1116_v52, %v1132_v32  ;;  %v539_v8 = vld [vmem:[#allocation2 + $0xd8] sm:$0xff]  ;;  %v575_v42 = vld [vmem:[#allocation2 + $0x20] sm:$0xff]  ;;  %v603_v47 = vld [vmem:[%s17432_s0 + $0x10] sm:$0xff] }
  0x94   : > { %2781 = vmatpush2.bf16.msra.mxu1 %v17519_v59  ;;  %2729 = vmatprep.subr.bf16.mxu0 %v17520_v10  ;;  %v1152_v17 = vmax.f32 %v1120_v55, %v1136_v53  ;;  %v701_v39 = vadd.f32 %v637_v48, %v573_v51  ;;  %v713_v43 = vadd.f32 %v649_v30, %v585_v7  ;;  %vm729_vm1 = vcmp.ge.f32.partialorder %v665_v37, 1.0  ;;  %v555_v51 = vld [vmem:[#allocation2 + $0x138] sm:$0xff]  ;;  %v619_v30 = vld [vmem:[%s17432_s0 + $0x90] sm:$0xff] }
  0x95   : > { %2782 = vmatprep.subr.bf16.mxu1 %v17521_v33  ;;  %v717_v44 = vadd.f32 %v653_v28, %v589_v27  ;;  %vm733_vm2 = vcmp.ge.f32.partialorder %v669_v58, 1.0  ;;  %vm745_vm3 = vcmp.ge.f32.partialorder %v681_v11, 1.0  ;;  %v17522_v12 = vcombine.low %v11607_v18, %v11612_v19  ;;  %v17532_v40 = vld [vmem:[#allocation11_spill] sm:$0xff]  ;;  %v591_v33 = vld [vmem:[#allocation2 + $0x68] sm:$0xff] }
  0x96   : > { %v11956_v13 = vpack.c.bf16 %v1152_v17, %v1148_v6  ;;  %vm749_vm4 = vcmp.ge.f32.partialorder %v685_v60, 1.0  ;;  %vm761_vm5 = vcmp.ge.f32.partialorder %v697_v61, 1.0  ;;  %vm765_vm6 = vcmp.ge.f32.partialorder %v701_v39, 1.0  ;;  %v623_v56 = vld [vmem:[%s17432_s0 + $0xb0] sm:$0xff] }
  0x97   : > { %2730 = vmatpush2.bf16.msra.mxu0 %v17522_v12  ;;  %v17524_v63 = vcombine.low %v11617_v20, %v11628_v24  ;;  %v17525_v45 = vcombine.high %v11633_v25, %v11638_v26  ;;  %vm777_vm7 = vcmp.ge.f32.partialorder %v713_v43, 1.0  ;;  %vm781_vm8 = vcmp.ge.f32.partialorder %v717_v44, 1.0  ;;  %v635_v32 = vld [vmem:[%s17432_s0 + $0x110] sm:$0xff] }
  0x98   : > { %17523 = vst [vmem:[#allocation18_spill] sm:$0xff] %v11956_v13  ;;  %v11965_v46 = vsel %vm729_vm1, 1.0, %v17512_v35  ;;  %v11968_v18 = vsel %vm733_vm2, 1.0, %v17512_v35  ;;  %v17526_v19 = vcombine.high %v11651_v31, %v11656_v34  ;;  %2790 = vmatprep.mubr.bf16.mxu1 %v11956_v13  ;;  %v11975_v20 = vsel %vm745_vm3, 1.0, %v17512_v35  ;;  %v639_v59 = vld [vmem:[%s17432_s0 + $0x130] sm:$0xff] }
  0x99   : > { %2783 = vmatpush2.bf16.msra.mxu1 %v17524_v63  ;;  %2731 = vmatprep.subr.bf16.mxu0 %v17525_v45  ;;  %v11978_v24 = vsel %vm749_vm4, 1.0, %v17512_v35  ;;  %v10096_v14 = vsel %vm761_vm5, 1.0, %v17512_v35  ;;  %v10100_v50 = vsel %vm765_vm6, 1.0, %v17512_v35  ;;  %v10112_v16 = vsel %vm777_vm7, 1.0, %v17512_v35  ;;  %v651_v10 = vld [vmem:[%s17432_s0 + $0x190] sm:$0xff] }
  0x9a   : > { %2784 = vmatprep.subr.bf16.mxu1 %v17526_v19  ;;  %v10116_v49 = vsel %vm781_vm8, 1.0, %v17512_v35  ;;  %v921_v57 = vsub.f32 1.0, %v11965_v46  ;;  %v925_v62 = vsub.f32 1.0, %v11968_v18  ;;  %v17527_v36 = vcombine.low %v11633_v25, %v11638_v26  ;;  %v655_v6 = vld [vmem:[%s17432_s0 + $0x1b0] sm:$0xff] }
  0x9b   : > { %v937_v23 = vsub.f32 1.0, %v11975_v20  ;;  %v941_v2 = vsub.f32 1.0, %v11978_v24  ;;  %v953_v3 = vsub.f32 1.0, %v10096_v14  ;;  %v957_v0 = vsub.f32 1.0, %v10100_v50  ;;  %v17538_v12 = vld [vmem:[#allocation14_spill] sm:$0xff]  ;;  %v17540_v19 = vld [vmem:[#allocation15_spill] sm:$0xff] }
  0x9c   : > { %2732 = vmatpush2.bf16.msra.mxu0 %v17527_v36  ;;  %v17528_v4 = vcombine.low %v11651_v31, %v11656_v34  ;;  %v17531_v38 = vcombine.high %v17529_v5, %v17530_v15  ;;  %v969_v1 = vsub.f32 1.0, %v10112_v16  ;;  %v973_v25 = vsub.f32 1.0, %v10116_v49  ;;  %v17533_v31 = vld [vmem:[#allocation12_spill] sm:$0xff] }
  0x9d   : > { %v985_v26 = vmul.f32 %v921_v57, %v665_v37  ;;  %v989_v41 = vmul.f32 %v925_v62, %v669_v58  ;;  %v17534_v34 = vcombine.high %v17532_v40, %v17533_v31  ;;  %v1001_v52 = vmul.f32 %v937_v23, %v681_v11  ;;  %v587_v58 = vld [vmem:[#allocation2 + $0xa8] sm:$0xff] }
  0x9e   : > { %2785 = vmatpush2.bf16.msra.mxu1 %v17528_v4  ;;  %2733 = vmatprep.subr.bf16.mxu0 %v17531_v38  ;;  %v1005_v55 = vmul.f32 %v941_v2, %v685_v60  ;;  %v1017_v7 = vmul.f32 %v953_v3, %v697_v61  ;;  %v1021_v48 = vmul.f32 %v957_v0, %v701_v39  ;;  %v1230_v38 = vld [vmem:[%s17433_s1 + $0x1e8] sm:$0xff] }
  0x9f   : > { %2786 = vmatprep.subr.bf16.mxu1 %v17534_v34  ;;  %v1033_v53 = vmul.f32 %v969_v1, %v713_v43  ;;  %v1037_v27 = vmul.f32 %v973_v25, %v717_v44  ;;  %1049 = vst [vmem:[#allocation2 + $0xb0] sm:$0xff] %v985_v26  ;;  %1053 = vst [vmem:[#allocation2 + $0x50] sm:$0xff] %v989_v41  ;;  %v1113_v28 = vmax.f32 %v11965_v46, %v11975_v20  ;;  %v17537_v44 = vld [vmem:[#allocation13_spill] sm:$0xff]  ;;  %v17541_v20 = vld [vmem:[#allocation16_spill] sm:$0xff] }
  0xa0   : > { %v1117_v37 = vmax.f32 %v11968_v18, %v11978_v24  ;;  %v17535_v11 = vcombine.low %v17529_v5, %v17530_v15  ;;  %1065 = vst [vmem:[#allocation2 + $0xe0] sm:$0xff] %v1001_v52  ;;  %1069 = vst [vmem:[#allocation2 + $0x80] sm:$0xff] %v1005_v55  ;;  %v1129_v60 = vmax.f32 %v10096_v14, %v10112_v16  ;;  %v12070_v15 = vld [vmem:[%s17433_s1 + $0x1c8] sm:$0xff] }
  0xa1   : > { %1081 = vst [vmem:[#allocation2 + $0x148] sm:$0xff] %v1017_v7  ;;  %1085 = vst [vmem:[#allocation2 + $0x40] sm:$0xff] %v1021_v48  ;;  %v1133_v61 = vmax.f32 %v10100_v50, %v10116_v49  ;;  %v667_v17 = vadd.f32 %v603_v47, %v539_v8  ;;  %v671_v39 = vadd.f32 %v607_v21, %v543_v9  ;;  %v12085_v47 = vld [vmem:[%s17433_s1 + $0x5e8] sm:$0xff] }
  0xa2   : > { %2734 = vmatpush2.bf16.msra.mxu0 %v17535_v11  ;;  %v17536_v43 = vcombine.low %v17532_v40, %v17533_v31  ;;  %v17539_v63 = vcombine.high %v17537_v44, %v17538_v12  ;;  %1097 = vst [vmem:[#allocation2 + $0xb8] sm:$0xff] %v1033_v53  ;;  %1101 = vst [vmem:[#allocation2 + $0x170] sm:$0xff] %v1037_v27  ;;  %v683_v45 = vadd.f32 %v619_v30, %v555_v51  ;;  %v12090_v21 = vld [vmem:[%s17433_s1 + $0x188] sm:$0xff] }
  0xa3   : > { %v687_v46 = vadd.f32 %v623_v56, %v559_v22  ;;  %v699_v18 = vadd.f32 %v635_v32, %v571_v29  ;;  %v17542_v24 = vcombine.high %v17540_v19, %v17541_v20  ;;  %v1145_v14 = vmax.f32 %v1113_v28, %v1129_v60  ;;  %v12095_v55 = vld [vmem:[%s17433_s1 + $0x1a8] sm:$0xff] }
  0xa4   : > { %2787 = vmatpush2.bf16.msra.mxu1 %v17536_v43  ;;  %2735 = vmatprep.subr.bf16.mxu0 %v17539_v63  ;;  %v1149_v50 = vmax.f32 %v1117_v37, %v1133_v61  ;;  %v703_v16 = vadd.f32 %v639_v59, %v575_v42  ;;  %v715_v49 = vadd.f32 %v651_v10, %v587_v58  ;;  %vm731_vm9 = vcmp.ge.f32.partialorder %v667_v17, 1.0  ;;  %v12080_v42 = vld [vmem:[%s17433_s1 + $0x5c8] sm:$0xff] }
  0xa5   : > { %2788 = vmatprep.subr.bf16.mxu1 %v17542_v24  ;;  %v719_v57 = vadd.f32 %v655_v6, %v591_v33  ;;  %vm735_vm10 = vcmp.ge.f32.partialorder %v671_v39, 1.0  ;;  %vm747_vm11 = vcmp.ge.f32.partialorder %v683_v45, 1.0  ;;  %v17543_v62 = vcombine.low %v17537_v44, %v17538_v12  ;;  %v12100_v7 = vld [vmem:[%s17433_s1 + $0x588] sm:$0xff] }
  0xa6   : > { %v12043_v8 = vpack.c.bf16 %v1149_v50, %v1145_v14  ;;  %vm751_vm12 = vcmp.ge.f32.partialorder %v687_v46, 1.0  ;;  %vm763_vm13 = vcmp.ge.f32.partialorder %v699_v18, 1.0  ;;  %vm767_vm14 = vcmp.ge.f32.partialorder %v703_v16, 1.0  ;;  %v12105_v48 = vld [vmem:[%s17433_s1 + $0x5a8] sm:$0xff] }
  0xa7   : > { %2736 = vmatpush2.bf16.msra.mxu0 %v17543_v62  ;;  %v17545_v9 = vcombine.low %v17540_v19, %v17541_v20  ;;  %vm779_vm15 = vcmp.ge.f32.partialorder %v715_v49, 1.0  ;;  %vm783_vm0 = vcmp.ge.f32.partialorder %v719_v57, 1.0  ;;  %v12049_v36 = vsel %vm731_vm9, 1.0, %v17512_v35  ;;  %v12110_v27 = vld [vmem:[%s17433_s1 + $0x148] sm:$0xff] }
  0xa8   : > { %17544 = vst [vmem:[#allocation9_spill] sm:$0xff] %v12043_v8  ;;  %v12052_v23 = vsel %vm735_vm10, 1.0, %v17512_v35  ;;  %v12055_v2 = vsel %vm747_vm11, 1.0, %v17512_v35  ;;  %v12058_v3 = vsel %vm751_vm12, 1.0, %v17512_v35  ;;  %v10098_v0 = vsel %vm763_vm13, 1.0, %v17512_v35  ;;  %v12115_v28 = vld [vmem:[%s17433_s1 + $0x168] sm:$0xff] }
  0xa9   : > { %2789 = vmatpush2.bf16.msra.mxu1 %v17545_v9  ;;  %v10102_v51 = vsel %vm767_vm14, 1.0, %v17512_v35  ;;  %v10114_v22 = vsel %vm779_vm15, 1.0, %v17512_v35  ;;  %v10118_v29 = vsel %vm783_vm0, 1.0, %v17512_v35  ;;  %v923_v4 = vsub.f32 1.0, %v12049_v36  ;;  %v12120_v37 = vld [vmem:[%s17433_s1 + $0x548] sm:$0xff] }
  0xaa   : > { %2738 = vmatmul.mubr.bf16.vlgmr.msra.gmra.mxu0 %v12043_v8  ;;  %v927_v5 = vsub.f32 1.0, %v12052_v23  ;;  %v939_v1 = vsub.f32 1.0, %v12055_v2  ;;  %v943_v25 = vsub.f32 1.0, %v12058_v3  ;;  %v955_v26 = vsub.f32 1.0, %v10098_v0  ;;  %v12129_v60 = vld [vmem:[%s17433_s1 + $0x568] sm:$0xff] }
  0xab   : > { %v959_v41 = vsub.f32 1.0, %v10102_v51  ;;  %v971_v40 = vsub.f32 1.0, %v10114_v22  ;;  %v975_v31 = vsub.f32 1.0, %v10118_v29  ;;  %v987_v34 = vmul.f32 %v923_v4, %v667_v17  ;;  %v12134_v61 = vld [vmem:[%s17433_s1 + $0x108] sm:$0xff] }
  0xac   : > { %v991_v52 = vmul.f32 %v927_v5, %v671_v39  ;;  %v1003_v30 = vmul.f32 %v939_v1, %v683_v45  ;;  %v1007_v56 = vmul.f32 %v943_v25, %v687_v46  ;;  %v1019_v32 = vmul.f32 %v955_v26, %v699_v18  ;;  %v12139_v33 = vld [vmem:[%s17433_s1 + $0x128] sm:$0xff] }
  0xad   : > { %v1023_v53 = vmul.f32 %v959_v41, %v703_v16  ;;  %v1035_v58 = vmul.f32 %v971_v40, %v715_v49  ;;  %v1039_v59 = vmul.f32 %v975_v31, %v719_v57  ;;  %1051 = vst [vmem:[#allocation2 + $0xd8] sm:$0xff] %v987_v34  ;;  %v1115_v10 = vmax.f32 %v12049_v36, %v12055_v2  ;;  %v12146_v44 = vld [vmem:[%s17433_s1 + $0x508] sm:$0xff]  ;;  %v562_v31 = vld [vmem:[#allocation2 + $0xf8] sm:$0xff] }
  0xae   : > { %1055 = vst [vmem:[#allocation2 + $0x130] sm:$0xff] %v991_v52  ;;  %v1119_v11 = vmax.f32 %v12052_v23, %v12058_v3  ;;  %1067 = vst [vmem:[#allocation2 + $0x138] sm:$0xff] %v1003_v30  ;;  %v1131_v6 = vmax.f32 %v10098_v0, %v10114_v22  ;;  %v1135_v17 = vmax.f32 %v10102_v51, %v10118_v29  ;;  %v12151_v12 = vld [vmem:[%s17433_s1 + $0x528] sm:$0xff] }
  0xaf   : > { %1071 = vst [vmem:[#allocation2 + $0x1b8] sm:$0xff] %v1007_v56  ;;  %1083 = vst [vmem:[#allocation2 + $0x100] sm:$0xff] %v1019_v32  ;;  %v10186_v39 = vcombine.low %v12070_v15, %v1230_v38  ;;  %v10187_v43 = vcombine.high %v12070_v15, %v1230_v38  ;;  %v12156_v63 = vld [vmem:[%s17433_s1 + $0xc8] sm:$0xff]  ;;  %v10314_v46 = vcombine.low %v12080_v42, %v12085_v47  ;;  %v598_v56 = vld [vmem:[#allocation2 + $0x10] sm:$0xff] }
  0xb0   : > { %1087 = vst [vmem:[#allocation2 + $0x20] sm:$0xff] %v1023_v53  ;;  %v12161_v45 = vld [vmem:[%s17433_s1 + $0xe8] sm:$0xff]  ;;  %1099 = vst [vmem:[#allocation2 + $0xa8] sm:$0xff] %v1035_v58  ;;  %v10315_v18 = vcombine.high %v12080_v42, %v12085_v47  ;;  %v10178_v19 = vcombine.low %v12090_v21, %v12095_v55  ;;  %v10179_v20 = vcombine.high %v12090_v21, %v12095_v55  ;;  %v550_v47 = vld [vmem:[#allocation2 + $0x150] sm:$0xff] }
  0xb1   : > { %1103 = vst [vmem:[#allocation2 + $0x68] sm:$0xff] %v1039_v59  ;;  %v12174_v24 = vld [vmem:[%s17433_s1 + $0x4c8] sm:$0xff]  ;;  %v1147_v49 = vmax.f32 %v1115_v10, %v1131_v6  ;;  %v1151_v57 = vmax.f32 %v1119_v11, %v1135_v17  ;;  %2811 = vmatprep.subr.bf16.mxu0 %v10187_v43  ;;  %v10306_v62 = vcombine.low %v12100_v7, %v12105_v48  ;;  %v566_v21 = vld [vmem:[#allocation2] sm:$0xff] }
  0xb2   : > { %v12179_v14 = vld [vmem:[%s17433_s1 + $0x4e8] sm:$0xff]  ;;  %v10307_v9 = vcombine.high %v12100_v7, %v12105_v48  ;;  %2864 = vmatprep.subr.bf16.mxu1 %v10315_v18  ;;  %2812 = vmatpush1.bf16.msra.mxu0 %v10186_v39  ;;  %v10170_v3 = vcombine.low %v12110_v27, %v12115_v28  ;;  %v10171_v0 = vcombine.high %v12110_v27, %v12115_v28  ;;  %v578_v28 = vld [vmem:[#allocation2 + $0x1f0] sm:$0xff] }
  0xb3   : > { %v12184_v50 = vld [vmem:[%s17433_s1 + $0x88] sm:$0xff]  ;;  %v12231_v5 = vpack.c.bf16 %v1151_v57, %v1147_v49  ;;  %2813 = vmatprep.subr.bf16.mxu0 %v10179_v20  ;;  %v10299_v15 = vcombine.high %v12120_v37, %v12129_v60  ;;  %v10163_v1 = vcombine.high %v12134_v61, %v12139_v33  ;;  %v17555_v27 = vcombine.low %v12120_v37, %v12129_v60 }
  0xb4   : > { %v12189_v16 = vld [vmem:[%s17433_s1 + $0xa8] sm:$0xff]  ;;  %v17556_v7 = vcombine.low %v12134_v61, %v12139_v33 }
  0xb5   : > { %v12198_v36 = vld [vmem:[%s17433_s1 + $0x488] sm:$0xff]  ;;  %17546 = vst [vmem:[#allocation10_spill] sm:$0xff] %v12231_v5  ;;  %2791 = vmatmul.mubr.bf16.vlgmr.msra.gmra.mxu1 %v12231_v5 }
  0xb6   : > { %v12203_v23 = vld [vmem:[%s17433_s1 + $0x4a8] sm:$0xff]  ;;  %2865 = vmatpush1.bf16.msra.mxu1 %v10314_v46  ;;  %2814 = vmatpush1.bf16.msra.mxu0 %v10178_v19  ;;  %v546_v19 = vld [vmem:[#allocation2 + $0x110] sm:$0xff] }
  0xb7   : > { %v12208_v2 = vld [vmem:[%s17433_s1 + $0x48] sm:$0xff]  ;;  %2866 = vmatprep.subr.bf16.mxu1 %v10307_v9  ;;  %2815 = vmatprep.subr.bf16.mxu0 %v10171_v0  ;;  %v17565_v51 = vcombine.high %v12198_v36, %v12203_v23 }
  0xb8   : > { %v12219_v22 = vld [vmem:[%s17433_s1 + $0x68] sm:$0xff] }
  0xb9   : > { %v12224_v29 = vld [vmem:[%s17433_s1 + $0x448] sm:$0xff]  ;;  %v17566_v13 = vcombine.high %v12208_v2, %v12219_v22 }
  0xba   : > { %v12229_v4 = vld [vmem:[%s17433_s1 + $0x468] sm:$0xff]  ;;  %2867 = vmatpush1.bf16.msra.mxu1 %v10306_v62  ;;  %2816 = vmatpush1.bf16.msra.mxu0 %v10170_v3  ;;  %v582_v62 = vld [vmem:[#allocation2 + $0x90] sm:$0xff]  ;;  %v594_v3 = vld [vmem:[#allocation2 + $0x38] sm:$0xff] }
  0xbb   : > { %v12242_v25 = vld [vmem:[%s17433_s1 + $0x8] sm:$0xff]  ;;  %2868 = vmatprep.subr.bf16.mxu1 %v10299_v15  ;;  %2817 = vmatprep.subr.bf16.mxu0 %v10163_v1 }
  0xbc   : > { %v12247_v26 = vld [vmem:[%s17433_s1 + $0x28] sm:$0xff] }
  0xbd   : > { %v12252_v41 = vld [vmem:[%s17433_s1 + $0x408] sm:$0xff] }
  0xbe   : > { %v12257_v42 = vld [vmem:[%s17433_s1 + $0x428] sm:$0xff]  ;;  %2869 = vmatpush1.bf16.msra.mxu1 %v17555_v27  ;;  %2818 = vmatpush1.bf16.msra.mxu0 %v17556_v7 }
  0xbf   : > { %v12270_v34 = vld [vmem:[%s17433_s1 + $0x3c8] sm:$0xff] }
  0xc0   : > { %v12275_v52 = vld [vmem:[%s17433_s1 + $0x3e8] sm:$0xff] }
  0xc1   : > { %v12280_v55 = vld [vmem:[%s17433_s1 + $0x7c8] sm:$0xff] }
  0xc2   : > { %v12285_v30 = vld [vmem:[%s17433_s1 + $0x7e8] sm:$0xff] }
  0xc3   : > { %v12299_v59 = vld [vmem:[%s17433_s1 + $0x388] sm:$0xff] }
  0xc4   : > { %v12304_v10 = vld [vmem:[%s17433_s1 + $0x3a8] sm:$0xff] }
  0xc5   : > { %v12309_v11 = vld [vmem:[%s17433_s1 + $0x788] sm:$0xff] }
  0xc6   : > { %v12320_v43 = vld [vmem:[%s17433_s1 + $0x7a8] sm:$0xff] }
  0xc7   : > { %v12325_v18 = vld [vmem:[%s17433_s1 + $0x348] sm:$0xff] }
  0xc8   : > { %v12330_v46 = vld [vmem:[%s17433_s1 + $0x368] sm:$0xff] }
  0xc9   : > { %v12341_v57 = vld [vmem:[%s17433_s1 + $0x748] sm:$0xff] }
  0xca   : > { %v12346_v39 = vld [vmem:[%s17433_s1 + $0x768] sm:$0xff] }
  0xcb   : > { %v12351_v9 = vld [vmem:[%s17433_s1 + $0x308] sm:$0xff] }
  0xcc   : > { %17547 = vst [vmem:[#allocation11_spill] sm:$0xff] %v12351_v9  ;;  %v12356_v0 = vld [vmem:[%s17433_s1 + $0x328] sm:$0xff]  ;;  %v596_v9 = vld [vmem:[#allocation2 + $0x1c0] sm:$0xff] }
  0xcd   : > { %17548 = vst [vmem:[#allocation12_spill] sm:$0xff] %v12356_v0  ;;  %v12369_v17 = vld [vmem:[%s17433_s1 + $0x708] sm:$0xff] }
  0xce   : > { %17549 = vst [vmem:[#allocation13_spill] sm:$0xff] %v12369_v17  ;;  %v12374_v53 = vld [vmem:[%s17433_s1 + $0x728] sm:$0xff] }
  0xcf   : > { %17550 = vst [vmem:[#allocation14_spill] sm:$0xff] %v12374_v53  ;;  %v12379_v20 = vld [vmem:[%s17433_s1 + $0x2c8] sm:$0xff] }
  0xd0   : > { %17551 = vst [vmem:[#allocation15_spill] sm:$0xff] %v12379_v20  ;;  %v12384_v6 = vld [vmem:[%s17433_s1 + $0x2e8] sm:$0xff]  ;;  %v17558_v20 = vcombine.high %v12156_v63, %v12161_v45 }
  0xd1   : > { %17552 = vst [vmem:[#allocation16_spill] sm:$0xff] %v12384_v6  ;;  %v12397_v32 = vld [vmem:[%s17433_s1 + $0x6c8] sm:$0xff]  ;;  %v17557_v6 = vcombine.high %v12146_v44, %v12151_v12 }
  0xd2   : > { %17553 = vst [vmem:[#allocation19_spill] sm:$0xff] %v12397_v32  ;;  %v12402_v40 = vld [vmem:[%s17433_s1 + $0x6e8] sm:$0xff]  ;;  %2819 = vmatprep.subr.bf16.mxu0 %v17558_v20 }
  0xd3   : > { %17554 = vst [vmem:[#allocation20_spill] sm:$0xff] %v12402_v40  ;;  %v610_v49 = vld [vmem:[%s17432_s0 + $0x48] sm:$0xff]  ;;  %2870 = vmatprep.subr.bf16.mxu1 %v17557_v6  ;;  %v17560_v6 = vcombine.low %v12156_v63, %v12161_v45  ;;  %v580_v40 = vld [vmem:[#allocation2 + $0x78] sm:$0xff] }
  0xd4   : > { %v614_v15 = vld [vmem:[%s17432_s0 + $0x68] sm:$0xff]  ;;  %v674_v54 = vadd.f32 %v610_v49, %v546_v19  ;;  %v17559_v19 = vcombine.low %v12146_v44, %v12151_v12 }
  0xd5   : > { %v626_v58 = vld [vmem:[%s17432_s0 + $0xc8] sm:$0xff]  ;;  %v678_v37 = vadd.f32 %v614_v15, %v550_v47  ;;  %2820 = vmatpush1.bf16.msra.mxu0 %v17560_v6 }
  0xd6   : > { %v630_v38 = vld [vmem:[%s17432_s0 + $0xe8] sm:$0xff]  ;;  %v690_v60 = vadd.f32 %v626_v58, %v562_v31  ;;  %vm738_vm1 = vcmp.ge.f32.partialorder %v674_v54, 1.0  ;;  %2871 = vmatpush1.bf16.msra.mxu1 %v17559_v19 }
  0xd7   : > { %v642_v1 = vld [vmem:[%s17432_s0 + $0x148] sm:$0xff]  ;;  %v694_v27 = vadd.f32 %v630_v38, %v566_v21  ;;  %vm742_vm2 = vcmp.ge.f32.partialorder %v678_v37, 1.0  ;;  %v12491_v38 = vsel %vm738_vm1, 1.0, %v17512_v35 }
  0xd8   : > { %v646_v5 = vld [vmem:[%s17432_s0 + $0x168] sm:$0xff]  ;;  %v706_v61 = vadd.f32 %v642_v1, %v578_v28  ;;  %vm754_vm3 = vcmp.ge.f32.partialorder %v690_v60, 1.0  ;;  %v12494_v44 = vsel %vm742_vm2, 1.0, %v17512_v35  ;;  %v552_v28 = vld [vmem:[#allocation2 + $0x60] sm:$0xff] }
  0xd9   : > { %v658_v8 = vld [vmem:[%s17432_s0 + $0x1c8] sm:$0xff]  ;;  %v710_v33 = vadd.f32 %v646_v5, %v582_v62  ;;  %vm758_vm4 = vcmp.ge.f32.partialorder %v694_v27, 1.0  ;;  %v17562_v5 = vcombine.high %v12184_v50, %v12189_v16  ;;  %v10089_v12 = vsel %vm754_vm3, 1.0, %v17512_v35 }
  0xda   : > { %v662_v48 = vld [vmem:[%s17432_s0 + $0x1e8] sm:$0xff]  ;;  %v722_v7 = vadd.f32 %v658_v8, %v594_v3  ;;  %vm770_vm5 = vcmp.ge.f32.partialorder %v706_v61, 1.0  ;;  %v17561_v8 = vcombine.high %v12174_v24, %v12179_v14  ;;  %v12498_v63 = vsel %vm758_vm4, 1.0, %v17512_v35 }
  0xdb   : > { %v726_v53 = vadd.f32 %v662_v48, %v598_v56  ;;  %vm774_vm6 = vcmp.ge.f32.partialorder %v710_v33, 1.0  ;;  %2821 = vmatprep.subr.bf16.mxu0 %v17562_v5  ;;  %v10105_v45 = vsel %vm770_vm5, 1.0, %v17512_v35  ;;  %v930_v56 = vsub.f32 1.0, %v12491_v38  ;;  %v548_v48 = vld [vmem:[#allocation2 + $0x98] sm:$0xff]  ;;  %v568_v5 = vld [vmem:[#allocation2 + $0x8] sm:$0xff] }
  0xdc   : > { %vm786_vm7 = vcmp.ge.f32.partialorder %v722_v7, 1.0  ;;  %2872 = vmatprep.subr.bf16.mxu1 %v17561_v8  ;;  %v10109_v47 = vsel %vm774_vm6, 1.0, %v17512_v35  ;;  %v934_v58 = vsub.f32 1.0, %v12494_v44  ;;  %v946_v20 = vsub.f32 1.0, %v10089_v12  ;;  %v564_v8 = vld [vmem:[#allocation2 + $0x30] sm:$0xff] }
  0xdd   : > { %vm790_vm8 = vcmp.ge.f32.partialorder %v726_v53, 1.0  ;;  %v10121_v21 = vsel %vm786_vm7, 1.0, %v17512_v35  ;;  %v950_v49 = vsub.f32 1.0, %v12498_v63  ;;  %v17563_v62 = vcombine.low %v12174_v24, %v12179_v14 }
  0xde   : > { %v10125_v31 = vsel %vm790_vm8, 1.0, %v17512_v35  ;;  %v17564_v3 = vcombine.low %v12184_v50, %v12189_v16  ;;  %v962_v15 = vsub.f32 1.0, %v10105_v45  ;;  %v966_v1 = vsub.f32 1.0, %v10109_v47  ;;  %v584_v50 = vld [vmem:[#allocation2 + $0xd0] sm:$0xff]  ;;  %v612_v16 = vld [vmem:[%s17432_s0 + $0x58] sm:$0xff] }
  0xdf   : > { %2873 = vmatpush1.bf16.msra.mxu1 %v17563_v62  ;;  %v978_v19 = vsub.f32 1.0, %v10121_v21  ;;  %v982_v6 = vsub.f32 1.0, %v10125_v31  ;;  %v994_v24 = vmul.f32 %v930_v56, %v674_v54  ;;  %v998_v14 = vmul.f32 %v934_v58, %v678_v37  ;;  %v628_v54 = vld [vmem:[%s17432_s0 + $0xd8] sm:$0xff] }
  0xe0   : > { %2822 = vmatpush1.bf16.msra.mxu0 %v17564_v3  ;;  %2874 = vmatprep.subr.bf16.mxu1 %v17565_v51  ;;  %v1010_v62 = vmul.f32 %v946_v20, %v690_v60  ;;  %v616_v3 = vld [vmem:[%s17432_s0 + $0x78] sm:$0xff]  ;;  %v1014_v32 = vmul.f32 %v950_v49, %v694_v27  ;;  %v1026_v17 = vmul.f32 %v962_v15, %v706_v61 }
  0xe1   : > { %2823 = vmatprep.subr.bf16.mxu0 %v17566_v13  ;;  %v1030_v51 = vmul.f32 %v966_v1, %v710_v33  ;;  %v1042_v0 = vmul.f32 %v978_v19, %v722_v7  ;;  %v632_v13 = vld [vmem:[%s17432_s0 + $0xf8] sm:$0xff]  ;;  %v1046_v37 = vmul.f32 %v982_v6, %v726_v53  ;;  %1058 = vst [vmem:[#allocation2 + $0x110] sm:$0xff] %v994_v24  ;;  %1062 = vst [vmem:[#allocation2 + $0x150] sm:$0xff] %v998_v14 }
  0xe2   : > { %1074 = vst [vmem:[#allocation2 + $0xf8] sm:$0xff] %v1010_v62  ;;  %v1122_v60 = vmax.f32 %v12491_v38, %v10089_v12  ;;  %v1126_v27 = vmax.f32 %v12494_v44, %v12498_v63  ;;  %v1138_v61 = vmax.f32 %v10105_v45, %v10121_v21  ;;  %v644_v33 = vld [vmem:[%s17432_s0 + $0x158] sm:$0xff]  ;;  %v17567_v56 = vcombine.low %v12198_v36, %v12203_v23  ;;  %v600_v12 = vld [vmem:[#allocation2 + $0xa0] sm:$0xff] }
  0xe3   : > { %v648_v7 = vld [vmem:[%s17432_s0 + $0x178] sm:$0xff]  ;;  %v17568_v38 = vcombine.low %v12208_v2, %v12219_v22  ;;  %1078 = vst [vmem:[#allocation2] sm:$0xff] %v1014_v32  ;;  %1090 = vst [vmem:[#allocation2 + $0x1f0] sm:$0xff] %v1026_v17  ;;  %v1142_v44 = vmax.f32 %v10109_v47, %v10125_v31  ;;  %v676_v45 = vadd.f32 %v612_v16, %v548_v48 }
  0xe4   : > { %v660_v53 = vld [vmem:[%s17432_s0 + $0x1d8] sm:$0xff]  ;;  %2875 = vmatpush1.bf16.msra.mxu1 %v17567_v56  ;;  %1094 = vst [vmem:[#allocation2 + $0x90] sm:$0xff] %v1030_v51  ;;  %1106 = vst [vmem:[#allocation2 + $0x38] sm:$0xff] %v1042_v0  ;;  %v680_v21 = vadd.f32 %v616_v3, %v552_v28  ;;  %v17569_v36 = vcombine.high %v12224_v29, %v12229_v4  ;;  %v17570_v23 = vcombine.high %v12242_v25, %v12247_v26  ;;  %v549_v51 = vld [vmem:[#allocation2 + $0x120] sm:$0xff] }
  0xe5   : > { %2824 = vmatpush1.bf16.msra.mxu0 %v17568_v38  ;;  %v664_v63 = vld [vmem:[%s17432_s0 + $0x1f8] sm:$0xff]  ;;  %1110 = vst [vmem:[#allocation2 + $0x10] sm:$0xff] %v1046_v37  ;;  %v1154_v2 = vmax.f32 %v1122_v60, %v1138_v61  ;;  %v692_v22 = vadd.f32 %v628_v54, %v564_v8  ;;  %v696_v32 = vadd.f32 %v632_v13, %v568_v5  ;;  %vm740_vm9 = vcmp.ge.f32.partialorder %v676_v45, 1.0  ;;  %v545_v5 = vld [vmem:[#allocation2 + $0x180] sm:$0xff]  ;;  %v561_v54 = vld [vmem:[#allocation2 + $0x1e8] sm:$0xff] }
  0xe6   : > { %2876 = vmatprep.subr.bf16.mxu1 %v17569_v36  ;;  %2825 = vmatprep.subr.bf16.mxu0 %v17570_v23  ;;  %v1158_v17 = vmax.f32 %v1126_v27, %v1142_v44  ;;  %v708_v0 = vadd.f32 %v644_v33, %v580_v40  ;;  %v712_v47 = vadd.f32 %v648_v7, %v584_v50  ;;  %vm744_vm10 = vcmp.ge.f32.partialorder %v680_v21, 1.0  ;;  %v565_v13 = vld [vmem:[#allocation2 + $0x1e0] sm:$0xff]  ;;  %v581_v61 = vld [vmem:[#allocation2 + $0x70] sm:$0xff] }
  0xe7   : > { %v724_v31 = vadd.f32 %v660_v53, %v596_v9  ;;  %v728_v58 = vadd.f32 %v664_v63, %v600_v12  ;;  %vm756_vm11 = vcmp.ge.f32.partialorder %v692_v22, 1.0  ;;  %v17571_v20 = vcombine.low %v12224_v29, %v12229_v4  ;;  %v577_v27 = vld [vmem:[#allocation2 + $0x1a0] sm:$0xff] }
  0xe8   : > { %v17572_v49 = vcombine.low %v12242_v25, %v12247_v26  ;;  %v12564_v48 = vpack.c.bf16 %v1158_v17, %v1154_v2  ;;  %vm760_vm12 = vcmp.ge.f32.partialorder %v696_v32, 1.0  ;;  %vm772_vm13 = vcmp.ge.f32.partialorder %v708_v0, 1.0  ;;  %v609_v33 = vld [vmem:[%s17432_s0 + $0x40] sm:$0xff]  ;;  %v593_v2 = vld [vmem:[#allocation2 + $0x198] sm:$0xff] }
  0xe9   : > { %2877 = vmatpush1.bf16.msra.mxu1 %v17571_v20  ;;  %vm776_vm14 = vcmp.ge.f32.partialorder %v712_v47, 1.0  ;;  %v17573_v40 = vcombine.high %v12252_v41, %v12257_v42  ;;  %v17574_v9 = vcombine.high %v12270_v34, %v12275_v52  ;;  %vm788_vm15 = vcmp.ge.f32.partialorder %v724_v31, 1.0  ;;  %v613_v44 = vld [vmem:[%s17432_s0 + $0x60] sm:$0xff] }
  0xea   : > { %2826 = vmatpush1.bf16.msra.mxu0 %v17572_v49  ;;  %vm792_vm0 = vcmp.ge.f32.partialorder %v728_v58, 1.0  ;;  %v12573_v29 = vsel %vm740_vm9, 1.0, %v17512_v35  ;;  %v12576_v4 = vsel %vm744_vm10, 1.0, %v17512_v35  ;;  %2747 = vmatprep.mubr.bf16.mxu0 %v12564_v48  ;;  %v12580_v25 = vsel %vm756_vm11, 1.0, %v17512_v35  ;;  %v625_v12 = vld [vmem:[%s17432_s0 + $0xc0] sm:$0xff] }
  0xeb   : > { %2878 = vmatprep.subr.bf16.mxu1 %v17573_v40  ;;  %2827 = vmatprep.subr.bf16.mxu0 %v17574_v9  ;;  %v12583_v26 = vsel %vm760_vm12, 1.0, %v17512_v35  ;;  %v10107_v28 = vsel %vm772_vm13, 1.0, %v17512_v35  ;;  %v10111_v15 = vsel %vm776_vm14, 1.0, %v17512_v35  ;;  %v10123_v1 = vsel %vm788_vm15, 1.0, %v17512_v35  ;;  %v629_v63 = vld [vmem:[%s17432_s0 + $0xe0] sm:$0xff] }
  0xec   : > { %v10127_v19 = vsel %vm792_vm0, 1.0, %v17512_v35  ;;  %v932_v6 = vsub.f32 1.0, %v12573_v29  ;;  %v936_v8 = vsub.f32 1.0, %v12576_v4  ;;  %v17575_v24 = vcombine.low %v12252_v41, %v12257_v42  ;;  %v657_v20 = vld [vmem:[%s17432_s0 + $0x1c0] sm:$0xff] }
  0xed   : > { %v17576_v14 = vcombine.low %v12270_v34, %v12275_v52  ;;  %v948_v62 = vsub.f32 1.0, %v12580_v25  ;;  %v952_v50 = vsub.f32 1.0, %v12583_v26  ;;  %v964_v16 = vsub.f32 1.0, %v10107_v28 }
  0xee   : > { %2879 = vmatpush1.bf16.msra.mxu1 %v17575_v24  ;;  %v968_v3 = vsub.f32 1.0, %v10111_v15  ;;  %v17577_v37 = vcombine.high %v12280_v55, %v12285_v30  ;;  %v17578_v41 = vcombine.high %v12299_v59, %v12304_v10  ;;  %v980_v42 = vsub.f32 1.0, %v10123_v1  ;;  %v17587_v24 = vld [vmem:[#allocation12_spill] sm:$0xff] }
  0xef   : > { %2828 = vmatpush2.bf16.msra.mxu0 %v17576_v14  ;;  %v984_v34 = vsub.f32 1.0, %v10127_v19  ;;  %v996_v52 = vmul.f32 %v932_v6, %v676_v45  ;;  %v1000_v60 = vmul.f32 %v936_v8, %v680_v21  ;;  %v1012_v7 = vmul.f32 %v948_v62, %v692_v22  ;;  %v641_v22 = vld [vmem:[%s17432_s0 + $0x140] sm:$0xff] }
  0xf0   : > { %2880 = vmatprep.subr.bf16.mxu1 %v17577_v37  ;;  %2829 = vmatprep.subr.bf16.mxu0 %v17578_v41  ;;  %v1016_v53 = vmul.f32 %v952_v50, %v696_v32  ;;  %v1028_v56 = vmul.f32 %v964_v16, %v708_v0  ;;  %v1032_v38 = vmul.f32 %v968_v3, %v712_v47  ;;  %v645_v32 = vld [vmem:[%s17432_s0 + $0x160] sm:$0xff] }
  0xf1   : > { %v1044_v45 = vmul.f32 %v980_v42, %v724_v31  ;;  %v1048_v21 = vmul.f32 %v984_v34, %v728_v58  ;;  %1060 = vst [vmem:[#allocation2 + $0x98] sm:$0xff] %v996_v52  ;;  %1064 = vst [vmem:[#allocation2 + $0x60] sm:$0xff] %v1000_v60  ;;  %v1124_v36 = vmax.f32 %v12573_v29, %v12580_v25  ;;  %v597_v58 = vld [vmem:[#allocation2 + $0x158] sm:$0xff]  ;;  %v551_v60 = vld [vmem:[#allocation2 + $0x108] sm:$0xff] }
  0xf2   : > { %v1128_v23 = vmax.f32 %v12576_v4, %v12583_v26  ;;  %v17579_v17 = vcombine.low %v12280_v55, %v12285_v30  ;;  %v17580_v0 = vcombine.low %v12299_v59, %v12304_v10  ;;  %1076 = vst [vmem:[#allocation2 + $0x30] sm:$0xff] %v1012_v7  ;;  %1080 = vst [vmem:[#allocation2 + $0x8] sm:$0xff] %v1016_v53  ;;  %v661_v55 = vld [vmem:[%s17432_s0 + $0x1e0] sm:$0xff]  ;;  %v547_v52 = vld [vmem:[#allocation2 + $0x118] sm:$0xff] }
  0xf3   : > { %1092 = vst [vmem:[#allocation2 + $0x78] sm:$0xff] %v1028_v56  ;;  %1096 = vst [vmem:[#allocation2 + $0xd0] sm:$0xff] %v1032_v38  ;;  %v1140_v47 = vmax.f32 %v10107_v28, %v10123_v1  ;;  %v1144_v31 = vmax.f32 %v10111_v15, %v10127_v19  ;;  %v673_v30 = vadd.f32 %v609_v33, %v545_v5  ;;  %v17586_v5 = vld [vmem:[#allocation11_spill] sm:$0xff]  ;;  %v17591_v33 = vld [vmem:[#allocation13_spill] sm:$0xff] }
  0xf4   : > { %2881 = vmatpush2.bf16.msra.mxu1 %v17579_v17  ;;  %2830 = vmatpush2.bf16.msra.mxu0 %v17580_v0  ;;  %v17581_v59 = vcombine.high %v12309_v11, %v12320_v43  ;;  %v17582_v10 = vcombine.high %v12325_v18, %v12330_v46  ;;  %1108 = vst [vmem:[#allocation2 + $0x1c0] sm:$0xff] %v1044_v45  ;;  %1112 = vst [vmem:[#allocation2 + $0xa0] sm:$0xff] %v1048_v21  ;;  %v17592_v7 = vld [vmem:[#allocation14_spill] sm:$0xff]  ;;  %v17594_v56 = vld [vmem:[#allocation15_spill] sm:$0xff] }
  0xf5   : > { %v677_v49 = vadd.f32 %v613_v44, %v549_v51  ;;  %v689_v40 = vadd.f32 %v625_v12, %v561_v54  ;;  %v693_v9 = vadd.f32 %v629_v63, %v565_v13  ;;  %v1156_v29 = vmax.f32 %v1124_v36, %v1140_v47  ;;  %v579_v45 = vld [vmem:[#allocation2 + $0xe8] sm:$0xff]  ;;  %v583_v21 = vld [vmem:[#allocation2 + $0x1d8] sm:$0xff]  ;;  %v611_v36 = vld [vmem:[%s17432_s0 + $0x50] sm:$0xff] }
  0xf6   : > { %2882 = vmatprep.subr.bf16.mxu1 %v17581_v59  ;;  %2831 = vmatprep.subr.bf16.mxu0 %v17582_v10  ;;  %v1160_v4 = vmax.f32 %v1128_v23, %v1144_v31  ;;  %v705_v25 = vadd.f32 %v641_v22, %v577_v27  ;;  %v709_v26 = vadd.f32 %v645_v32, %v581_v61  ;;  %vm737_vm1 = vcmp.ge.f32.partialorder %v673_v30, 1.0  ;;  %v563_v27 = vld [vmem:[#allocation2 + $0x160] sm:$0xff]  ;;  %v567_v61 = vld [vmem:[#allocation2 + $0xf0] sm:$0xff] }
  0xf7   : > { %v721_v28 = vadd.f32 %v657_v20, %v593_v2  ;;  %v725_v15 = vadd.f32 %v661_v55, %v597_v58  ;;  %vm741_vm2 = vcmp.ge.f32.partialorder %v677_v49, 1.0  ;;  %v17583_v1 = vcombine.low %v12309_v11, %v12320_v43  ;;  %v615_v17 = vld [vmem:[%s17432_s0 + $0x70] sm:$0xff] }
  0xf8   : > { %v17584_v19 = vcombine.low %v12325_v18, %v12330_v46  ;;  %v12651_v6 = vpack.c.bf16 %v1160_v4, %v1156_v29  ;;  %vm753_vm3 = vcmp.ge.f32.partialorder %v689_v40, 1.0  ;;  %vm757_vm4 = vcmp.ge.f32.partialorder %v693_v9, 1.0  ;;  %v627_v0 = vld [vmem:[%s17432_s0 + $0xd0] sm:$0xff] }
  0xf9   : > { %2883 = vmatpush2.bf16.msra.mxu1 %v17583_v1  ;;  %vm769_vm5 = vcmp.ge.f32.partialorder %v705_v25, 1.0  ;;  %v17585_v8 = vcombine.high %v12341_v57, %v12346_v39  ;;  %v17588_v14 = vcombine.high %v17586_v5, %v17587_v24  ;;  %vm773_vm6 = vcmp.ge.f32.partialorder %v709_v26, 1.0  ;;  %v631_v47 = vld [vmem:[%s17432_s0 + $0xf0] sm:$0xff]  ;;  %v17600_v1 = vld [vmem:[#allocation20_spill] sm:$0xff] }
  0xfa   : > { %2832 = vmatpush2.bf16.msra.mxu0 %v17584_v19  ;;  %vm785_vm7 = vcmp.ge.f32.partialorder %v721_v28, 1.0  ;;  %vm789_vm8 = vcmp.ge.f32.partialorder %v725_v15, 1.0  ;;  %v12660_v11 = vsel %vm737_vm1, 1.0, %v17512_v35  ;;  %2800 = vmatprep.mubr.bf16.mxu1 %v12651_v6  ;;  %v12664_v43 = vsel %vm741_vm2, 1.0, %v17512_v35  ;;  %v643_v59 = vld [vmem:[%s17432_s0 + $0x150] sm:$0xff] }
  0xfb   : > { %2884 = vmatprep.subr.bf16.mxu1 %v17585_v8  ;;  %2833 = vmatprep.subr.bf16.mxu0 %v17588_v14  ;;  %v10088_v18 = vsel %vm753_vm3, 1.0, %v17512_v35  ;;  %v10092_v46 = vsel %vm757_vm4, 1.0, %v17512_v35  ;;  %v10104_v62 = vsel %vm769_vm5, 1.0, %v17512_v35  ;;  %v10108_v50 = vsel %vm773_vm6, 1.0, %v17512_v35  ;;  %v647_v10 = vld [vmem:[%s17432_s0 + $0x170] sm:$0xff] }
  0xfc   : > { %v10120_v16 = vsel %vm785_vm7, 1.0, %v17512_v35  ;;  %v10124_v3 = vsel %vm789_vm8, 1.0, %v17512_v35  ;;  %v929_v51 = vsub.f32 1.0, %v12660_v11  ;;  %v17589_v54 = vcombine.low %v12341_v57, %v12346_v39  ;;  %v17595_v39 = vld [vmem:[#allocation16_spill] sm:$0xff] }
  0xfd   : > { %v17590_v13 = vcombine.low %v17586_v5, %v17587_v24  ;;  %v933_v37 = vsub.f32 1.0, %v12664_v43  ;;  %v945_v41 = vsub.f32 1.0, %v10088_v18  ;;  %v949_v42 = vsub.f32 1.0, %v10092_v46 }
  0xfe   : > { %2885 = vmatpush2.bf16.msra.mxu1 %v17589_v54  ;;  %v961_v34 = vsub.f32 1.0, %v10104_v62  ;;  %v17593_v53 = vcombine.high %v17591_v33, %v17592_v7  ;;  %v17596_v57 = vcombine.high %v17594_v56, %v17595_v39  ;;  %v965_v38 = vsub.f32 1.0, %v10108_v50 }
  0xff   : > { %2834 = vmatpush2.bf16.msra.mxu0 %v17590_v13  ;;  %v977_v44 = vsub.f32 1.0, %v10120_v16  ;;  %v981_v12 = vsub.f32 1.0, %v10124_v3  ;;  %v993_v63 = vmul.f32 %v929_v51, %v673_v30  ;;  %v997_v23 = vmul.f32 %v933_v37, %v677_v49  ;;  %v595_v30 = vld [vmem:[#allocation2 + $0xc0] sm:$0xff] }
 0x100   : > { %2886 = vmatprep.subr.bf16.mxu1 %v17593_v53  ;;  %2835 = vmatprep.subr.bf16.mxu0 %v17596_v57  ;;  %v1009_v2 = vmul.f32 %v945_v41, %v689_v40  ;;  %v1013_v22 = vmul.f32 %v949_v42, %v693_v9  ;;  %v1025_v32 = vmul.f32 %v961_v34, %v705_v25  ;;  %v599_v25 = vld [vmem:[#allocation2 + $0x58] sm:$0xff]  ;;  %vm7053_vm1 = vcmask 261120  }
 0x101   : > { %v1029_v31 = vmul.f32 %v965_v38, %v709_v26  ;;  %v1041_v58 = vmul.f32 %v977_v44, %v721_v28  ;;  %v1045_v20 = vmul.f32 %v981_v12, %v725_v15  ;;  %1057 = vst [vmem:[#allocation2 + $0x180] sm:$0xff] %v993_v63  ;;  %v1121_v55 = vmax.f32 %v12660_v11, %v10088_v18  ;;  %v659_v26 = vld [vmem:[%s17432_s0 + $0x1d0] sm:$0xff]  ;;  %v1250_v44 = vld [vmem:[%s17433_s1 + $0x288] sm:$0xff] }
 0x102   : > { %v17597_v49 = vcombine.low %v17591_v33, %v17592_v7  ;;  %v17598_v40 = vcombine.low %v17594_v56, %v17595_v39  ;;  %1061 = vst [vmem:[#allocation2 + $0x120] sm:$0xff] %v997_v23  ;;  %1073 = vst [vmem:[#allocation2 + $0x1e8] sm:$0xff] %v1009_v2  ;;  %v1125_v9 = vmax.f32 %v12664_v43, %v10092_v46  ;;  %v663_v28 = vld [vmem:[%s17432_s0 + $0x1f0] sm:$0xff]  ;;  %v1254_v12 = vld [vmem:[%s17433_s1 + $0x2a8] sm:$0xff] }
 0x103   : > { %1077 = vst [vmem:[#allocation2 + $0x1e0] sm:$0xff] %v1013_v22  ;;  %1089 = vst [vmem:[#allocation2 + $0x1a0] sm:$0xff] %v1025_v32  ;;  %v1137_v29 = vmax.f32 %v10104_v62, %v10120_v16  ;;  %v1141_v4 = vmax.f32 %v10108_v50, %v10124_v3  ;;  %v17599_v15 = vld [vmem:[#allocation19_spill] sm:$0xff]  ;;  %v675_v8 = vadd.f32 %v611_v36, %v547_v52  ;;  %v1378_v23 = vld [vmem:[%s17433_s1 + $0x688] sm:$0xff] }
 0x104   : > { %2887 = vmatpush2.bf16.msra.mxu1 %v17597_v49  ;;  %2836 = vmatpush2.bf16.msra.mxu0 %v17598_v40  ;;  %v17601_v19 = vcombine.high %v17599_v15, %v17600_v1  ;;  %1093 = vst [vmem:[#allocation2 + $0x70] sm:$0xff] %v1029_v31  ;;  %1105 = vst [vmem:[#allocation2 + $0x198] sm:$0xff] %v1041_v58  ;;  %v679_v5 = vadd.f32 %v615_v17, %v551_v60  ;;  %v1382_v2 = vld [vmem:[%s17433_s1 + $0x6a8] sm:$0xff] }
 0x105   : > { %1109 = vst [vmem:[#allocation2 + $0x158] sm:$0xff] %v1045_v20  ;;  %v691_v24 = vadd.f32 %v627_v0, %v563_v27  ;;  %v695_v14 = vadd.f32 %v631_v47, %v567_v61  ;;  %v1153_v11 = vmax.f32 %v1121_v55, %v1137_v29  ;;  %v1157_v43 = vmax.f32 %v1125_v9, %v1141_v4  ;;  %v17603_v27 = vld [vmem:[#allocation17_spill] sm:$0xff] }
 0x106   : > { %2888 = vmatprep.subr.bf16.mxu1 %v17601_v19  ;;  %v707_v18 = vadd.f32 %v643_v59, %v579_v45  ;;  %v711_v46 = vadd.f32 %v647_v10, %v583_v21  ;;  %v723_v62 = vadd.f32 %v659_v26, %v595_v30  ;;  %v727_v50 = vadd.f32 %v663_v28, %v599_v25  ;;  %v1242_v47 = vld [vmem:[%s17433_s1 + $0x248] sm:$0xff] }
 0x107   : > { %vm739_vm9 = vcmp.ge.f32.partialorder %v675_v8, 1.0  ;;  %vm743_vm10 = vcmp.ge.f32.partialorder %v679_v5, 1.0  ;;  %v17602_v16 = vcombine.low %v17599_v15, %v17600_v1  ;;  %v12724_v3 = vpack.c.bf16 %v1157_v43, %v1153_v11  ;;  %v1246_v31 = vld [vmem:[%s17433_s1 + $0x268] sm:$0xff]  ;;  %v1227_v43 = vld [vmem:[%s17433_s1 + $0x1d0] sm:$0xff] }
 0x108   : > { %vm755_vm11 = vcmp.ge.f32.partialorder %v691_v24, 1.0  ;;  %vm759_vm12 = vcmp.ge.f32.partialorder %v695_v14, 1.0  ;;  %vm771_vm13 = vcmp.ge.f32.partialorder %v707_v18, 1.0  ;;  %vm775_vm14 = vcmp.ge.f32.partialorder %v711_v46, 1.0  ;;  %v1370_v59 = vld [vmem:[%s17433_s1 + $0x648] sm:$0xff] }
 0x109   : > { %2889 = vmatpush2.bf16.msra.mxu1 %v17602_v16  ;;  %vm787_vm15 = vcmp.ge.f32.partialorder %v723_v62, 1.0  ;;  %vm791_vm0 = vcmp.ge.f32.partialorder %v727_v50, 1.0  ;;  %v10074_v51 = vsel %vm739_vm9, 1.0, %v17512_v35  ;;  %2748 = vmatmul.mubr.bf16.gmra.mxu0 %v12724_v3  ;;  %v10078_v54 = vsel %vm743_vm10, 1.0, %v17512_v35  ;;  %v1374_v10 = vld [vmem:[%s17433_s1 + $0x668] sm:$0xff] }
 0x10a   : > { %v10090_v13 = vsel %vm755_vm11, 1.0, %v17512_v35  ;;  %v10094_v37 = vsel %vm759_vm12, 1.0, %v17512_v35  ;;  %v10106_v41 = vsel %vm771_vm13, 1.0, %v17512_v35  ;;  %v10110_v42 = vsel %vm775_vm14, 1.0, %v17512_v35  ;;  %2843 = vmatprep.mubr.bf16.mxu0 %v17603_v27  ;;  %v1234_v29 = vld [vmem:[%s17433_s1 + $0x208] sm:$0xff] }
 0x10b   : > { %v10122_v34 = vsel %vm787_vm15, 1.0, %v17512_v35  ;;  %v10126_v52 = vsel %vm791_vm0, 1.0, %v17512_v35  ;;  %v931_v60 = vsub.f32 1.0, %v10074_v51  ;;  %v935_v61 = vsub.f32 1.0, %v10078_v54  ;;  %v1238_v28 = vld [vmem:[%s17433_s1 + $0x228] sm:$0xff] }
 0x10c   : > { %v947_v33 = vsub.f32 1.0, %v10090_v13  ;;  %v951_v7 = vsub.f32 1.0, %v10094_v37  ;;  %v963_v53 = vsub.f32 1.0, %v10106_v41  ;;  %v967_v56 = vsub.f32 1.0, %v10110_v42  ;;  %v1362_v15 = vld [vmem:[%s17433_s1 + $0x608] sm:$0xff] }
 0x10d   : > { %v979_v39 = vsub.f32 1.0, %v10122_v34  ;;  %v983_v57 = vsub.f32 1.0, %v10126_v52  ;;  %v995_v38 = vmul.f32 %v931_v60, %v675_v8  ;;  %v999_v63 = vmul.f32 %v935_v61, %v679_v5  ;;  %v1366_v1 = vld [vmem:[%s17433_s1 + $0x628] sm:$0xff] }
 0x10e   : > { %v1011_v45 = vmul.f32 %v947_v33, %v691_v24  ;;  %v1015_v21 = vmul.f32 %v951_v7, %v695_v14  ;;  %v1027_v36 = vmul.f32 %v963_v53, %v707_v18  ;;  %v1031_v22 = vmul.f32 %v967_v56, %v711_v46  ;;  %v1231_v18 = vld [vmem:[%s17433_s1 + $0x1f0] sm:$0xff] }
 0x10f   : > { %v1043_v32 = vmul.f32 %v979_v39, %v723_v62  ;;  %v1047_v17 = vmul.f32 %v983_v57, %v727_v50  ;;  %1059 = vst [vmem:[#allocation2 + $0x118] sm:$0xff] %v995_v38  ;;  %v1123_v0 = vmax.f32 %v10074_v51, %v10090_v13  ;;  %1063 = vst [vmem:[#allocation2 + $0x108] sm:$0xff] %v999_v63  ;;  %v1355_v46 = vld [vmem:[%s17433_s1 + $0x5d0] sm:$0xff]  ;;  %v17605_v57 = vld [vmem:[#allocation9_spill] sm:$0xff] }
 0x110   : > { %1075 = vst [vmem:[#allocation2 + $0x160] sm:$0xff] %v1011_v45  ;;  %1079 = vst [vmem:[#allocation2 + $0xf0] sm:$0xff] %v1015_v21  ;;  %v1127_v58 = vmax.f32 %v10078_v54, %v10094_v37  ;;  %v1139_v20 = vmax.f32 %v10106_v41, %v10122_v34  ;;  %v1143_v55 = vmax.f32 %v10110_v42, %v10126_v52  ;;  %v1359_v62 = vld [vmem:[%s17433_s1 + $0x5f0] sm:$0xff] }
 0x111   : > { %1091 = vst [vmem:[#allocation2 + $0xe8] sm:$0xff] %v1027_v36  ;;  %v10210_v30 = vcombine.low %v1250_v44, %v1254_v12  ;;  %1095 = vst [vmem:[#allocation2 + $0x1d8] sm:$0xff] %v1031_v22  ;;  %v10211_v49 = vcombine.high %v1250_v44, %v1254_v12  ;;  %v10338_v40 = vcombine.low %v1378_v23, %v1382_v2  ;;  %v17604_v50 = vld [vmem:[#allocation18_spill] sm:$0xff] }
 0x112   : > { %1107 = vst [vmem:[#allocation2 + $0xc0] sm:$0xff] %v1043_v32  ;;  %1111 = vst [vmem:[#allocation2 + $0x58] sm:$0xff] %v1047_v17  ;;  %v10339_v9 = vcombine.high %v1378_v23, %v1382_v2  ;;  %v1155_v4 = vmax.f32 %v1123_v0, %v1139_v20  ;;  %v1159_v25 = vmax.f32 %v1127_v58, %v1143_v55  ;;  %v1219_v37 = vld [vmem:[%s17433_s1 + $0x190] sm:$0xff] }
 0x113   : > { %v10203_v26 = vcombine.high %v1242_v47, %v1246_v31  ;;  %2837 = vmatprep.subr.bf16.mxu0 %v10211_v49  ;;  %v10331_v19 = vcombine.high %v1370_v59, %v1374_v10  ;;  %v10202_v5 = vcombine.low %v1242_v47, %v1246_v31  ;;  %v10330_v24 = vcombine.low %v1370_v59, %v1374_v10  ;;  %v1223_v41 = vld [vmem:[%s17433_s1 + $0x1b0] sm:$0xff] }
 0x114   : > { %2890 = vmatprep.subr.bf16.mxu1 %v10339_v9  ;;  %v12772_v8 = vpack.c.bf16 %v1159_v25, %v1155_v4  ;;  %2838 = vmatpush2.bf16.msra.mxu0 %v10210_v30  ;;  %v10195_v14 = vcombine.high %v1234_v29, %v1238_v28  ;;  %v10323_v11 = vcombine.high %v1362_v15, %v1366_v1  ;;  %v1347_v42 = vld [vmem:[%s17433_s1 + $0x590] sm:$0xff] }
 0x115   : > { %2891 = vmatpush2.bf16.msra.mxu1 %v10338_v40  ;;  %2839 = vmatprep.subr.bf16.mxu0 %v10203_v26  ;;  %v10194_v16 = vcombine.low %v1234_v29, %v1238_v28  ;;  %v10322_v51 = vcombine.low %v1362_v15, %v1366_v1  ;;  %v10189_v54 = vcombine.high %v1227_v43, %v1231_v18  ;;  %v1351_v34 = vld [vmem:[%s17433_s1 + $0x5b0] sm:$0xff] }
 0x116   : > { %2892 = vmatprep.subr.bf16.mxu1 %v10331_v19  ;;  %2801 = vmatmul.mubr.bf16.gmra.mxu1 %v12772_v8  ;;  %v10317_v13 = vcombine.high %v1355_v46, %v1359_v62  ;;  %v10188_v52 = vcombine.low %v1227_v43, %v1231_v18  ;;  %v10316_v60 = vcombine.low %v1355_v46, %v1359_v62  ;;  %v1211_v7 = vld [vmem:[%s17433_s1 + $0x150] sm:$0xff] }
 0x117   : > { %2896 = vmatprep.mubr.bf16.mxu1 %v17604_v50  ;;  %v10181_v61 = vcombine.high %v1219_v37, %v1223_v41  ;;  %v10309_v33 = vcombine.high %v1347_v42, %v1351_v34  ;;  %v1215_v53 = vld [vmem:[%s17433_s1 + $0x170] sm:$0xff]  ;;  %v10180_v44 = vcombine.low %v1219_v37, %v1223_v41  ;;  %v10308_v12 = vcombine.low %v1347_v42, %v1351_v34 }
 0x118   : > { %2840 = vmatpush2.bf16.msra.mxu0 %v10202_v5  ;;  %v1339_v56 = vld [vmem:[%s17433_s1 + $0x550] sm:$0xff]  ;;  %v10173_v63 = vcombine.high %v1211_v7, %v1215_v53  ;;  %v10172_v22 = vcombine.low %v1211_v7, %v1215_v53 }
 0x119   : > { %2893 = vmatpush2.bf16.msra.mxu1 %v10330_v24  ;;  %2841 = vmatprep.subr.bf16.mxu0 %v10195_v14  ;;  %v1343_v39 = vld [vmem:[%s17433_s1 + $0x570] sm:$0xff] }
 0x11a   : > { %2894 = vmatprep.subr.bf16.mxu1 %v10323_v11  ;;  %v17606_v38 = vld [vmem:[#allocation10_spill] sm:$0xff]  ;;  %v10301_v45 = vcombine.high %v1339_v56, %v1343_v39  ;;  %v10300_v32 = vcombine.low %v1339_v56, %v1343_v39 }
 0x11b   : > { %v1203_v21 = vld [vmem:[%s17433_s1 + $0x110] sm:$0xff] }
 0x11c   : > { %2842 = vmatpush2.bf16.msra.mxu0 %v10194_v16  ;;  %v1207_v36 = vld [vmem:[%s17433_s1 + $0x130] sm:$0xff] }
 0x11d   : > { %2895 = vmatpush2.bf16.msra.mxu1 %v10322_v51  ;;  %2917 = vmatprep.subr.bf16.mxu0 %v10189_v54  ;;  %v1331_v23 = vld [vmem:[%s17433_s1 + $0x510] sm:$0xff]  ;;  %v10165_v17 = vcombine.high %v1203_v21, %v1207_v36  ;;  %v10164_v55 = vcombine.low %v1203_v21, %v1207_v36 }
 0x11e   : > { %2970 = vmatprep.subr.bf16.mxu1 %v10317_v13  ;;  %v1335_v2 = vld [vmem:[%s17433_s1 + $0x530] sm:$0xff] }
 0x11f   : > { %2844 = vmatmul.mubr.bf16.vlgmr.msra.gmra.mxu0 %v17605_v57  ;;  %v10293_v0 = vcombine.high %v1331_v23, %v1335_v2  ;;  %v1195_v47 = vld [vmem:[%s17433_s1 + $0xd0] sm:$0xff]  ;;  %v10292_v30 = vcombine.low %v1331_v23, %v1335_v2 }
 0x120   : > { %2897 = vmatmul.mubr.bf16.vlgmr.msra.gmra.mxu1 %v17606_v38  ;;  %2918 = vmatpush1.bf16.msra.mxu0 %v10188_v52  ;;  %v1199_v31 = vld [vmem:[%s17433_s1 + $0xf0] sm:$0xff] }
 0x121   : > { %2971 = vmatpush1.bf16.msra.mxu1 %v10316_v60  ;;  %2919 = vmatprep.subr.bf16.mxu0 %v10181_v61  ;;  %v1323_v58 = vld [vmem:[%s17433_s1 + $0x4d0] sm:$0xff]  ;;  %v10157_v59 = vcombine.high %v1195_v47, %v1199_v31  ;;  %v10156_v4 = vcombine.low %v1195_v47, %v1199_v31 }
 0x122   : > { %2972 = vmatprep.subr.bf16.mxu1 %v10309_v33  ;;  %2853 = vmatprep.mubr.bf16.mxu0 %v12564_v48  ;;  %v1327_v20 = vld [vmem:[%s17433_s1 + $0x4f0] sm:$0xff] }
 0x123   : > { %2906 = vmatprep.mubr.bf16.mxu1 %v12651_v6  ;;  %v10285_v10 = vcombine.high %v1323_v58, %v1327_v20  ;;  %v1187_v49 = vld [vmem:[%s17433_s1 + $0x90] sm:$0xff]  ;;  %v10284_v25 = vcombine.low %v1323_v58, %v1327_v20 }
 0x124   : > { %2920 = vmatpush1.bf16.msra.mxu0 %v10180_v44  ;;  %v1191_v40 = vld [vmem:[%s17433_s1 + $0xb0] sm:$0xff] }
 0x125   : > { %2973 = vmatpush1.bf16.msra.mxu1 %v10308_v12  ;;  %2921 = vmatprep.subr.bf16.mxu0 %v10173_v63  ;;  %v1315_v9 = vld [vmem:[%s17433_s1 + $0x490] sm:$0xff]  ;;  %v10149_v26 = vcombine.high %v1187_v49, %v1191_v40  ;;  %v10148_v24 = vcombine.low %v1187_v49, %v1191_v40 }
 0x126   : > { %2974 = vmatprep.subr.bf16.mxu1 %v10301_v45  ;;  %v1319_v29 = vld [vmem:[%s17433_s1 + $0x4b0] sm:$0xff] }
 0x127   : > { %2854 = vmatmul.mubr.bf16.gmra.mxu0 %v12724_v3  ;;  %v10277_v28 = vcombine.high %v1315_v9, %v1319_v29  ;;  %v1179_v15 = vld [vmem:[%s17433_s1 + $0x50] sm:$0xff]  ;;  %v10276_v14 = vcombine.low %v1315_v9, %v1319_v29 }
 0x128   : > { %2907 = vmatmul.mubr.bf16.gmra.mxu1 %v12772_v8  ;;  %2922 = vmatpush1.bf16.msra.mxu0 %v10172_v22  ;;  %v1183_v1 = vld [vmem:[%s17433_s1 + $0x70] sm:$0xff] }
 0x129   : > { %2975 = vmatpush1.bf16.msra.mxu1 %v10300_v32  ;;  %2923 = vmatprep.subr.bf16.mxu0 %v10165_v17  ;;  %v1307_v19 = vld [vmem:[%s17433_s1 + $0x450] sm:$0xff]  ;;  %v10141_v11 = vcombine.high %v1179_v15, %v1183_v1  ;;  %v10140_v51 = vcombine.low %v1179_v15, %v1183_v1 }
 0x12a   : > { %2976 = vmatprep.subr.bf16.mxu1 %v10293_v0  ;;  %2949 = vmatprep.mubr.bf16.mxu0 %v17603_v27  ;;  %v1311_v5 = vld [vmem:[%s17433_s1 + $0x470] sm:$0xff] }
 0x12b   : > { %3002 = vmatprep.mubr.bf16.mxu1 %v17604_v50  ;;  %v10269_v43 = vcombine.high %v1307_v19, %v1311_v5  ;;  %v1171_v18 = vld [vmem:[%s17433_s1 + $0x10] sm:$0xff]  ;;  %v10268_v54 = vcombine.low %v1307_v19, %v1311_v5 }
 0x12c   : > { %2924 = vmatpush1.bf16.msra.mxu0 %v10164_v55  ;;  %v1175_v46 = vld [vmem:[%s17433_s1 + $0x30] sm:$0xff] }
 0x12d   : > { %2977 = vmatpush1.bf16.msra.mxu1 %v10292_v30  ;;  %2925 = vmatprep.subr.bf16.mxu0 %v10157_v59  ;;  %v1299_v62 = vld [vmem:[%s17433_s1 + $0x410] sm:$0xff]  ;;  %v10133_v13 = vcombine.high %v1171_v18, %v1175_v46  ;;  %v10132_v60 = vcombine.low %v1171_v18, %v1175_v46 }
 0x12e   : > { %2978 = vmatprep.subr.bf16.mxu1 %v10285_v10  ;;  %v1303_v16 = vld [vmem:[%s17433_s1 + $0x430] sm:$0xff] }
 0x12f   : > { %v10261_v37 = vcombine.high %v1299_v62, %v1303_v16  ;;  %v1291_v41 = vld [vmem:[%s17433_s1 + $0x3d0] sm:$0xff]  ;;  %v10260_v61 = vcombine.low %v1299_v62, %v1303_v16 }
 0x130   : > { %2926 = vmatpush1.bf16.msra.mxu0 %v10156_v4  ;;  %v1295_v42 = vld [vmem:[%s17433_s1 + $0x3f0] sm:$0xff] }
 0x131   : > { %2979 = vmatpush1.bf16.msra.mxu1 %v10284_v25  ;;  %2927 = vmatprep.subr.bf16.mxu0 %v10149_v26  ;;  %v1419_v34 = vld [vmem:[%s17433_s1 + $0x7d0] sm:$0xff]  ;;  %v10253_v33 = vcombine.high %v1291_v41, %v1295_v42  ;;  %v10252_v12 = vcombine.low %v1291_v41, %v1295_v42 }
 0x132   : > { %2980 = vmatprep.subr.bf16.mxu1 %v10277_v28  ;;  %v1423_v52 = vld [vmem:[%s17433_s1 + $0x7f0] sm:$0xff] }
 0x133   : > { %v10381_v7 = vcombine.high %v1419_v34, %v1423_v52  ;;  %v1283_v53 = vld [vmem:[%s17433_s1 + $0x390] sm:$0xff]  ;;  %v10380_v63 = vcombine.low %v1419_v34, %v1423_v52 }
 0x134   : > { %2928 = vmatpush1.bf16.msra.mxu0 %v10148_v24  ;;  %v1287_v56 = vld [vmem:[%s17433_s1 + $0x3b0] sm:$0xff] }
 0x135   : > { %2981 = vmatpush1.bf16.msra.mxu1 %v10276_v14  ;;  %2929 = vmatprep.subr.bf16.mxu0 %v10141_v11  ;;  %v1411_v39 = vld [vmem:[%s17433_s1 + $0x790] sm:$0xff]  ;;  %v10245_v45 = vcombine.high %v1283_v53, %v1287_v56  ;;  %v10244_v32 = vcombine.low %v1283_v53, %v1287_v56  ;;  %v1228_v56 = vld [vmem:[%s17433_s1 + $0x1d8] sm:$0xff] }
 0x136   : > { %2982 = vmatprep.subr.bf16.mxu1 %v10269_v43  ;;  %v1415_v44 = vld [vmem:[%s17433_s1 + $0x7b0] sm:$0xff] }
 0x137   : > { %v10373_v21 = vcombine.high %v1411_v39, %v1415_v44  ;;  %v1275_v36 = vld [vmem:[%s17433_s1 + $0x350] sm:$0xff]  ;;  %v10372_v17 = vcombine.low %v1411_v39, %v1415_v44  ;;  %v1232_v39 = vld [vmem:[%s17433_s1 + $0x1f8] sm:$0xff] }
 0x138   : > { %2930 = vmatpush1.bf16.msra.mxu0 %v10140_v51  ;;  %v1279_v23 = vld [vmem:[%s17433_s1 + $0x370] sm:$0xff]  ;;  %v1356_v44 = vld [vmem:[%s17433_s1 + $0x5d8] sm:$0xff] }
 0x139   : > { %2983 = vmatpush1.bf16.msra.mxu1 %v10268_v54  ;;  %2931 = vmatprep.subr.bf16.mxu0 %v10133_v13  ;;  %v1403_v2 = vld [vmem:[%s17433_s1 + $0x750] sm:$0xff]  ;;  %v10237_v0 = vcombine.high %v1275_v36, %v1279_v23  ;;  %v10236_v30 = vcombine.low %v1275_v36, %v1279_v23  ;;  %v1220_v23 = vld [vmem:[%s17433_s1 + $0x198] sm:$0xff] }
 0x13a   : > { %2984 = vmatprep.subr.bf16.mxu1 %v10261_v37  ;;  %v1407_v22 = vld [vmem:[%s17433_s1 + $0x770] sm:$0xff] }
 0x13b   : > { %v10365_v47 = vcombine.high %v1403_v2, %v1407_v22  ;;  %v1267_v31 = vld [vmem:[%s17433_s1 + $0x310] sm:$0xff]  ;;  %v10364_v59 = vcombine.low %v1403_v2, %v1407_v22  ;;  %v1224_v2 = vld [vmem:[%s17433_s1 + $0x1b8] sm:$0xff] }
 0x13c   : > { %2932 = vmatpush1.bf16.msra.mxu0 %v10132_v60  ;;  %v1271_v58 = vld [vmem:[%s17433_s1 + $0x330] sm:$0xff]  ;;  %v1348_v22 = vld [vmem:[%s17433_s1 + $0x598] sm:$0xff] }
 0x13d   : > { %2985 = vmatpush1.bf16.msra.mxu1 %v10260_v61  ;;  %2933 = vmatprep.subr.bf16.mxu0 %v10253_v33  ;;  %v1395_v20 = vld [vmem:[%s17433_s1 + $0x710] sm:$0xff]  ;;  %v10229_v10 = vcombine.high %v1267_v31, %v1271_v58  ;;  %v10228_v25 = vcombine.low %v1267_v31, %v1271_v58  ;;  %v1212_v58 = vld [vmem:[%s17433_s1 + $0x158] sm:$0xff] }
 0x13e   : > { %2986 = vmatprep.subr.bf16.mxu1 %v10381_v7  ;;  %v1399_v55 = vld [vmem:[%s17433_s1 + $0x730] sm:$0xff] }
 0x13f   : > { %v10357_v49 = vcombine.high %v1395_v20, %v1399_v55  ;;  %v1259_v40 = vld [vmem:[%s17433_s1 + $0x2d0] sm:$0xff]  ;;  %v10356_v26 = vcombine.low %v1395_v20, %v1399_v55  ;;  %v1216_v20 = vld [vmem:[%s17433_s1 + $0x178] sm:$0xff] }
 0x140   : > { %2934 = vmatpush2.bf16.msra.mxu0 %v10252_v12  ;;  %v1263_v9 = vld [vmem:[%s17433_s1 + $0x2f0] sm:$0xff]  ;;  %v1360_v12 = vld [vmem:[%s17433_s1 + $0x5f8] sm:$0xff] }
 0x141   : > { %2987 = vmatpush2.bf16.msra.mxu1 %v10380_v63  ;;  %2935 = vmatprep.subr.bf16.mxu0 %v10245_v45  ;;  %v1387_v29 = vld [vmem:[%s17433_s1 + $0x6d0] sm:$0xff]  ;;  %v10221_v28 = vcombine.high %v1259_v40, %v1263_v9  ;;  %v10220_v14 = vcombine.low %v1259_v40, %v1263_v9  ;;  %v10319_v36 = vcombine.high %v1356_v44, %v1360_v12  ;;  %v1340_v55 = vld [vmem:[%s17433_s1 + $0x558] sm:$0xff] }
 0x142   : > { %2988 = vmatprep.subr.bf16.mxu1 %v10373_v21  ;;  %v1391_v4 = vld [vmem:[%s17433_s1 + $0x6f0] sm:$0xff]  ;;  %v10191_v21 = vcombine.high %v1228_v56, %v1232_v39  ;;  %v1204_v9 = vld [vmem:[%s17433_s1 + $0x118] sm:$0xff] }
 0x143   : > { %v10349_v15 = vcombine.high %v1387_v29, %v1391_v4  ;;  %v1251_v1 = vld [vmem:[%s17433_s1 + $0x290] sm:$0xff]  ;;  %v10348_v11 = vcombine.low %v1387_v29, %v1391_v4  ;;  %v1208_v29 = vld [vmem:[%s17433_s1 + $0x138] sm:$0xff] }
 0x144   : > { %2936 = vmatpush2.bf16.msra.mxu0 %v10244_v32  ;;  %v1255_v19 = vld [vmem:[%s17433_s1 + $0x2b0] sm:$0xff]  ;;  %v1352_v32 = vld [vmem:[%s17433_s1 + $0x5b8] sm:$0xff] }
 0x145   : > { %2989 = vmatpush2.bf16.msra.mxu1 %v10372_v17  ;;  %2937 = vmatprep.subr.bf16.mxu0 %v10237_v0  ;;  %v1379_v5 = vld [vmem:[%s17433_s1 + $0x690] sm:$0xff]  ;;  %v10213_v43 = vcombine.high %v1251_v1, %v1255_v19  ;;  %v10212_v54 = vcombine.low %v1251_v1, %v1255_v19  ;;  %v10190_v17 = vcombine.low %v1228_v56, %v1232_v39  ;;  %v1332_v4 = vld [vmem:[%s17433_s1 + $0x518] sm:$0xff] }
 0x146   : > { %2990 = vmatprep.subr.bf16.mxu1 %v10365_v47  ;;  %v1383_v24 = vld [vmem:[%s17433_s1 + $0x6b0] sm:$0xff]  ;;  %v10318_v0 = vcombine.low %v1356_v44, %v1360_v12  ;;  %v10183_v47 = vcombine.high %v1220_v23, %v1224_v2  ;;  %v10311_v31 = vcombine.high %v1348_v22, %v1352_v32  ;;  %v1196_v19 = vld [vmem:[%s17433_s1 + $0xd8] sm:$0xff] }
 0x147   : > { %v10341_v18 = vcombine.high %v1379_v5, %v1383_v24  ;;  %v1243_v46 = vld [vmem:[%s17433_s1 + $0x250] sm:$0xff]  ;;  %v10340_v13 = vcombine.low %v1379_v5, %v1383_v24  ;;  %v1200_v5 = vld [vmem:[%s17433_s1 + $0xf8] sm:$0xff] }
 0x148   : > { %2938 = vmatpush2.bf16.msra.mxu0 %v10236_v30  ;;  %v1247_v62 = vld [vmem:[%s17433_s1 + $0x270] sm:$0xff]  ;;  %v1344_v30 = vld [vmem:[%s17433_s1 + $0x578] sm:$0xff] }
 0x149   : > { %2991 = vmatpush2.bf16.msra.mxu1 %v10364_v59  ;;  %2939 = vmatprep.subr.bf16.mxu0 %v10229_v10  ;;  %v1371_v16 = vld [vmem:[%s17433_s1 + $0x650] sm:$0xff]  ;;  %v10205_v37 = vcombine.high %v1243_v46, %v1247_v62  ;;  %v10204_v61 = vcombine.low %v1243_v46, %v1247_v62  ;;  %v10182_v59 = vcombine.low %v1220_v23, %v1224_v2  ;;  %v1324_v24 = vld [vmem:[%s17433_s1 + $0x4d8] sm:$0xff] }
 0x14a   : > { %2992 = vmatprep.subr.bf16.mxu1 %v10357_v49  ;;  %v1375_v51 = vld [vmem:[%s17433_s1 + $0x670] sm:$0xff]  ;;  %v10310_v10 = vcombine.low %v1348_v22, %v1352_v32  ;;  %v10175_v49 = vcombine.high %v1212_v58, %v1216_v20  ;;  %v10303_v40 = vcombine.high %v1340_v55, %v1344_v30  ;;  %v1188_v62 = vld [vmem:[%s17433_s1 + $0x98] sm:$0xff] }
 0x14b   : > { %v10333_v41 = vcombine.high %v1371_v16, %v1375_v51  ;;  %v1235_v42 = vld [vmem:[%s17433_s1 + $0x210] sm:$0xff]  ;;  %v10332_v33 = vcombine.low %v1371_v16, %v1375_v51  ;;  %v1192_v16 = vld [vmem:[%s17433_s1 + $0xb8] sm:$0xff] }
 0x14c   : > { %2940 = vmatpush2.bf16.msra.mxu0 %v10228_v25  ;;  %v1239_v34 = vld [vmem:[%s17433_s1 + $0x230] sm:$0xff]  ;;  %v1336_v25 = vld [vmem:[%s17433_s1 + $0x538] sm:$0xff] }
 0x14d   : > { %2993 = vmatpush2.bf16.msra.mxu1 %v10356_v26  ;;  %2941 = vmatprep.subr.bf16.mxu0 %v10221_v28  ;;  %v1363_v52 = vld [vmem:[%s17433_s1 + $0x610] sm:$0xff]  ;;  %v10197_v7 = vcombine.high %v1235_v42, %v1239_v34  ;;  %v10196_v63 = vcombine.low %v1235_v42, %v1239_v34  ;;  %v10174_v26 = vcombine.low %v1212_v58, %v1216_v20  ;;  %v1316_v51 = vld [vmem:[%s17433_s1 + $0x498] sm:$0xff] }
 0x14e   : > { %2994 = vmatprep.subr.bf16.mxu1 %v10349_v15  ;;  %v1367_v60 = vld [vmem:[%s17433_s1 + $0x630] sm:$0xff]  ;;  %v10302_v28 = vcombine.low %v1340_v55, %v1344_v30  ;;  %v10167_v15 = vcombine.high %v1204_v9, %v1208_v29  ;;  %v10295_v1 = vcombine.high %v1332_v4, %v1336_v25  ;;  %v1180_v34 = vld [vmem:[%s17433_s1 + $0x58] sm:$0xff] }
 0x14f   : > { %v10325_v53 = vcombine.high %v1363_v52, %v1367_v60  ;;  %v10324_v45 = vcombine.low %v1363_v52, %v1367_v60  ;;  %v1184_v52 = vld [vmem:[%s17433_s1 + $0x78] sm:$0xff] }
 0x150   : > { %2942 = vmatpush2.bf16.msra.mxu0 %v10220_v14  ;;  %v1328_v14 = vld [vmem:[%s17433_s1 + $0x4f8] sm:$0xff] }
 0x151   : > { %2995 = vmatpush2.bf16.msra.mxu1 %v10348_v11  ;;  %2943 = vmatprep.subr.bf16.mxu0 %v10213_v43  ;;  %v10166_v11 = vcombine.low %v1204_v9, %v1208_v29  ;;  %v10294_v43 = vcombine.low %v1332_v4, %v1336_v25  ;;  %v10287_v46 = vcombine.high %v1324_v24, %v1328_v14  ;;  %v1308_v60 = vld [vmem:[%s17433_s1 + $0x458] sm:$0xff] }
 0x152   : > { %2996 = vmatprep.subr.bf16.mxu1 %v10341_v18  ;;  %v10159_v18 = vcombine.high %v1196_v19, %v1200_v5  ;;  %v1172_v39 = vld [vmem:[%s17433_s1 + $0x18] sm:$0xff] }
 0x153   : > { %v1176_v44 = vld [vmem:[%s17433_s1 + $0x38] sm:$0xff] }
 0x154   : > { %2944 = vmatpush2.bf16.msra.mxu0 %v10212_v54  ;;  %v1320_v54 = vld [vmem:[%s17433_s1 + $0x4b8] sm:$0xff] }
 0x155   : > { %2997 = vmatpush2.bf16.msra.mxu1 %v10340_v13  ;;  %2945 = vmatprep.subr.bf16.mxu0 %v10205_v37  ;;  %v10158_v13 = vcombine.low %v1196_v19, %v1200_v5  ;;  %v10286_v37 = vcombine.low %v1324_v24, %v1328_v14  ;;  %v10279_v42 = vcombine.high %v1316_v51, %v1320_v54  ;;  %v1300_v12 = vld [vmem:[%s17433_s1 + $0x418] sm:$0xff] }
 0x156   : > { %2998 = vmatprep.subr.bf16.mxu1 %v10333_v41  ;;  %v10151_v41 = vcombine.high %v1188_v62, %v1192_v16  ;;  %v1292_v2 = vld [vmem:[%s17433_s1 + $0x3d8] sm:$0xff] }
 0x157   : > { %v1296_v22 = vld [vmem:[%s17433_s1 + $0x3f8] sm:$0xff] }
 0x158   : > { %2946 = vmatpush2.bf16.msra.mxu0 %v10204_v61  ;;  %v1312_v61 = vld [vmem:[%s17433_s1 + $0x478] sm:$0xff] }
 0x159   : > { %2999 = vmatpush2.bf16.msra.mxu1 %v10332_v33  ;;  %2947 = vmatprep.subr.bf16.mxu0 %v10197_v7  ;;  %v10150_v33 = vcombine.low %v1188_v62, %v1192_v16  ;;  %v10278_v7 = vcombine.low %v1316_v51, %v1320_v54  ;;  %v10271_v56 = vcombine.high %v1308_v60, %v1312_v61  ;;  %v1420_v32 = vld [vmem:[%s17433_s1 + $0x7d8] sm:$0xff] }
 0x15a   : > { %3000 = vmatprep.subr.bf16.mxu1 %v10325_v53  ;;  %v10143_v53 = vcombine.high %v1180_v34, %v1184_v52  ;;  %v1284_v20 = vld [vmem:[%s17433_s1 + $0x398] sm:$0xff] }
 0x15b   : > { %v1288_v55 = vld [vmem:[%s17433_s1 + $0x3b8] sm:$0xff] }
 0x15c   : > { %2948 = vmatpush2.bf16.msra.mxu0 %v10196_v63  ;;  %v1304_v63 = vld [vmem:[%s17433_s1 + $0x438] sm:$0xff] }
 0x15d   : > { %3001 = vmatpush2.bf16.msra.mxu1 %v10324_v45  ;;  %3023 = vmatprep.subr.bf16.mxu0 %v10191_v21  ;;  %v10142_v45 = vcombine.low %v1180_v34, %v1184_v52  ;;  %v10270_v21 = vcombine.low %v1308_v60, %v1312_v61  ;;  %v10263_v23 = vcombine.high %v1300_v12, %v1304_v63  ;;  %v1412_v30 = vld [vmem:[%s17433_s1 + $0x798] sm:$0xff] }
 0x15e   : > { %3076 = vmatprep.subr.bf16.mxu1 %v10319_v36  ;;  %v10135_v36 = vcombine.high %v1172_v39, %v1176_v44  ;;  %v1276_v29 = vld [vmem:[%s17433_s1 + $0x358] sm:$0xff] }
 0x15f   : > { %2950 = vmatmul.mubr.bf16.vlgmr.msra.gmra.mxu0 %v17605_v57  ;;  %v1280_v4 = vld [vmem:[%s17433_s1 + $0x378] sm:$0xff] }
 0x160   : > { %3003 = vmatmul.mubr.bf16.vlgmr.msra.gmra.mxu1 %v17606_v38  ;;  %3024 = vmatpush1.bf16.msra.mxu0 %v10190_v17  ;;  %v1424_v17 = vld [vmem:[%s17433_s1 + $0x7f8] sm:$0xff] }
 0x161   : > { %3077 = vmatpush1.bf16.msra.mxu1 %v10318_v0  ;;  %3025 = vmatprep.subr.bf16.mxu0 %v10183_v47  ;;  %v10134_v0 = vcombine.low %v1172_v39, %v1176_v44  ;;  %v10262_v47 = vcombine.low %v1300_v12, %v1304_v63  ;;  %v10383_v58 = vcombine.high %v1420_v32, %v1424_v17  ;;  %v1404_v25 = vld [vmem:[%s17433_s1 + $0x758] sm:$0xff] }
 0x162   : > { %3078 = vmatprep.subr.bf16.mxu1 %v10311_v31  ;;  %2959 = vmatprep.mubr.bf16.mxu0 %v12564_v48  ;;  %v10255_v31 = vcombine.high %v1292_v2, %v1296_v22  ;;  %v1268_v5 = vld [vmem:[%s17433_s1 + $0x318] sm:$0xff] }
 0x163   : > { %3012 = vmatprep.mubr.bf16.mxu1 %v12651_v6  ;;  %v1272_v24 = vld [vmem:[%s17433_s1 + $0x338] sm:$0xff] }
 0x164   : > { %3026 = vmatpush1.bf16.msra.mxu0 %v10182_v59  ;;  %v1416_v59 = vld [vmem:[%s17433_s1 + $0x7b8] sm:$0xff] }
 0x165   : > { %3079 = vmatpush1.bf16.msra.mxu1 %v10310_v10  ;;  %3027 = vmatprep.subr.bf16.mxu0 %v10175_v49  ;;  %v10254_v10 = vcombine.low %v1292_v2, %v1296_v22  ;;  %v10382_v49 = vcombine.low %v1420_v32, %v1424_v17  ;;  %v10375_v9 = vcombine.high %v1412_v30, %v1416_v59  ;;  %v1396_v14 = vld [vmem:[%s17433_s1 + $0x718] sm:$0xff] }
 0x166   : > { %3080 = vmatprep.subr.bf16.mxu1 %v10303_v40  ;;  %v10247_v40 = vcombine.high %v1284_v20, %v1288_v55  ;;  %v1260_v16 = vld [vmem:[%s17433_s1 + $0x2d8] sm:$0xff] }
 0x167   : > { %2960 = vmatmul.mubr.bf16.gmra.mxu0 %v12724_v3  ;;  %v1264_v51 = vld [vmem:[%s17433_s1 + $0x2f8] sm:$0xff] }
 0x168   : > { %3013 = vmatmul.mubr.bf16.gmra.mxu1 %v12772_v8  ;;  %3028 = vmatpush1.bf16.msra.mxu0 %v10174_v26  ;;  %v1408_v26 = vld [vmem:[%s17433_s1 + $0x778] sm:$0xff] }
 0x169   : > { %3081 = vmatpush1.bf16.msra.mxu1 %v10302_v28  ;;  %3029 = vmatprep.subr.bf16.mxu0 %v10167_v15  ;;  %v10246_v28 = vcombine.low %v1284_v20, %v1288_v55  ;;  %v10374_v15 = vcombine.low %v1412_v30, %v1416_v59  ;;  %v10367_v19 = vcombine.high %v1404_v25, %v1408_v26  ;;  %v1388_v54 = vld [vmem:[%s17433_s1 + $0x6d8] sm:$0xff]  ;;  %v3185_v30 = vld [vmem:[%s17434_s2 + $0x1c0] sm:$0xff] }
 0x16a   : > { %3082 = vmatprep.subr.bf16.mxu1 %v10295_v1  ;;  %3055 = vmatprep.mubr.bf16.mxu0 %v17603_v27  ;;  %v10239_v1 = vcombine.high %v1276_v29, %v1280_v4  ;;  %v1252_v52 = vld [vmem:[%s17433_s1 + $0x298] sm:$0xff]  ;;  %v2739_v32 = vpop.f32.mrf.mxu0 }
 0x16b   : > { %3108 = vmatprep.mubr.bf16.mxu1 %v17604_v50  ;;  %v1256_v60 = vld [vmem:[%s17433_s1 + $0x2b8] sm:$0xff] }
 0x16c   : > { %3030 = vmatpush1.bf16.msra.mxu0 %v10166_v11  ;;  %v1400_v11 = vld [vmem:[%s17433_s1 + $0x738] sm:$0xff]  ;;  %v13179_v59 = vpop.f32.mrf.mxu0 }
 0x16d   : > { %3083 = vmatpush1.bf16.msra.mxu1 %v10294_v43  ;;  %3031 = vmatprep.subr.bf16.mxu0 %v10159_v18  ;;  %v10238_v43 = vcombine.low %v1276_v29, %v1280_v4  ;;  %v10366_v18 = vcombine.low %v1404_v25, %v1408_v26  ;;  %v10359_v62 = vcombine.high %v1396_v14, %v1400_v11  ;;  %v1380_v61 = vld [vmem:[%s17433_s1 + $0x698] sm:$0xff] }
 0x16e   : > { %3084 = vmatprep.subr.bf16.mxu1 %v10287_v46  ;;  %v10231_v46 = vcombine.high %v1268_v5, %v1272_v24  ;;  %v1244_v44 = vld [vmem:[%s17433_s1 + $0x258] sm:$0xff] }
 0x16f   : > { %v1248_v12 = vld [vmem:[%s17433_s1 + $0x278] sm:$0xff] }
 0x170   : > { %3032 = vmatpush1.bf16.msra.mxu0 %v10158_v13  ;;  %v1392_v13 = vld [vmem:[%s17433_s1 + $0x6f8] sm:$0xff] }
 0x171   : > { %3085 = vmatpush1.bf16.msra.mxu1 %v10286_v37  ;;  %3033 = vmatprep.subr.bf16.mxu0 %v10151_v41  ;;  %v10230_v37 = vcombine.low %v1268_v5, %v1272_v24  ;;  %v10358_v41 = vcombine.low %v1396_v14, %v1400_v11  ;;  %v10351_v34 = vcombine.high %v1388_v54, %v1392_v13  ;;  %v1372_v63 = vld [vmem:[%s17433_s1 + $0x658] sm:$0xff]  ;;  %v3181_v5 = vld [vmem:[%s17434_s2 + $0x1a0] sm:$0xff] }
 0x172   : > { %3086 = vmatprep.subr.bf16.mxu1 %v10279_v42  ;;  %v10223_v42 = vcombine.high %v1260_v16, %v1264_v51  ;;  %v1236_v22 = vld [vmem:[%s17433_s1 + $0x218] sm:$0xff]  ;;  %v3305_v24 = vld [vmem:[%s17434_s2 + $0x580] sm:$0xff] }
 0x173   : > { %v1240_v17 = vld [vmem:[%s17433_s1 + $0x238] sm:$0xff]  ;;  %v3309_v14 = vld [vmem:[%s17434_s2 + $0x5a0] sm:$0xff] }
 0x174   : > { %3034 = vmatpush1.bf16.msra.mxu0 %v10150_v33  ;;  %v1384_v33 = vld [vmem:[%s17433_s1 + $0x6b8] sm:$0xff]  ;;  %v10199_v20 = vcombine.high %v1236_v22, %v1240_v17  ;;  %v10198_v29 = vcombine.low %v1236_v22, %v1240_v17  ;;  %v3149_v17 = vld [vmem:[%s17434_s2 + $0xa0] sm:$0xff] }
 0x175   : > { %3087 = vmatpush1.bf16.msra.mxu1 %v10278_v7  ;;  %3035 = vmatprep.subr.bf16.mxu0 %v10143_v53  ;;  %v10222_v7 = vcombine.low %v1260_v16, %v1264_v51  ;;  %v10350_v53 = vcombine.low %v1388_v54, %v1392_v13  ;;  %v10343_v39 = vcombine.high %v1380_v61, %v1384_v33  ;;  %v3169_v51 = vld [vmem:[%s17434_s2 + $0x140] sm:$0xff] }
 0x176   : > { %3088 = vmatprep.subr.bf16.mxu1 %v10271_v56  ;;  %v10215_v56 = vcombine.high %v1252_v52, %v1256_v60  ;;  %v10561_v16 = vcombine.high %v3305_v24, %v3309_v14  ;;  %v3173_v54 = vld [vmem:[%s17434_s2 + $0x160] sm:$0xff] }
 0x177   : > { %v3297_v13 = vld [vmem:[%s17434_s2 + $0x540] sm:$0xff] }
 0x178   : > { %3036 = vmatpush1.bf16.msra.mxu0 %v10142_v45  ;;  %v1376_v45 = vld [vmem:[%s17433_s1 + $0x678] sm:$0xff] }
 0x179   : > { %3089 = vmatpush1.bf16.msra.mxu1 %v10270_v21  ;;  %3037 = vmatprep.subr.bf16.mxu0 %v10135_v36  ;;  %v10214_v21 = vcombine.low %v1252_v52, %v1256_v60  ;;  %v10342_v36 = vcombine.low %v1380_v61, %v1384_v33  ;;  %v10335_v2 = vcombine.high %v1372_v63, %v1376_v45  ;;  %v3161_v60 = vld [vmem:[%s17434_s2 + $0x100] sm:$0xff] }
 0x17a   : > { %3090 = vmatprep.subr.bf16.mxu1 %v10263_v23  ;;  %v10207_v23 = vcombine.high %v1244_v44, %v1248_v12  ;;  %v3165_v61 = vld [vmem:[%s17434_s2 + $0x120] sm:$0xff] }
 0x17b   : > { %v3289_v33 = vld [vmem:[%s17434_s2 + $0x500] sm:$0xff] }
 0x17c   : > { %3038 = vmatpush1.bf16.msra.mxu0 %v10134_v0  ;;  %v1364_v0 = vld [vmem:[%s17433_s1 + $0x618] sm:$0xff] }
 0x17d   : > { %3091 = vmatpush1.bf16.msra.mxu1 %v10262_v47  ;;  %3039 = vmatprep.subr.bf16.mxu0 %v10255_v31  ;;  %v1368_v47 = vld [vmem:[%s17433_s1 + $0x638] sm:$0xff]  ;;  %v10206_v31 = vcombine.low %v1244_v44, %v1248_v12  ;;  %v3153_v12 = vld [vmem:[%s17434_s2 + $0xc0] sm:$0xff] }
 0x17e   : > { %3092 = vmatprep.subr.bf16.mxu1 %v10383_v58  ;;  %v10334_v58 = vcombine.low %v1372_v63, %v1376_v45  ;;  %v10327_v55 = vcombine.high %v1364_v0, %v1368_v47  ;;  %v10326_v4 = vcombine.low %v1364_v0, %v1368_v47  ;;  %v3157_v63 = vld [vmem:[%s17434_s2 + $0xe0] sm:$0xff] }
 0x17f   : > { %v3281_v45 = vld [vmem:[%s17434_s2 + $0x4c0] sm:$0xff] }
 0x180   : > { %3040 = vmatpush2.bf16.msra.mxu0 %v10254_v10  ;;  %v3189_v10 = vld [vmem:[%s17434_s2 + $0x1e0] sm:$0xff] }
 0x181   : > { %3093 = vmatpush2.bf16.msra.mxu1 %v10382_v49  ;;  %3041 = vmatprep.subr.bf16.mxu0 %v10247_v40  ;;  %v3313_v49 = vld [vmem:[%s17434_s2 + $0x5c0] sm:$0xff]  ;;  %v10441_v26 = vcombine.high %v3185_v30, %v3189_v10 }
 0x182   : > { %3094 = vmatprep.subr.bf16.mxu1 %v10375_v9  ;;  %v3317_v40 = vld [vmem:[%s17434_s2 + $0x5e0] sm:$0xff]  ;;  %v2792_v9 = vpop.f32.mrf.mxu1 }
 0x183   : > { %v13190_v25 = vadd.f32 %v2792_v9, %v2739_v32  ;;  %v3145_v32 = vld [vmem:[%s17434_s2 + $0x80] sm:$0xff] }
 0x184   : > { %3042 = vmatpush2.bf16.msra.mxu0 %v10246_v28  ;;  %v10569_v28 = vcombine.high %v3313_v49, %v3317_v40  ;;  %v3273_v0 = vld [vmem:[%s17434_s2 + $0x480] sm:$0xff]  ;;  %v10400_v9 = vcombine.low %v3145_v32, %v3149_v17 }
 0x185   : > { %3095 = vmatpush2.bf16.msra.mxu1 %v10374_v15  ;;  %3043 = vmatprep.subr.bf16.mxu0 %v10239_v1  ;;  %v13192_v15 = vpop.f32.mrf.mxu1  ;;  %v2743_v1 = vpop.f32.mrf.mxu0  ;;  %v3277_v47 = vld [vmem:[%s17434_s2 + $0x4a0] sm:$0xff] }
 0x186   : > { %3096 = vmatprep.subr.bf16.mxu1 %v10367_v19  ;;  %v3177_v19 = vld [vmem:[%s17434_s2 + $0x180] sm:$0xff] }
 0x187   : > { %v2796_v11 = vpop.f32.mrf.mxu1 }
 0x188   : > { %3044 = vmatpush2.bf16.msra.mxu0 %v10238_v43  ;;  %v10440_v43 = vcombine.low %v3185_v30, %v3189_v10  ;;  %v3137_v30 = vld [vmem:[%s17434_s2 + $0x40] sm:$0xff] }
 0x189   : > { %3097 = vmatpush2.bf16.msra.mxu1 %v10366_v18  ;;  %3045 = vmatprep.subr.bf16.mxu0 %v10231_v46  ;;  %v10568_v18 = vcombine.low %v3313_v49, %v3317_v40  ;;  %v13206_v46 = vadd.f32 %v2796_v11, %v2743_v1  ;;  %v3141_v10 = vld [vmem:[%s17434_s2 + $0x60] sm:$0xff] }
 0x18a   : > { %3098 = vmatprep.subr.bf16.mxu1 %v10359_v62  ;;  %v10433_v62 = vcombine.high %v3177_v19, %v3181_v5  ;;  %v3265_v49 = vld [vmem:[%s17434_s2 + $0x440] sm:$0xff] }
 0x18b   : > { %v3269_v40 = vld [vmem:[%s17434_s2 + $0x460] sm:$0xff] }
 0x18c   : > { %3046 = vmatpush2.bf16.msra.mxu0 %v10230_v37  ;;  %v3301_v37 = vld [vmem:[%s17434_s2 + $0x560] sm:$0xff] }
 0x18d   : > { %3099 = vmatpush2.bf16.msra.mxu1 %v10358_v41  ;;  %3047 = vmatprep.subr.bf16.mxu0 %v10223_v42  ;;  %v10432_v41 = vcombine.low %v3177_v19, %v3181_v5  ;;  %v10560_v42 = vcombine.low %v3305_v24, %v3309_v14  ;;  %v10553_v52 = vcombine.high %v3297_v13, %v3301_v37  ;;  %v3133_v1 = vld [vmem:[%s17434_s2 + $0x20] sm:$0xff] }
 0x18e   : > { %3100 = vmatprep.subr.bf16.mxu1 %v10351_v34  ;;  %v10425_v34 = vcombine.high %v3169_v51, %v3173_v54  ;;  %v3257_v19 = vld [vmem:[%s17434_s2 + $0x400] sm:$0xff]  ;;  %v10392_v24 = vcombine.low %v3137_v30, %v3141_v10  ;;  %v10520_v14 = vcombine.low %v3265_v49, %v3269_v40 }
 0x18f   : > { %v3261_v5 = vld [vmem:[%s17434_s2 + $0x420] sm:$0xff] }
 0x190   : > { %3048 = vmatpush2.bf16.msra.mxu0 %v10222_v7  ;;  %v3293_v7 = vld [vmem:[%s17434_s2 + $0x520] sm:$0xff] }
 0x191   : > { %3101 = vmatpush2.bf16.msra.mxu1 %v10350_v53  ;;  %3049 = vmatprep.subr.bf16.mxu0 %v10215_v56  ;;  %v10424_v53 = vcombine.low %v3169_v51, %v3173_v54  ;;  %v10552_v56 = vcombine.low %v3297_v13, %v3301_v37  ;;  %v10545_v44 = vcombine.high %v3289_v33, %v3293_v7  ;;  %v3381_v51 = vld [vmem:[%s17434_s2 + $0x7e0] sm:$0xff] }
 0x192   : > { %3102 = vmatprep.subr.bf16.mxu1 %v10343_v39  ;;  %v10417_v39 = vcombine.high %v3161_v60, %v3165_v61  ;;  %v10512_v13 = vcombine.low %v3257_v19, %v3261_v5 }
 0x194   : > { %3050 = vmatpush2.bf16.msra.mxu0 %v10214_v21  ;;  %v3285_v21 = vld [vmem:[%s17434_s2 + $0x4e0] sm:$0xff] }
 0x195   : > { %3103 = vmatpush2.bf16.msra.mxu1 %v10342_v36  ;;  %3051 = vmatprep.subr.bf16.mxu0 %v10207_v23  ;;  %v10416_v36 = vcombine.low %v3161_v60, %v3165_v61  ;;  %v10544_v23 = vcombine.low %v3289_v33, %v3293_v7  ;;  %v10537_v22 = vcombine.high %v3281_v45, %v3285_v21  ;;  %v3373_v60 = vld [vmem:[%s17434_s2 + $0x7a0] sm:$0xff] }
 0x196   : > { %3104 = vmatprep.subr.bf16.mxu1 %v10335_v2  ;;  %v10409_v2 = vcombine.high %v3153_v12, %v3157_v63 }
 0x198   : > { %3052 = vmatpush2.bf16.msra.mxu0 %v10206_v31  ;;  %v10408_v31 = vcombine.low %v3153_v12, %v3157_v63  ;;  %v3365_v12 = vld [vmem:[%s17434_s2 + $0x760] sm:$0xff] }
 0x199   : > { %3105 = vmatpush2.bf16.msra.mxu1 %v10334_v58  ;;  %3053 = vmatprep.subr.bf16.mxu0 %v10199_v20  ;;  %v10536_v58 = vcombine.low %v3281_v45, %v3285_v21  ;;  %v10401_v20 = vcombine.high %v3145_v32, %v3149_v17  ;;  %v3357_v32 = vld [vmem:[%s17434_s2 + $0x720] sm:$0xff] }
 0x19a   : > { %3106 = vmatprep.subr.bf16.mxu1 %v10327_v55  ;;  %v10529_v55 = vcombine.high %v3273_v0, %v3277_v47 }
 0x19c   : > { %3054 = vmatpush2.bf16.msra.mxu0 %v10198_v29  ;;  %v10528_v29 = vcombine.low %v3273_v0, %v3277_v47 }
 0x19d   : > { %3107 = vmatpush2.bf16.msra.mxu1 %v10326_v4  ;;  %4665 = vmatprep.subr.bf16.mxu0 %v10441_v26  ;;  %v10393_v4 = vcombine.high %v3137_v30, %v3141_v10  ;;  %v10521_v26 = vcombine.high %v3265_v49, %v3269_v40  ;;  %v3349_v30 = vld [vmem:[%s17434_s2 + $0x6e0] sm:$0xff] }
 0x19e   : > { %4718 = vmatprep.subr.bf16.mxu1 %v10569_v28  ;;  %v3129_v28 = vld [vmem:[%s17434_s2] sm:$0xff] }
 0x19f   : > { %3056 = vmatmul.mubr.bf16.vlgmr.msra.gmra.mxu0 %v17605_v57  ;;  %v10385_v11 = vcombine.high %v3129_v28, %v3133_v1  ;;  %v10384_v54 = vcombine.low %v3129_v28, %v3133_v1  ;;  %v3341_v28 = vld [vmem:[%s17434_s2 + $0x6a0] sm:$0xff] }
 0x1a0   : > { %3109 = vmatmul.mubr.bf16.vlgmr.msra.gmra.mxu1 %v17606_v38  ;;  %4666 = vmatpush1.bf16.msra.mxu0 %v10440_v43  ;;  %v10513_v43 = vcombine.high %v3257_v19, %v3261_v5 }
 0x1a1   : > { %4719 = vmatpush1.bf16.msra.mxu1 %v10568_v18  ;;  %4667 = vmatprep.subr.bf16.mxu0 %v10433_v62  ;;  %v3249_v18 = vld [vmem:[%s17434_s2 + $0x3c0] sm:$0xff] }
 0x1a2   : > { %4720 = vmatprep.subr.bf16.mxu1 %v10561_v16  ;;  %3065 = vmatprep.mubr.bf16.mxu0 %v12564_v48  ;;  %v3253_v62 = vld [vmem:[%s17434_s2 + $0x3e0] sm:$0xff] }
 0x1a3   : > { %3118 = vmatprep.mubr.bf16.mxu1 %v12651_v6  ;;  %v3377_v16 = vld [vmem:[%s17434_s2 + $0x7c0] sm:$0xff]  ;;  %v10505_v37 = vcombine.high %v3249_v18, %v3253_v62  ;;  %v10504_v61 = vcombine.low %v3249_v18, %v3253_v62  ;;  %v13372_v62 = vpop.f32.mrf.mxu0 }
 0x1a4   : > { %4668 = vmatpush1.bf16.msra.mxu0 %v10432_v41  ;;  %v10633_v41 = vcombine.high %v3377_v16, %v3381_v51  ;;  %v10632_v33 = vcombine.low %v3377_v16, %v3381_v51  ;;  %v3333_v18 = vld [vmem:[%s17434_s2 + $0x660] sm:$0xff] }
 0x1a5   : > { %4721 = vmatpush1.bf16.msra.mxu1 %v10560_v42  ;;  %4669 = vmatprep.subr.bf16.mxu0 %v10425_v34  ;;  %v3241_v42 = vld [vmem:[%s17434_s2 + $0x380] sm:$0xff] }
 0x1a6   : > { %4722 = vmatprep.subr.bf16.mxu1 %v10553_v52  ;;  %v3245_v34 = vld [vmem:[%s17434_s2 + $0x3a0] sm:$0xff] }
 0x1a7   : > { %3066 = vmatmul.mubr.bf16.gmra.mxu0 %v12724_v3  ;;  %v3369_v52 = vld [vmem:[%s17434_s2 + $0x780] sm:$0xff]  ;;  %v10497_v7 = vcombine.high %v3241_v42, %v3245_v34  ;;  %v10496_v63 = vcombine.low %v3241_v42, %v3245_v34 }
 0x1a8   : > { %3119 = vmatmul.mubr.bf16.gmra.mxu1 %v12772_v8  ;;  %4670 = vmatpush1.bf16.msra.mxu0 %v10424_v53  ;;  %v10625_v53 = vcombine.high %v3369_v52, %v3373_v60  ;;  %v10624_v45 = vcombine.low %v3369_v52, %v3373_v60  ;;  %v3197_v42 = vld [vmem:[%s17434_s2 + $0x220] sm:$0xff]  ;;  %v13386_v60 = vpop.f32.mrf.mxu1 }
 0x1a9   : > { %4723 = vmatpush1.bf16.msra.mxu1 %v10552_v56  ;;  %4671 = vmatprep.subr.bf16.mxu0 %v10417_v39  ;;  %v3233_v56 = vld [vmem:[%s17434_s2 + $0x340] sm:$0xff] }
 0x1aa   : > { %4724 = vmatprep.subr.bf16.mxu1 %v10545_v44  ;;  %4697 = vmatprep.mubr.bf16.mxu0 %v17603_v27  ;;  %v3237_v39 = vld [vmem:[%s17434_s2 + $0x360] sm:$0xff] }
 0x1ab   : > { %4750 = vmatprep.mubr.bf16.mxu1 %v17604_v50  ;;  %v3361_v44 = vld [vmem:[%s17434_s2 + $0x740] sm:$0xff]  ;;  %v10489_v21 = vcombine.high %v3233_v56, %v3237_v39  ;;  %v10488_v17 = vcombine.low %v3233_v56, %v3237_v39  ;;  %v3186_v39 = vld [vmem:[%s17434_s2 + $0x1c8] sm:$0xff] }
 0x1ac   : > { %4672 = vmatpush1.bf16.msra.mxu0 %v10416_v36  ;;  %v10617_v36 = vcombine.high %v3361_v44, %v3365_v12  ;;  %v10616_v0 = vcombine.low %v3361_v44, %v3365_v12  ;;  %v3321_v34 = vld [vmem:[%s17434_s2 + $0x600] sm:$0xff]  ;;  %v3190_v12 = vld [vmem:[%s17434_s2 + $0x1e8] sm:$0xff] }
 0x1ad   : > { %4725 = vmatpush1.bf16.msra.mxu1 %v10544_v23  ;;  %4673 = vmatprep.subr.bf16.mxu0 %v10409_v2  ;;  %v3225_v23 = vld [vmem:[%s17434_s2 + $0x300] sm:$0xff] }
 0x1ae   : > { %4726 = vmatprep.subr.bf16.mxu1 %v10537_v22  ;;  %v3229_v2 = vld [vmem:[%s17434_s2 + $0x320] sm:$0xff] }
 0x1af   : > { %v3353_v22 = vld [vmem:[%s17434_s2 + $0x700] sm:$0xff]  ;;  %v10481_v47 = vcombine.high %v3225_v23, %v3229_v2  ;;  %v10480_v10 = vcombine.low %v3225_v23, %v3229_v2 }
 0x1b0   : > { %4674 = vmatpush1.bf16.msra.mxu0 %v10408_v31  ;;  %v10609_v31 = vcombine.high %v3353_v22, %v3357_v32  ;;  %v10608_v49 = vcombine.low %v3353_v22, %v3357_v32  ;;  %v3325_v52 = vld [vmem:[%s17434_s2 + $0x620] sm:$0xff]  ;;  %v10443_v32 = vcombine.high %v3186_v39, %v3190_v12 }
 0x1b1   : > { %4727 = vmatpush1.bf16.msra.mxu1 %v10536_v58  ;;  %4675 = vmatprep.subr.bf16.mxu0 %v10401_v20  ;;  %v3217_v58 = vld [vmem:[%s17434_s2 + $0x2c0] sm:$0xff]  ;;  %v10577_v56 = vcombine.high %v3321_v34, %v3325_v52  ;;  %v10576_v2 = vcombine.low %v3321_v34, %v3325_v52 }
 0x1b2   : > { %4728 = vmatprep.subr.bf16.mxu1 %v10529_v55  ;;  %v3221_v20 = vld [vmem:[%s17434_s2 + $0x2e0] sm:$0xff] }
 0x1b3   : > { %v3345_v55 = vld [vmem:[%s17434_s2 + $0x6c0] sm:$0xff]  ;;  %v10473_v40 = vcombine.high %v3217_v58, %v3221_v20  ;;  %v10472_v1 = vcombine.low %v3217_v58, %v3221_v20  ;;  %v3306_v58 = vld [vmem:[%s17434_s2 + $0x588] sm:$0xff] }
 0x1b4   : > { %4676 = vmatpush1.bf16.msra.mxu0 %v10400_v9  ;;  %v10601_v9 = vcombine.high %v3345_v55, %v3349_v30  ;;  %v10600_v19 = vcombine.low %v3345_v55, %v3349_v30  ;;  %v3310_v20 = vld [vmem:[%s17434_s2 + $0x5a8] sm:$0xff]  ;;  %v10442_v30 = vcombine.low %v3186_v39, %v3190_v12 }
 0x1b5   : > { %4729 = vmatpush1.bf16.msra.mxu1 %v10528_v29  ;;  %4677 = vmatprep.subr.bf16.mxu0 %v10393_v4  ;;  %v3209_v29 = vld [vmem:[%s17434_s2 + $0x280] sm:$0xff]  ;;  %v3154_v12 = vld [vmem:[%s17434_s2 + $0xc8] sm:$0xff] }
 0x1b6   : > { %4730 = vmatprep.subr.bf16.mxu1 %v10521_v26  ;;  %v3213_v4 = vld [vmem:[%s17434_s2 + $0x2a0] sm:$0xff] }
 0x1b7   : > { %v3337_v26 = vld [vmem:[%s17434_s2 + $0x680] sm:$0xff]  ;;  %v10465_v5 = vcombine.high %v3209_v29, %v3213_v4  ;;  %v10464_v16 = vcombine.low %v3209_v29, %v3213_v4  ;;  %v10563_v29 = vcombine.high %v3306_v58, %v3310_v20  ;;  %v3170_v4 = vld [vmem:[%s17434_s2 + $0x148] sm:$0xff] }
 0x1b8   : > { %4678 = vmatpush1.bf16.msra.mxu0 %v10392_v24  ;;  %v10593_v24 = vcombine.high %v3337_v26, %v3341_v28  ;;  %v10592_v51 = vcombine.low %v3337_v26, %v3341_v28  ;;  %v3174_v26 = vld [vmem:[%s17434_s2 + $0x168] sm:$0xff] }
 0x1b9   : > { %4731 = vmatpush1.bf16.msra.mxu1 %v10520_v14  ;;  %4679 = vmatprep.subr.bf16.mxu0 %v10385_v11  ;;  %v3201_v14 = vld [vmem:[%s17434_s2 + $0x240] sm:$0xff]  ;;  %v3298_v28 = vld [vmem:[%s17434_s2 + $0x548] sm:$0xff] }
 0x1ba   : > { %4732 = vmatprep.subr.bf16.mxu1 %v10513_v43  ;;  %v3205_v11 = vld [vmem:[%s17434_s2 + $0x260] sm:$0xff] }
 0x1bb   : > { %v3329_v43 = vld [vmem:[%s17434_s2 + $0x640] sm:$0xff] }
 0x1bc   : > { %4680 = vmatpush1.bf16.msra.mxu0 %v10384_v54 }
 0x1bd   : > { %4733 = vmatpush1.bf16.msra.mxu1 %v10512_v13  ;;  %4681 = vmatprep.subr.bf16.mxu0 %v10505_v37  ;;  %v10457_v13 = vcombine.high %v3201_v14, %v3205_v11  ;;  %v10585_v37 = vcombine.high %v3329_v43, %v3333_v18 }
 0x1be   : > { %4734 = vmatprep.subr.bf16.mxu1 %v10633_v41  ;;  %v3193_v41 = vld [vmem:[%s17434_s2 + $0x200] sm:$0xff] }
 0x1bf   : > { %v10448_v23 = vcombine.low %v3193_v41, %v3197_v42 }
 0x1c0   : > { %4682 = vmatpush2.bf16.msra.mxu0 %v10504_v61  ;;  %v10456_v61 = vcombine.low %v3201_v14, %v3205_v11  ;;  %v10562_v11 = vcombine.low %v3306_v58, %v3310_v20  ;;  %v3146_v58 = vld [vmem:[%s17434_s2 + $0x88] sm:$0xff] }
 0x1c1   : > { %4735 = vmatpush2.bf16.msra.mxu1 %v10632_v33  ;;  %4683 = vmatprep.subr.bf16.mxu0 %v10497_v7  ;;  %v10584_v33 = vcombine.low %v3329_v43, %v3333_v18 }
 0x1c2   : > { %4736 = vmatprep.subr.bf16.mxu1 %v10625_v53  ;;  %v10449_v53 = vcombine.high %v3193_v41, %v3197_v42  ;;  %v3294_v41 = vld [vmem:[%s17434_s2 + $0x528] sm:$0xff] }
 0x1c4   : > { %4684 = vmatpush2.bf16.msra.mxu0 %v10496_v63  ;;  %v3314_v63 = vld [vmem:[%s17434_s2 + $0x5c8] sm:$0xff] }
 0x1c5   : > { %4737 = vmatpush2.bf16.msra.mxu1 %v10624_v45  ;;  %4685 = vmatprep.subr.bf16.mxu0 %v10489_v21  ;;  %v3318_v45 = vld [vmem:[%s17434_s2 + $0x5e8] sm:$0xff] }
 0x1c6   : > { %4738 = vmatprep.subr.bf16.mxu1 %v10617_v36 }
 0x1c8   : > { %4686 = vmatpush2.bf16.msra.mxu0 %v10488_v17  ;;  %v10571_v17 = vcombine.high %v3314_v63, %v3318_v45 }
 0x1c9   : > { %4739 = vmatpush2.bf16.msra.mxu1 %v10616_v0  ;;  %4687 = vmatprep.subr.bf16.mxu0 %v10481_v47  ;;  %v2749_v54 = vpop.f32.mrf.mxu0  ;;  %v3178_v0 = vld [vmem:[%s17434_s2 + $0x188] sm:$0xff] }
 0x1ca   : > { %4740 = vmatprep.subr.bf16.mxu1 %v10609_v31  ;;  %v3182_v31 = vld [vmem:[%s17434_s2 + $0x1a8] sm:$0xff] }
 0x1cb   : > { %v13388_v7 = vpop.f32.mrf.mxu0  ;;  %v10434_v14 = vcombine.low %v3178_v0, %v3182_v31 }
 0x1cc   : > { %4688 = vmatpush2.bf16.msra.mxu0 %v10480_v10  ;;  %v10570_v10 = vcombine.low %v3314_v63, %v3318_v45  ;;  %v3158_v63 = vld [vmem:[%s17434_s2 + $0xe8] sm:$0xff] }
 0x1cd   : > { %4741 = vmatpush2.bf16.msra.mxu1 %v10608_v49  ;;  %4689 = vmatprep.subr.bf16.mxu0 %v10473_v40  ;;  %v2753_v22 = vpop.f32.mrf.mxu0  ;;  %v3282_v45 = vld [vmem:[%s17434_s2 + $0x4c8] sm:$0xff] }
 0x1ce   : > { %4742 = vmatprep.subr.bf16.mxu1 %v10601_v9  ;;  %v10435_v9 = vcombine.high %v3178_v0, %v3182_v31 }
 0x1cf   : > { %v13420_v49 = vpop.f32.mrf.mxu0 }
 0x1d0   : > { %4690 = vmatpush2.bf16.msra.mxu0 %v10472_v1  ;;  %v3302_v1 = vld [vmem:[%s17434_s2 + $0x568] sm:$0xff] }
 0x1d1   : > { %4743 = vmatpush2.bf16.msra.mxu1 %v10600_v19  ;;  %4691 = vmatprep.subr.bf16.mxu0 %v10465_v5 }
 0x1d2   : > { %4744 = vmatprep.subr.bf16.mxu1 %v10593_v24 }
 0x1d4   : > { %4692 = vmatpush2.bf16.msra.mxu0 %v10464_v16  ;;  %v10427_v16 = vcombine.high %v3170_v4, %v3174_v26 }
 0x1d5   : > { %4745 = vmatpush2.bf16.msra.mxu1 %v10592_v51  ;;  %4693 = vmatprep.subr.bf16.mxu0 %v10457_v13  ;;  %v10555_v51 = vcombine.high %v3298_v28, %v3302_v1  ;;  %v3166_v13 = vld [vmem:[%s17434_s2 + $0x128] sm:$0xff] }
 0x1d6   : > { %4746 = vmatprep.subr.bf16.mxu1 %v10585_v37  ;;  %v2802_v44 = vpop.f32.mrf.mxu1  ;;  %v3290_v37 = vld [vmem:[%s17434_s2 + $0x508] sm:$0xff] }
 0x1d7   : > { %v13402_v21 = vadd.f32 %v2802_v44, %v2749_v54  ;;  %v3162_v54 = vld [vmem:[%s17434_s2 + $0x108] sm:$0xff]  ;;  %v10547_v44 = vcombine.high %v3290_v37, %v3294_v41 }
 0x1d8   : > { %v13404_v36 = vpop.f32.mrf.mxu1  ;;  %4694 = vmatpush2.bf16.msra.mxu0 %v10456_v61  ;;  %v10426_v61 = vcombine.low %v3170_v4, %v3174_v26  ;;  %v10419_v39 = vcombine.high %v3162_v54, %v3166_v13 }
 0x1d9   : > { %4747 = vmatpush2.bf16.msra.mxu1 %v10584_v33  ;;  %4695 = vmatprep.subr.bf16.mxu0 %v10449_v53  ;;  %v10554_v33 = vcombine.low %v3298_v28, %v3302_v1  ;;  %v10410_v28 = vcombine.low %v3154_v12, %v3158_v63 }
 0x1da   : > { %4748 = vmatprep.subr.bf16.mxu1 %v10577_v56  ;;  %v2806_v47 = vpop.f32.mrf.mxu1 }
 0x1db   : > { %v13418_v55 = vadd.f32 %v2806_v47, %v2753_v22  ;;  %v10411_v47 = vcombine.high %v3154_v12, %v3158_v63 }
 0x1dc   : > { %4696 = vmatpush2.bf16.msra.mxu0 %v10448_v23  ;;  %v13422_v40 = vpop.f32.mrf.mxu1  ;;  %v3286_v23 = vld [vmem:[%s17434_s2 + $0x4e8] sm:$0xff] }
 0x1dd   : > { %4749 = vmatpush2.bf16.msra.mxu1 %v10576_v2  ;;  %4771 = vmatprep.subr.bf16.mxu0 %v10443_v32  ;;  %v10418_v32 = vcombine.low %v3162_v54, %v3166_v13  ;;  %v10539_v31 = vcombine.high %v3282_v45, %v3286_v23  ;;  %v10538_v1 = vcombine.low %v3282_v45, %v3286_v23  ;;  %v3270_v54 = vld [vmem:[%s17434_s2 + $0x468] sm:$0xff] }
 0x1de   : > { %4824 = vmatprep.subr.bf16.mxu1 %v10571_v17  ;;  %v10546_v17 = vcombine.low %v3290_v37, %v3294_v41  ;;  %v3250_v23 = vld [vmem:[%s17434_s2 + $0x3c8] sm:$0xff] }
 0x1df   : > { %v2845_v19 = vpop.f32.mrf.mxu0  ;;  %4698 = vmatmul.mubr.bf16.vlgmr.msra.gmra.mxu0 %v17605_v57 }
 0x1e0   : > { %v2898_v5 = vpop.f32.mrf.mxu1  ;;  %4751 = vmatmul.mubr.bf16.vlgmr.msra.gmra.mxu1 %v17606_v38  ;;  %4772 = vmatpush1.bf16.msra.mxu0 %v10442_v30 }
 0x1e1   : > { %v13438_v24 = vadd.f32 %v2898_v5, %v2845_v19  ;;  %4825 = vmatpush1.bf16.msra.mxu1 %v10570_v10  ;;  %v13440_v43 = vpop.f32.mrf.mxu0  ;;  %4773 = vmatprep.subr.bf16.mxu0 %v10435_v9  ;;  %v3150_v10 = vld [vmem:[%s17434_s2 + $0xa8] sm:$0xff] }
 0x1e2   : > { %v13442_v18 = vpop.f32.mrf.mxu1  ;;  %4826 = vmatprep.subr.bf16.mxu1 %v10563_v29  ;;  %4707 = vmatprep.mubr.bf16.mxu0 %v12564_v48  ;;  %v3274_v9 = vld [vmem:[%s17434_s2 + $0x488] sm:$0xff]  ;;  %v10403_v5 = vcombine.high %v3146_v58, %v3150_v10  ;;  %v10402_v13 = vcombine.low %v3146_v58, %v3150_v10 }
 0x1e3   : > { %4760 = vmatprep.mubr.bf16.mxu1 %v12651_v6  ;;  %v2849_v42 = vpop.f32.mrf.mxu0  ;;  %v3278_v29 = vld [vmem:[%s17434_s2 + $0x4a8] sm:$0xff] }
 0x1e4   : > { %v2902_v34 = vpop.f32.mrf.mxu1  ;;  %4774 = vmatpush1.bf16.msra.mxu0 %v10434_v14  ;;  %v10531_v14 = vcombine.high %v3274_v9, %v3278_v29  ;;  %v10530_v37 = vcombine.low %v3274_v9, %v3278_v29  ;;  %v3242_v10 = vld [vmem:[%s17434_s2 + $0x388] sm:$0xff] }
 0x1e5   : > { %v13458_v52 = vadd.f32 %v2902_v34, %v2849_v42  ;;  %4827 = vmatpush1.bf16.msra.mxu1 %v10562_v11  ;;  %v13460_v53 = vpop.f32.mrf.mxu0  ;;  %4775 = vmatprep.subr.bf16.mxu0 %v10427_v16  ;;  %v3138_v11 = vld [vmem:[%s17434_s2 + $0x48] sm:$0xff] }
 0x1e6   : > { %v13462_v56 = vpop.f32.mrf.mxu1  ;;  %4828 = vmatprep.subr.bf16.mxu1 %v10555_v51  ;;  %v3142_v16 = vld [vmem:[%s17434_s2 + $0x68] sm:$0xff] }
 0x1e7   : > { %v2855_v2 = vpop.f32.mrf.mxu0  ;;  %4708 = vmatmul.mubr.bf16.gmra.mxu0 %v12724_v3  ;;  %v3266_v51 = vld [vmem:[%s17434_s2 + $0x448] sm:$0xff]  ;;  %v10395_v41 = vcombine.high %v3138_v11, %v3142_v16 }
 0x1e8   : > { %v2908_v22 = vpop.f32.mrf.mxu1  ;;  %4761 = vmatmul.mubr.bf16.gmra.mxu1 %v12772_v8  ;;  %4776 = vmatpush1.bf16.msra.mxu0 %v10426_v61  ;;  %v10523_v42 = vcombine.high %v3266_v51, %v3270_v54  ;;  %v3130_v34 = vld [vmem:[%s17434_s2 + $0x8] sm:$0xff]  ;;  %v10522_v12 = vcombine.low %v3266_v51, %v3270_v54 }
 0x1e9   : > { %4829 = vmatpush1.bf16.msra.mxu1 %v10554_v33  ;;  %v13478_v0 = vadd.f32 %v2908_v22, %v2855_v2  ;;  %4777 = vmatprep.subr.bf16.mxu0 %v10419_v39  ;;  %v13483_v20 = vpop.f32.mrf.mxu0  ;;  %v3134_v61 = vld [vmem:[%s17434_s2 + $0x28] sm:$0xff] }
 0x1ea   : > { %4830 = vmatprep.subr.bf16.mxu1 %v10547_v44  ;;  %v13485_v30 = vpop.f32.mrf.mxu1  ;;  %4803 = vmatprep.mubr.bf16.mxu0 %v17603_v27  ;;  %v3258_v33 = vld [vmem:[%s17434_s2 + $0x408] sm:$0xff]  ;;  %v10394_v44 = vcombine.low %v3138_v11, %v3142_v16  ;;  %v10387_v63 = vcombine.high %v3130_v34, %v3134_v61 }
 0x1eb   : > { %4856 = vmatprep.mubr.bf16.mxu1 %v17604_v50  ;;  %v2859_v4 = vpop.f32.mrf.mxu0  ;;  %v3262_v39 = vld [vmem:[%s17434_s2 + $0x428] sm:$0xff] }
 0x1ec   : > { %v2912_v26 = vpop.f32.mrf.mxu1  ;;  %4778 = vmatpush1.bf16.msra.mxu0 %v10418_v32  ;;  %v10515_v45 = vcombine.high %v3258_v33, %v3262_v39  ;;  %v3254_v2 = vld [vmem:[%s17434_s2 + $0x3e8] sm:$0xff] }
 0x1ed   : > { %4831 = vmatpush1.bf16.msra.mxu1 %v10546_v17  ;;  %v13498_v19 = vadd.f32 %v2912_v26, %v2859_v4  ;;  %4779 = vmatprep.subr.bf16.mxu0 %v10411_v47  ;;  %v3378_v22 = vld [vmem:[%s17434_s2 + $0x7c8] sm:$0xff]  ;;  %v10386_v17 = vcombine.low %v3130_v34, %v3134_v61  ;;  %v10514_v47 = vcombine.low %v3258_v33, %v3262_v39 }
 0x1ee   : > { %4832 = vmatprep.subr.bf16.mxu1 %v10539_v31  ;;  %v3382_v32 = vld [vmem:[%s17434_s2 + $0x7e8] sm:$0xff]  ;;  %v10507_v31 = vcombine.high %v3250_v23, %v3254_v2  ;;  %v10506_v26 = vcombine.low %v3250_v23, %v3254_v2 }
 0x1ef   : > { %v10635_v58 = vcombine.high %v3378_v22, %v3382_v32  ;;  %v3246_v9 = vld [vmem:[%s17434_s2 + $0x3a8] sm:$0xff] }
 0x1f0   : > { %4780 = vmatpush1.bf16.msra.mxu0 %v10410_v28  ;;  %v3370_v29 = vld [vmem:[%s17434_s2 + $0x788] sm:$0xff]  ;;  %v10634_v28 = vcombine.low %v3378_v22, %v3382_v32  ;;  %v10498_v54 = vcombine.low %v3242_v10, %v3246_v9 }
 0x1f1   : > { %4833 = vmatpush1.bf16.msra.mxu1 %v10538_v1  ;;  %4781 = vmatprep.subr.bf16.mxu0 %v10403_v5  ;;  %v3374_v4 = vld [vmem:[%s17434_s2 + $0x7a8] sm:$0xff]  ;;  %v10499_v1 = vcombine.high %v3242_v10, %v3246_v9 }
 0x1f2   : > { %4834 = vmatprep.subr.bf16.mxu1 %v10531_v14  ;;  %v10627_v5 = vcombine.high %v3370_v29, %v3374_v4  ;;  %v3234_v14 = vld [vmem:[%s17434_s2 + $0x348] sm:$0xff] }
 0x1f3   : > { %v3238_v11 = vld [vmem:[%s17434_s2 + $0x368] sm:$0xff] }
 0x1f4   : > { %4782 = vmatpush1.bf16.msra.mxu0 %v10402_v13  ;;  %v3362_v16 = vld [vmem:[%s17434_s2 + $0x748] sm:$0xff]  ;;  %v10626_v13 = vcombine.low %v3370_v29, %v3374_v4  ;;  %v10490_v39 = vcombine.low %v3234_v14, %v3238_v11 }
 0x1f5   : > { %4835 = vmatpush1.bf16.msra.mxu1 %v10530_v37  ;;  %4783 = vmatprep.subr.bf16.mxu0 %v10395_v41  ;;  %v3366_v51 = vld [vmem:[%s17434_s2 + $0x768] sm:$0xff]  ;;  %v10491_v37 = vcombine.high %v3234_v14, %v3238_v11 }
 0x1f6   : > { %4836 = vmatprep.subr.bf16.mxu1 %v10523_v42  ;;  %v10619_v41 = vcombine.high %v3362_v16, %v3366_v51  ;;  %v3226_v42 = vld [vmem:[%s17434_s2 + $0x308] sm:$0xff] }
 0x1f7   : > { %v3230_v34 = vld [vmem:[%s17434_s2 + $0x328] sm:$0xff] }
 0x1f8   : > { %4784 = vmatpush1.bf16.msra.mxu0 %v10394_v44  ;;  %v3354_v61 = vld [vmem:[%s17434_s2 + $0x708] sm:$0xff]  ;;  %v10618_v44 = vcombine.low %v3362_v16, %v3366_v51  ;;  %v10482_v32 = vcombine.low %v3226_v42, %v3230_v34 }
 0x1f9   : > { %4837 = vmatpush1.bf16.msra.mxu1 %v10522_v12  ;;  %4785 = vmatprep.subr.bf16.mxu0 %v10387_v63  ;;  %v3358_v33 = vld [vmem:[%s17434_s2 + $0x728] sm:$0xff]  ;;  %v10483_v12 = vcombine.high %v3226_v42, %v3230_v34 }
 0x1fa   : > { %4838 = vmatprep.subr.bf16.mxu1 %v10515_v45  ;;  %v10611_v63 = vcombine.high %v3354_v61, %v3358_v33  ;;  %v3218_v45 = vld [vmem:[%s17434_s2 + $0x2c8] sm:$0xff] }
 0x1fb   : > { %v3222_v23 = vld [vmem:[%s17434_s2 + $0x2e8] sm:$0xff] }
 0x1fc   : > { %4786 = vmatpush1.bf16.msra.mxu0 %v10386_v17  ;;  %v3346_v2 = vld [vmem:[%s17434_s2 + $0x6c8] sm:$0xff]  ;;  %v10610_v17 = vcombine.low %v3354_v61, %v3358_v33  ;;  %v10474_v4 = vcombine.low %v3218_v45, %v3222_v23 }
 0x1fd   : > { %4839 = vmatpush1.bf16.msra.mxu1 %v10514_v47  ;;  %4787 = vmatprep.subr.bf16.mxu0 %v10507_v31  ;;  %v3350_v22 = vld [vmem:[%s17434_s2 + $0x6e8] sm:$0xff]  ;;  %v10475_v47 = vcombine.high %v3218_v45, %v3222_v23  ;;  %v3191_v45 = vld [vmem:[%s17434_s2 + $0x1f0] sm:$0xff] }
 0x1fe   : > { %4840 = vmatprep.subr.bf16.mxu1 %v10635_v58  ;;  %v10603_v31 = vcombine.high %v3346_v2, %v3350_v22  ;;  %v3210_v58 = vld [vmem:[%s17434_s2 + $0x288] sm:$0xff]  ;;  %v3315_v23 = vld [vmem:[%s17434_s2 + $0x5d0] sm:$0xff] }
 0x1ff   : > { %v3214_v10 = vld [vmem:[%s17434_s2 + $0x2a8] sm:$0xff] }
 0x200   : > { %4788 = vmatpush2.bf16.msra.mxu0 %v10506_v26  ;;  %v3338_v9 = vld [vmem:[%s17434_s2 + $0x688] sm:$0xff]  ;;  %v10602_v26 = vcombine.low %v3346_v2, %v3350_v22  ;;  %v10466_v51 = vcombine.low %v3210_v58, %v3214_v10  ;;  %v3319_v2 = vld [vmem:[%s17434_s2 + $0x5f0] sm:$0xff] }
 0x201   : > { %4841 = vmatpush2.bf16.msra.mxu1 %v10634_v28  ;;  %4789 = vmatprep.subr.bf16.mxu0 %v10499_v1  ;;  %v3342_v29 = vld [vmem:[%s17434_s2 + $0x6a8] sm:$0xff]  ;;  %v10467_v28 = vcombine.high %v3210_v58, %v3214_v10  ;;  %v3183_v58 = vld [vmem:[%s17434_s2 + $0x1b0] sm:$0xff] }
 0x202   : > { %4842 = vmatprep.subr.bf16.mxu1 %v10627_v5  ;;  %v10595_v1 = vcombine.high %v3338_v9, %v3342_v29  ;;  %v3202_v5 = vld [vmem:[%s17434_s2 + $0x248] sm:$0xff]  ;;  %v3307_v10 = vld [vmem:[%s17434_s2 + $0x590] sm:$0xff] }
 0x203   : > { %v3206_v14 = vld [vmem:[%s17434_s2 + $0x268] sm:$0xff] }
 0x204   : > { %4790 = vmatpush2.bf16.msra.mxu0 %v10498_v54  ;;  %v3330_v11 = vld [vmem:[%s17434_s2 + $0x648] sm:$0xff]  ;;  %v10594_v54 = vcombine.low %v3338_v9, %v3342_v29  ;;  %v10458_v33 = vcombine.low %v3202_v5, %v3206_v14  ;;  %v3311_v9 = vld [vmem:[%s17434_s2 + $0x5b0] sm:$0xff] }
 0x205   : > { %4843 = vmatpush2.bf16.msra.mxu1 %v10626_v13  ;;  %4791 = vmatprep.subr.bf16.mxu0 %v10491_v37  ;;  %v3334_v16 = vld [vmem:[%s17434_s2 + $0x668] sm:$0xff]  ;;  %v10459_v13 = vcombine.high %v3202_v5, %v3206_v14  ;;  %v10565_v5 = vcombine.high %v3307_v10, %v3311_v9  ;;  %v3171_v14 = vld [vmem:[%s17434_s2 + $0x150] sm:$0xff] }
 0x206   : > { %4844 = vmatprep.subr.bf16.mxu1 %v10619_v41  ;;  %v10587_v37 = vcombine.high %v3330_v11, %v3334_v16  ;;  %v3194_v41 = vld [vmem:[%s17434_s2 + $0x208] sm:$0xff] }
 0x207   : > { %v3198_v42 = vld [vmem:[%s17434_s2 + $0x228] sm:$0xff] }
 0x208   : > { %4792 = vmatpush2.bf16.msra.mxu0 %v10490_v39  ;;  %v3322_v34 = vld [vmem:[%s17434_s2 + $0x608] sm:$0xff]  ;;  %v10586_v39 = vcombine.low %v3330_v11, %v3334_v16  ;;  %v10450_v22 = vcombine.low %v3194_v41, %v3198_v42  ;;  %v3175_v11 = vld [vmem:[%s17434_s2 + $0x170] sm:$0xff] }
 0x209   : > { %4845 = vmatpush2.bf16.msra.mxu1 %v10618_v44  ;;  %4793 = vmatprep.subr.bf16.mxu0 %v10483_v12  ;;  %v3326_v61 = vld [vmem:[%s17434_s2 + $0x628] sm:$0xff]  ;;  %v10451_v44 = vcombine.high %v3194_v41, %v3198_v42  ;;  %v3299_v16 = vld [vmem:[%s17434_s2 + $0x550] sm:$0xff]  ;;  %v10564_v42 = vcombine.low %v3307_v10, %v3311_v9 }
 0x20a   : > { %4846 = vmatprep.subr.bf16.mxu1 %v10611_v63  ;;  %v10579_v12 = vcombine.high %v3322_v34, %v3326_v61  ;;  %v3187_v63 = vld [vmem:[%s17434_s2 + $0x1d0] sm:$0xff] }
 0x20b   : > { %v10444_v29 = vcombine.low %v3187_v63, %v3191_v45  ;;  %v3155_v9 = vld [vmem:[%s17434_s2 + $0xd0] sm:$0xff] }
 0x20c   : > { %4794 = vmatpush2.bf16.msra.mxu0 %v10482_v32  ;;  %v10578_v32 = vcombine.low %v3322_v34, %v3326_v61 }
 0x20d   : > { %4847 = vmatpush2.bf16.msra.mxu1 %v10610_v17  ;;  %4795 = vmatprep.subr.bf16.mxu0 %v10475_v47  ;;  %v10445_v17 = vcombine.high %v3187_v63, %v3191_v45  ;;  %v10573_v47 = vcombine.high %v3315_v23, %v3319_v2  ;;  %v3291_v63 = vld [vmem:[%s17434_s2 + $0x510] sm:$0xff] }
 0x20e   : > { %4848 = vmatprep.subr.bf16.mxu1 %v10603_v31  ;;  %v3179_v31 = vld [vmem:[%s17434_s2 + $0x190] sm:$0xff] }
 0x20f   : > { %v10436_v41 = vcombine.low %v3179_v31, %v3183_v58  ;;  %v3295_v45 = vld [vmem:[%s17434_s2 + $0x530] sm:$0xff] }
 0x210   : > { %4796 = vmatpush2.bf16.msra.mxu0 %v10474_v4  ;;  %v10572_v4 = vcombine.low %v3315_v23, %v3319_v2  ;;  %v10549_v10 = vcombine.high %v3291_v63, %v3295_v45 }
 0x211   : > { %4849 = vmatpush2.bf16.msra.mxu1 %v10602_v26  ;;  %4797 = vmatprep.subr.bf16.mxu0 %v10467_v28  ;;  %v13644_v26 = vpop.f32.mrf.mxu0  ;;  %v13646_v28 = vpop.f32.mrf.mxu1 }
 0x212   : > { %4850 = vmatprep.subr.bf16.mxu1 %v10595_v1  ;;  %v10437_v1 = vcombine.high %v3179_v31, %v3183_v58 }
 0x214   : > { %4798 = vmatpush2.bf16.msra.mxu0 %v10466_v51  ;;  %v3303_v51 = vld [vmem:[%s17434_s2 + $0x570] sm:$0xff] }
 0x215   : > { %4851 = vmatpush2.bf16.msra.mxu1 %v10594_v54  ;;  %4799 = vmatprep.subr.bf16.mxu0 %v10459_v13 }
 0x216   : > { %4852 = vmatprep.subr.bf16.mxu1 %v10587_v37 }
 0x218   : > { %4800 = vmatpush2.bf16.msra.mxu0 %v10458_v33  ;;  %v10429_v33 = vcombine.high %v3171_v14, %v3175_v11 }
 0x219   : > { %4853 = vmatpush2.bf16.msra.mxu1 %v10586_v39  ;;  %4801 = vmatprep.subr.bf16.mxu0 %v10451_v44  ;;  %v10557_v39 = vcombine.high %v3299_v16, %v3303_v51  ;;  %v3163_v44 = vld [vmem:[%s17434_s2 + $0x110] sm:$0xff] }
 0x21a   : > { %4854 = vmatprep.subr.bf16.mxu1 %v10579_v12  ;;  %v3167_v12 = vld [vmem:[%s17434_s2 + $0x130] sm:$0xff] }
 0x21b   : > { %v10421_v58 = vcombine.high %v3163_v44, %v3167_v12 }
 0x21c   : > { %4802 = vmatpush2.bf16.msra.mxu0 %v10450_v22 }
 0x21d   : > { %4855 = vmatpush2.bf16.msra.mxu1 %v10578_v32  ;;  %4877 = vmatprep.subr.bf16.mxu0 %v10445_v17  ;;  %v10428_v32 = vcombine.low %v3171_v14, %v3175_v11  ;;  %v10556_v17 = vcombine.low %v3299_v16, %v3303_v51  ;;  %v10420_v11 = vcombine.low %v3163_v44, %v3167_v12  ;;  %v3275_v44 = vld [vmem:[%s17434_s2 + $0x490] sm:$0xff] }
 0x21e   : > { %4930 = vmatprep.subr.bf16.mxu1 %v10573_v47  ;;  %v10548_v16 = vcombine.low %v3291_v63, %v3295_v45  ;;  %v3279_v12 = vld [vmem:[%s17434_s2 + $0x4b0] sm:$0xff] }
 0x21f   : > { %v2951_v54 = vpop.f32.mrf.mxu0  ;;  %4804 = vmatmul.mubr.bf16.vlgmr.msra.gmra.mxu0 %v17605_v57 }
 0x220   : > { %v3004_v13 = vpop.f32.mrf.mxu1  ;;  %4857 = vmatmul.mubr.bf16.vlgmr.msra.gmra.mxu1 %v17606_v38  ;;  %4878 = vmatpush1.bf16.msra.mxu0 %v10444_v29  ;;  %v3159_v29 = vld [vmem:[%s17434_s2 + $0xf0] sm:$0xff] }
 0x221   : > { %v13662_v37 = vadd.f32 %v3004_v13, %v2951_v54  ;;  %4931 = vmatpush1.bf16.msra.mxu1 %v10572_v4  ;;  %v13664_v34 = vpop.f32.mrf.mxu0  ;;  %4879 = vmatprep.subr.bf16.mxu0 %v10437_v1  ;;  %v3283_v4 = vld [vmem:[%s17434_s2 + $0x4d0] sm:$0xff]  ;;  %v10413_v54 = vcombine.high %v3155_v9, %v3159_v29 }
 0x222   : > { %17608 = vst [vmem:[#allocation12_spill] sm:$0xff] %v13664_v34  ;;  %v13666_v61 = vpop.f32.mrf.mxu1  ;;  %4932 = vmatprep.subr.bf16.mxu1 %v10565_v5  ;;  %4813 = vmatprep.mubr.bf16.mxu0 %v12564_v48  ;;  %v3287_v1 = vld [vmem:[%s17434_s2 + $0x4f0] sm:$0xff] }
 0x223   : > { %17607 = vst [vmem:[#allocation11_spill] sm:$0xff] %v13662_v37  ;;  %17609 = vst [vmem:[#allocation13_spill] sm:$0xff] %v13666_v61  ;;  %4866 = vmatprep.mubr.bf16.mxu1 %v12651_v6  ;;  %v2955_v23 = vpop.f32.mrf.mxu0  ;;  %v10541_v13 = vcombine.high %v3283_v4, %v3287_v1  ;;  %v3164_v61 = vld [vmem:[%s17434_s2 + $0x118] sm:$0xff] }
 0x224   : > { %v3008_v2 = vpop.f32.mrf.mxu1  ;;  %4880 = vmatpush1.bf16.msra.mxu0 %v10436_v41  ;;  %v3147_v41 = vld [vmem:[%s17434_s2 + $0x90] sm:$0xff] }
 0x225   : > { %v13682_v22 = vadd.f32 %v3008_v2, %v2955_v23  ;;  %4933 = vmatpush1.bf16.msra.mxu1 %v10564_v42  ;;  %v13684_v47 = vpop.f32.mrf.mxu0  ;;  %4881 = vmatprep.subr.bf16.mxu0 %v10429_v33  ;;  %v10412_v23 = vcombine.low %v3155_v9, %v3159_v29  ;;  %v10540_v2 = vcombine.low %v3283_v4, %v3287_v1  ;;  %v3271_v9 = vld [vmem:[%s17434_s2 + $0x470] sm:$0xff] }
 0x226   : > { %17611 = vst [vmem:[#allocation15_spill] sm:$0xff] %v13684_v47  ;;  %v13686_v31 = vpop.f32.mrf.mxu1  ;;  %4934 = vmatprep.subr.bf16.mxu1 %v10557_v39  ;;  %v3151_v39 = vld [vmem:[%s17434_s2 + $0xb0] sm:$0xff]  ;;  %v10532_v4 = vcombine.low %v3275_v44, %v3279_v12 }
 0x227   : > { %17610 = vst [vmem:[#allocation14_spill] sm:$0xff] %v13682_v22  ;;  %17612 = vst [vmem:[#allocation16_spill] sm:$0xff] %v13686_v31  ;;  %v2961_v5 = vpop.f32.mrf.mxu0  ;;  %4814 = vmatmul.mubr.bf16.gmra.mxu0 %v12724_v3  ;;  %v10404_v29 = vcombine.low %v3147_v41, %v3151_v39 }
 0x228   : > { %v3014_v14 = vpop.f32.mrf.mxu1  ;;  %4867 = vmatmul.mubr.bf16.gmra.mxu1 %v12772_v8  ;;  %4882 = vmatpush1.bf16.msra.mxu0 %v10428_v32 }
 0x229   : > { %4935 = vmatpush1.bf16.msra.mxu1 %v10556_v17  ;;  %v13702_v51 = vadd.f32 %v3014_v14, %v2961_v5  ;;  %4883 = vmatprep.subr.bf16.mxu0 %v10421_v58  ;;  %v13707_v42 = vpop.f32.mrf.mxu0  ;;  %v10405_v17 = vcombine.high %v3147_v41, %v3151_v39  ;;  %v10533_v58 = vcombine.high %v3275_v44, %v3279_v12  ;;  %v3143_v5 = vld [vmem:[%s17434_s2 + $0x70] sm:$0xff] }
 0x22a   : > { %4936 = vmatprep.subr.bf16.mxu1 %v10549_v10  ;;  %v13709_v33 = vpop.f32.mrf.mxu1  ;;  %4909 = vmatprep.mubr.bf16.mxu0 %v17603_v27  ;;  %v3139_v10 = vld [vmem:[%s17434_s2 + $0x50] sm:$0xff] }
 0x22b   : > { %17613 = vst [vmem:[#allocation19_spill] sm:$0xff] %v13702_v51  ;;  %4962 = vmatprep.mubr.bf16.mxu1 %v17604_v50  ;;  %v2965_v63 = vpop.f32.mrf.mxu0  ;;  %v3267_v14 = vld [vmem:[%s17434_s2 + $0x450] sm:$0xff]  ;;  %v10397_v1 = vcombine.high %v3139_v10, %v3143_v5  ;;  %v10396_v39 = vcombine.low %v3139_v10, %v3143_v5 }
 0x22c   : > { %v3018_v45 = vpop.f32.mrf.mxu1  ;;  %4884 = vmatpush1.bf16.msra.mxu0 %v10420_v11  ;;  %v10525_v11 = vcombine.high %v3267_v14, %v3271_v9  ;;  %v3263_v41 = vld [vmem:[%s17434_s2 + $0x430] sm:$0xff]  ;;  %v10524_v44 = vcombine.low %v3267_v14, %v3271_v9 }
 0x22d   : > { %4937 = vmatpush1.bf16.msra.mxu1 %v10548_v16  ;;  %v13722_v32 = vadd.f32 %v3018_v45, %v2965_v63  ;;  %4885 = vmatprep.subr.bf16.mxu0 %v10413_v54  ;;  %v3131_v16 = vld [vmem:[%s17434_s2 + $0x10] sm:$0xff] }
 0x22e   : > { %4938 = vmatprep.subr.bf16.mxu1 %v10541_v13  ;;  %v3135_v54 = vld [vmem:[%s17434_s2 + $0x30] sm:$0xff] }
 0x22f   : > { %17614 = vst [vmem:[#allocation20_spill] sm:$0xff] %v13722_v32  ;;  %v3259_v13 = vld [vmem:[%s17434_s2 + $0x410] sm:$0xff]  ;;  %v10389_v12 = vcombine.high %v3131_v16, %v3135_v54  ;;  %v5102_v32 = vld [vmem:[%s17435_s3 + $0x68] sm:$0xff] }
 0x230   : > { %4886 = vmatpush1.bf16.msra.mxu0 %v10412_v23  ;;  %v10517_v63 = vcombine.high %v3259_v13, %v3263_v41  ;;  %v3251_v45 = vld [vmem:[%s17434_s2 + $0x3d0] sm:$0xff]  ;;  %v10516_v10 = vcombine.low %v3259_v13, %v3263_v41 }
 0x231   : > { %4939 = vmatpush1.bf16.msra.mxu1 %v10540_v2  ;;  %4887 = vmatprep.subr.bf16.mxu0 %v10405_v17  ;;  %v3255_v23 = vld [vmem:[%s17434_s2 + $0x3f0] sm:$0xff] }
 0x232   : > { %4940 = vmatprep.subr.bf16.mxu1 %v10533_v58  ;;  %v3379_v2 = vld [vmem:[%s17434_s2 + $0x7d0] sm:$0xff]  ;;  %v10388_v58 = vcombine.low %v3131_v16, %v3135_v54  ;;  %v10509_v5 = vcombine.high %v3251_v45, %v3255_v23 }
 0x233   : > { %v3383_v17 = vld [vmem:[%s17434_s2 + $0x7f0] sm:$0xff] }
 0x234   : > { %4888 = vmatpush1.bf16.msra.mxu0 %v10404_v29  ;;  %v10637_v14 = vcombine.high %v3379_v2, %v3383_v17  ;;  %v3243_v9 = vld [vmem:[%s17434_s2 + $0x390] sm:$0xff]  ;;  %v10636_v16 = vcombine.low %v3379_v2, %v3383_v17 }
 0x235   : > { %4941 = vmatpush1.bf16.msra.mxu1 %v10532_v4  ;;  %4889 = vmatprep.subr.bf16.mxu0 %v10397_v1  ;;  %v3247_v29 = vld [vmem:[%s17434_s2 + $0x3b0] sm:$0xff] }
 0x236   : > { %4942 = vmatprep.subr.bf16.mxu1 %v10525_v11  ;;  %v3371_v4 = vld [vmem:[%s17434_s2 + $0x790] sm:$0xff]  ;;  %v10508_v11 = vcombine.low %v3251_v45, %v3255_v23  ;;  %v10501_v54 = vcombine.high %v3243_v9, %v3247_v29 }
 0x237   : > { %v3375_v1 = vld [vmem:[%s17434_s2 + $0x7b0] sm:$0xff] }
 0x238   : > { %4890 = vmatpush1.bf16.msra.mxu0 %v10396_v39  ;;  %v10629_v13 = vcombine.high %v3371_v4, %v3375_v1  ;;  %v3235_v41 = vld [vmem:[%s17434_s2 + $0x350] sm:$0xff]  ;;  %v10628_v45 = vcombine.low %v3371_v4, %v3375_v1 }
 0x239   : > { %4943 = vmatpush1.bf16.msra.mxu1 %v10524_v44  ;;  %4891 = vmatprep.subr.bf16.mxu0 %v10389_v12  ;;  %v3239_v39 = vld [vmem:[%s17434_s2 + $0x370] sm:$0xff] }
 0x23a   : > { %4944 = vmatprep.subr.bf16.mxu1 %v10517_v63  ;;  %v3363_v44 = vld [vmem:[%s17434_s2 + $0x750] sm:$0xff]  ;;  %v10500_v63 = vcombine.low %v3243_v9, %v3247_v29  ;;  %v10493_v23 = vcombine.high %v3235_v41, %v3239_v39 }
 0x23b   : > { %v3367_v12 = vld [vmem:[%s17434_s2 + $0x770] sm:$0xff] }
 0x23c   : > { %4892 = vmatpush1.bf16.msra.mxu0 %v10388_v58  ;;  %v10621_v2 = vcombine.high %v3363_v44, %v3367_v12  ;;  %v3227_v17 = vld [vmem:[%s17434_s2 + $0x310] sm:$0xff]  ;;  %v10620_v9 = vcombine.low %v3363_v44, %v3367_v12 }
 0x23d   : > { %4945 = vmatpush1.bf16.msra.mxu1 %v10516_v10  ;;  %4893 = vmatprep.subr.bf16.mxu0 %v10509_v5  ;;  %v3231_v58 = vld [vmem:[%s17434_s2 + $0x330] sm:$0xff] }
 0x23e   : > { %4946 = vmatprep.subr.bf16.mxu1 %v10637_v14  ;;  %v3355_v10 = vld [vmem:[%s17434_s2 + $0x710] sm:$0xff]  ;;  %v10492_v14 = vcombine.low %v3235_v41, %v3239_v39  ;;  %v10485_v29 = vcombine.high %v3227_v17, %v3231_v58 }
 0x23f   : > { %v3359_v5 = vld [vmem:[%s17434_s2 + $0x730] sm:$0xff] }
 0x240   : > { %4894 = vmatpush2.bf16.msra.mxu0 %v10508_v11  ;;  %v10613_v4 = vcombine.high %v3355_v10, %v3359_v5  ;;  %v3219_v1 = vld [vmem:[%s17434_s2 + $0x2d0] sm:$0xff]  ;;  %v10612_v41 = vcombine.low %v3355_v10, %v3359_v5 }
 0x241   : > { %4947 = vmatpush2.bf16.msra.mxu1 %v10636_v16  ;;  %4895 = vmatprep.subr.bf16.mxu0 %v10501_v54  ;;  %v3223_v11 = vld [vmem:[%s17434_s2 + $0x2f0] sm:$0xff] }
 0x242   : > { %4948 = vmatprep.subr.bf16.mxu1 %v10629_v13  ;;  %v3347_v16 = vld [vmem:[%s17434_s2 + $0x6d0] sm:$0xff]  ;;  %v10484_v13 = vcombine.low %v3227_v17, %v3231_v58  ;;  %v10477_v39 = vcombine.high %v3219_v1, %v3223_v11 }
 0x243   : > { %v3351_v54 = vld [vmem:[%s17434_s2 + $0x6f0] sm:$0xff] }
 0x244   : > { %4896 = vmatpush2.bf16.msra.mxu0 %v10500_v63  ;;  %v10605_v44 = vcombine.high %v3347_v16, %v3351_v54  ;;  %v3211_v12 = vld [vmem:[%s17434_s2 + $0x290] sm:$0xff]  ;;  %v10604_v17 = vcombine.low %v3347_v16, %v3351_v54 }
 0x245   : > { %4949 = vmatpush2.bf16.msra.mxu1 %v10628_v45  ;;  %4897 = vmatprep.subr.bf16.mxu0 %v10493_v23  ;;  %v3215_v63 = vld [vmem:[%s17434_s2 + $0x2b0] sm:$0xff] }
 0x246   : > { %4950 = vmatprep.subr.bf16.mxu1 %v10621_v2  ;;  %v3339_v45 = vld [vmem:[%s17434_s2 + $0x690] sm:$0xff]  ;;  %v10476_v2 = vcombine.low %v3219_v1, %v3223_v11  ;;  %v10469_v58 = vcombine.high %v3211_v12, %v3215_v63 }
 0x247   : > { %v3343_v23 = vld [vmem:[%s17434_s2 + $0x6b0] sm:$0xff] }
 0x248   : > { %4898 = vmatpush2.bf16.msra.mxu0 %v10492_v14  ;;  %v10597_v10 = vcombine.high %v3339_v45, %v3343_v23  ;;  %v3203_v5 = vld [vmem:[%s17434_s2 + $0x250] sm:$0xff]  ;;  %v10596_v1 = vcombine.low %v3339_v45, %v3343_v23  ;;  %v3188_v23 = vld [vmem:[%s17434_s2 + $0x1d8] sm:$0xff] }
 0x249   : > { %4951 = vmatpush2.bf16.msra.mxu1 %v10620_v9  ;;  %4899 = vmatprep.subr.bf16.mxu0 %v10485_v29  ;;  %v3207_v14 = vld [vmem:[%s17434_s2 + $0x270] sm:$0xff] }
 0x24a   : > { %4952 = vmatprep.subr.bf16.mxu1 %v10613_v4  ;;  %v3331_v9 = vld [vmem:[%s17434_s2 + $0x650] sm:$0xff]  ;;  %v10468_v4 = vcombine.low %v3211_v12, %v3215_v63  ;;  %v10461_v11 = vcombine.high %v3203_v5, %v3207_v14 }
 0x24b   : > { %v3335_v29 = vld [vmem:[%s17434_s2 + $0x670] sm:$0xff] }
 0x24c   : > { %4900 = vmatpush2.bf16.msra.mxu0 %v10484_v13  ;;  %v10589_v16 = vcombine.high %v3331_v9, %v3335_v29  ;;  %v3195_v54 = vld [vmem:[%s17434_s2 + $0x210] sm:$0xff]  ;;  %v10588_v12 = vcombine.low %v3331_v9, %v3335_v29  ;;  %v3180_v29 = vld [vmem:[%s17434_s2 + $0x198] sm:$0xff] }
 0x24d   : > { %4953 = vmatpush2.bf16.msra.mxu1 %v10612_v41  ;;  %4901 = vmatprep.subr.bf16.mxu0 %v10477_v39  ;;  %v3199_v13 = vld [vmem:[%s17434_s2 + $0x230] sm:$0xff] }
 0x24e   : > { %4954 = vmatprep.subr.bf16.mxu1 %v10605_v44  ;;  %v3323_v41 = vld [vmem:[%s17434_s2 + $0x610] sm:$0xff]  ;;  %v10460_v44 = vcombine.low %v3203_v5, %v3207_v14  ;;  %v10453_v63 = vcombine.high %v3195_v54, %v3199_v13 }
 0x24f   : > { %v3327_v39 = vld [vmem:[%s17434_s2 + $0x630] sm:$0xff] }
 0x250   : > { %4902 = vmatpush2.bf16.msra.mxu0 %v10476_v2  ;;  %v10581_v45 = vcombine.high %v3323_v41, %v3327_v39  ;;  %v3192_v2 = vld [vmem:[%s17434_s2 + $0x1f8] sm:$0xff]  ;;  %v10580_v5 = vcombine.low %v3323_v41, %v3327_v39  ;;  %v13870_v41 = vpop.f32.mrf.mxu1 }
 0x251   : > { %4955 = vmatpush2.bf16.msra.mxu1 %v10604_v17  ;;  %4903 = vmatprep.subr.bf16.mxu0 %v10469_v58  ;;  %v3316_v17 = vld [vmem:[%s17434_s2 + $0x5d8] sm:$0xff]  ;;  %v10447_v14 = vcombine.high %v3188_v23, %v3192_v2 }
 0x252   : > { %4956 = vmatprep.subr.bf16.mxu1 %v10597_v10  ;;  %v3320_v58 = vld [vmem:[%s17434_s2 + $0x5f8] sm:$0xff]  ;;  %v10452_v10 = vcombine.low %v3195_v54, %v3199_v13  ;;  %v13868_v13 = vpop.f32.mrf.mxu0 }
 0x253   : > { %v10575_v9 = vcombine.high %v3316_v17, %v3320_v58  ;;  %v10574_v54 = vcombine.low %v3316_v17, %v3320_v58 }
 0x254   : > { %4904 = vmatpush2.bf16.msra.mxu0 %v10468_v4  ;;  %v3184_v4 = vld [vmem:[%s17434_s2 + $0x1b8] sm:$0xff] }
 0x255   : > { %4957 = vmatpush2.bf16.msra.mxu1 %v10596_v1  ;;  %4905 = vmatprep.subr.bf16.mxu0 %v10461_v11  ;;  %v3308_v1 = vld [vmem:[%s17434_s2 + $0x598] sm:$0xff]  ;;  %v10439_v39 = vcombine.high %v3180_v29, %v3184_v4 }
 0x256   : > { %4958 = vmatprep.subr.bf16.mxu1 %v10589_v16  ;;  %v3312_v11 = vld [vmem:[%s17434_s2 + $0x5b8] sm:$0xff]  ;;  %v10446_v16 = vcombine.low %v3188_v23, %v3192_v2 }
 0x257   : > { %v3304_v23 = vld [vmem:[%s17434_s2 + $0x578] sm:$0xff] }
 0x258   : > { %4906 = vmatpush2.bf16.msra.mxu0 %v10460_v44  ;;  %v10567_v44 = vcombine.high %v3308_v1, %v3312_v11 }
 0x259   : > { %4959 = vmatpush2.bf16.msra.mxu1 %v10588_v12  ;;  %4907 = vmatprep.subr.bf16.mxu0 %v10453_v63  ;;  %v3172_v12 = vld [vmem:[%s17434_s2 + $0x158] sm:$0xff] }
 0x25a   : > { %4960 = vmatprep.subr.bf16.mxu1 %v10581_v45  ;;  %v3176_v63 = vld [vmem:[%s17434_s2 + $0x178] sm:$0xff] }
 0x25b   : > { %v3300_v45 = vld [vmem:[%s17434_s2 + $0x558] sm:$0xff]  ;;  %v10431_v37 = vcombine.high %v3172_v12, %v3176_v63 }
 0x25c   : > { %4908 = vmatpush2.bf16.msra.mxu0 %v10452_v10  ;;  %v10438_v10 = vcombine.low %v3180_v29, %v3184_v4  ;;  %v10559_v22 = vcombine.high %v3300_v45, %v3304_v23  ;;  %v3292_v29 = vld [vmem:[%s17434_s2 + $0x518] sm:$0xff] }
 0x25d   : > { %4961 = vmatpush2.bf16.msra.mxu1 %v10580_v5  ;;  %4983 = vmatprep.subr.bf16.mxu0 %v10447_v14  ;;  %v10566_v5 = vcombine.low %v3308_v1, %v3312_v11  ;;  %v3296_v4 = vld [vmem:[%s17434_s2 + $0x538] sm:$0xff] }
 0x25e   : > { %5036 = vmatprep.subr.bf16.mxu1 %v10575_v9 }
 0x25f   : > { %v3057_v2 = vpop.f32.mrf.mxu0  ;;  %4910 = vmatmul.mubr.bf16.vlgmr.msra.gmra.mxu0 %v17605_v57 }
 0x260   : > { %v3110_v17 = vpop.f32.mrf.mxu1  ;;  %4963 = vmatmul.mubr.bf16.vlgmr.msra.gmra.mxu1 %v17606_v38  ;;  %4984 = vmatpush1.bf16.msra.mxu0 %v10446_v16 }
 0x261   : > { %v13886_v58 = vadd.f32 %v3110_v17, %v3057_v2  ;;  %5037 = vmatpush1.bf16.msra.mxu1 %v10574_v54  ;;  %v13888_v14 = vpop.f32.mrf.mxu0  ;;  %4985 = vmatprep.subr.bf16.mxu0 %v10439_v39  ;;  %v3168_v2 = vld [vmem:[%s17434_s2 + $0x138] sm:$0xff]  ;;  %v10430_v54 = vcombine.low %v3172_v12, %v3176_v63  ;;  %v10558_v39 = vcombine.low %v3300_v45, %v3304_v23 }
 0x262   : > { %17616 = vst [vmem:[#allocation18_spill] sm:$0xff] %v13888_v14  ;;  %v13890_v9 = vpop.f32.mrf.mxu1  ;;  %5038 = vmatprep.subr.bf16.mxu1 %v10567_v44  ;;  %4919 = vmatprep.mubr.bf16.mxu0 %v12564_v48  ;;  %v3156_v14 = vld [vmem:[%s17434_s2 + $0xd8] sm:$0xff]  ;;  %v10422_v45 = vcombine.low %v3164_v61, %v3168_v2  ;;  %v10550_v23 = vcombine.low %v3292_v29, %v3296_v4 }
 0x263   : > { %17615 = vst [vmem:[#allocation17_spill] sm:$0xff] %v13886_v58  ;;  %17617 = vst [vmem:[#allocation9_spill] sm:$0xff] %v13890_v9  ;;  %4972 = vmatprep.mubr.bf16.mxu1 %v12651_v6  ;;  %v3061_v1 = vpop.f32.mrf.mxu0  ;;  %v10423_v58 = vcombine.high %v3164_v61, %v3168_v2  ;;  %v10551_v9 = vcombine.high %v3292_v29, %v3296_v4  ;;  %v3284_v12 = vld [vmem:[%s17434_s2 + $0x4d8] sm:$0xff] }
 0x264   : > { %v3114_v11 = vpop.f32.mrf.mxu1  ;;  %4986 = vmatpush1.bf16.msra.mxu0 %v10438_v10  ;;  %v3288_v63 = vld [vmem:[%s17434_s2 + $0x4f8] sm:$0xff] }
 0x265   : > { %v13906_v16 = vadd.f32 %v3114_v11, %v3061_v1  ;;  %5039 = vmatpush1.bf16.msra.mxu1 %v10566_v5  ;;  %v13908_v44 = vpop.f32.mrf.mxu0  ;;  %4987 = vmatprep.subr.bf16.mxu0 %v10431_v37  ;;  %v3160_v1 = vld [vmem:[%s17434_s2 + $0xf8] sm:$0xff]  ;;  %v10543_v11 = vcombine.high %v3284_v12, %v3288_v63  ;;  %v10542_v4 = vcombine.low %v3284_v12, %v3288_v63 }
 0x266   : > { %17619 = vst [vmem:[#allocation21_spill] sm:$0xff] %v13908_v44  ;;  %v13910_v17 = vpop.f32.mrf.mxu1  ;;  %5040 = vmatprep.subr.bf16.mxu1 %v10559_v22  ;;  %v10415_v5 = vcombine.high %v3156_v14, %v3160_v1  ;;  %v3276_v61 = vld [vmem:[%s17434_s2 + $0x498] sm:$0xff]  ;;  %v10414_v29 = vcombine.low %v3156_v14, %v3160_v1 }
 0x267   : > { %17618 = vst [vmem:[#allocation10_spill] sm:$0xff] %v13906_v16  ;;  %17620 = vst [vmem:[#allocation22_spill] sm:$0xff] %v13910_v17  ;;  %v3067_v37 = vpop.f32.mrf.mxu0  ;;  %4920 = vmatmul.mubr.bf16.gmra.mxu0 %v12724_v3  ;;  %v3148_v16 = vld [vmem:[%s17434_s2 + $0x98] sm:$0xff] }
 0x268   : > { %v3120_v22 = vpop.f32.mrf.mxu1  ;;  %4973 = vmatmul.mubr.bf16.gmra.mxu1 %v12772_v8  ;;  %4988 = vmatpush1.bf16.msra.mxu0 %v10430_v54  ;;  %v3152_v54 = vld [vmem:[%s17434_s2 + $0xb8] sm:$0xff] }
 0x269   : > { %5041 = vmatpush1.bf16.msra.mxu1 %v10558_v39  ;;  %v13926_v10 = vadd.f32 %v3120_v22, %v3067_v37  ;;  %4989 = vmatprep.subr.bf16.mxu0 %v10423_v58  ;;  %v13931_v34 = vpop.f32.mrf.mxu0  ;;  %v3280_v58 = vld [vmem:[%s17434_s2 + $0x4b8] sm:$0xff]  ;;  %v10407_v37 = vcombine.high %v3148_v16, %v3152_v54  ;;  %v10406_v1 = vcombine.low %v3148_v16, %v3152_v54 }
 0x26a   : > { %5042 = vmatprep.subr.bf16.mxu1 %v10551_v9  ;;  %v13933_v51 = vpop.f32.mrf.mxu1  ;;  %5015 = vmatprep.mubr.bf16.mxu0 %v17603_v27  ;;  %v10535_v22 = vcombine.high %v3276_v61, %v3280_v58  ;;  %v3144_v17 = vld [vmem:[%s17434_s2 + $0x78] sm:$0xff]  ;;  %v10534_v12 = vcombine.low %v3276_v61, %v3280_v58 }
 0x26b   : > { %17621 = vst [vmem:[#allocation23_spill] sm:$0xff] %v13926_v10  ;;  %5068 = vmatprep.mubr.bf16.mxu1 %v17604_v50  ;;  %v3071_v9 = vpop.f32.mrf.mxu0  ;;  %v3140_v10 = vld [vmem:[%s17434_s2 + $0x58] sm:$0xff] }
 0x26c   : > { %v3124_v2 = vpop.f32.mrf.mxu1  ;;  %4990 = vmatpush1.bf16.msra.mxu0 %v10422_v45  ;;  %v3268_v45 = vld [vmem:[%s17434_s2 + $0x458] sm:$0xff]  ;;  %v10399_v63 = vcombine.high %v3140_v10, %v3144_v17  ;;  %v10398_v54 = vcombine.low %v3140_v10, %v3144_v17 }
 0x26d   : > { %5043 = vmatpush1.bf16.msra.mxu1 %v10550_v23  ;;  %v13946_v39 = vadd.f32 %v3124_v2, %v3071_v9  ;;  %4991 = vmatprep.subr.bf16.mxu0 %v10415_v5  ;;  %v3272_v14 = vld [vmem:[%s17434_s2 + $0x478] sm:$0xff] }
 0x26e   : > { %5044 = vmatprep.subr.bf16.mxu1 %v10543_v11  ;;  %v10527_v23 = vcombine.high %v3268_v45, %v3272_v14  ;;  %v3132_v5 = vld [vmem:[%s17434_s2 + $0x18] sm:$0xff]  ;;  %v10526_v61 = vcombine.low %v3268_v45, %v3272_v14 }
 0x26f   : > { %17622 = vst [vmem:[#allocation24_spill] sm:$0xff] %v13946_v39  ;;  %v3136_v11 = vld [vmem:[%s17434_s2 + $0x38] sm:$0xff]  ;;  %v5121_v39 = vld [vmem:[%s17435_s3 + $0x100] sm:$0xff] }
 0x270   : > { %4992 = vmatpush1.bf16.msra.mxu0 %v10414_v29  ;;  %v3260_v9 = vld [vmem:[%s17434_s2 + $0x418] sm:$0xff]  ;;  %v10391_v58 = vcombine.high %v3132_v5, %v3136_v11  ;;  %v10390_v10 = vcombine.low %v3132_v5, %v3136_v11 }
 0x271   : > { %5045 = vmatpush1.bf16.msra.mxu1 %v10542_v4  ;;  %4993 = vmatprep.subr.bf16.mxu0 %v10407_v37  ;;  %v3264_v16 = vld [vmem:[%s17434_s2 + $0x438] sm:$0xff] }
 0x272   : > { %5046 = vmatprep.subr.bf16.mxu1 %v10535_v22  ;;  %v10519_v2 = vcombine.high %v3260_v9, %v3264_v16  ;;  %v3252_v29 = vld [vmem:[%s17434_s2 + $0x3d8] sm:$0xff]  ;;  %v10518_v22 = vcombine.low %v3260_v9, %v3264_v16 }
 0x273   : > { %v3256_v4 = vld [vmem:[%s17434_s2 + $0x3f8] sm:$0xff] }
 0x274   : > { %4994 = vmatpush1.bf16.msra.mxu0 %v10406_v1  ;;  %v3380_v37 = vld [vmem:[%s17434_s2 + $0x7d8] sm:$0xff]  ;;  %v10511_v45 = vcombine.high %v3252_v29, %v3256_v4  ;;  %v10510_v5 = vcombine.low %v3252_v29, %v3256_v4 }
 0x275   : > { %5047 = vmatpush1.bf16.msra.mxu1 %v10534_v12  ;;  %4995 = vmatprep.subr.bf16.mxu0 %v10399_v63  ;;  %v3384_v17 = vld [vmem:[%s17434_s2 + $0x7f8] sm:$0xff] }
 0x276   : > { %5048 = vmatprep.subr.bf16.mxu1 %v10527_v23  ;;  %v10639_v14 = vcombine.high %v3380_v37, %v3384_v17  ;;  %v3244_v1 = vld [vmem:[%s17434_s2 + $0x398] sm:$0xff]  ;;  %v10638_v11 = vcombine.low %v3380_v37, %v3384_v17 }
 0x277   : > { %v3248_v12 = vld [vmem:[%s17434_s2 + $0x3b8] sm:$0xff] }
 0x278   : > { %4996 = vmatpush1.bf16.msra.mxu0 %v10398_v54  ;;  %v3372_v63 = vld [vmem:[%s17434_s2 + $0x798] sm:$0xff]  ;;  %v10503_v9 = vcombine.high %v3244_v1, %v3248_v12  ;;  %v10502_v29 = vcombine.low %v3244_v1, %v3248_v12 }
 0x279   : > { %5049 = vmatpush1.bf16.msra.mxu1 %v10526_v61  ;;  %4997 = vmatprep.subr.bf16.mxu0 %v10391_v58  ;;  %v3376_v23 = vld [vmem:[%s17434_s2 + $0x7b8] sm:$0xff] }
 0x27a   : > { %5050 = vmatprep.subr.bf16.mxu1 %v10519_v2  ;;  %v10631_v16 = vcombine.high %v3372_v63, %v3376_v23  ;;  %v3236_v54 = vld [vmem:[%s17434_s2 + $0x358] sm:$0xff]  ;;  %v10630_v4 = vcombine.low %v3372_v63, %v3376_v23 }
 0x27b   : > { %v3240_v61 = vld [vmem:[%s17434_s2 + $0x378] sm:$0xff] }
 0x27c   : > { %4998 = vmatpush1.bf16.msra.mxu0 %v10390_v10  ;;  %v3364_v58 = vld [vmem:[%s17434_s2 + $0x758] sm:$0xff]  ;;  %v10495_v37 = vcombine.high %v3236_v54, %v3240_v61  ;;  %v10494_v1 = vcombine.low %v3236_v54, %v3240_v61 }
 0x27d   : > { %5051 = vmatpush1.bf16.msra.mxu1 %v10518_v22  ;;  %4999 = vmatprep.subr.bf16.mxu0 %v10511_v45  ;;  %v3368_v2 = vld [vmem:[%s17434_s2 + $0x778] sm:$0xff] }
 0x27e   : > { %5052 = vmatprep.subr.bf16.mxu1 %v10639_v14  ;;  %v10623_v17 = vcombine.high %v3364_v58, %v3368_v2  ;;  %v3228_v10 = vld [vmem:[%s17434_s2 + $0x318] sm:$0xff]  ;;  %v10622_v12 = vcombine.low %v3364_v58, %v3368_v2 }
 0x27f   : > { %v3232_v22 = vld [vmem:[%s17434_s2 + $0x338] sm:$0xff] }
 0x280   : > { %5000 = vmatpush2.bf16.msra.mxu0 %v10510_v5  ;;  %v3356_v45 = vld [vmem:[%s17434_s2 + $0x718] sm:$0xff]  ;;  %v10487_v63 = vcombine.high %v3228_v10, %v3232_v22  ;;  %v10486_v54 = vcombine.low %v3228_v10, %v3232_v22 }
 0x281   : > { %5053 = vmatpush2.bf16.msra.mxu1 %v10638_v11  ;;  %5001 = vmatprep.subr.bf16.mxu0 %v10503_v9  ;;  %v3360_v14 = vld [vmem:[%s17434_s2 + $0x738] sm:$0xff] }
 0x282   : > { %5054 = vmatprep.subr.bf16.mxu1 %v10631_v16  ;;  %v10615_v23 = vcombine.high %v3356_v45, %v3360_v14  ;;  %v3220_v5 = vld [vmem:[%s17434_s2 + $0x2d8] sm:$0xff]  ;;  %v10614_v61 = vcombine.low %v3356_v45, %v3360_v14 }
 0x283   : > { %v3224_v11 = vld [vmem:[%s17434_s2 + $0x2f8] sm:$0xff] }
 0x284   : > { %5002 = vmatpush2.bf16.msra.mxu0 %v10502_v29  ;;  %v3348_v9 = vld [vmem:[%s17434_s2 + $0x6d8] sm:$0xff]  ;;  %v10479_v58 = vcombine.high %v3220_v5, %v3224_v11  ;;  %v10478_v10 = vcombine.low %v3220_v5, %v3224_v11 }
 0x285   : > { %5055 = vmatpush2.bf16.msra.mxu1 %v10630_v4  ;;  %5003 = vmatprep.subr.bf16.mxu0 %v10495_v37  ;;  %v3352_v16 = vld [vmem:[%s17434_s2 + $0x6f8] sm:$0xff] }
 0x286   : > { %5056 = vmatprep.subr.bf16.mxu1 %v10623_v17  ;;  %v10607_v2 = vcombine.high %v3348_v9, %v3352_v16  ;;  %v3212_v29 = vld [vmem:[%s17434_s2 + $0x298] sm:$0xff]  ;;  %v10606_v22 = vcombine.low %v3348_v9, %v3352_v16 }
 0x287   : > { %v3216_v4 = vld [vmem:[%s17434_s2 + $0x2b8] sm:$0xff] }
 0x288   : > { %5004 = vmatpush2.bf16.msra.mxu0 %v10494_v1  ;;  %v3340_v37 = vld [vmem:[%s17434_s2 + $0x698] sm:$0xff]  ;;  %v10471_v45 = vcombine.high %v3212_v29, %v3216_v4  ;;  %v10470_v5 = vcombine.low %v3212_v29, %v3216_v4 }
 0x289   : > { %5057 = vmatpush2.bf16.msra.mxu1 %v10622_v12  ;;  %5005 = vmatprep.subr.bf16.mxu0 %v10487_v63  ;;  %v3344_v17 = vld [vmem:[%s17434_s2 + $0x6b8] sm:$0xff] }
 0x28a   : > { %5058 = vmatprep.subr.bf16.mxu1 %v10615_v23  ;;  %v10599_v14 = vcombine.high %v3340_v37, %v3344_v17  ;;  %v3204_v1 = vld [vmem:[%s17434_s2 + $0x258] sm:$0xff]  ;;  %v10598_v11 = vcombine.low %v3340_v37, %v3344_v17 }
 0x28b   : > { %v3208_v12 = vld [vmem:[%s17434_s2 + $0x278] sm:$0xff] }
 0x28c   : > { %5006 = vmatpush2.bf16.msra.mxu0 %v10486_v54  ;;  %v3332_v63 = vld [vmem:[%s17434_s2 + $0x658] sm:$0xff]  ;;  %v10463_v9 = vcombine.high %v3204_v1, %v3208_v12  ;;  %v10462_v29 = vcombine.low %v3204_v1, %v3208_v12 }
 0x28d   : > { %5059 = vmatpush2.bf16.msra.mxu1 %v10614_v61  ;;  %5007 = vmatprep.subr.bf16.mxu0 %v10479_v58  ;;  %v3336_v23 = vld [vmem:[%s17434_s2 + $0x678] sm:$0xff] }
 0x28e   : > { %5060 = vmatprep.subr.bf16.mxu1 %v10607_v2  ;;  %v10591_v16 = vcombine.high %v3332_v63, %v3336_v23  ;;  %v3196_v54 = vld [vmem:[%s17434_s2 + $0x218] sm:$0xff]  ;;  %v10590_v4 = vcombine.low %v3332_v63, %v3336_v23 }
 0x28f   : > { %v3200_v61 = vld [vmem:[%s17434_s2 + $0x238] sm:$0xff] }
 0x290   : > { %5008 = vmatpush2.bf16.msra.mxu0 %v10478_v10  ;;  %v3324_v58 = vld [vmem:[%s17434_s2 + $0x618] sm:$0xff]  ;;  %v10455_v37 = vcombine.high %v3196_v54, %v3200_v61  ;;  %v5145_v10 = vld [vmem:[%s17435_s3 + $0x1c0] sm:$0xff]  ;;  %v10454_v1 = vcombine.low %v3196_v54, %v3200_v61 }
 0x291   : > { %5061 = vmatpush2.bf16.msra.mxu1 %v10606_v22  ;;  %5009 = vmatprep.subr.bf16.mxu0 %v10471_v45  ;;  %v3328_v2 = vld [vmem:[%s17434_s2 + $0x638] sm:$0xff]  ;;  %v5149_v22 = vld [vmem:[%s17435_s3 + $0x1e0] sm:$0xff] }
 0x292   : > { %5062 = vmatprep.subr.bf16.mxu1 %v10599_v14  ;;  %v10583_v17 = vcombine.high %v3324_v58, %v3328_v2  ;;  %v5273_v45 = vld [vmem:[%s17435_s3 + $0x5c0] sm:$0xff]  ;;  %v10582_v12 = vcombine.low %v3324_v58, %v3328_v2  ;;  %v10697_v63 = vcombine.high %v5145_v10, %v5149_v22  ;;  %v10696_v54 = vcombine.low %v5145_v10, %v5149_v22  ;;  %v14092_v58 = vpop.f32.mrf.mxu0  ;;  %v14094_v2 = vpop.f32.mrf.mxu1 }
 0x293   : > { %v5277_v14 = vld [vmem:[%s17435_s3 + $0x5e0] sm:$0xff] }
 0x294   : > { %5010 = vmatpush2.bf16.msra.mxu0 %v10470_v5  ;;  %v10825_v23 = vcombine.high %v5273_v45, %v5277_v14  ;;  %v5137_v5 = vld [vmem:[%s17435_s3 + $0x180] sm:$0xff]  ;;  %v10824_v61 = vcombine.low %v5273_v45, %v5277_v14 }
 0x295   : > { %5063 = vmatpush2.bf16.msra.mxu1 %v10598_v11  ;;  %5011 = vmatprep.subr.bf16.mxu0 %v10463_v9  ;;  %v5141_v11 = vld [vmem:[%s17435_s3 + $0x1a0] sm:$0xff] }
 0x296   : > { %5064 = vmatprep.subr.bf16.mxu1 %v10591_v16  ;;  %v5265_v9 = vld [vmem:[%s17435_s3 + $0x580] sm:$0xff] }
 0x297   : > { %v5269_v16 = vld [vmem:[%s17435_s3 + $0x5a0] sm:$0xff] }
 0x298   : > { %5012 = vmatpush2.bf16.msra.mxu0 %v10462_v29  ;;  %v10689_v29 = vcombine.high %v5137_v5, %v5141_v11  ;;  %v5257_v10 = vld [vmem:[%s17435_s3 + $0x540] sm:$0xff] }
 0x299   : > { %5065 = vmatpush2.bf16.msra.mxu1 %v10590_v4  ;;  %5013 = vmatprep.subr.bf16.mxu0 %v10455_v37  ;;  %v10817_v4 = vcombine.high %v5265_v9, %v5269_v16  ;;  %v5129_v37 = vld [vmem:[%s17435_s3 + $0x140] sm:$0xff] }
 0x29a   : > { %5066 = vmatprep.subr.bf16.mxu1 %v10583_v17  ;;  %v5133_v17 = vld [vmem:[%s17435_s3 + $0x160] sm:$0xff] }
 0x29b   : > { %v5261_v22 = vld [vmem:[%s17435_s3 + $0x560] sm:$0xff]  ;;  %v10681_v31 = vcombine.high %v5129_v37, %v5133_v17 }
 0x29c   : > { %5014 = vmatpush2.bf16.msra.mxu0 %v10454_v1  ;;  %v10809_v47 = vcombine.high %v5257_v10, %v5261_v22 }
 0x29d   : > { %5067 = vmatpush2.bf16.msra.mxu1 %v10582_v12  ;;  %6625 = vmatprep.subr.bf16.mxu0 %v10697_v63  ;;  %v10688_v12 = vcombine.low %v5137_v5, %v5141_v11  ;;  %v10816_v63 = vcombine.low %v5265_v9, %v5269_v16  ;;  %v5249_v5 = vld [vmem:[%s17435_s3 + $0x500] sm:$0xff] }
 0x29e   : > { %6678 = vmatprep.subr.bf16.mxu1 %v10825_v23  ;;  %v5253_v11 = vld [vmem:[%s17435_s3 + $0x520] sm:$0xff] }
 0x29f   : > { %v4699_v45 = vpop.f32.mrf.mxu0  ;;  %5016 = vmatmul.mubr.bf16.vlgmr.msra.gmra.mxu0 %v17605_v57 }
 0x2a0   : > { %v4752_v14 = vpop.f32.mrf.mxu1  ;;  %5069 = vmatmul.mubr.bf16.vlgmr.msra.gmra.mxu1 %v17606_v38  ;;  %6626 = vmatpush1.bf16.msra.mxu0 %v10696_v54 }
 0x2a1   : > { %v14110_v1 = vadd.f32 %v4752_v14, %v4699_v45  ;;  %6679 = vmatpush1.bf16.msra.mxu1 %v10824_v61  ;;  %v14112_v23 = vpop.f32.mrf.mxu0  ;;  %6627 = vmatprep.subr.bf16.mxu0 %v10689_v29  ;;  %v5125_v45 = vld [vmem:[%s17435_s3 + $0x120] sm:$0xff]  ;;  %v10680_v61 = vcombine.low %v5129_v37, %v5133_v17  ;;  %v10808_v29 = vcombine.low %v5257_v10, %v5261_v22 }
 0x2a2   : > { %17624 = vst [vmem:[#allocation26_spill] sm:$0xff] %v14112_v23  ;;  %v14114_v44 = vpop.f32.mrf.mxu1  ;;  %6680 = vmatprep.subr.bf16.mxu1 %v10817_v4  ;;  %5025 = vmatprep.mubr.bf16.mxu0 %v12564_v48  ;;  %v5113_v23 = vld [vmem:[%s17435_s3 + $0xc0] sm:$0xff]  ;;  %v10672_v10 = vcombine.low %v5121_v39, %v5125_v45  ;;  %v10800_v22 = vcombine.low %v5249_v5, %v5253_v11 }
 0x2a3   : > { %17623 = vst [vmem:[#allocation25_spill] sm:$0xff] %v14110_v1  ;;  %17625 = vst [vmem:[#allocation27_spill] sm:$0xff] %v14114_v44  ;;  %5078 = vmatprep.mubr.bf16.mxu1 %v12651_v6  ;;  %v4703_v9 = vpop.f32.mrf.mxu0  ;;  %v10673_v1 = vcombine.high %v5121_v39, %v5125_v45  ;;  %v10801_v44 = vcombine.high %v5249_v5, %v5253_v11  ;;  %v5241_v37 = vld [vmem:[%s17435_s3 + $0x4c0] sm:$0xff] }
 0x2a4   : > { %v4756_v16 = vpop.f32.mrf.mxu1  ;;  %6628 = vmatpush1.bf16.msra.mxu0 %v10688_v12  ;;  %v5245_v17 = vld [vmem:[%s17435_s3 + $0x4e0] sm:$0xff] }
 0x2a5   : > { %v14130_v54 = vadd.f32 %v4756_v16, %v4703_v9  ;;  %6681 = vmatpush1.bf16.msra.mxu1 %v10816_v63  ;;  %v14132_v4 = vpop.f32.mrf.mxu0  ;;  %6629 = vmatprep.subr.bf16.mxu0 %v10681_v31  ;;  %v5117_v9 = vld [vmem:[%s17435_s3 + $0xe0] sm:$0xff]  ;;  %v10793_v16 = vcombine.high %v5241_v37, %v5245_v17  ;;  %v10792_v11 = vcombine.low %v5241_v37, %v5245_v17 }
 0x2a6   : > { %17627 = vst [vmem:[#allocation29_spill] sm:$0xff] %v14132_v4  ;;  %v14134_v14 = vpop.f32.mrf.mxu1  ;;  %6682 = vmatprep.subr.bf16.mxu1 %v10809_v47  ;;  %v10665_v63 = vcombine.high %v5113_v23, %v5117_v9  ;;  %v5233_v39 = vld [vmem:[%s17435_s3 + $0x480] sm:$0xff]  ;;  %v10664_v5 = vcombine.low %v5113_v23, %v5117_v9 }
 0x2a7   : > { %17626 = vst [vmem:[#allocation28_spill] sm:$0xff] %v14130_v54  ;;  %17628 = vst [vmem:[#allocation30_spill] sm:$0xff] %v14134_v14  ;;  %v4709_v31 = vpop.f32.mrf.mxu0  ;;  %5026 = vmatmul.mubr.bf16.gmra.mxu0 %v12724_v3  ;;  %v5105_v54 = vld [vmem:[%s17435_s3 + $0x80] sm:$0xff] }
 0x2a8   : > { %v4762_v47 = vpop.f32.mrf.mxu1  ;;  %5079 = vmatmul.mubr.bf16.gmra.mxu1 %v12772_v8  ;;  %6630 = vmatpush1.bf16.msra.mxu0 %v10680_v61  ;;  %v5109_v61 = vld [vmem:[%s17435_s3 + $0xa0] sm:$0xff] }
 0x2a9   : > { %6683 = vmatpush1.bf16.msra.mxu1 %v10808_v29  ;;  %v14150_v12 = vadd.f32 %v4762_v47, %v4709_v31  ;;  %6631 = vmatprep.subr.bf16.mxu0 %v10673_v1  ;;  %v14155_v14 = vpop.f32.mrf.mxu0  ;;  %v10657_v31 = vcombine.high %v5105_v54, %v5109_v61  ;;  %v5229_v23 = vld [vmem:[%s17435_s3 + $0x460] sm:$0xff]  ;;  %v10656_v9 = vcombine.low %v5105_v54, %v5109_v61 }
 0x2aa   : > { %6684 = vmatprep.subr.bf16.mxu1 %v10801_v44  ;;  %17630 = vst [vmem:[#allocation32_spill] sm:$0xff] %v14155_v14  ;;  %v14157_v4 = vpop.f32.mrf.mxu1  ;;  %v5237_v44 = vld [vmem:[%s17435_s3 + $0x4a0] sm:$0xff]  ;;  %6657 = vmatprep.mubr.bf16.mxu0 %v17603_v27  ;;  %v5122_v14 = vld [vmem:[%s17435_s3 + $0x108] sm:$0xff] }
 0x2ab   : > { %17629 = vst [vmem:[#allocation31_spill] sm:$0xff] %v14150_v12  ;;  %17631 = vst [vmem:[#allocation33_spill] sm:$0xff] %v14157_v4  ;;  %6710 = vmatprep.mubr.bf16.mxu1 %v17604_v50  ;;  %v4713_v1 = vpop.f32.mrf.mxu0  ;;  %v10785_v47 = vcombine.high %v5233_v39, %v5237_v44  ;;  %v5097_v12 = vld [vmem:[%s17435_s3 + $0x40] sm:$0xff]  ;;  %v10784_v37 = vcombine.low %v5233_v39, %v5237_v44 }
 0x2ac   : > { %v4766_v45 = vpop.f32.mrf.mxu1  ;;  %6632 = vmatpush1.bf16.msra.mxu0 %v10672_v10  ;;  %v5101_v4 = vld [vmem:[%s17435_s3 + $0x60] sm:$0xff] }
 0x2ad   : > { %6685 = vmatpush1.bf16.msra.mxu1 %v10800_v22  ;;  %v14170_v29 = vadd.f32 %v4766_v45, %v4713_v1  ;;  %6633 = vmatprep.subr.bf16.mxu0 %v10665_v63  ;;  %v5225_v10 = vld [vmem:[%s17435_s3 + $0x440] sm:$0xff]  ;;  %v10649_v17 = vcombine.high %v5097_v12, %v5101_v4  ;;  %v10648_v61 = vcombine.low %v5097_v12, %v5101_v4 }
 0x2ae   : > { %6686 = vmatprep.subr.bf16.mxu1 %v10793_v16  ;;  %v10777_v22 = vcombine.high %v5225_v10, %v5229_v23  ;;  %v5089_v63 = vld [vmem:[%s17435_s3] sm:$0xff]  ;;  %v10776_v39 = vcombine.low %v5225_v10, %v5229_v23 }
 0x2af   : > { %17632 = vst [vmem:[#allocation34_spill] sm:$0xff] %v14170_v29  ;;  %v5093_v16 = vld [vmem:[%s17435_s3 + $0x20] sm:$0xff] }
 0x2b0   : > { %6634 = vmatpush1.bf16.msra.mxu0 %v10664_v5  ;;  %v5217_v1 = vld [vmem:[%s17435_s3 + $0x400] sm:$0xff]  ;;  %v10641_v44 = vcombine.high %v5089_v63, %v5093_v16  ;;  %v10640_v12 = vcombine.low %v5089_v63, %v5093_v16 }
 0x2b1   : > { %6687 = vmatpush1.bf16.msra.mxu1 %v10792_v11  ;;  %6635 = vmatprep.subr.bf16.mxu0 %v10657_v31  ;;  %v5221_v54 = vld [vmem:[%s17435_s3 + $0x420] sm:$0xff] }
 0x2b2   : > { %6688 = vmatprep.subr.bf16.mxu1 %v10785_v47  ;;  %v10769_v45 = vcombine.high %v5217_v1, %v5221_v54  ;;  %v5209_v5 = vld [vmem:[%s17435_s3 + $0x3c0] sm:$0xff]  ;;  %v10768_v47 = vcombine.low %v5217_v1, %v5221_v54 }
 0x2b3   : > { %v5213_v11 = vld [vmem:[%s17435_s3 + $0x3e0] sm:$0xff] }
 0x2b4   : > { %6636 = vmatpush1.bf16.msra.mxu0 %v10656_v9  ;;  %v5337_v31 = vld [vmem:[%s17435_s3 + $0x7c0] sm:$0xff]  ;;  %v10761_v10 = vcombine.high %v5209_v5, %v5213_v11  ;;  %v10760_v63 = vcombine.low %v5209_v5, %v5213_v11 }
 0x2b5   : > { %6689 = vmatpush1.bf16.msra.mxu1 %v10784_v37  ;;  %6637 = vmatprep.subr.bf16.mxu0 %v10649_v17  ;;  %v5341_v4 = vld [vmem:[%s17435_s3 + $0x7e0] sm:$0xff] }
 0x2b6   : > { %6690 = vmatprep.subr.bf16.mxu1 %v10777_v22  ;;  %v10889_v23 = vcombine.high %v5337_v31, %v5341_v4  ;;  %v5201_v9 = vld [vmem:[%s17435_s3 + $0x380] sm:$0xff]  ;;  %v10888_v16 = vcombine.low %v5337_v31, %v5341_v4 }
 0x2b7   : > { %v5205_v37 = vld [vmem:[%s17435_s3 + $0x3a0] sm:$0xff] }
 0x2b8   : > { %6638 = vmatpush1.bf16.msra.mxu0 %v10648_v61  ;;  %v5329_v17 = vld [vmem:[%s17435_s3 + $0x780] sm:$0xff]  ;;  %v10753_v1 = vcombine.high %v5201_v9, %v5205_v37  ;;  %v10752_v5 = vcombine.low %v5201_v9, %v5205_v37 }
 0x2b9   : > { %6691 = vmatpush1.bf16.msra.mxu1 %v10776_v39  ;;  %6639 = vmatprep.subr.bf16.mxu0 %v10641_v44  ;;  %v5333_v22 = vld [vmem:[%s17435_s3 + $0x7a0] sm:$0xff] }
 0x2ba   : > { %6692 = vmatprep.subr.bf16.mxu1 %v10769_v45  ;;  %v10881_v54 = vcombine.high %v5329_v17, %v5333_v22  ;;  %v5193_v61 = vld [vmem:[%s17435_s3 + $0x340] sm:$0xff]  ;;  %v10880_v11 = vcombine.low %v5329_v17, %v5333_v22 }
 0x2bb   : > { %v5197_v39 = vld [vmem:[%s17435_s3 + $0x360] sm:$0xff] }
 0x2bc   : > { %6640 = vmatpush1.bf16.msra.mxu0 %v10640_v12  ;;  %v5321_v44 = vld [vmem:[%s17435_s3 + $0x740] sm:$0xff]  ;;  %v10745_v31 = vcombine.high %v5193_v61, %v5197_v39  ;;  %v10744_v9 = vcombine.low %v5193_v61, %v5197_v39 }
 0x2bd   : > { %6693 = vmatpush1.bf16.msra.mxu1 %v10768_v47  ;;  %6641 = vmatprep.subr.bf16.mxu0 %v10761_v10  ;;  %v5325_v45 = vld [vmem:[%s17435_s3 + $0x760] sm:$0xff] }
 0x2be   : > { %6694 = vmatprep.subr.bf16.mxu1 %v10889_v23  ;;  %v10873_v4 = vcombine.high %v5321_v44, %v5325_v45  ;;  %v5185_v12 = vld [vmem:[%s17435_s3 + $0x300] sm:$0xff]  ;;  %v10872_v37 = vcombine.low %v5321_v44, %v5325_v45 }
 0x2bf   : > { %v5189_v47 = vld [vmem:[%s17435_s3 + $0x320] sm:$0xff] }
 0x2c0   : > { %6642 = vmatpush2.bf16.msra.mxu0 %v10760_v63  ;;  %v5313_v10 = vld [vmem:[%s17435_s3 + $0x700] sm:$0xff]  ;;  %v10737_v17 = vcombine.high %v5185_v12, %v5189_v47  ;;  %v10736_v61 = vcombine.low %v5185_v12, %v5189_v47 }
 0x2c1   : > { %6695 = vmatpush2.bf16.msra.mxu1 %v10888_v16  ;;  %6643 = vmatprep.subr.bf16.mxu0 %v10753_v1  ;;  %v5317_v23 = vld [vmem:[%s17435_s3 + $0x720] sm:$0xff] }
 0x2c2   : > { %6696 = vmatprep.subr.bf16.mxu1 %v10881_v54  ;;  %v10865_v22 = vcombine.high %v5313_v10, %v5317_v23  ;;  %v5177_v63 = vld [vmem:[%s17435_s3 + $0x2c0] sm:$0xff]  ;;  %v10864_v39 = vcombine.low %v5313_v10, %v5317_v23 }
 0x2c3   : > { %v5181_v16 = vld [vmem:[%s17435_s3 + $0x2e0] sm:$0xff] }
 0x2c4   : > { %6644 = vmatpush2.bf16.msra.mxu0 %v10752_v5  ;;  %v5305_v1 = vld [vmem:[%s17435_s3 + $0x6c0] sm:$0xff]  ;;  %v10729_v44 = vcombine.high %v5177_v63, %v5181_v16  ;;  %v10728_v12 = vcombine.low %v5177_v63, %v5181_v16 }
 0x2c5   : > { %6697 = vmatpush2.bf16.msra.mxu1 %v10880_v11  ;;  %6645 = vmatprep.subr.bf16.mxu0 %v10745_v31  ;;  %v5309_v54 = vld [vmem:[%s17435_s3 + $0x6e0] sm:$0xff] }
 0x2c6   : > { %6698 = vmatprep.subr.bf16.mxu1 %v10873_v4  ;;  %v10857_v45 = vcombine.high %v5305_v1, %v5309_v54  ;;  %v5169_v5 = vld [vmem:[%s17435_s3 + $0x280] sm:$0xff]  ;;  %v10856_v47 = vcombine.low %v5305_v1, %v5309_v54 }
 0x2c7   : > { %v5173_v11 = vld [vmem:[%s17435_s3 + $0x2a0] sm:$0xff] }
 0x2c8   : > { %6646 = vmatpush2.bf16.msra.mxu0 %v10744_v9  ;;  %v5297_v31 = vld [vmem:[%s17435_s3 + $0x680] sm:$0xff]  ;;  %v10721_v10 = vcombine.high %v5169_v5, %v5173_v11  ;;  %v10720_v63 = vcombine.low %v5169_v5, %v5173_v11 }
 0x2c9   : > { %6699 = vmatpush2.bf16.msra.mxu1 %v10872_v37  ;;  %6647 = vmatprep.subr.bf16.mxu0 %v10737_v17  ;;  %v5301_v4 = vld [vmem:[%s17435_s3 + $0x6a0] sm:$0xff] }
 0x2ca   : > { %6700 = vmatprep.subr.bf16.mxu1 %v10865_v22  ;;  %v10849_v23 = vcombine.high %v5297_v31, %v5301_v4  ;;  %v5161_v9 = vld [vmem:[%s17435_s3 + $0x240] sm:$0xff]  ;;  %v10848_v16 = vcombine.low %v5297_v31, %v5301_v4 }
 0x2cb   : > { %v5165_v37 = vld [vmem:[%s17435_s3 + $0x260] sm:$0xff] }
 0x2cc   : > { %6648 = vmatpush2.bf16.msra.mxu0 %v10736_v61  ;;  %v5289_v17 = vld [vmem:[%s17435_s3 + $0x640] sm:$0xff]  ;;  %v10713_v1 = vcombine.high %v5161_v9, %v5165_v37  ;;  %v10712_v5 = vcombine.low %v5161_v9, %v5165_v37 }
 0x2cd   : > { %6701 = vmatpush2.bf16.msra.mxu1 %v10864_v39  ;;  %6649 = vmatprep.subr.bf16.mxu0 %v10729_v44  ;;  %v5293_v22 = vld [vmem:[%s17435_s3 + $0x660] sm:$0xff] }
 0x2ce   : > { %6702 = vmatprep.subr.bf16.mxu1 %v10857_v45  ;;  %v10841_v54 = vcombine.high %v5289_v17, %v5293_v22  ;;  %v5153_v61 = vld [vmem:[%s17435_s3 + $0x200] sm:$0xff]  ;;  %v10840_v11 = vcombine.low %v5289_v17, %v5293_v22 }
 0x2cf   : > { %v5157_v39 = vld [vmem:[%s17435_s3 + $0x220] sm:$0xff] }
 0x2d0   : > { %6650 = vmatpush2.bf16.msra.mxu0 %v10728_v12  ;;  %v5281_v44 = vld [vmem:[%s17435_s3 + $0x600] sm:$0xff]  ;;  %v10705_v31 = vcombine.high %v5153_v61, %v5157_v39  ;;  %v5146_v12 = vld [vmem:[%s17435_s3 + $0x1c8] sm:$0xff]  ;;  %v10704_v9 = vcombine.low %v5153_v61, %v5157_v39 }
 0x2d1   : > { %6703 = vmatpush2.bf16.msra.mxu1 %v10856_v47  ;;  %6651 = vmatprep.subr.bf16.mxu0 %v10721_v10  ;;  %v5285_v45 = vld [vmem:[%s17435_s3 + $0x620] sm:$0xff]  ;;  %v5150_v47 = vld [vmem:[%s17435_s3 + $0x1e8] sm:$0xff] }
 0x2d2   : > { %6704 = vmatprep.subr.bf16.mxu1 %v10849_v23  ;;  %v10833_v4 = vcombine.high %v5281_v44, %v5285_v45  ;;  %v5274_v10 = vld [vmem:[%s17435_s3 + $0x5c8] sm:$0xff]  ;;  %v10832_v37 = vcombine.low %v5281_v44, %v5285_v45  ;;  %v10699_v17 = vcombine.high %v5146_v12, %v5150_v47  ;;  %v10698_v61 = vcombine.low %v5146_v12, %v5150_v47  ;;  %v14316_v44 = vpop.f32.mrf.mxu0  ;;  %v14318_v45 = vpop.f32.mrf.mxu1 }
 0x2d3   : > { %v5278_v23 = vld [vmem:[%s17435_s3 + $0x5e8] sm:$0xff]  ;;  %17633 = vst [vmem:[#allocation35_spill] sm:$0xff] %v14316_v44  ;;  %17634 = vst [vmem:[#allocation36_spill] sm:$0xff] %v14318_v45 }
 0x2d4   : > { %6652 = vmatpush2.bf16.msra.mxu0 %v10720_v63  ;;  %v10827_v22 = vcombine.high %v5274_v10, %v5278_v23  ;;  %v5138_v63 = vld [vmem:[%s17435_s3 + $0x188] sm:$0xff]  ;;  %v10826_v39 = vcombine.low %v5274_v10, %v5278_v23 }
 0x2d5   : > { %6705 = vmatpush2.bf16.msra.mxu1 %v10848_v16  ;;  %6653 = vmatprep.subr.bf16.mxu0 %v10713_v1  ;;  %v5142_v16 = vld [vmem:[%s17435_s3 + $0x1a8] sm:$0xff] }
 0x2d6   : > { %6706 = vmatprep.subr.bf16.mxu1 %v10841_v54  ;;  %v5266_v1 = vld [vmem:[%s17435_s3 + $0x588] sm:$0xff] }
 0x2d7   : > { %v5270_v54 = vld [vmem:[%s17435_s3 + $0x5a8] sm:$0xff] }
 0x2d8   : > { %6654 = vmatpush2.bf16.msra.mxu0 %v10712_v5  ;;  %v10691_v5 = vcombine.high %v5138_v63, %v5142_v16  ;;  %v5258_v12 = vld [vmem:[%s17435_s3 + $0x548] sm:$0xff] }
 0x2d9   : > { %6707 = vmatpush2.bf16.msra.mxu1 %v10840_v11  ;;  %6655 = vmatprep.subr.bf16.mxu0 %v10705_v31  ;;  %v10819_v11 = vcombine.high %v5266_v1, %v5270_v54  ;;  %v5130_v31 = vld [vmem:[%s17435_s3 + $0x148] sm:$0xff] }
 0x2da   : > { %6708 = vmatprep.subr.bf16.mxu1 %v10833_v4  ;;  %v5134_v4 = vld [vmem:[%s17435_s3 + $0x168] sm:$0xff] }
 0x2db   : > { %v5262_v47 = vld [vmem:[%s17435_s3 + $0x568] sm:$0xff]  ;;  %v10683_v45 = vcombine.high %v5130_v31, %v5134_v4 }
 0x2dc   : > { %6656 = vmatpush2.bf16.msra.mxu0 %v10704_v9  ;;  %v10811_v44 = vcombine.high %v5258_v12, %v5262_v47 }
 0x2dd   : > { %6709 = vmatpush2.bf16.msra.mxu1 %v10832_v37  ;;  %6731 = vmatprep.subr.bf16.mxu0 %v10699_v17  ;;  %v10690_v37 = vcombine.low %v5138_v63, %v5142_v16  ;;  %v10818_v17 = vcombine.low %v5266_v1, %v5270_v54  ;;  %v5250_v63 = vld [vmem:[%s17435_s3 + $0x508] sm:$0xff] }
 0x2de   : > { %6784 = vmatprep.subr.bf16.mxu1 %v10827_v22  ;;  %v5254_v16 = vld [vmem:[%s17435_s3 + $0x528] sm:$0xff] }
 0x2df   : > { %v4805_v10 = vpop.f32.mrf.mxu0  ;;  %6658 = vmatmul.mubr.bf16.vlgmr.msra.gmra.mxu0 %v17605_v57 }
 0x2e0   : > { %v4858_v23 = vpop.f32.mrf.mxu1  ;;  %6711 = vmatmul.mubr.bf16.vlgmr.msra.gmra.mxu1 %v17606_v38  ;;  %6732 = vmatpush1.bf16.msra.mxu0 %v10698_v61 }
 0x2e1   : > { %v14334_v9 = vadd.f32 %v4858_v23, %v4805_v10  ;;  %6785 = vmatpush1.bf16.msra.mxu1 %v10826_v39  ;;  %v14336_v22 = vpop.f32.mrf.mxu0  ;;  %6733 = vmatprep.subr.bf16.mxu0 %v10691_v5  ;;  %v5126_v10 = vld [vmem:[%s17435_s3 + $0x128] sm:$0xff]  ;;  %v10682_v39 = vcombine.low %v5130_v31, %v5134_v4  ;;  %v10810_v5 = vcombine.low %v5258_v12, %v5262_v47 }
 0x2e2   : > { %17636 = vst [vmem:[#allocation38_spill] sm:$0xff] %v14336_v22  ;;  %v14338_v29 = vpop.f32.mrf.mxu1  ;;  %6786 = vmatprep.subr.bf16.mxu1 %v10819_v11  ;;  %6667 = vmatprep.mubr.bf16.mxu0 %v12564_v48  ;;  %v5114_v22 = vld [vmem:[%s17435_s3 + $0xc8] sm:$0xff]  ;;  %v10674_v12 = vcombine.low %v5122_v14, %v5126_v10  ;;  %v10802_v47 = vcombine.low %v5250_v63, %v5254_v16 }
 0x2e3   : > { %17635 = vst [vmem:[#allocation37_spill] sm:$0xff] %v14334_v9  ;;  %17637 = vst [vmem:[#allocation39_spill] sm:$0xff] %v14338_v29  ;;  %6720 = vmatprep.mubr.bf16.mxu1 %v12651_v6  ;;  %v4809_v1 = vpop.f32.mrf.mxu0  ;;  %v10675_v9 = vcombine.high %v5122_v14, %v5126_v10  ;;  %v10803_v29 = vcombine.high %v5250_v63, %v5254_v16  ;;  %v5242_v31 = vld [vmem:[%s17435_s3 + $0x4c8] sm:$0xff] }
 0x2e4   : > { %v4862_v54 = vpop.f32.mrf.mxu1  ;;  %6734 = vmatpush1.bf16.msra.mxu0 %v10690_v37  ;;  %v5246_v4 = vld [vmem:[%s17435_s3 + $0x4e8] sm:$0xff] }
 0x2e5   : > { %v14354_v61 = vadd.f32 %v4862_v54, %v4809_v1  ;;  %6787 = vmatpush1.bf16.msra.mxu1 %v10818_v17  ;;  %v14356_v11 = vpop.f32.mrf.mxu0  ;;  %6735 = vmatprep.subr.bf16.mxu0 %v10683_v45  ;;  %v5118_v1 = vld [vmem:[%s17435_s3 + $0xe8] sm:$0xff]  ;;  %v10795_v54 = vcombine.high %v5242_v31, %v5246_v4  ;;  %v10794_v16 = vcombine.low %v5242_v31, %v5246_v4 }
 0x2e6   : > { %17639 = vst [vmem:[#allocation41_spill] sm:$0xff] %v14356_v11  ;;  %v14358_v23 = vpop.f32.mrf.mxu1  ;;  %6788 = vmatprep.subr.bf16.mxu1 %v10811_v44  ;;  %v10667_v17 = vcombine.high %v5114_v22, %v5118_v1  ;;  %v5234_v14 = vld [vmem:[%s17435_s3 + $0x488] sm:$0xff]  ;;  %v10666_v63 = vcombine.low %v5114_v22, %v5118_v1 }
 0x2e7   : > { %17638 = vst [vmem:[#allocation40_spill] sm:$0xff] %v14354_v61  ;;  %17640 = vst [vmem:[#allocation42_spill] sm:$0xff] %v14358_v23  ;;  %6668 = vmatmul.mubr.bf16.gmra.mxu0 %v12724_v3  ;;  %v4815_v44 = vpop.f32.mrf.mxu0  ;;  %v5106_v61 = vld [vmem:[%s17435_s3 + $0x88] sm:$0xff] }
 0x2e8   : > { %6721 = vmatmul.mubr.bf16.gmra.mxu1 %v12772_v8  ;;  %v4868_v45 = vpop.f32.mrf.mxu1  ;;  %6736 = vmatpush1.bf16.msra.mxu0 %v10682_v39  ;;  %v5110_v39 = vld [vmem:[%s17435_s3 + $0xa8] sm:$0xff] }
 0x2e9   : > { %6789 = vmatpush1.bf16.msra.mxu1 %v10810_v5  ;;  %v14374_v37 = vadd.f32 %v4868_v45, %v4815_v44  ;;  %6737 = vmatprep.subr.bf16.mxu0 %v10675_v9  ;;  %v14379_v23 = vpop.f32.mrf.mxu0  ;;  %v10659_v44 = vcombine.high %v5106_v61, %v5110_v39  ;;  %v5226_v22 = vld [vmem:[%s17435_s3 + $0x448] sm:$0xff]  ;;  %v10658_v4 = vcombine.low %v5106_v61, %v5110_v39 }
 0x2ea   : > { %6790 = vmatprep.subr.bf16.mxu1 %v10803_v29  ;;  %17642 = vst [vmem:[#allocation44_spill] sm:$0xff] %v14379_v23  ;;  %v14381_v11 = vpop.f32.mrf.mxu1  ;;  %v5238_v29 = vld [vmem:[%s17435_s3 + $0x4a8] sm:$0xff]  ;;  %6763 = vmatprep.mubr.bf16.mxu0 %v17603_v27 }
 0x2eb   : > { %17641 = vst [vmem:[#allocation43_spill] sm:$0xff] %v14374_v37  ;;  %17643 = vst [vmem:[#allocation45_spill] sm:$0xff] %v14381_v11  ;;  %6816 = vmatprep.mubr.bf16.mxu1 %v17604_v50  ;;  %v4819_v9 = vpop.f32.mrf.mxu0  ;;  %v10787_v45 = vcombine.high %v5234_v14, %v5238_v29  ;;  %v5098_v37 = vld [vmem:[%s17435_s3 + $0x48] sm:$0xff] }
 0x2ec   : > { %v4872_v10 = vpop.f32.mrf.mxu1  ;;  %6738 = vmatpush1.bf16.msra.mxu0 %v10674_v12  ;;  %v5230_v1 = vld [vmem:[%s17435_s3 + $0x468] sm:$0xff]  ;;  %v10786_v12 = vcombine.low %v5234_v14, %v5238_v29 }
 0x2ed   : > { %6791 = vmatpush1.bf16.msra.mxu1 %v10802_v47  ;;  %v14394_v5 = vadd.f32 %v4872_v10, %v4819_v9  ;;  %6739 = vmatprep.subr.bf16.mxu0 %v10667_v17  ;;  %v4821_v11 = vpop.f32.mrf.mxu0  ;;  %v10651_v47 = vcombine.high %v5098_v37, %v5102_v32  ;;  %v10779_v17 = vcombine.high %v5226_v22, %v5230_v1  ;;  %v5094_v9 = vld [vmem:[%s17435_s3 + $0x28] sm:$0xff] }
 0x2ee   : > { %6792 = vmatprep.subr.bf16.mxu1 %v10795_v54  ;;  %v4874_v23 = vpop.f32.mrf.mxu1  ;;  %v5090_v54 = vld [vmem:[%s17435_s3 + $0x8] sm:$0xff]  ;;  %v10778_v39 = vcombine.low %v5226_v22, %v5230_v1 }
 0x2ef   : > { %17644 = vst [vmem:[#allocation46_spill] sm:$0xff] %v14394_v5  ;;  %v14408_v31 = vadd.f32 %v4874_v23, %v4821_v11  ;;  %v5218_v11 = vld [vmem:[%s17435_s3 + $0x408] sm:$0xff]  ;;  %v10650_v23 = vcombine.low %v5098_v37, %v5102_v32  ;;  %v10643_v14 = vcombine.high %v5090_v54, %v5094_v9  ;;  %v10642_v37 = vcombine.low %v5090_v54, %v5094_v9 }
 0x2f0   : > { %6740 = vmatpush1.bf16.msra.mxu0 %v10666_v63  ;;  %v5222_v61 = vld [vmem:[%s17435_s3 + $0x428] sm:$0xff] }
 0x2f1   : > { %17645 = vst [vmem:[#allocation47_spill] sm:$0xff] %v14408_v31  ;;  %6793 = vmatpush1.bf16.msra.mxu1 %v10794_v16  ;;  %6741 = vmatprep.subr.bf16.mxu0 %v10659_v44  ;;  %v10771_v29 = vcombine.high %v5218_v11, %v5222_v61  ;;  %v5210_v10 = vld [vmem:[%s17435_s3 + $0x3c8] sm:$0xff]  ;;  %v10770_v44 = vcombine.low %v5218_v11, %v5222_v61  ;;  %v5123_v31 = vld [vmem:[%s17435_s3 + $0x110] sm:$0xff] }
 0x2f2   : > { %6794 = vmatprep.subr.bf16.mxu1 %v10787_v45  ;;  %v5214_v63 = vld [vmem:[%s17435_s3 + $0x3e8] sm:$0xff] }
 0x2f3   : > { %v5338_v16 = vld [vmem:[%s17435_s3 + $0x7c8] sm:$0xff]  ;;  %v10763_v45 = vcombine.high %v5210_v10, %v5214_v63 }
 0x2f4   : > { %6742 = vmatpush1.bf16.msra.mxu0 %v10658_v4  ;;  %v5342_v32 = vld [vmem:[%s17435_s3 + $0x7e8] sm:$0xff] }
 0x2f5   : > { %6795 = vmatpush1.bf16.msra.mxu1 %v10786_v12  ;;  %6743 = vmatprep.subr.bf16.mxu0 %v10651_v47  ;;  %v10891_v22 = vcombine.high %v5338_v16, %v5342_v32  ;;  %v5202_v1 = vld [vmem:[%s17435_s3 + $0x388] sm:$0xff]  ;;  %v10890_v54 = vcombine.low %v5338_v16, %v5342_v32 }
 0x2f6   : > { %6796 = vmatprep.subr.bf16.mxu1 %v10779_v17  ;;  %v5206_v4 = vld [vmem:[%s17435_s3 + $0x3a8] sm:$0xff]  ;;  %v10762_v17 = vcombine.low %v5210_v10, %v5214_v63 }
 0x2f7   : > { %v5330_v12 = vld [vmem:[%s17435_s3 + $0x788] sm:$0xff]  ;;  %v10755_v9 = vcombine.high %v5202_v1, %v5206_v4 }
 0x2f8   : > { %6744 = vmatpush1.bf16.msra.mxu0 %v10650_v23  ;;  %v5334_v47 = vld [vmem:[%s17435_s3 + $0x7a8] sm:$0xff] }
 0x2f9   : > { %6797 = vmatpush1.bf16.msra.mxu1 %v10778_v39  ;;  %6745 = vmatprep.subr.bf16.mxu0 %v10643_v14  ;;  %v10883_v11 = vcombine.high %v5330_v12, %v5334_v47  ;;  %v5194_v61 = vld [vmem:[%s17435_s3 + $0x348] sm:$0xff]  ;;  %v10882_v10 = vcombine.low %v5330_v12, %v5334_v47 }
 0x2fa   : > { %6798 = vmatprep.subr.bf16.mxu1 %v10771_v29  ;;  %v5198_v23 = vld [vmem:[%s17435_s3 + $0x368] sm:$0xff]  ;;  %v10754_v29 = vcombine.low %v5202_v1, %v5206_v4 }
 0x2fb   : > { %v5322_v39 = vld [vmem:[%s17435_s3 + $0x748] sm:$0xff]  ;;  %v10747_v63 = vcombine.high %v5194_v61, %v5198_v23 }
 0x2fc   : > { %6746 = vmatpush1.bf16.msra.mxu0 %v10642_v37  ;;  %v5326_v14 = vld [vmem:[%s17435_s3 + $0x768] sm:$0xff] }
 0x2fd   : > { %6799 = vmatpush1.bf16.msra.mxu1 %v10770_v44  ;;  %6747 = vmatprep.subr.bf16.mxu0 %v10763_v45  ;;  %v10875_v16 = vcombine.high %v5322_v39, %v5326_v14  ;;  %v5186_v32 = vld [vmem:[%s17435_s3 + $0x308] sm:$0xff]  ;;  %v10874_v1 = vcombine.low %v5322_v39, %v5326_v14 }
 0x2fe   : > { %6800 = vmatprep.subr.bf16.mxu1 %v10891_v22  ;;  %v5190_v37 = vld [vmem:[%s17435_s3 + $0x328] sm:$0xff]  ;;  %v10746_v22 = vcombine.low %v5194_v61, %v5198_v23 }
 0x2ff   : > { %v5314_v44 = vld [vmem:[%s17435_s3 + $0x708] sm:$0xff]  ;;  %v10739_v4 = vcombine.high %v5186_v32, %v5190_v37 }
 0x300   : > { %6748 = vmatpush2.bf16.msra.mxu0 %v10762_v17  ;;  %v5318_v45 = vld [vmem:[%s17435_s3 + $0x728] sm:$0xff] }
 0x301   : > { %6801 = vmatpush2.bf16.msra.mxu1 %v10890_v54  ;;  %6749 = vmatprep.subr.bf16.mxu0 %v10755_v9  ;;  %v10867_v12 = vcombine.high %v5314_v44, %v5318_v45  ;;  %v5178_v47 = vld [vmem:[%s17435_s3 + $0x2c8] sm:$0xff]  ;;  %v10866_v61 = vcombine.low %v5314_v44, %v5318_v45 }
 0x302   : > { %6802 = vmatprep.subr.bf16.mxu1 %v10883_v11  ;;  %v5182_v17 = vld [vmem:[%s17435_s3 + $0x2e8] sm:$0xff]  ;;  %v10738_v11 = vcombine.low %v5186_v32, %v5190_v37 }
 0x303   : > { %v5306_v54 = vld [vmem:[%s17435_s3 + $0x6c8] sm:$0xff]  ;;  %v10731_v23 = vcombine.high %v5178_v47, %v5182_v17 }
 0x304   : > { %6750 = vmatpush2.bf16.msra.mxu0 %v10754_v29  ;;  %v5310_v9 = vld [vmem:[%s17435_s3 + $0x6e8] sm:$0xff] }
 0x305   : > { %6803 = vmatpush2.bf16.msra.mxu1 %v10882_v10  ;;  %6751 = vmatprep.subr.bf16.mxu0 %v10747_v63  ;;  %v10859_v39 = vcombine.high %v5306_v54, %v5310_v9  ;;  %v5170_v14 = vld [vmem:[%s17435_s3 + $0x288] sm:$0xff]  ;;  %v10858_v32 = vcombine.low %v5306_v54, %v5310_v9 }
 0x306   : > { %6804 = vmatprep.subr.bf16.mxu1 %v10875_v16  ;;  %v5174_v29 = vld [vmem:[%s17435_s3 + $0x2a8] sm:$0xff]  ;;  %v10730_v16 = vcombine.low %v5178_v47, %v5182_v17 }
 0x307   : > { %v5298_v10 = vld [vmem:[%s17435_s3 + $0x688] sm:$0xff]  ;;  %v10723_v37 = vcombine.high %v5170_v14, %v5174_v29 }
 0x308   : > { %6752 = vmatpush2.bf16.msra.mxu0 %v10746_v22  ;;  %v5302_v63 = vld [vmem:[%s17435_s3 + $0x6a8] sm:$0xff] }
 0x309   : > { %6805 = vmatpush2.bf16.msra.mxu1 %v10874_v1  ;;  %6753 = vmatprep.subr.bf16.mxu0 %v10739_v4  ;;  %v10851_v44 = vcombine.high %v5298_v10, %v5302_v63  ;;  %v5162_v45 = vld [vmem:[%s17435_s3 + $0x248] sm:$0xff]  ;;  %v10850_v47 = vcombine.low %v5298_v10, %v5302_v63  ;;  %v5147_v63 = vld [vmem:[%s17435_s3 + $0x1d0] sm:$0xff] }
 0x30a   : > { %6806 = vmatprep.subr.bf16.mxu1 %v10867_v12  ;;  %v5166_v22 = vld [vmem:[%s17435_s3 + $0x268] sm:$0xff]  ;;  %v10722_v12 = vcombine.low %v5170_v14, %v5174_v29 }
 0x30b   : > { %v5290_v1 = vld [vmem:[%s17435_s3 + $0x648] sm:$0xff]  ;;  %v10715_v17 = vcombine.high %v5162_v45, %v5166_v22 }
 0x30c   : > { %6754 = vmatpush2.bf16.msra.mxu0 %v10738_v11  ;;  %v5294_v4 = vld [vmem:[%s17435_s3 + $0x668] sm:$0xff] }
 0x30d   : > { %6807 = vmatpush2.bf16.msra.mxu1 %v10866_v61  ;;  %6755 = vmatprep.subr.bf16.mxu0 %v10731_v23  ;;  %v10843_v54 = vcombine.high %v5290_v1, %v5294_v4  ;;  %v5154_v9 = vld [vmem:[%s17435_s3 + $0x208] sm:$0xff]  ;;  %v10842_v14 = vcombine.low %v5290_v1, %v5294_v4  ;;  %v5139_v4 = vld [vmem:[%s17435_s3 + $0x190] sm:$0xff] }
 0x30e   : > { %6808 = vmatprep.subr.bf16.mxu1 %v10859_v39  ;;  %v5158_v11 = vld [vmem:[%s17435_s3 + $0x228] sm:$0xff]  ;;  %v10714_v39 = vcombine.low %v5162_v45, %v5166_v22 }
 0x30f   : > { %v5282_v61 = vld [vmem:[%s17435_s3 + $0x608] sm:$0xff]  ;;  %v10707_v29 = vcombine.high %v5154_v9, %v5158_v11 }
 0x310   : > { %6756 = vmatpush2.bf16.msra.mxu0 %v10730_v16  ;;  %v5286_v23 = vld [vmem:[%s17435_s3 + $0x628] sm:$0xff]  ;;  %v5151_v16 = vld [vmem:[%s17435_s3 + $0x1f0] sm:$0xff] }
 0x311   : > { %6809 = vmatpush2.bf16.msra.mxu1 %v10858_v32  ;;  %6757 = vmatprep.subr.bf16.mxu0 %v10723_v37  ;;  %v10835_v10 = vcombine.high %v5282_v61, %v5286_v23  ;;  %v5275_v32 = vld [vmem:[%s17435_s3 + $0x5d0] sm:$0xff]  ;;  %v10834_v45 = vcombine.low %v5282_v61, %v5286_v23  ;;  %v10701_v22 = vcombine.high %v5147_v63, %v5151_v16 }
 0x312   : > { %6810 = vmatprep.subr.bf16.mxu1 %v10851_v44  ;;  %v5279_v37 = vld [vmem:[%s17435_s3 + $0x5f0] sm:$0xff]  ;;  %v10706_v44 = vcombine.low %v5154_v9, %v5158_v11 }
 0x313   : > { %v10829_v1 = vcombine.high %v5275_v32, %v5279_v37  ;;  %v10828_v9 = vcombine.low %v5275_v32, %v5279_v37  ;;  %v5131_v23 = vld [vmem:[%s17435_s3 + $0x150] sm:$0xff] }
 0x314   : > { %6758 = vmatpush2.bf16.msra.mxu0 %v10722_v12  ;;  %v5143_v12 = vld [vmem:[%s17435_s3 + $0x1b0] sm:$0xff] }
 0x315   : > { %6811 = vmatpush2.bf16.msra.mxu1 %v10850_v47  ;;  %6759 = vmatprep.subr.bf16.mxu0 %v10715_v17  ;;  %v5267_v47 = vld [vmem:[%s17435_s3 + $0x590] sm:$0xff]  ;;  %v10693_v11 = vcombine.high %v5139_v4, %v5143_v12  ;;  %v10692_v32 = vcombine.low %v5139_v4, %v5143_v12 }
 0x316   : > { %6812 = vmatprep.subr.bf16.mxu1 %v10843_v54  ;;  %v5271_v17 = vld [vmem:[%s17435_s3 + $0x5b0] sm:$0xff]  ;;  %v10700_v54 = vcombine.low %v5147_v63, %v5151_v16 }
 0x317   : > { %v10821_v61 = vcombine.high %v5267_v47, %v5271_v17  ;;  %v10820_v37 = vcombine.low %v5267_v47, %v5271_v17  ;;  %v5127_v4 = vld [vmem:[%s17435_s3 + $0x130] sm:$0xff] }
 0x318   : > { %6760 = vmatpush2.bf16.msra.mxu0 %v10714_v39  ;;  %v5135_v39 = vld [vmem:[%s17435_s3 + $0x170] sm:$0xff] }
 0x319   : > { %6813 = vmatpush2.bf16.msra.mxu1 %v10842_v14  ;;  %6761 = vmatprep.subr.bf16.mxu0 %v10707_v29  ;;  %v5259_v14 = vld [vmem:[%s17435_s3 + $0x550] sm:$0xff] }
 0x31a   : > { %6814 = vmatprep.subr.bf16.mxu1 %v10835_v10  ;;  %v5263_v29 = vld [vmem:[%s17435_s3 + $0x570] sm:$0xff] }
 0x31b   : > { %v5251_v12 = vld [vmem:[%s17435_s3 + $0x510] sm:$0xff] }
 0x31c   : > { %6762 = vmatpush2.bf16.msra.mxu0 %v10706_v44  ;;  %v5255_v47 = vld [vmem:[%s17435_s3 + $0x530] sm:$0xff] }
 0x31d   : > { %6815 = vmatpush2.bf16.msra.mxu1 %v10834_v45  ;;  %6837 = vmatprep.subr.bf16.mxu0 %v10701_v22  ;;  %v10685_v22 = vcombine.high %v5131_v23, %v5135_v39 }
 0x31e   : > { %6890 = vmatprep.subr.bf16.mxu1 %v10829_v1  ;;  %v10813_v1 = vcombine.high %v5259_v14, %v5263_v29 }
 0x31f   : > { %v4911_v10 = vpop.f32.mrf.mxu0  ;;  %6764 = vmatmul.mubr.bf16.vlgmr.msra.gmra.mxu0 %v17605_v57 }
 0x320   : > { %v4964_v63 = vpop.f32.mrf.mxu1  ;;  %6817 = vmatmul.mubr.bf16.vlgmr.msra.gmra.mxu1 %v17606_v38  ;;  %6838 = vmatpush1.bf16.msra.mxu0 %v10700_v54 }
 0x321   : > { %v14556_v16 = vadd.f32 %v4964_v63, %v4911_v10  ;;  %6891 = vmatpush1.bf16.msra.mxu1 %v10828_v9  ;;  %v4913_v44 = vpop.f32.mrf.mxu0  ;;  %6839 = vmatprep.subr.bf16.mxu0 %v10693_v11  ;;  %v10684_v11 = vcombine.low %v5131_v23, %v5135_v39  ;;  %v5243_v23 = vld [vmem:[%s17435_s3 + $0x4d0] sm:$0xff] }
 0x322   : > { %v4966_v45 = vpop.f32.mrf.mxu1  ;;  %6892 = vmatprep.subr.bf16.mxu1 %v10821_v61  ;;  %6773 = vmatprep.mubr.bf16.mxu0 %v12564_v48  ;;  %v10812_v61 = vcombine.low %v5259_v14, %v5263_v29  ;;  %v5247_v39 = vld [vmem:[%s17435_s3 + $0x4f0] sm:$0xff] }
 0x323   : > { %17646 = vst [vmem:[#allocation48_spill] sm:$0xff] %v14556_v16  ;;  %v14561_v5 = vadd.f32 %v4966_v45, %v4913_v44  ;;  %6826 = vmatprep.mubr.bf16.mxu1 %v12651_v6  ;;  %v4915_v17 = vpop.f32.mrf.mxu0  ;;  %v10677_v44 = vcombine.high %v5123_v31, %v5127_v4  ;;  %v10805_v45 = vcombine.high %v5251_v12, %v5255_v47 }
 0x324   : > { %v4968_v54 = vpop.f32.mrf.mxu1  ;;  %6840 = vmatpush1.bf16.msra.mxu0 %v10692_v32  ;;  %v10676_v32 = vcombine.low %v5123_v31, %v5127_v4  ;;  %v5235_v31 = vld [vmem:[%s17435_s3 + $0x490] sm:$0xff] }
 0x325   : > { %17647 = vst [vmem:[#allocation49_spill] sm:$0xff] %v14561_v5  ;;  %v14574_v9 = vadd.f32 %v4968_v54, %v4915_v17  ;;  %6893 = vmatpush1.bf16.msra.mxu1 %v10820_v37  ;;  %v4917_v10 = vpop.f32.mrf.mxu0  ;;  %6841 = vmatprep.subr.bf16.mxu0 %v10685_v22  ;;  %v5115_v5 = vld [vmem:[%s17435_s3 + $0xd0] sm:$0xff]  ;;  %v10804_v37 = vcombine.low %v5251_v12, %v5255_v47 }
 0x326   : > { %v4970_v63 = vpop.f32.mrf.mxu1  ;;  %6894 = vmatprep.subr.bf16.mxu1 %v10813_v1  ;;  %v5119_v17 = vld [vmem:[%s17435_s3 + $0xf0] sm:$0xff]  ;;  %v10797_v54 = vcombine.high %v5243_v23, %v5247_v39 }
 0x327   : > { %17648 = vst [vmem:[#allocation50_spill] sm:$0xff] %v14574_v9  ;;  %v14579_v16 = vadd.f32 %v4970_v63, %v4917_v10  ;;  %6774 = vmatmul.mubr.bf16.gmra.mxu0 %v12724_v3  ;;  %v4921_v14 = vpop.f32.mrf.mxu0  ;;  %v10669_v1 = vcombine.high %v5115_v5, %v5119_v17  ;;  %v5107_v10 = vld [vmem:[%s17435_s3 + $0x90] sm:$0xff] }
 0x328   : > { %6827 = vmatmul.mubr.bf16.gmra.mxu1 %v12772_v8  ;;  %v4974_v29 = vpop.f32.mrf.mxu1  ;;  %6842 = vmatpush1.bf16.msra.mxu0 %v10684_v11  ;;  %v5111_v9 = vld [vmem:[%s17435_s3 + $0xb0] sm:$0xff] }
 0x329   : > { %17649 = vst [vmem:[#allocation51_spill] sm:$0xff] %v14579_v16  ;;  %6895 = vmatpush1.bf16.msra.mxu1 %v10812_v61  ;;  %v14592_v22 = vadd.f32 %v4974_v29, %v4921_v14  ;;  %6843 = vmatprep.subr.bf16.mxu0 %v10677_v44  ;;  %v4923_v63 = vpop.f32.mrf.mxu0  ;;  %v5239_v4 = vld [vmem:[%s17435_s3 + $0x4b0] sm:$0xff]  ;;  %v10668_v61 = vcombine.low %v5115_v5, %v5119_v17 }
 0x32a   : > { %6896 = vmatprep.subr.bf16.mxu1 %v10805_v45  ;;  %v4976_v16 = vpop.f32.mrf.mxu1  ;;  %6869 = vmatprep.mubr.bf16.mxu0 %v17603_v27  ;;  %v10796_v44 = vcombine.low %v5243_v23, %v5247_v39  ;;  %v10661_v14 = vcombine.high %v5107_v10, %v5111_v9  ;;  %v10789_v29 = vcombine.high %v5235_v31, %v5239_v4  ;;  %v5227_v5 = vld [vmem:[%s17435_s3 + $0x450] sm:$0xff] }
 0x32b   : > { %17650 = vst [vmem:[#allocation52_spill] sm:$0xff] %v14592_v22  ;;  %v14606_v12 = vadd.f32 %v4976_v16, %v4923_v63  ;;  %6922 = vmatprep.mubr.bf16.mxu1 %v17604_v50  ;;  %v4925_v47 = vpop.f32.mrf.mxu0  ;;  %v5099_v16 = vld [vmem:[%s17435_s3 + $0x50] sm:$0xff]  ;;  %v10660_v39 = vcombine.low %v5107_v10, %v5111_v9 }
 0x32c   : > { %v4978_v11 = vpop.f32.mrf.mxu1  ;;  %6844 = vmatpush1.bf16.msra.mxu0 %v10676_v32  ;;  %v5103_v22 = vld [vmem:[%s17435_s3 + $0x70] sm:$0xff]  ;;  %v10788_v32 = vcombine.low %v5235_v31, %v5239_v4 }
 0x32d   : > { %17651 = vst [vmem:[#allocation53_spill] sm:$0xff] %v14606_v12  ;;  %6897 = vmatpush1.bf16.msra.mxu1 %v10804_v37  ;;  %v14610_v45 = vadd.f32 %v4978_v11, %v4925_v47  ;;  %6845 = vmatprep.subr.bf16.mxu0 %v10669_v1  ;;  %v4927_v63 = vpop.f32.mrf.mxu0  ;;  %v5231_v17 = vld [vmem:[%s17435_s3 + $0x470] sm:$0xff]  ;;  %v10653_v37 = vcombine.high %v5099_v16, %v5103_v22 }
 0x32e   : > { %6898 = vmatprep.subr.bf16.mxu1 %v10797_v54  ;;  %v4980_v12 = vpop.f32.mrf.mxu1  ;;  %v10781_v1 = vcombine.high %v5227_v5, %v5231_v17  ;;  %v5091_v54 = vld [vmem:[%s17435_s3 + $0x10] sm:$0xff]  ;;  %v10652_v10 = vcombine.low %v5099_v16, %v5103_v22  ;;  %v10780_v31 = vcombine.low %v5227_v5, %v5231_v17 }
 0x32f   : > { %17652 = vst [vmem:[#allocation54_spill] sm:$0xff] %v14610_v45  ;;  %v14624_v23 = vadd.f32 %v4980_v12, %v4927_v63  ;;  %v5095_v47 = vld [vmem:[%s17435_s3 + $0x30] sm:$0xff] }
 0x330   : > { %6846 = vmatpush1.bf16.msra.mxu0 %v10668_v61  ;;  %v5219_v12 = vld [vmem:[%s17435_s3 + $0x410] sm:$0xff]  ;;  %v10645_v4 = vcombine.high %v5091_v54, %v5095_v47 }
 0x331   : > { %17653 = vst [vmem:[#allocation55_spill] sm:$0xff] %v14624_v23  ;;  %6899 = vmatpush1.bf16.msra.mxu1 %v10796_v44  ;;  %6847 = vmatprep.subr.bf16.mxu0 %v10661_v14  ;;  %v5223_v9 = vld [vmem:[%s17435_s3 + $0x430] sm:$0xff]  ;;  %v5124_v23 = vld [vmem:[%s17435_s3 + $0x118] sm:$0xff] }
 0x332   : > { %6900 = vmatprep.subr.bf16.mxu1 %v10789_v29  ;;  %v10773_v11 = vcombine.high %v5219_v12, %v5223_v9  ;;  %v5211_v61 = vld [vmem:[%s17435_s3 + $0x3d0] sm:$0xff]  ;;  %v10644_v29 = vcombine.low %v5091_v54, %v5095_v47  ;;  %v10772_v16 = vcombine.low %v5219_v12, %v5223_v9 }
 0x333   : > { %v5215_v44 = vld [vmem:[%s17435_s3 + $0x3f0] sm:$0xff] }
 0x334   : > { %6848 = vmatpush1.bf16.msra.mxu0 %v10660_v39  ;;  %v5339_v14 = vld [vmem:[%s17435_s3 + $0x7d0] sm:$0xff]  ;;  %v10765_v63 = vcombine.high %v5211_v61, %v5215_v44 }
 0x335   : > { %6901 = vmatpush1.bf16.msra.mxu1 %v10788_v32  ;;  %6849 = vmatprep.subr.bf16.mxu0 %v10653_v37  ;;  %v5343_v22 = vld [vmem:[%s17435_s3 + $0x7f0] sm:$0xff] }
 0x336   : > { %6902 = vmatprep.subr.bf16.mxu1 %v10781_v1  ;;  %v10893_v5 = vcombine.high %v5339_v14, %v5343_v22  ;;  %v5203_v17 = vld [vmem:[%s17435_s3 + $0x390] sm:$0xff]  ;;  %v10764_v1 = vcombine.low %v5211_v61, %v5215_v44  ;;  %v10892_v54 = vcombine.low %v5339_v14, %v5343_v22 }
 0x337   : > { %v5207_v39 = vld [vmem:[%s17435_s3 + $0x3b0] sm:$0xff] }
 0x338   : > { %6850 = vmatpush1.bf16.msra.mxu0 %v10652_v10  ;;  %v5331_v32 = vld [vmem:[%s17435_s3 + $0x790] sm:$0xff]  ;;  %v10757_v47 = vcombine.high %v5203_v17, %v5207_v39 }
 0x339   : > { %6903 = vmatpush1.bf16.msra.mxu1 %v10780_v31  ;;  %6851 = vmatprep.subr.bf16.mxu0 %v10645_v4  ;;  %v5335_v37 = vld [vmem:[%s17435_s3 + $0x7b0] sm:$0xff] }
 0x33a   : > { %6904 = vmatprep.subr.bf16.mxu1 %v10773_v11  ;;  %v10885_v12 = vcombine.high %v5331_v32, %v5335_v37  ;;  %v5195_v9 = vld [vmem:[%s17435_s3 + $0x350] sm:$0xff]  ;;  %v10756_v11 = vcombine.low %v5203_v17, %v5207_v39  ;;  %v10884_v61 = vcombine.low %v5331_v32, %v5335_v37 }
 0x33b   : > { %v5199_v10 = vld [vmem:[%s17435_s3 + $0x370] sm:$0xff] }
 0x33c   : > { %6852 = vmatpush1.bf16.msra.mxu0 %v10644_v29  ;;  %v5323_v31 = vld [vmem:[%s17435_s3 + $0x750] sm:$0xff]  ;;  %v10749_v44 = vcombine.high %v5195_v9, %v5199_v10 }
 0x33d   : > { %6905 = vmatpush1.bf16.msra.mxu1 %v10772_v16  ;;  %6853 = vmatprep.subr.bf16.mxu0 %v10765_v63  ;;  %v5327_v4 = vld [vmem:[%s17435_s3 + $0x770] sm:$0xff] }
 0x33e   : > { %6906 = vmatprep.subr.bf16.mxu1 %v10893_v5  ;;  %v10877_v14 = vcombine.high %v5323_v31, %v5327_v4  ;;  %v5187_v22 = vld [vmem:[%s17435_s3 + $0x310] sm:$0xff]  ;;  %v10748_v5 = vcombine.low %v5195_v9, %v5199_v10  ;;  %v10876_v17 = vcombine.low %v5323_v31, %v5327_v4 }
 0x33f   : > { %v5191_v29 = vld [vmem:[%s17435_s3 + $0x330] sm:$0xff] }
 0x340   : > { %6854 = vmatpush2.bf16.msra.mxu0 %v10764_v1  ;;  %v5315_v16 = vld [vmem:[%s17435_s3 + $0x710] sm:$0xff]  ;;  %v10741_v39 = vcombine.high %v5187_v22, %v5191_v29 }
 0x341   : > { %6907 = vmatpush2.bf16.msra.mxu1 %v10892_v54  ;;  %6855 = vmatprep.subr.bf16.mxu0 %v10757_v47  ;;  %v5319_v63 = vld [vmem:[%s17435_s3 + $0x730] sm:$0xff] }
 0x342   : > { %6908 = vmatprep.subr.bf16.mxu1 %v10885_v12  ;;  %v10869_v32 = vcombine.high %v5315_v16, %v5319_v63  ;;  %v5179_v37 = vld [vmem:[%s17435_s3 + $0x2d0] sm:$0xff]  ;;  %v10740_v12 = vcombine.low %v5187_v22, %v5191_v29  ;;  %v10868_v9 = vcombine.low %v5315_v16, %v5319_v63 }
 0x343   : > { %v5183_v1 = vld [vmem:[%s17435_s3 + $0x2f0] sm:$0xff] }
 0x344   : > { %6856 = vmatpush2.bf16.msra.mxu0 %v10756_v11  ;;  %v5307_v54 = vld [vmem:[%s17435_s3 + $0x6d0] sm:$0xff]  ;;  %v10733_v10 = vcombine.high %v5179_v37, %v5183_v1 }
 0x345   : > { %6909 = vmatpush2.bf16.msra.mxu1 %v10884_v61  ;;  %6857 = vmatprep.subr.bf16.mxu0 %v10749_v44  ;;  %v5311_v47 = vld [vmem:[%s17435_s3 + $0x6f0] sm:$0xff] }
 0x346   : > { %6910 = vmatprep.subr.bf16.mxu1 %v10877_v14  ;;  %v10861_v31 = vcombine.high %v5307_v54, %v5311_v47  ;;  %v5171_v4 = vld [vmem:[%s17435_s3 + $0x290] sm:$0xff]  ;;  %v10732_v14 = vcombine.low %v5179_v37, %v5183_v1  ;;  %v10860_v22 = vcombine.low %v5307_v54, %v5311_v47 }
 0x347   : > { %v5175_v11 = vld [vmem:[%s17435_s3 + $0x2b0] sm:$0xff] }
 0x348   : > { %6858 = vmatpush2.bf16.msra.mxu0 %v10748_v5  ;;  %v5299_v61 = vld [vmem:[%s17435_s3 + $0x690] sm:$0xff]  ;;  %v10725_v29 = vcombine.high %v5171_v4, %v5175_v11 }
 0x349   : > { %6911 = vmatpush2.bf16.msra.mxu1 %v10876_v17  ;;  %6859 = vmatprep.subr.bf16.mxu0 %v10741_v39  ;;  %v5303_v44 = vld [vmem:[%s17435_s3 + $0x6b0] sm:$0xff] }
 0x34a   : > { %6912 = vmatprep.subr.bf16.mxu1 %v10869_v32  ;;  %v10853_v16 = vcombine.high %v5299_v61, %v5303_v44  ;;  %v5163_v63 = vld [vmem:[%s17435_s3 + $0x250] sm:$0xff]  ;;  %v10724_v32 = vcombine.low %v5171_v4, %v5175_v11  ;;  %v10852_v37 = vcombine.low %v5299_v61, %v5303_v44  ;;  %v5148_v44 = vld [vmem:[%s17435_s3 + $0x1d8] sm:$0xff] }
 0x34b   : > { %v5167_v5 = vld [vmem:[%s17435_s3 + $0x270] sm:$0xff] }
 0x34c   : > { %6860 = vmatpush2.bf16.msra.mxu0 %v10740_v12  ;;  %v5291_v17 = vld [vmem:[%s17435_s3 + $0x650] sm:$0xff]  ;;  %v10717_v1 = vcombine.high %v5163_v63, %v5167_v5 }
 0x34d   : > { %6913 = vmatpush2.bf16.msra.mxu1 %v10868_v9  ;;  %6861 = vmatprep.subr.bf16.mxu0 %v10733_v10  ;;  %v5295_v39 = vld [vmem:[%s17435_s3 + $0x670] sm:$0xff] }
 0x34e   : > { %6914 = vmatprep.subr.bf16.mxu1 %v10861_v31  ;;  %v10845_v54 = vcombine.high %v5291_v17, %v5295_v39  ;;  %v5155_v47 = vld [vmem:[%s17435_s3 + $0x210] sm:$0xff]  ;;  %v10716_v31 = vcombine.low %v5163_v63, %v5167_v5  ;;  %v10844_v4 = vcombine.low %v5291_v17, %v5295_v39  ;;  %v5140_v39 = vld [vmem:[%s17435_s3 + $0x198] sm:$0xff] }
 0x34f   : > { %v5159_v12 = vld [vmem:[%s17435_s3 + $0x230] sm:$0xff] }
 0x350   : > { %6862 = vmatpush2.bf16.msra.mxu0 %v10732_v14  ;;  %v5283_v9 = vld [vmem:[%s17435_s3 + $0x610] sm:$0xff]  ;;  %v10709_v11 = vcombine.high %v5155_v47, %v5159_v12  ;;  %v5152_v14 = vld [vmem:[%s17435_s3 + $0x1f8] sm:$0xff] }
 0x351   : > { %6915 = vmatpush2.bf16.msra.mxu1 %v10860_v22  ;;  %6863 = vmatprep.subr.bf16.mxu0 %v10725_v29  ;;  %v5287_v10 = vld [vmem:[%s17435_s3 + $0x630] sm:$0xff]  ;;  %v5276_v22 = vld [vmem:[%s17435_s3 + $0x5d8] sm:$0xff]  ;;  %v10703_v5 = vcombine.high %v5148_v44, %v5152_v14 }
 0x352   : > { %6916 = vmatprep.subr.bf16.mxu1 %v10853_v16  ;;  %v10837_v61 = vcombine.high %v5283_v9, %v5287_v10  ;;  %v5280_v29 = vld [vmem:[%s17435_s3 + $0x5f8] sm:$0xff]  ;;  %v10708_v16 = vcombine.low %v5155_v47, %v5159_v12  ;;  %v10836_v63 = vcombine.low %v5283_v9, %v5287_v10 }
 0x353   : > { %v10831_v17 = vcombine.high %v5276_v22, %v5280_v29  ;;  %v10830_v47 = vcombine.low %v5276_v22, %v5280_v29  ;;  %v5132_v10 = vld [vmem:[%s17435_s3 + $0x158] sm:$0xff] }
 0x354   : > { %6864 = vmatpush2.bf16.msra.mxu0 %v10724_v32  ;;  %v5144_v32 = vld [vmem:[%s17435_s3 + $0x1b8] sm:$0xff] }
 0x355   : > { %6917 = vmatpush2.bf16.msra.mxu1 %v10852_v37  ;;  %6865 = vmatprep.subr.bf16.mxu0 %v10717_v1  ;;  %v5268_v37 = vld [vmem:[%s17435_s3 + $0x598] sm:$0xff]  ;;  %v10695_v12 = vcombine.high %v5140_v39, %v5144_v32  ;;  %v10694_v22 = vcombine.low %v5140_v39, %v5144_v32 }
 0x356   : > { %6918 = vmatprep.subr.bf16.mxu1 %v10845_v54  ;;  %v5272_v1 = vld [vmem:[%s17435_s3 + $0x5b8] sm:$0xff]  ;;  %v10702_v54 = vcombine.low %v5148_v44, %v5152_v14 }
 0x357   : > { %v10823_v9 = vcombine.high %v5268_v37, %v5272_v1  ;;  %v10822_v29 = vcombine.low %v5268_v37, %v5272_v1  ;;  %v5128_v39 = vld [vmem:[%s17435_s3 + $0x138] sm:$0xff] }
 0x358   : > { %6866 = vmatpush2.bf16.msra.mxu0 %v10716_v31  ;;  %v5136_v31 = vld [vmem:[%s17435_s3 + $0x178] sm:$0xff] }
 0x359   : > { %6919 = vmatpush2.bf16.msra.mxu1 %v10844_v4  ;;  %6867 = vmatprep.subr.bf16.mxu0 %v10709_v11  ;;  %v5260_v4 = vld [vmem:[%s17435_s3 + $0x558] sm:$0xff] }
 0x35a   : > { %6920 = vmatprep.subr.bf16.mxu1 %v10837_v61  ;;  %v5264_v11 = vld [vmem:[%s17435_s3 + $0x578] sm:$0xff] }
 0x35b   : > { %v5252_v32 = vld [vmem:[%s17435_s3 + $0x518] sm:$0xff] }
 0x35c   : > { %6868 = vmatpush2.bf16.msra.mxu0 %v10708_v16  ;;  %v5256_v37 = vld [vmem:[%s17435_s3 + $0x538] sm:$0xff] }
 0x35d   : > { %6921 = vmatpush2.bf16.msra.mxu1 %v10836_v63  ;;  %6943 = vmatprep.subr.bf16.mxu0 %v10703_v5  ;;  %v10687_v5 = vcombine.high %v5132_v10, %v5136_v31 }
 0x35e   : > { %6996 = vmatprep.subr.bf16.mxu1 %v10831_v17  ;;  %v10815_v17 = vcombine.high %v5260_v4, %v5264_v11 }
 0x35f   : > { %v5017_v61 = vpop.f32.mrf.mxu0  ;;  %6870 = vmatmul.mubr.bf16.vlgmr.msra.gmra.mxu0 %v17605_v57 }
 0x360   : > { %v5070_v44 = vpop.f32.mrf.mxu1  ;;  %6923 = vmatmul.mubr.bf16.vlgmr.msra.gmra.mxu1 %v17606_v38  ;;  %6944 = vmatpush1.bf16.msra.mxu0 %v10702_v54 }
 0x361   : > { %v14772_v14 = vadd.f32 %v5070_v44, %v5017_v61  ;;  %6997 = vmatpush1.bf16.msra.mxu1 %v10830_v47  ;;  %v5019_v16 = vpop.f32.mrf.mxu0  ;;  %6945 = vmatprep.subr.bf16.mxu0 %v10695_v12  ;;  %v10686_v12 = vcombine.low %v5132_v10, %v5136_v31  ;;  %v5244_v10 = vld [vmem:[%s17435_s3 + $0x4d8] sm:$0xff] }
 0x362   : > { %v5072_v63 = vpop.f32.mrf.mxu1  ;;  %6998 = vmatprep.subr.bf16.mxu1 %v10823_v9  ;;  %6879 = vmatprep.mubr.bf16.mxu0 %v12564_v48  ;;  %v10814_v9 = vcombine.low %v5260_v4, %v5264_v11  ;;  %v5248_v31 = vld [vmem:[%s17435_s3 + $0x4f8] sm:$0xff] }
 0x363   : > { %17654 = vst [vmem:[#allocation56_spill] sm:$0xff] %v14772_v14  ;;  %v14777_v45 = vadd.f32 %v5072_v63, %v5019_v16  ;;  %6932 = vmatprep.mubr.bf16.mxu1 %v12651_v6  ;;  %v5021_v1 = vpop.f32.mrf.mxu0  ;;  %v10679_v16 = vcombine.high %v5124_v23, %v5128_v39  ;;  %v10807_v63 = vcombine.high %v5252_v32, %v5256_v37 }
 0x364   : > { %v5074_v54 = vpop.f32.mrf.mxu1  ;;  %6946 = vmatpush1.bf16.msra.mxu0 %v10694_v22  ;;  %v10678_v22 = vcombine.low %v5124_v23, %v5128_v39  ;;  %v5236_v23 = vld [vmem:[%s17435_s3 + $0x498] sm:$0xff] }
 0x365   : > { %17655 = vst [vmem:[#allocation57_spill] sm:$0xff] %v14777_v45  ;;  %v14790_v47 = vadd.f32 %v5074_v54, %v5021_v1  ;;  %6999 = vmatpush1.bf16.msra.mxu1 %v10822_v29  ;;  %v5023_v61 = vpop.f32.mrf.mxu0  ;;  %6947 = vmatprep.subr.bf16.mxu0 %v10687_v5  ;;  %v5116_v45 = vld [vmem:[%s17435_s3 + $0xd8] sm:$0xff]  ;;  %v10806_v29 = vcombine.low %v5252_v32, %v5256_v37 }
 0x366   : > { %v5076_v44 = vpop.f32.mrf.mxu1  ;;  %7000 = vmatprep.subr.bf16.mxu1 %v10815_v17  ;;  %v5120_v1 = vld [vmem:[%s17435_s3 + $0xf8] sm:$0xff]  ;;  %v10799_v54 = vcombine.high %v5244_v10, %v5248_v31 }
 0x367   : > { %17656 = vst [vmem:[#allocation58_spill] sm:$0xff] %v14790_v47  ;;  %v14795_v14 = vadd.f32 %v5076_v44, %v5023_v61  ;;  %6880 = vmatmul.mubr.bf16.gmra.mxu0 %v12724_v3  ;;  %v5027_v4 = vpop.f32.mrf.mxu0  ;;  %v10671_v17 = vcombine.high %v5116_v45, %v5120_v1  ;;  %v5108_v61 = vld [vmem:[%s17435_s3 + $0x98] sm:$0xff] }
 0x368   : > { %6933 = vmatmul.mubr.bf16.gmra.mxu1 %v12772_v8  ;;  %v5080_v11 = vpop.f32.mrf.mxu1  ;;  %6948 = vmatpush1.bf16.msra.mxu0 %v10686_v12  ;;  %v5112_v47 = vld [vmem:[%s17435_s3 + $0xb8] sm:$0xff] }
 0x369   : > { %17657 = vst [vmem:[#allocation59_spill] sm:$0xff] %v14795_v14  ;;  %7001 = vmatpush1.bf16.msra.mxu1 %v10814_v9  ;;  %v14808_v5 = vadd.f32 %v5080_v11, %v5027_v4  ;;  %6949 = vmatprep.subr.bf16.mxu0 %v10679_v16  ;;  %v5029_v44 = vpop.f32.mrf.mxu0  ;;  %v5240_v39 = vld [vmem:[%s17435_s3 + $0x4b8] sm:$0xff]  ;;  %v10670_v9 = vcombine.low %v5116_v45, %v5120_v1 }
 0x36a   : > { %7002 = vmatprep.subr.bf16.mxu1 %v10807_v63  ;;  %v5082_v14 = vpop.f32.mrf.mxu1  ;;  %6975 = vmatprep.mubr.bf16.mxu0 %v17603_v27  ;;  %v10798_v16 = vcombine.low %v5244_v10, %v5248_v31  ;;  %v10663_v4 = vcombine.high %v5108_v61, %v5112_v47  ;;  %v10791_v11 = vcombine.high %v5236_v23, %v5240_v39  ;;  %v5228_v45 = vld [vmem:[%s17435_s3 + $0x458] sm:$0xff] }
 0x36b   : > { %v14822_v32 = vadd.f32 %v5082_v14, %v5029_v44  ;;  %7028 = vmatprep.mubr.bf16.mxu1 %v17604_v50  ;;  %v5031_v37 = vpop.f32.mrf.mxu0  ;;  %v5100_v14 = vld [vmem:[%s17435_s3 + $0x58] sm:$0xff]  ;;  %v10662_v31 = vcombine.low %v5108_v61, %v5112_v47 }
 0x36c   : > { %v5084_v12 = vpop.f32.mrf.mxu1  ;;  %6950 = vmatpush1.bf16.msra.mxu0 %v10678_v22  ;;  %v5104_v50 = vld [vmem:[%s17435_s3 + $0x78] sm:$0xff]  ;;  %v10790_v22 = vcombine.low %v5236_v23, %v5240_v39 }
 0x36d   : > { %7003 = vmatpush1.bf16.msra.mxu1 %v10806_v29  ;;  %v14826_v63 = vadd.f32 %v5084_v12, %v5031_v37  ;;  %6951 = vmatprep.subr.bf16.mxu0 %v10671_v17  ;;  %v5033_v44 = vpop.f32.mrf.mxu0  ;;  %v5232_v1 = vld [vmem:[%s17435_s3 + $0x478] sm:$0xff]  ;;  %v10655_v29 = vcombine.high %v5100_v14, %v5104_v50  ;;  %v10654_v61 = vcombine.low %v5100_v14, %v5104_v50 }
 0x36e   : > { %7004 = vmatprep.subr.bf16.mxu1 %v10799_v54  ;;  %v5086_v27 = vpop.f32.mrf.mxu1  ;;  %v10783_v17 = vcombine.high %v5228_v45, %v5232_v1  ;;  %v5092_v54 = vld [vmem:[%s17435_s3 + $0x18] sm:$0xff]  ;;  %v10782_v23 = vcombine.low %v5228_v45, %v5232_v1 }
 0x36f   : > { %v14840_v10 = vadd.f32 %v5086_v27, %v5033_v44  ;;  %v5096_v37 = vld [vmem:[%s17435_s3 + $0x38] sm:$0xff] }
 0x370   : > { %6952 = vmatpush1.bf16.msra.mxu0 %v10670_v9  ;;  %v5220_v12 = vld [vmem:[%s17435_s3 + $0x418] sm:$0xff]  ;;  %v10647_v39 = vcombine.high %v5092_v54, %v5096_v37  ;;  %v10646_v44 = vcombine.low %v5092_v54, %v5096_v37 }
 0x371   : > { %7005 = vmatpush1.bf16.msra.mxu1 %v10798_v16  ;;  %6953 = vmatprep.subr.bf16.mxu0 %v10663_v4  ;;  %v5224_v47 = vld [vmem:[%s17435_s3 + $0x438] sm:$0xff] }
 0x372   : > { %7006 = vmatprep.subr.bf16.mxu1 %v10791_v11  ;;  %v10775_v9 = vcombine.high %v5220_v12, %v5224_v47  ;;  %v5212_v16 = vld [vmem:[%s17435_s3 + $0x3d8] sm:$0xff]  ;;  %v10774_v27 = vcombine.low %v5220_v12, %v5224_v47 }
 0x373   : > { %v5216_v4 = vld [vmem:[%s17435_s3 + $0x3f8] sm:$0xff] }
 0x374   : > { %6954 = vmatpush1.bf16.msra.mxu0 %v10662_v31  ;;  %v5340_v11 = vld [vmem:[%s17435_s3 + $0x7d8] sm:$0xff]  ;;  %v10767_v50 = vcombine.high %v5212_v16, %v5216_v4 }
 0x375   : > { %7007 = vmatpush1.bf16.msra.mxu1 %v10790_v22  ;;  %6955 = vmatprep.subr.bf16.mxu0 %v10655_v29  ;;  %v5344_v14 = vld [vmem:[%s17435_s3 + $0x7f8] sm:$0xff] }
 0x376   : > { %7008 = vmatprep.subr.bf16.mxu1 %v10783_v17  ;;  %v10895_v45 = vcombine.high %v5340_v11, %v5344_v14  ;;  %v5204_v1 = vld [vmem:[%s17435_s3 + $0x398] sm:$0xff]  ;;  %v10766_v17 = vcombine.low %v5212_v16, %v5216_v4  ;;  %v10894_v54 = vcombine.low %v5340_v11, %v5344_v14 }
 0x377   : > { %v5208_v31 = vld [vmem:[%s17435_s3 + $0x3b8] sm:$0xff] }
 0x378   : > { %6956 = vmatpush1.bf16.msra.mxu0 %v10654_v61  ;;  %v5332_v22 = vld [vmem:[%s17435_s3 + $0x798] sm:$0xff]  ;;  %v10759_v37 = vcombine.high %v5204_v1, %v5208_v31 }
 0x379   : > { %7009 = vmatpush1.bf16.msra.mxu1 %v10782_v23  ;;  %6957 = vmatprep.subr.bf16.mxu0 %v10647_v39  ;;  %v5336_v29 = vld [vmem:[%s17435_s3 + $0x7b8] sm:$0xff] }
 0x37a   : > { %7010 = vmatprep.subr.bf16.mxu1 %v10775_v9  ;;  %v10887_v12 = vcombine.high %v5332_v22, %v5336_v29  ;;  %v5196_v47 = vld [vmem:[%s17435_s3 + $0x358] sm:$0xff]  ;;  %v10758_v9 = vcombine.low %v5204_v1, %v5208_v31  ;;  %v10886_v16 = vcombine.low %v5332_v22, %v5336_v29 }
 0x37b   : > { %v5200_v61 = vld [vmem:[%s17435_s3 + $0x378] sm:$0xff] }
 0x37c   : > { %6958 = vmatpush1.bf16.msra.mxu0 %v10646_v44  ;;  %v5324_v23 = vld [vmem:[%s17435_s3 + $0x758] sm:$0xff]  ;;  %v10751_v4 = vcombine.high %v5196_v47, %v5200_v61 }
 0x37d   : > { %7011 = vmatpush1.bf16.msra.mxu1 %v10774_v27  ;;  %6959 = vmatprep.subr.bf16.mxu0 %v10767_v50  ;;  %v5328_v39 = vld [vmem:[%s17435_s3 + $0x778] sm:$0xff] }
 0x37e   : > { %7012 = vmatprep.subr.bf16.mxu1 %v10895_v45  ;;  %v10879_v11 = vcombine.high %v5324_v23, %v5328_v39  ;;  %v5188_v14 = vld [vmem:[%s17435_s3 + $0x318] sm:$0xff]  ;;  %v10750_v45 = vcombine.low %v5196_v47, %v5200_v61  ;;  %v10878_v1 = vcombine.low %v5324_v23, %v5328_v39 }
 0x37f   : > { %v5192_v44 = vld [vmem:[%s17435_s3 + $0x338] sm:$0xff] }
 0x380   : > { %6960 = vmatpush2.bf16.msra.mxu0 %v10766_v17  ;;  %v5316_v27 = vld [vmem:[%s17435_s3 + $0x718] sm:$0xff]  ;;  %v10743_v31 = vcombine.high %v5188_v14, %v5192_v44 }
 0x381   : > { %7013 = vmatpush2.bf16.msra.mxu1 %v10894_v54  ;;  %6961 = vmatprep.subr.bf16.mxu0 %v10759_v37  ;;  %v5320_v50 = vld [vmem:[%s17435_s3 + $0x738] sm:$0xff] }
 0x382   : > { %7014 = vmatprep.subr.bf16.mxu1 %v10887_v12  ;;  %v10871_v22 = vcombine.high %v5316_v27, %v5320_v50  ;;  %v5180_v29 = vld [vmem:[%s17435_s3 + $0x2d8] sm:$0xff]  ;;  %v10742_v12 = vcombine.low %v5188_v14, %v5192_v44  ;;  %v10870_v47 = vcombine.low %v5316_v27, %v5320_v50 }
 0x383   : > { %v5184_v17 = vld [vmem:[%s17435_s3 + $0x2f8] sm:$0xff] }
 0x384   : > { %6962 = vmatpush2.bf16.msra.mxu0 %v10758_v9  ;;  %v5308_v54 = vld [vmem:[%s17435_s3 + $0x6d8] sm:$0xff]  ;;  %v10735_v61 = vcombine.high %v5180_v29, %v5184_v17 }
 0x385   : > { %7015 = vmatpush2.bf16.msra.mxu1 %v10886_v16  ;;  %6963 = vmatprep.subr.bf16.mxu0 %v10751_v4  ;;  %v5312_v37 = vld [vmem:[%s17435_s3 + $0x6f8] sm:$0xff] }
 0x386   : > { %7016 = vmatprep.subr.bf16.mxu1 %v10879_v11  ;;  %v10863_v23 = vcombine.high %v5308_v54, %v5312_v37  ;;  %v5172_v39 = vld [vmem:[%s17435_s3 + $0x298] sm:$0xff]  ;;  %v10734_v11 = vcombine.low %v5180_v29, %v5184_v17  ;;  %v10862_v14 = vcombine.low %v5308_v54, %v5312_v37 }
 0x387   : > { %v5176_v9 = vld [vmem:[%s17435_s3 + $0x2b8] sm:$0xff] }
 0x388   : > { %6964 = vmatpush2.bf16.msra.mxu0 %v10750_v45  ;;  %v5300_v16 = vld [vmem:[%s17435_s3 + $0x698] sm:$0xff]  ;;  %v10727_v44 = vcombine.high %v5172_v39, %v5176_v9 }
 0x389   : > { %7017 = vmatpush2.bf16.msra.mxu1 %v10878_v1  ;;  %6965 = vmatprep.subr.bf16.mxu0 %v10743_v31  ;;  %v5304_v4 = vld [vmem:[%s17435_s3 + $0x6b8] sm:$0xff] }
 0x38a   : > { %7018 = vmatprep.subr.bf16.mxu1 %v10871_v22  ;;  %v10855_v27 = vcombine.high %v5300_v16, %v5304_v4  ;;  %v5164_v50 = vld [vmem:[%s17435_s3 + $0x258] sm:$0xff]  ;;  %v10726_v22 = vcombine.low %v5172_v39, %v5176_v9  ;;  %v10854_v29 = vcombine.low %v5300_v16, %v5304_v4 }
 0x38b   : > { %v5168_v45 = vld [vmem:[%s17435_s3 + $0x278] sm:$0xff] }
 0x38c   : > { %6966 = vmatpush2.bf16.msra.mxu0 %v10742_v12  ;;  %v5292_v1 = vld [vmem:[%s17435_s3 + $0x658] sm:$0xff]  ;;  %v10719_v17 = vcombine.high %v5164_v50, %v5168_v45 }
 0x38d   : > { %7019 = vmatpush2.bf16.msra.mxu1 %v10870_v47  ;;  %6967 = vmatprep.subr.bf16.mxu0 %v10735_v61  ;;  %v5296_v31 = vld [vmem:[%s17435_s3 + $0x678] sm:$0xff] }
 0x38e   : > { %7020 = vmatprep.subr.bf16.mxu1 %v10863_v23  ;;  %v10847_v54 = vcombine.high %v5292_v1, %v5296_v31  ;;  %v5156_v37 = vld [vmem:[%s17435_s3 + $0x218] sm:$0xff]  ;;  %v10718_v23 = vcombine.low %v5164_v50, %v5168_v45  ;;  %v10846_v39 = vcombine.low %v5292_v1, %v5296_v31  ;;  %v2911_v50 = vadd.f32 %v13485_v30, %v13483_v20  ;;  %v17662_v30 = vld [vmem:[#allocation21_spill] sm:$0xff] }
 0x38f   : > { %v5160_v12 = vld [vmem:[%s17435_s3 + $0x238] sm:$0xff] }
 0x390   : > { %6968 = vmatpush2.bf16.msra.mxu0 %v10734_v11  ;;  %v5284_v47 = vld [vmem:[%s17435_s3 + $0x618] sm:$0xff]  ;;  %v10711_v9 = vcombine.high %v5156_v37, %v5160_v12  ;;  %v10710_v4 = vcombine.low %v5156_v37, %v5160_v12  ;;  %v17673_v12 = vld [vmem:[#allocation17_spill] sm:$0xff] }
 0x391   : > { %7021 = vmatpush2.bf16.msra.mxu1 %v10862_v14  ;;  %6969 = vmatprep.subr.bf16.mxu0 %v10727_v44  ;;  %v5288_v61 = vld [vmem:[%s17435_s3 + $0x638] sm:$0xff]  ;;  %v2809_v14 = vadd.f32 %v13422_v40, %v13420_v49  ;;  %v2915_v44 = vadd.f32 %v13646_v28, %v13644_v26  ;;  %v2799_v49 = vadd.f32 %v13386_v60, %v13372_v62 }
 0x392   : > { %7022 = vmatprep.subr.bf16.mxu1 %v10855_v27  ;;  %v10839_v16 = vcombine.high %v5284_v47, %v5288_v61  ;;  %v10838_v11 = vcombine.low %v5284_v47, %v5288_v61  ;;  %v2805_v27 = vadd.f32 %v13404_v36, %v13388_v7  ;;  %v2905_v7 = vadd.f32 %v13462_v56, %v13460_v53  ;;  %v17660_v56 = vld [vmem:[#allocation15_spill] sm:$0xff] }
 0x393   : > { %v17664_v28 = vld [vmem:[#allocation19_spill] sm:$0xff] }
 0x394   : > { %6970 = vmatpush2.bf16.msra.mxu0 %v10726_v22  ;;  %v17672_v37 = vld [vmem:[#allocation11_spill] sm:$0xff] }
 0x395   : > { %7023 = vmatpush2.bf16.msra.mxu1 %v10854_v29  ;;  %6971 = vmatprep.subr.bf16.mxu0 %v10719_v17  ;;  %v17670_v29 = vld [vmem:[#allocation14_spill] sm:$0xff]  ;;  %v7052_v61 = vld [vmem:[%s17436_s4 + $0x18] sm:$0xff] }
 0x396   : > { %7024 = vmatprep.subr.bf16.mxu1 %v10847_v54  ;;  %v17671_v17 = vld [vmem:[#allocation10_spill] sm:$0xff] }
 0x397   : > { %v7051_v54 = vld [vmem:[%s17436_s4 + $0x10] sm:$0xff] }
 0x398   : > { %6972 = vmatpush2.bf16.msra.mxu0 %v10718_v23 }
 0x399   : > { %7025 = vmatpush2.bf16.msra.mxu1 %v10846_v39  ;;  %6973 = vmatprep.subr.bf16.mxu0 %v10711_v9 }
 0x39a   : > { %7026 = vmatprep.subr.bf16.mxu1 %v10839_v16 }
 0x39c   : > { %6974 = vmatpush2.bf16.msra.mxu0 %v10710_v4 }
 0x39d   : > { %7027 = vmatpush2.bf16.msra.mxu1 %v10838_v11  ;;  %7090 = vmatprep.subr.mxu0 %v2809_v14 }
 0x39e   : > { %7179 = vmatprep.subr.mxu1 %v2915_v44  ;;  %v15076_v44 = vld [vmem:[%s17437_s5] sm:$0xff] }
 0x39f   : > { %v14958_v45 = vpop.f32.mrf.mxu0  ;;  %6976 = vmatmul.mubr.bf16.vlgmr.msra.gmra.mxu0 %v17605_v57  ;;  %v2795_v57 = vadd.f32 %v13192_v15, %v13179_v59  ;;  %v3021_v59 = vadd.f32 %v13870_v41, %v13868_v13  ;;  %v3127_v15 = vadd.f32 %v14094_v2, %v14092_v58  ;;  %v17668_v41 = vld [vmem:[#allocation18_spill] sm:$0xff]  ;;  %v17669_v58 = vld [vmem:[#allocation9_spill] sm:$0xff] }
 0x3a0   : > { %v14960_v1 = vpop.f32.mrf.mxu1  ;;  %7029 = vmatmul.mubr.bf16.vlgmr.msra.gmra.mxu1 %v17606_v38  ;;  %7091 = vmatpush1.msra.mxu0 %v13418_v55  ;;  %v2901_v38 = vadd.f32 %v13442_v18, %v13440_v43  ;;  %v17658_v43 = vld [vmem:[#allocation20_spill] sm:$0xff]  ;;  %v3113_v2 = vadd.f32 %v17669_v58, %v17668_v41 }
 0x3a1   : > { %7180 = vmatpush1.msra.mxu1 %v13498_v19  ;;  %v14970_v36 = vpop.f32.mrf.mxu0  ;;  %7092 = vmatprep.subr.mxu0 %v2805_v27  ;;  %v17659_v18 = vld [vmem:[#allocation24_spill] sm:$0xff]  ;;  %v17663_v19 = vld [vmem:[#allocation22_spill] sm:$0xff]  ;;  %v6713_v14 = vadd.f32 %v14960_v1, %v14958_v45 }
 0x3a2   : > { %v14972_v40 = vpop.f32.mrf.mxu1  ;;  %7181 = vmatprep.subr.mxu1 %v2911_v50  ;;  %7093 = vmatpush1.msra.mxu0 %v13402_v21  ;;  %v3117_v26 = vadd.f32 %v17663_v19, %v17662_v30  ;;  %v15085_v27 = vld [vmem:[%s17437_s5 + $0x8] sm:$0xff]  ;;  %v15093_v50 = vld [vmem:[%s17437_s5 + $0x10] sm:$0xff]  ;;  %v15101_v45 = vld [vmem:[%s17437_s5 + $0x18] sm:$0xff] }
 0x3a3   : > { %7182 = vmatpush1.msra.mxu1 %v13478_v0  ;;  %7094 = vmatprep.subr.mxu0 %v2799_v49  ;;  %v14980_v62 = vpop.f32.mrf.mxu0  ;;  %v17661_v0 = vld [vmem:[#allocation16_spill] sm:$0xff]  ;;  %v6715_v11 = vadd.f32 %v14972_v40, %v14970_v36 }
 0x3a4   : > { %7183 = vmatprep.subr.mxu1 %v2905_v7  ;;  %v14982_v60 = vpop.f32.mrf.mxu1  ;;  %7095 = vmatpush1.msra.mxu0 %v13206_v46  ;;  %v3011_v20 = vadd.f32 %v17661_v0, %v17660_v56 }
 0x3a5   : > { %7184 = vmatpush1.msra.mxu1 %v13458_v52  ;;  %7096 = vmatprep.subr.mxu0 %v2795_v57  ;;  %v14994_v21 = vpop.f32.mrf.mxu0  ;;  %v6717_v4 = vadd.f32 %v14982_v60, %v14980_v62 }
 0x3a6   : > { %7185 = vmatprep.subr.mxu1 %v2901_v38  ;;  %6985 = vmatprep.mubr.bf16.mxu0 %v12564_v48  ;;  %v14996_v46 = vpop.f32.mrf.mxu1 }
 0x3a7   : > { %7038 = vmatprep.mubr.bf16.mxu1 %v12651_v6  ;;  %7097 = vmatpush1.msra.mxu0 %v13190_v25  ;;  %v6669_v48 = vpop.f32.mrf.mxu0  ;;  %v7049_v25 = vld [vmem:[%s17436_s4] sm:$0xff]  ;;  %v6719_v16 = vadd.f32 %v14996_v46, %v14994_v21 }
 0x3a8   : > { %7186 = vmatpush1.msra.mxu1 %v13438_v24  ;;  %6986 = vmatmul.mubr.bf16.gmra.mxu0 %v12724_v3  ;;  %v6722_v6 = vpop.f32.mrf.mxu1  ;;  %v3017_v3 = vadd.f32 %v13709_v33, %v13707_v42  ;;  %v17666_v42 = vld [vmem:[#allocation12_spill] sm:$0xff]  ;;  %v17667_v33 = vld [vmem:[#allocation13_spill] sm:$0xff] }
 0x3a9   : > { %7039 = vmatmul.mubr.bf16.gmra.mxu1 %v12772_v8  ;;  %7268 = vmatprep.subr.mxu0 %v3021_v59  ;;  %v6671_v55 = vpop.f32.mrf.mxu0  ;;  %v3123_v8 = vadd.f32 %v13933_v51, %v13931_v34  ;;  %v17665_v34 = vld [vmem:[#allocation23_spill] sm:$0xff]  ;;  %v7050_v51 = vld [vmem:[%s17436_s4 + $0x8] sm:$0xff]  ;;  %v3007_v13 = vadd.f32 %v17667_v33, %v17666_v42  ;;  %v6723_v9 = vadd.f32 %v6722_v6, %v6669_v48 }
 0x3aa   : > { %7357 = vmatprep.subr.mxu1 %v3127_v15  ;;  %7130 = vmatprep.mubr.f32.mxu0 %v17512_v35  ;;  %v6724_v24 = vpop.f32.mrf.mxu1 }
 0x3ab   : > { %7219 = vmatprep.mubr.f32.mxu1 %v17512_v35  ;;  %v6673_v52 = vpop.f32.mrf.mxu0  ;;  %v6725_v39 = vadd.f32 %v6724_v24, %v6671_v55 }
 0x3ac   : > { %v6726_v53 = vpop.f32.mrf.mxu1 }
 0x3ad   : > { %v6675_v31 = vpop.f32.mrf.mxu0  ;;  %v6727_v23 = vadd.f32 %v6726_v53, %v6673_v52 }
 0x3ae   : > { %v6728_v22 = vpop.f32.mrf.mxu1 }
 0x3af   : > { %v6729_v47 = vadd.f32 %v6728_v22, %v6675_v31 }
 0x3b0   : > { %10896 = vmatmul.mubr.msk.f32.vlgmr.msra.gmra.mxu0 %vm7053_vm1, %v7049_v25 }
 0x3b1   : > { %10900 = vmatmul.mubr.msk.f32.vlgmr.msra.gmra.mxu1 %vm7053_vm1, %v7049_v25  ;;  %7269 = vmatpush1.msra.mxu0 %v17658_v43 }
 0x3b2   : > { %7358 = vmatpush1.msra.mxu1 %v17659_v18  ;;  %7270 = vmatprep.subr.mxu0 %v3017_v3 }
 0x3b3   : > { %7359 = vmatprep.subr.mxu1 %v3123_v8  ;;  %7271 = vmatpush1.msra.mxu0 %v17664_v28 }
 0x3b4   : > { %7360 = vmatpush1.msra.mxu1 %v17665_v34  ;;  %7136 = vmatprep.mubr.f32.mxu0 %v17512_v35 }
 0x3b5   : > { %7225 = vmatprep.mubr.f32.mxu1 %v17512_v35  ;;  %7272 = vmatprep.subr.mxu0 %v3011_v20 }
 0x3b6   : > { %7361 = vmatprep.subr.mxu1 %v3117_v26  ;;  %10897 = vmatmul.mubr.msk.f32.gmra.mxu0 %vm7053_vm1, %v7050_v51 }
 0x3b7   : > { %10901 = vmatmul.mubr.msk.f32.gmra.mxu1 %vm7053_vm1, %v7050_v51  ;;  %7273 = vmatpush1.msra.mxu0 %v17670_v29 }
 0x3b8   : > { %7362 = vmatpush1.msra.mxu1 %v17671_v17  ;;  %7274 = vmatprep.subr.mxu0 %v3007_v13 }
 0x3b9   : > { %7363 = vmatprep.subr.mxu1 %v3113_v2  ;;  %7275 = vmatpush1.msra.mxu0 %v17672_v37 }
 0x3ba   : > { %7364 = vmatpush1.msra.mxu1 %v17673_v12  ;;  %7142 = vmatprep.mubr.f32.mxu0 %v17512_v35 }
 0x3bb   : > { %7231 = vmatprep.mubr.f32.mxu1 %v17512_v35  ;;  %10898 = vmatmul.mubr.msk.f32.gmra.mxu0 %vm7053_vm1, %v7051_v54 }
 0x3bc   : > { %10902 = vmatmul.mubr.msk.f32.gmra.mxu1 %vm7053_vm1, %v7051_v54  ;;  %7148 = vmatprep.mubr.f32.mxu0 %v17512_v35 }
 0x3bd   : > { %7237 = vmatprep.mubr.f32.mxu1 %v17512_v35  ;;  %7462 = vmatprep.subr.mxu0 %v6729_v47 }
 0x3bf   : > { %10899 = vmatmul.mubr.msk.f32.gmra.mxu0 %vm7053_vm1, %v7052_v61 }
 0x3c0   : > { %10903 = vmatmul.mubr.msk.f32.gmra.mxu1 %vm7053_vm1, %v7052_v61  ;;  %7308 = vmatprep.mubr.f32.mxu0 %v17512_v35 }
 0x3c1   : > { %7397 = vmatprep.mubr.f32.mxu1 %v17512_v35 }
 0x3c3   : > { %10904 = vmatmul.mubr.msk.f32.vlgmr.msra.gmra.mxu0 %vm7053_vm1, %v7049_v25 }
 0x3c4   : > { %10908 = vmatmul.mubr.msk.f32.vlgmr.msra.gmra.mxu1 %vm7053_vm1, %v7049_v25  ;;  %7463 = vmatpush1.msra.mxu0 %v6727_v23 }
 0x3c5   : > { %7314 = vmatprep.mubr.f32.mxu0 %v17512_v35  ;;  %7464 = vmatprep.subr.mxu0 %v6725_v39 }
 0x3c6   : > { %7403 = vmatprep.mubr.f32.mxu1 %v17512_v35  ;;  %7465 = vmatpush1.msra.mxu0 %v6723_v9 }
 0x3c7   : > { %7466 = vmatprep.subr.mxu0 %v6719_v16  ;;  %10905 = vmatmul.mubr.msk.f32.gmra.mxu0 %vm7053_vm1, %v7050_v51 }
 0x3c8   : > { %10909 = vmatmul.mubr.msk.f32.gmra.mxu1 %vm7053_vm1, %v7050_v51  ;;  %7467 = vmatpush1.msra.mxu0 %v6717_v4 }
 0x3c9   : > { %7468 = vmatprep.subr.mxu0 %v6715_v11  ;;  %7320 = vmatprep.mubr.f32.mxu0 %v17512_v35 }
 0x3ca   : > { %7469 = vmatpush1.msra.mxu0 %v6713_v14  ;;  %7409 = vmatprep.mubr.f32.mxu1 %v17512_v35 }
 0x3cb   : > { %10906 = vmatmul.mubr.msk.f32.gmra.mxu0 %vm7053_vm1, %v7051_v54 }
 0x3cc   : > { %10910 = vmatmul.mubr.msk.f32.gmra.mxu1 %vm7053_vm1, %v7051_v54  ;;  %7326 = vmatprep.mubr.f32.mxu0 %v17512_v35 }
 0x3cd   : > { %7415 = vmatprep.mubr.f32.mxu1 %v17512_v35 }
 0x3cf   : > { %10907 = vmatmul.mubr.msk.f32.gmra.mxu0 %vm7053_vm1, %v7052_v61 }
 0x3d0   : > { %10911 = vmatmul.mubr.msk.f32.gmra.mxu1 %vm7053_vm1, %v7052_v61  ;;  %7502 = vmatprep.mubr.f32.mxu0 %v17512_v35 }
 0x3d1   : > { %7591 = vmatprep.mubr.f32.mxu1 %v17512_v35 }
 0x3d3   : > { %10912 = vmatmul.mubr.msk.f32.vlgmr.msra.gmra.mxu0 %vm7053_vm1, %v15076_v44 }
 0x3d4   : > { %7508 = vmatprep.mubr.f32.mxu0 %v17512_v35 }
 0x3d7   : > { %10913 = vmatmul.mubr.msk.f32.gmra.mxu0 %vm7053_vm1, %v15085_v27 }
 0x3d8   : > { %7514 = vmatprep.mubr.f32.mxu0 %v17512_v35 }
 0x3db   : > { %10914 = vmatmul.mubr.msk.f32.gmra.mxu0 %vm7053_vm1, %v15093_v50 }
 0x3dc   : > { %7520 = vmatprep.mubr.f32.mxu0 %v17512_v35 }
 0x3df   : > { %10915 = vmatmul.mubr.msk.f32.gmra.mxu0 %vm7053_vm1, %v15101_v45  ;;  %v6765_v1 = vpop.f32.mrf.mxu0 }
 0x3e0   : > { %v6818_v49 = vpop.f32.mrf.mxu1  ;;  %7680 = vmatprep.mubr.f32.mxu0 %v17512_v35 }
 0x3e1   : > { %v6767_v7 = vpop.f32.mrf.mxu0  ;;  %v6819_v53 = vadd.f32 %v6818_v49, %v6765_v1 }
 0x3e2   : > { %v6820_v36 = vpop.f32.mrf.mxu1 }
 0x3e3   : > { %v6769_v40 = vpop.f32.mrf.mxu0  ;;  %v6821_v52 = vadd.f32 %v6820_v36, %v6767_v7 }
 0x3e4   : > { %v6822_v57 = vpop.f32.mrf.mxu1 }
 0x3e5   : > { %v6771_v38 = vpop.f32.mrf.mxu0  ;;  %v6823_v18 = vadd.f32 %v6822_v57, %v6769_v40 }
 0x3e6   : > { %v6824_v62 = vpop.f32.mrf.mxu1 }
 0x3e7   : > { %v6775_v60 = vpop.f32.mrf.mxu0  ;;  %v6825_v43 = vadd.f32 %v6824_v62, %v6771_v38 }
 0x3e8   : > { %v6828_v59 = vpop.f32.mrf.mxu1 }
 0x3e9   : > { %v6777_v15 = vpop.f32.mrf.mxu0  ;;  %v6829_v8 = vadd.f32 %v6828_v59, %v6775_v60 }
 0x3ea   : > { %v6830_v21 = vpop.f32.mrf.mxu1 }
 0x3eb   : > { %v6779_v46 = vpop.f32.mrf.mxu0  ;;  %v6831_v24 = vadd.f32 %v6830_v21, %v6777_v15 }
 0x3ec   : > { %v6832_v48 = vpop.f32.mrf.mxu1 }
 0x3ed   : > { %v6833_v6 = vadd.f32 %v6832_v48, %v6779_v46  ;;  %v6781_v25 = vpop.f32.mrf.mxu0 }
 0x3ee   : > { %v6834_v55 = vpop.f32.mrf.mxu1 }
 0x3ef   : > { %v6835_v3 = vadd.f32 %v6834_v55, %v6781_v25 }
 0x3f1   : > { %7551 = vmatprep.subr.mxu1 %v6835_v3 }
 0x3f2   : > { %7552 = vmatpush1.msra.mxu1 %v6833_v6 }
 0x3f3   : > { %7553 = vmatprep.subr.mxu1 %v6831_v24 }
 0x3f4   : > { %7554 = vmatpush1.msra.mxu1 %v6829_v8 }
 0x3f5   : > { %7555 = vmatprep.subr.mxu1 %v6825_v43 }
 0x3f6   : > { %7556 = vmatpush1.msra.mxu1 %v6823_v18 }
 0x3f7   : > { %7557 = vmatprep.subr.mxu1 %v6821_v52 }
 0x3f8   : > { %7558 = vmatpush1.msra.mxu1 %v6819_v53 }
 0x3f9   : > { %10916 = vmatmul.mubr.msk.f32.vlgmr.msra.gmra.mxu1 %vm7053_vm1, %v15076_v44 }
 0x3fa   : > { %7597 = vmatprep.mubr.f32.mxu1 %v17512_v35 }
 0x3fd   : > { %10917 = vmatmul.mubr.msk.f32.gmra.mxu1 %vm7053_vm1, %v15085_v27 }
 0x3fe   : > { %7603 = vmatprep.mubr.f32.mxu1 %v17512_v35 }
 0x401   : > { %10918 = vmatmul.mubr.msk.f32.gmra.mxu1 %vm7053_vm1, %v15093_v50 }
 0x402   : > { %7609 = vmatprep.mubr.f32.mxu1 %v17512_v35 }
 0x405   : > { %10919 = vmatmul.mubr.msk.f32.gmra.mxu1 %vm7053_vm1, %v15101_v45 }
 0x406   : > { %7769 = vmatprep.mubr.f32.mxu1 %v17512_v35 }
 0x41f   : > { %v6871_v56 = vpop.f32.mrf.mxu0 }
 0x420   : > { %v6924_v0 = vpop.f32.mrf.mxu1 }
 0x421   : > { %v6873_v20 = vpop.f32.mrf.mxu0  ;;  %v6925_v61 = vadd.f32 %v6924_v0, %v6871_v56 }
 0x422   : > { %v6926_v30 = vpop.f32.mrf.mxu1 }
 0x423   : > { %v6875_v19 = vpop.f32.mrf.mxu0  ;;  %v6927_v47 = vadd.f32 %v6926_v30, %v6873_v20 }
 0x424   : > { %v6928_v26 = vpop.f32.mrf.mxu1 }
 0x425   : > { %v6877_v28 = vpop.f32.mrf.mxu0  ;;  %v6929_v12 = vadd.f32 %v6928_v26, %v6875_v19 }
 0x426   : > { %v6930_v34 = vpop.f32.mrf.mxu1 }
 0x427   : > { %v6881_v51 = vpop.f32.mrf.mxu0  ;;  %v6931_v37 = vadd.f32 %v6930_v34, %v6877_v28 }
 0x428   : > { %v6934_v42 = vpop.f32.mrf.mxu1 }
 0x429   : > { %v6883_v33 = vpop.f32.mrf.mxu0  ;;  %v6935_v54 = vadd.f32 %v6934_v42, %v6881_v51 }
 0x42a   : > { %v6936_v13 = vpop.f32.mrf.mxu1 }
 0x42b   : > { %v6885_v41 = vpop.f32.mrf.mxu0  ;;  %v6937_v29 = vadd.f32 %v6936_v13, %v6883_v33  ;;  %v17674_v33 = vld [vmem:[#allocation48_spill] sm:$0xff] }
 0x42c   : > { %v6938_v58 = vpop.f32.mrf.mxu1 }
 0x42d   : > { %v6939_v2 = vadd.f32 %v6938_v58, %v6885_v41  ;;  %v6887_v31 = vpop.f32.mrf.mxu0 }
 0x42e   : > { %v6940_v22 = vpop.f32.mrf.mxu1 }
 0x42f   : > { %v6941_v17 = vadd.f32 %v6940_v22, %v6887_v31  ;;  %v17676_v31 = vld [vmem:[#allocation49_spill] sm:$0xff] }
 0x431   : > { %7640 = vmatprep.subr.mxu0 %v6941_v17  ;;  %v7828_v17 = vlaneseq }
 0x432   : > { %7641 = vmatpush1.msra.mxu0 %v6939_v2 }
 0x433   : > { %7642 = vmatprep.subr.mxu0 %v6937_v29  ;;  %v17677_v29 = vld [vmem:[#allocation57_spill] sm:$0xff] }
 0x434   : > { %7643 = vmatpush1.msra.mxu0 %v6935_v54 }
 0x435   : > { %7644 = vmatprep.subr.mxu0 %v6931_v37  ;;  %v17678_v37 = vld [vmem:[#allocation50_spill] sm:$0xff] }
 0x436   : > { %7645 = vmatpush1.msra.mxu0 %v6929_v12 }
 0x437   : > { %7646 = vmatprep.subr.mxu0 %v6927_v47 }
 0x438   : > { %7647 = vmatpush1.msra.mxu0 %v6925_v61  ;;  %v17679_v61 = vld [vmem:[#allocation58_spill] sm:$0xff] }
 0x439   : > { %10920 = vmatmul.mubr.msk.f32.vlgmr.msra.gmra.mxu0 %vm7053_vm1, %v15076_v44 }
 0x43a   : > { %7686 = vmatprep.mubr.f32.mxu0 %v17512_v35 }
 0x43d   : > { %10921 = vmatmul.mubr.msk.f32.gmra.mxu0 %vm7053_vm1, %v15085_v27 }
 0x43e   : > { %7692 = vmatprep.mubr.f32.mxu0 %v17512_v35 }
 0x441   : > { %10922 = vmatmul.mubr.msk.f32.gmra.mxu0 %vm7053_vm1, %v15093_v50 }
 0x442   : > { %7698 = vmatprep.mubr.f32.mxu0 %v17512_v35 }
 0x445   : > { %10923 = vmatmul.mubr.msk.f32.gmra.mxu0 %vm7053_vm1, %v15101_v45 }
 0x446   : > { %8228 = vmatprep.mubr.f32.mxu0 %v17512_v35 }
 0x45f   : > { %v6977_v23 = vpop.f32.mrf.mxu0 }
 0x460   : > { %v7030_v39 = vpop.f32.mrf.mxu1 }
 0x461   : > { %v6979_v9 = vpop.f32.mrf.mxu0  ;;  %v7031_v43 = vadd.f32 %v7030_v39, %v6977_v23 }
 0x462   : > { %v7032_v16 = vpop.f32.mrf.mxu1 }
 0x463   : > { %v6981_v4 = vpop.f32.mrf.mxu0  ;;  %v7033_v8 = vadd.f32 %v7032_v16, %v6979_v9  ;;  %v17680_v9 = vld [vmem:[#allocation51_spill] sm:$0xff] }
 0x464   : > { %v7034_v11 = vpop.f32.mrf.mxu1 }
 0x465   : > { %v6983_v14 = vpop.f32.mrf.mxu0  ;;  %v7035_v3 = vadd.f32 %v7034_v11, %v6981_v4  ;;  %v15195_v4 = vshrl.u32 %v7828_v17, 7  ;;  %v17681_v11 = vld [vmem:[#allocation59_spill] sm:$0xff] }
 0x466   : > { %v7036_v1 = vpop.f32.mrf.mxu1 }
 0x467   : > { %v7037_v24 = vadd.f32 %v7036_v1, %v6983_v14 }
 0x468   : > { %v6987_v49 = vpop.f32.mrf.mxu0 }
 0x469   : > { %v7040_v7 = vpop.f32.mrf.mxu1 }
 0x46a   : > { %v6989_v36 = vpop.f32.mrf.mxu0  ;;  %v7041_v6 = vadd.f32 %v7040_v7, %v6987_v49  ;;  %v17682_v49 = vld [vmem:[#allocation52_spill] sm:$0xff] }
 0x46b   : > { %v7042_v40 = vpop.f32.mrf.mxu1 }
 0x46c   : > { %v6991_v57 = vpop.f32.mrf.mxu0  ;;  %v7043_v48 = vadd.f32 %v7042_v40, %v6989_v36 }
 0x46d   : > { %v7044_v38 = vpop.f32.mrf.mxu1 }
 0x46e   : > { %v6993_v62 = vpop.f32.mrf.mxu0  ;;  %v7045_v15 = vadd.f32 %v7044_v38, %v6991_v57  ;;  %v17683_v38 = vld [vmem:[#allocation53_spill] sm:$0xff] }
 0x46f   : > { %v7046_v60 = vpop.f32.mrf.mxu1 }
 0x470   : > { %v7047_v59 = vadd.f32 %v7046_v60, %v6993_v62  ;;  %v15130_v21 = vpop.f32.mrf.mxu0 }
 0x471   : > { %v15132_v46 = vpop.f32.mrf.mxu1 }
 0x472   : > { %7729 = vmatprep.subr.mxu1 %v7047_v59  ;;  %v15134_v25 = vpop.f32.mrf.mxu0  ;;  %v7830_v59 = vsub.s32 0, %v15195_v4 }
 0x473   : > { %v15136_v55 = vpop.f32.mrf.mxu1  ;;  %7730 = vmatpush1.msra.mxu1 %v7045_v15 }
 0x474   : > { %7731 = vmatprep.subr.mxu1 %v7043_v48 }
 0x475   : > { %7732 = vmatpush1.msra.mxu1 %v7041_v6  ;;  %v15216_v6 = vld [vmem:[%s17438_s6] sm:$0xff] }
 0x476   : > { %7733 = vmatprep.subr.mxu1 %v7037_v24  ;;  %v15138_v18 = vpop.f32.mrf.mxu0  ;;  %v17684_v24 = vld [vmem:[#allocation54_spill] sm:$0xff]  ;;  %v7831_v17 = vrot.slane %v15216_v6, %v7830_v59 }
 0x477   : > { %v15140_v52 = vpop.f32.mrf.mxu1  ;;  %7734 = vmatpush1.msra.mxu1 %v7035_v3 }
 0x478   : > { %7735 = vmatprep.subr.mxu1 %v7033_v8  ;;  %v15142_v53 = vpop.f32.mrf.mxu0  ;;  %v7834_v8 = vsub.s32 1, %v15195_v4 }
 0x479   : > { %v15144_v56 = vpop.f32.mrf.mxu1  ;;  %7736 = vmatpush1.msra.mxu1 %v7031_v43 }
 0x47a   : > { %10924 = vmatmul.mubr.msk.f32.vlgmr.msra.gmra.mxu1 %vm7053_vm1, %v15076_v44 }
 0x47b   : > { %7775 = vmatprep.mubr.f32.mxu1 %v17512_v35  ;;  %v15149_v0 = vpop.f32.mrf.mxu0 }
 0x47c   : > { %v15151_v20 = vpop.f32.mrf.mxu1 }
 0x47d   : > { %v15153_v30 = vpop.f32.mrf.mxu0 }
 0x47e   : > { %v15155_v19 = vpop.f32.mrf.mxu1  ;;  %10925 = vmatmul.mubr.msk.f32.gmra.mxu1 %vm7053_vm1, %v15085_v27  ;;  %v17675_v27 = vld [vmem:[#allocation56_spill] sm:$0xff] }
 0x47f   : > { %7781 = vmatprep.mubr.f32.mxu1 %v17512_v35  ;;  %v15160_v26 = vpop.f32.mrf.mxu0 }
 0x480   : > { %v15162_v28 = vpop.f32.mrf.mxu1 }
 0x481   : > { %v15164_v44 = vpop.f32.mrf.mxu0 }
 0x482   : > { %v15166_v34 = vpop.f32.mrf.mxu1  ;;  %10926 = vmatmul.mubr.msk.f32.gmra.mxu1 %vm7053_vm1, %v15093_v50 }
 0x483   : > { %7787 = vmatprep.mubr.f32.mxu1 %v17512_v35  ;;  %v7310_v51 = vpop.f32.mrf.mxu0 }
 0x484   : > { %v7399_v42 = vpop.f32.mrf.mxu1  ;;  %v15172_v13 = vadd.f32 %v7310_v51, %v17674_v33  ;;  %v17686_v33 = vld [vmem:[#allocation27_spill] sm:$0xff] }
 0x485   : > { %v15175_v41 = vadd.f32 %v7399_v42, %v17675_v27  ;;  %v7312_v58 = vpop.f32.mrf.mxu0  ;;  %v17685_v42 = vld [vmem:[#allocation26_spill] sm:$0xff]  ;;  %v17687_v27 = vld [vmem:[#allocation25_spill] sm:$0xff] }
 0x486   : > { %v7401_v2 = vpop.f32.mrf.mxu1  ;;  %10927 = vmatmul.mubr.msk.f32.gmra.mxu1 %vm7053_vm1, %v15101_v45  ;;  %v15180_v22 = vadd.f32 %v7312_v58, %v17676_v31  ;;  %v7133_v58 = vadd.f32 %v15130_v21, %v17687_v27  ;;  %v17690_v21 = vld [vmem:[#allocation30_spill] sm:$0xff] }
 0x487   : > { %v15183_v50 = vadd.f32 %v7401_v2, %v17677_v29  ;;  %8305 = vmatprep.mubr.f32.mxu1 %v17512_v35  ;;  %v7316_v54 = vpop.f32.mrf.mxu0  ;;  %v17688_v2 = vld [vmem:[#allocation55_spill] sm:$0xff] }
 0x488   : > { %v15187_v12 = vadd.f32 %v7316_v54, %v17678_v37  ;;  %v7405_v47 = vpop.f32.mrf.mxu1 }
 0x489   : > { %v15190_v23 = vadd.f32 %v7405_v47, %v17679_v61  ;;  %v7318_v39 = vpop.f32.mrf.mxu0  ;;  %v15238_v61 = vrot.slane %v15216_v6, %v7834_v8 }
 0x48a   : > { %v15193_v45 = vadd.f32 %v7318_v39, %v17680_v9  ;;  %v7407_v16 = vpop.f32.mrf.mxu1  ;;  %v7900_v39 = vld [vmem:[#allocation3 + $0x68] sm:$0xff] }
 0x48b   : > { %v15198_v14 = vadd.f32 %v7407_v16, %v17681_v11  ;;  %v7322_v1 = vpop.f32.mrf.mxu0  ;;  %v17689_v16 = vld [vmem:[#allocation29_spill] sm:$0xff] }
 0x48c   : > { %v15201_v7 = vadd.f32 %v7322_v1, %v17682_v49  ;;  %v7411_v36 = vpop.f32.mrf.mxu1  ;;  %v4759_v11 = vadd.f32 %v17690_v21, %v17689_v16  ;;  %v17691_v1 = vld [vmem:[#allocation28_spill] sm:$0xff]  ;;  %v17697_v21 = vld [vmem:[#allocation34_spill] sm:$0xff] }
 0x48d   : > { %v15204_v40 = vadd.f32 %v7411_v36, %v14808_v5  ;;  %v7324_v57 = vpop.f32.mrf.mxu0  ;;  %v7139_v49 = vadd.f32 %v15138_v18, %v17691_v1 }
 0x48e   : > { %v15207_v62 = vadd.f32 %v7324_v57, %v17683_v38  ;;  %v7413_v60 = vpop.f32.mrf.mxu1  ;;  %v7901_v38 = vld [vmem:[#allocation3 + $0x50] sm:$0xff] }
 0x48f   : > { %v15211_v15 = vadd.f32 %v7413_v60, %v14822_v32  ;;  %v7328_v48 = vpop.f32.mrf.mxu0  ;;  %v4755_v32 = vadd.f32 %v17686_v33, %v17685_v42  ;;  %v7141_v60 = vadd.f32 %v15142_v53, %v4759_v11  ;;  %v7908_v33 = vld [vmem:[#allocation3 + $0x48] sm:$0xff]  ;;  %v7151_v11 = vadd.f32 %v15160_v26, %v17697_v21 }
 0x490   : > { %v15219_v3 = vadd.f32 %v7328_v48, %v17684_v24  ;;  %v7417_v5 = vpop.f32.mrf.mxu1  ;;  %v17692_v24 = vld [vmem:[#allocation32_spill] sm:$0xff] }
 0x491   : > { %v15223_v43 = vadd.f32 %v7417_v5, %v14826_v63  ;;  %v7330_v51 = vpop.f32.mrf.mxu0  ;;  %v7135_v63 = vadd.f32 %v15134_v25, %v4755_v32  ;;  %v17693_v5 = vld [vmem:[#allocation33_spill] sm:$0xff] }
 0x492   : > { %v15230_v31 = vadd.f32 %v7330_v51, %v17688_v2  ;;  %v7419_v29 = vpop.f32.mrf.mxu1  ;;  %v4765_v8 = vadd.f32 %v17693_v5, %v17692_v24  ;;  %v17694_v51 = vld [vmem:[#allocation31_spill] sm:$0xff]  ;;  %v7909_v2 = vld [vmem:[#allocation3 + $0x8] sm:$0xff] }
 0x493   : > { %v15234_v54 = vadd.f32 %v7419_v29, %v14840_v10  ;;  %v7504_v37 = vpop.f32.mrf.mxu0  ;;  %v7145_v42 = vadd.f32 %v15149_v0, %v17694_v51 }
 0x494   : > { %v7794_v47 = vadd.f32 %v7504_v37, %v7133_v58  ;;  %v7147_v53 = vadd.f32 %v15153_v30, %v4765_v8  ;;  %v7916_v30 = vld [vmem:[#allocation3 + $0x98] sm:$0xff] }
 0x495   : > { %v7506_v9 = vpop.f32.mrf.mxu0 }
 0x496   : > { %v7868_v36 = vadd.f32 %v7831_v17, %v7794_v47  ;;  %v7795_v57 = vadd.f32 %v7506_v9, %v7135_v63  ;;  %v17696_v9 = vld [vmem:[#allocation36_spill] sm:$0xff] }
 0x497   : > { %v7510_v10 = vpop.f32.mrf.mxu0 }
 0x498   : > { %v15245_v59 = vadd.f32 %v7900_v39, %v7868_v36  ;;  %v7869_v25 = vadd.f32 %v15238_v61, %v7795_v57  ;;  %v7802_v48 = vadd.f32 %v7510_v10, %v7139_v49  ;;  %v17695_v39 = vld [vmem:[#allocation35_spill] sm:$0xff] }
 0x499   : > { %v7512_v32 = vpop.f32.mrf.mxu0  ;;  %v4769_v16 = vadd.f32 %v17696_v9, %v17695_v39 }
 0x49a   : > { %v15252_v18 = vadd.f32 %v7901_v38, %v7869_v25  ;;  %v7876_v27 = vadd.f32 %v7831_v17, %v7802_v48  ;;  %v7803_v58 = vadd.f32 %v7512_v32, %v7141_v60  ;;  %vm7964_vm2 = vcmp.ge.f32.partialorder %v15245_v59, 1.0  ;;  %v7917_v25 = vld [vmem:[#allocation3 + $0xa0] sm:$0xff] }
 0x49b   : > { %v7516_v29 = vpop.f32.mrf.mxu0  ;;  %v10928_v37 = vsel %vm7964_vm2, 1.0, %v17512_v35  ;;  %v7153_v60 = vadd.f32 %v15164_v44, %v4769_v16 }
 0x49c   : > { %v15259_v63 = vadd.f32 %v7908_v33, %v7876_v27  ;;  %v7877_v0 = vadd.f32 %v15238_v61, %v7803_v58  ;;  %v7810_v47 = vadd.f32 %v7516_v29, %v7145_v42  ;;  %vm7965_vm3 = vcmp.ge.f32.partialorder %v15252_v18, 1.0  ;;  %v7924_v33 = vld [vmem:[#allocation3 + $0xe8] sm:$0xff] }
 0x49d   : > { %v7518_v1 = vpop.f32.mrf.mxu0  ;;  %v10929_v49 = vsel %vm7965_vm3, 1.0, %v17512_v35  ;;  %v8060_v36 = vsub.f32 1.0, %v10928_v37  ;;  %v7925_v37 = vld [vmem:[#allocation3 + $0xb0] sm:$0xff] }
 0x49e   : > { %v7941_v57 = vadd.f32 %v7909_v2, %v7877_v0  ;;  %v7884_v38 = vadd.f32 %v7831_v17, %v7810_v47  ;;  %v7811_v10 = vadd.f32 %v7518_v1, %v7147_v53  ;;  %vm7972_vm4 = vcmp.ge.f32.partialorder %v15259_v63, 1.0 }
 0x49f   : > { %v7522_v48 = vpop.f32.mrf.mxu0  ;;  %v10936_v26 = vsel %vm7972_vm4, 1.0, %v17512_v35  ;;  %v8061_v24 = vsub.f32 1.0, %v10929_v49  ;;  %v8092_v5 = vmul.f32 %v8060_v36, %v15245_v59  ;;  %v17698_v59 = vld [vmem:[#allocation38_spill] sm:$0xff] }
 0x4a0   : > { %v7948_v8 = vadd.f32 %v7916_v30, %v7884_v38  ;;  %v7885_v51 = vadd.f32 %v15238_v61, %v7811_v10  ;;  %v7818_v42 = vadd.f32 %v7522_v48, %v7151_v11  ;;  %vm7973_vm5 = vcmp.ge.f32.partialorder %v7941_v57, 1.0 }
 0x4a1   : > { %v7524_v32 = vpop.f32.mrf.mxu0  ;;  %v10937_v27 = vsel %vm7973_vm5, 1.0, %v17512_v35  ;;  %v8068_v44 = vsub.f32 1.0, %v10936_v26  ;;  %v8093_v58 = vmul.f32 %v8061_v24, %v15252_v18  ;;  %8124 = vst [vmem:[#allocation3 + $0x68] sm:$0xff] %v8092_v5  ;;  %v15302_v24 = vld [vmem:[%s17439_s7] sm:$0xff]  ;;  %v7842_v5 = vsub.s32 3, %v15195_v4  ;;  %v17699_v18 = vld [vmem:[#allocation39_spill] sm:$0xff] }
 0x4a2   : > { %v7949_v53 = vadd.f32 %v7917_v25, %v7885_v51  ;;  %v7892_v2 = vadd.f32 %v7831_v17, %v7818_v42  ;;  %v7819_v29 = vadd.f32 %v7524_v32, %v7153_v60  ;;  %vm7980_vm6 = vcmp.ge.f32.partialorder %v7948_v8, 1.0  ;;  %v17700_v51 = vld [vmem:[#allocation37_spill] sm:$0xff] }
 0x4a3   : > { %v10944_v0 = vsel %vm7980_vm6, 1.0, %v17512_v35  ;;  %v8069_v47 = vsub.f32 1.0, %v10937_v27  ;;  %v8100_v39 = vmul.f32 %v8068_v44, %v15259_v63  ;;  %8125 = vst [vmem:[#allocation3 + $0x50] sm:$0xff] %v8093_v58  ;;  %v11162_v60 = vmov 1.0   ;;  %v15316_v63 = vld [vmem:[%s17439_s7 + $0x8] sm:$0x3f] }
 0x4a4   : > { %v7956_v9 = vadd.f32 %v7924_v33, %v7892_v2  ;;  %v7893_v16 = vadd.f32 %v15238_v61, %v7819_v29  ;;  %vm7981_vm7 = vcmp.ge.f32.partialorder %v7949_v53, 1.0  ;;  %v8076_v21 = vsub.f32 1.0, %v10944_v0  ;;  %v17701_v29 = vld [vmem:[#allocation41_spill] sm:$0xff] }
 0x4a5   : > { %v10945_v11 = vsel %vm7981_vm7, 1.0, %v17512_v35  ;;  %v8101_v30 = vmul.f32 %v8069_v47, %v7941_v57  ;;  %8132 = vst [vmem:[#allocation3 + $0x48] sm:$0xff] %v8100_v39  ;;  %v7838_v57 = vsub.s32 2, %v15195_v4  ;;  %v7222_v42 = vadd.f32 %v15132_v46, %v17700_v51  ;;  %v17703_v47 = vld [vmem:[#allocation40_spill] sm:$0xff]  ;;  %v17707_v51 = vld [vmem:[#allocation46_spill] sm:$0xff] }
 0x4a6   : > { %v7957_v17 = vadd.f32 %v7925_v37, %v7893_v16  ;;  %vm7988_vm8 = vcmp.ge.f32.partialorder %v7956_v9, 1.0  ;;  %v8077_v1 = vsub.f32 1.0, %v10945_v11  ;;  %v8108_v49 = vmul.f32 %v8076_v21, %v7948_v8  ;;  %v17702_v37 = vld [vmem:[#allocation42_spill] sm:$0xff]  ;;  %v7903_v46 = vld [vmem:[#allocation3 + $0x60] sm:$0xff] }
 0x4a7   : > { %v10952_v36 = vsel %vm7988_vm8, 1.0, %v17512_v35  ;;  %8133 = vst [vmem:[#allocation3 + $0x8] sm:$0xff] %v8101_v30  ;;  %v4861_v8 = vadd.f32 %v17699_v18, %v17698_v59  ;;  %v7839_v33 = vrot.slane %v15216_v6, %v7838_v57  ;;  %v15330_v58 = vrot.slane %v15216_v6, %v7842_v5  ;;  %v7911_v57 = vld [vmem:[#allocation3 + $0x88] sm:$0xff] }
 0x4a8   : > { %vm7989_vm9 = vcmp.ge.f32.partialorder %v7957_v17, 1.0  ;;  %v8084_v38 = vsub.f32 1.0, %v10952_v36  ;;  %v8109_v10 = vmul.f32 %v8077_v1, %v7949_v53  ;;  %8140 = vst [vmem:[#allocation3 + $0x98] sm:$0xff] %v8108_v49  ;;  %v7902_v53 = vld [vmem:[#allocation3 + $0x70] sm:$0xff]  ;;  %v4865_v0 = vadd.f32 %v17702_v37, %v17701_v29  ;;  %v17704_v1 = vld [vmem:[#allocation44_spill] sm:$0xff]  ;;  %v17705_v49 = vld [vmem:[#allocation45_spill] sm:$0xff] }
 0x4a9   : > { %v10953_v61 = vsel %vm7989_vm9, 1.0, %v17512_v35  ;;  %10960 = vmatprep.subr.msk.mxu0 %vm7989_vm9, %v11162_v60  ;;  %v7224_v27 = vadd.f32 %v15136_v55, %v4861_v8  ;;  %v7228_v39 = vadd.f32 %v15140_v52, %v17703_v47  ;;  %v4871_v36 = vadd.f32 %v17705_v49, %v17704_v1  ;;  %v17708_v37 = vld [vmem:[#allocation47_spill] sm:$0xff] }
 0x4aa   : > { %v8085_v25 = vsub.f32 1.0, %v10953_v61  ;;  %v8116_v48 = vmul.f32 %v8084_v38, %v7956_v9  ;;  %10961 = vmatpush1.msk.msra.mxu0 %vm7988_vm8, %v11162_v60  ;;  %8141 = vst [vmem:[#allocation3 + $0xa0] sm:$0xff] %v8109_v10  ;;  %v7230_v11 = vadd.f32 %v15144_v56, %v4865_v0  ;;  %v17706_v38 = vld [vmem:[#allocation43_spill] sm:$0xff]  ;;  %v7242_v0 = vadd.f32 %v15166_v34, %v17708_v37 }
 0x4ab   : > { %10962 = vmatprep.subr.msk.mxu0 %vm7981_vm7, %v11162_v60  ;;  %v7234_v10 = vadd.f32 %v15151_v20, %v17706_v38  ;;  %v7910_v61 = vld [vmem:[#allocation3 + $0xf0] sm:$0xff]  ;;  %v7236_v56 = vadd.f32 %v15155_v19, %v4871_v36  ;;  %v7919_v47 = vld [vmem:[#allocation3 + $0x58] sm:$0xff] }
 0x4ac   : > { %v8117_v26 = vmul.f32 %v8085_v25, %v7957_v17  ;;  %8148 = vst [vmem:[#allocation3 + $0xe8] sm:$0xff] %v8116_v48  ;;  %10963 = vmatpush1.msk.msra.mxu0 %vm7980_vm6, %v11162_v60 }
 0x4ad   : > { %10964 = vmatprep.subr.msk.mxu0 %vm7973_vm5, %v11162_v60 }
 0x4ae   : > { %8149 = vst [vmem:[#allocation3 + $0xb0] sm:$0xff] %v8117_v26  ;;  %10965 = vmatpush1.msk.msra.mxu0 %vm7972_vm4, %v11162_v60 }
 0x4af   : > { %10966 = vmatprep.subr.msk.mxu0 %vm7965_vm3, %v11162_v60 }
 0x4b0   : > { %10967 = vmatpush1.msk.msra.mxu0 %vm7964_vm2, %v11162_v60 }
 0x4b1   : > { %10968 = vmatmul.mubr.msk.f32.vlgmr.msra.gmra.mxu0 %vm7053_vm1, %v15302_v24 }
 0x4b2   : > { %8234 = vmatprep.mubr.f32.mxu0 %v17512_v35 }
 0x4b5   : > { %10969 = vmatmul.mubr.msk.f32.gmra.mxu0 %vm7053_vm1, %v15316_v63 }
 0x4b6   : > { %8382 = vmatprep.mubr.f32.mxu0 %v17512_v35 }
 0x4b9   : > { %v7593_v32 = vpop.f32.mrf.mxu1 }
 0x4ba   : > { %v7796_v44 = vadd.f32 %v7593_v32, %v7222_v42  ;;  %v7240_v42 = vadd.f32 %v15162_v28, %v17707_v51  ;;  %v7918_v32 = vld [vmem:[#allocation3 + $0xf8] sm:$0xff] }
 0x4bb   : > { %v7595_v2 = vpop.f32.mrf.mxu1 }
 0x4bc   : > { %v7870_v9 = vadd.f32 %v7839_v33, %v7796_v44  ;;  %v7797_v16 = vadd.f32 %v7595_v2, %v7224_v27 }
 0x4bd   : > { %v7599_v21 = vpop.f32.mrf.mxu1 }
 0x4be   : > { %v15337_v30 = vadd.f32 %v7902_v53, %v7870_v9  ;;  %v7871_v55 = vadd.f32 %v15330_v58, %v7797_v16  ;;  %v7804_v17 = vadd.f32 %v7599_v21, %v7228_v39 }
 0x4bf   : > { %v7601_v25 = vpop.f32.mrf.mxu1 }
 0x4c0   : > { %v15344_v52 = vadd.f32 %v7903_v46, %v7871_v55  ;;  %v7878_v48 = vadd.f32 %v7839_v33, %v7804_v17  ;;  %v7805_v26 = vadd.f32 %v7601_v25, %v7230_v11  ;;  %vm7966_vm10 = vcmp.ge.f32.partialorder %v15337_v30, 1.0  ;;  %v7926_v55 = vld [vmem:[#allocation3 + $0x90] sm:$0xff] }
 0x4c1   : > { %v7605_v5 = vpop.f32.mrf.mxu1  ;;  %v10930_v59 = vsel %vm7966_vm10, 1.0, %v17512_v35 }
 0x4c2   : > { %v15351_v18 = vadd.f32 %v7910_v61, %v7878_v48  ;;  %v7879_v20 = vadd.f32 %v15330_v58, %v7805_v26  ;;  %v7812_v8 = vadd.f32 %v7605_v5, %v7234_v10  ;;  %vm7967_vm11 = vcmp.ge.f32.partialorder %v15344_v52, 1.0  ;;  %v7927_v61 = vld [vmem:[#allocation3 + $0xb8] sm:$0xff] }
 0x4c3   : > { %v7607_v27 = vpop.f32.mrf.mxu1  ;;  %v10931_v19 = vsel %vm7967_vm11, 1.0, %v17512_v35  ;;  %v8062_v44 = vsub.f32 1.0, %v10930_v59 }
 0x4c4   : > { %v7943_v53 = vadd.f32 %v7911_v57, %v7879_v20  ;;  %v7886_v2 = vadd.f32 %v7839_v33, %v7812_v8  ;;  %v7813_v29 = vadd.f32 %v7607_v27, %v7236_v56  ;;  %vm7974_vm12 = vcmp.ge.f32.partialorder %v15351_v18, 1.0 }
 0x4c5   : > { %v7611_v39 = vpop.f32.mrf.mxu1  ;;  %v10938_v28 = vsel %vm7974_vm12, 1.0, %v17512_v35  ;;  %v8063_v9 = vsub.f32 1.0, %v10931_v19  ;;  %v8094_v16 = vmul.f32 %v8062_v44, %v15337_v30 }
 0x4c6   : > { %v7950_v46 = vadd.f32 %v7918_v32, %v7886_v2  ;;  %v7887_v21 = vadd.f32 %v15330_v58, %v7813_v29  ;;  %v7820_v11 = vadd.f32 %v7611_v39, %v7240_v42  ;;  %vm7975_vm13 = vcmp.ge.f32.partialorder %v7943_v53, 1.0 }
 0x4c7   : > { %v7613_v17 = vpop.f32.mrf.mxu1  ;;  %v10939_v1 = vsel %vm7975_vm13, 1.0, %v17512_v35  ;;  %v8070_v34 = vsub.f32 1.0, %v10938_v28  ;;  %v8095_v49 = vmul.f32 %v8063_v9, %v15344_v52  ;;  %8126 = vst [vmem:[#allocation3 + $0x70] sm:$0xff] %v8094_v16  ;;  %v7905_v9 = vld [vmem:[#allocation3 + $0xd8] sm:$0xff] }
 0x4c8   : > { %v7951_v36 = vadd.f32 %v7919_v47, %v7887_v21  ;;  %v7894_v38 = vadd.f32 %v7839_v33, %v7820_v11  ;;  %v7821_v10 = vadd.f32 %v7613_v17, %v7242_v0  ;;  %vm7982_vm14 = vcmp.ge.f32.partialorder %v7950_v46, 1.0  ;;  %v7904_v0 = vld [vmem:[#allocation3 + $0xd0] sm:$0xff] }
 0x4c9   : > { %v10946_v25 = vsel %vm7982_vm14, 1.0, %v17512_v35  ;;  %v8071_v48 = vsub.f32 1.0, %v10939_v1  ;;  %v8102_v26 = vmul.f32 %v8070_v34, %v15351_v18  ;;  %8127 = vst [vmem:[#allocation3 + $0x60] sm:$0xff] %v8095_v49  ;;  %v7846_v18 = vsub.s32 4, %v15195_v4  ;;  %v7913_v49 = vld [vmem:[#allocation3 + $0x20] sm:$0xff] }
 0x4ca   : > { %v7958_v56 = vadd.f32 %v7926_v55, %v7894_v38  ;;  %v7895_v57 = vadd.f32 %v15330_v58, %v7821_v10  ;;  %vm7983_vm15 = vcmp.ge.f32.partialorder %v7951_v36, 1.0  ;;  %v8078_v5 = vsub.f32 1.0, %v10946_v25  ;;  %v7912_v55 = vld [vmem:[#allocation3 + $0x78] sm:$0xff] }
 0x4cb   : > { %v10947_v59 = vsel %vm7983_vm15, 1.0, %v17512_v35  ;;  %v8103_v20 = vmul.f32 %v8071_v48, %v7943_v53  ;;  %8134 = vst [vmem:[#allocation3 + $0xf0] sm:$0xff] %v8102_v26  ;;  %v7850_v53 = vsub.s32 5, %v15195_v4  ;;  %v7847_v52 = vrot.slane %v15216_v6, %v7846_v18 }
 0x4cc   : > { %v7959_v33 = vadd.f32 %v7927_v61, %v7895_v57  ;;  %vm7990_vm0 = vcmp.ge.f32.partialorder %v7958_v56, 1.0  ;;  %v8079_v8 = vsub.f32 1.0, %v10947_v59  ;;  %v8110_v51 = vmul.f32 %v8078_v5, %v7950_v46  ;;  %v7920_v61 = vld [vmem:[#allocation3 + $0xc0] sm:$0xff]  ;;  %v7921_v5 = vld [vmem:[#allocation3 + $0x38] sm:$0xff] }
 0x4cd   : > { %v10954_v42 = vsel %vm7990_vm0, 1.0, %v17512_v35  ;;  %8135 = vst [vmem:[#allocation3 + $0x88] sm:$0xff] %v8103_v20  ;;  %v7851_v37 = vrot.slane %v15216_v6, %v7850_v53  ;;  %v7929_v53 = vld [vmem:[#allocation3 + $0x80] sm:$0xff] }
 0x4ce   : > { %vm7991_vm2 = vcmp.ge.f32.partialorder %v7959_v33, 1.0  ;;  %v8086_v32 = vsub.f32 1.0, %v10954_v42  ;;  %v8111_v27 = vmul.f32 %v8079_v8, %v7951_v36  ;;  %8142 = vst [vmem:[#allocation3 + $0xf8] sm:$0xff] %v8110_v51 }
 0x4cf   : > { %v10955_v58 = vsel %vm7991_vm2, 1.0, %v17512_v35  ;;  %10970 = vmatprep.subr.msk.mxu1 %vm7991_vm2, %v11162_v60 }
 0x4d0   : > { %v8087_v19 = vsub.f32 1.0, %v10955_v58  ;;  %v8118_v44 = vmul.f32 %v8086_v32, %v7958_v56  ;;  %10971 = vmatpush1.msk.msra.mxu1 %vm7990_vm0, %v11162_v60  ;;  %8143 = vst [vmem:[#allocation3 + $0x58] sm:$0xff] %v8111_v27  ;;  %v7928_v32 = vld [vmem:[#allocation3 + $0x10] sm:$0xff] }
 0x4d1   : > { %10972 = vmatprep.subr.msk.mxu1 %vm7983_vm15, %v11162_v60 }
 0x4d2   : > { %v8119_v2 = vmul.f32 %v8087_v19, %v7959_v33  ;;  %8150 = vst [vmem:[#allocation3 + $0x90] sm:$0xff] %v8118_v44  ;;  %10973 = vmatpush1.msk.msra.mxu1 %vm7982_vm14, %v11162_v60 }
 0x4d3   : > { %10974 = vmatprep.subr.msk.mxu1 %vm7975_vm13, %v11162_v60 }
 0x4d4   : > { %8151 = vst [vmem:[#allocation3 + $0xb8] sm:$0xff] %v8119_v2  ;;  %10975 = vmatpush1.msk.msra.mxu1 %vm7974_vm12, %v11162_v60 }
 0x4d5   : > { %10976 = vmatprep.subr.msk.mxu1 %vm7967_vm11, %v11162_v60 }
 0x4d6   : > { %10977 = vmatpush1.msk.msra.mxu1 %vm7966_vm10, %v11162_v60 }
 0x4d7   : > { %10978 = vmatmul.mubr.msk.f32.vlgmr.msra.gmra.mxu1 %vm7053_vm1, %v15302_v24 }
 0x4d8   : > { %8311 = vmatprep.mubr.f32.mxu1 %v17512_v35 }
 0x4db   : > { %10979 = vmatmul.mubr.msk.f32.gmra.mxu1 %vm7053_vm1, %v15316_v63 }
 0x4dc   : > { %8459 = vmatprep.mubr.f32.mxu1 %v17512_v35 }
 0x4f9   : > { %v7682_v29 = vpop.f32.mrf.mxu0 }
 0x4fa   : > { %v7798_v30 = vadd.f32 %v7682_v29, %v15172_v13 }
 0x4fb   : > { %v7684_v47 = vpop.f32.mrf.mxu0 }
 0x4fc   : > { %v7872_v39 = vadd.f32 %v7847_v52, %v7798_v30  ;;  %v7799_v28 = vadd.f32 %v7684_v47, %v15180_v22 }
 0x4fd   : > { %v7688_v16 = vpop.f32.mrf.mxu0 }
 0x4fe   : > { %v15408_v46 = vadd.f32 %v7904_v0, %v7872_v39  ;;  %v7873_v21 = vadd.f32 %v7851_v37, %v7799_v28  ;;  %v7806_v11 = vadd.f32 %v7688_v16, %v15187_v12 }
 0x4ff   : > { %v7690_v17 = vpop.f32.mrf.mxu0 }
 0x500   : > { %v15411_v1 = vadd.f32 %v7905_v9, %v7873_v21  ;;  %v7880_v34 = vadd.f32 %v7847_v52, %v7806_v11  ;;  %v7807_v13 = vadd.f32 %v7690_v17, %v15193_v45  ;;  %vm7968_vm3 = vcmp.ge.f32.partialorder %v15408_v46, 1.0 }
 0x501   : > { %v7694_v36 = vpop.f32.mrf.mxu0  ;;  %v10932_v22 = vsel %vm7968_vm3, 1.0, %v17512_v35 }
 0x502   : > { %v15418_v38 = vadd.f32 %v7912_v55, %v7880_v34  ;;  %v7881_v10 = vadd.f32 %v7851_v37, %v7807_v13  ;;  %v7814_v12 = vadd.f32 %v7694_v36, %v15201_v7  ;;  %vm7969_vm4 = vcmp.ge.f32.partialorder %v15411_v1, 1.0  ;;  %v8532_v36 = vld [vmem:[%s17440_s8 + $0x1e0] sm:$0xff] }
 0x503   : > { %v7696_v25 = vpop.f32.mrf.mxu0  ;;  %v10933_v45 = vsel %vm7969_vm4, 1.0, %v17512_v35  ;;  %v8064_v48 = vsub.f32 1.0, %v10932_v22  ;;  %v8529_v22 = vld [vmem:[%s17440_s8 + $0x1c8] sm:$0xff] }
 0x504   : > { %v7945_v26 = vadd.f32 %v7913_v49, %v7881_v10  ;;  %v7888_v56 = vadd.f32 %v7847_v52, %v7814_v12  ;;  %v7815_v57 = vadd.f32 %v7696_v25, %v15207_v62  ;;  %vm7976_vm5 = vcmp.ge.f32.partialorder %v15418_v38, 1.0  ;;  %v8533_v49 = vld [vmem:[%s17440_s8 + $0x1e8] sm:$0xff]  ;;  %v8520_v12 = vld [vmem:[%s17440_s8 + $0x180] sm:$0xff] }
 0x505   : > { %v7700_v59 = vpop.f32.mrf.mxu0  ;;  %v10940_v7 = vsel %vm7976_vm5, 1.0, %v17512_v35  ;;  %v8065_v20 = vsub.f32 1.0, %v10933_v45  ;;  %v8096_v33 = vmul.f32 %v8064_v48, %v15408_v46  ;;  %v8525_v46 = vld [vmem:[%s17440_s8 + $0x1a8] sm:$0xff]  ;;  %v8516_v25 = vld [vmem:[%s17440_s8 + $0x160] sm:$0xff] }
 0x506   : > { %v7952_v8 = vadd.f32 %v7920_v61, %v7888_v56  ;;  %v7889_v51 = vadd.f32 %v7851_v37, %v7815_v57  ;;  %v7822_v42 = vadd.f32 %v7700_v59, %v15219_v3  ;;  %vm7977_vm6 = vcmp.ge.f32.partialorder %v7945_v26, 1.0  ;;  %v8521_v10 = vld [vmem:[%s17440_s8 + $0x188] sm:$0xff]  ;;  %v8512_v48 = vld [vmem:[%s17440_s8 + $0x140] sm:$0xff] }
 0x507   : > { %v7702_v27 = vpop.f32.mrf.mxu0  ;;  %v10941_v62 = vsel %vm7977_vm6, 1.0, %v17512_v35  ;;  %v8072_v58 = vsub.f32 1.0, %v10940_v7  ;;  %v8097_v19 = vmul.f32 %v8065_v20, %v15411_v1  ;;  %8128 = vst [vmem:[#allocation3 + $0xd0] sm:$0xff] %v8096_v33  ;;  %v8528_v1 = vld [vmem:[%s17440_s8 + $0x1c0] sm:$0xff]  ;;  %v8517_v61 = vld [vmem:[%s17440_s8 + $0x168] sm:$0xff] }
 0x508   : > { %v7953_v44 = vadd.f32 %v7921_v5, %v7889_v51  ;;  %v7896_v2 = vadd.f32 %v7847_v52, %v7822_v42  ;;  %v7823_v18 = vadd.f32 %v7702_v27, %v15230_v31  ;;  %vm7984_vm7 = vcmp.ge.f32.partialorder %v7952_v8, 1.0  ;;  %v8513_v45 = vld [vmem:[%s17440_s8 + $0x148] sm:$0xff]  ;;  %v8508_v56 = vld [vmem:[%s17440_s8 + $0x120] sm:$0xff] }
 0x509   : > { %v10948_v29 = vsel %vm7984_vm7, 1.0, %v17512_v35  ;;  %v8073_v3 = vsub.f32 1.0, %v10941_v62  ;;  %v8104_v30 = vmul.f32 %v8072_v58, %v15418_v38  ;;  %8129 = vst [vmem:[#allocation3 + $0xd8] sm:$0xff] %v8097_v19  ;;  %v8524_v38 = vld [vmem:[%s17440_s8 + $0x1a0] sm:$0xff]  ;;  %v8505_v57 = vld [vmem:[%s17440_s8 + $0x108] sm:$0xff] }
 0x50a   : > { %v7960_v0 = vadd.f32 %v7928_v32, %v7896_v2  ;;  %v7897_v47 = vadd.f32 %v7851_v37, %v7823_v18  ;;  %vm7985_vm8 = vcmp.ge.f32.partialorder %v7953_v44, 1.0  ;;  %v8080_v39 = vsub.f32 1.0, %v10948_v29  ;;  %v8504_v5 = vld [vmem:[%s17440_s8 + $0x100] sm:$0xff]  ;;  %v8501_v59 = vld [vmem:[%s17440_s8 + $0xe8] sm:$0xff] }
 0x50b   : > { %v10949_v28 = vsel %vm7985_vm8, 1.0, %v17512_v35  ;;  %v8105_v9 = vmul.f32 %v8073_v3, %v7945_v26  ;;  %8136 = vst [vmem:[#allocation3 + $0x78] sm:$0xff] %v8104_v30  ;;  %v8509_v26 = vld [vmem:[%s17440_s8 + $0x128] sm:$0xff]  ;;  %v8500_v7 = vld [vmem:[%s17440_s8 + $0xe0] sm:$0xff]  ;;  %v7854_v3 = vsub.s32 6, %v15195_v4 }
 0x50c   : > { %v7961_v52 = vadd.f32 %v7929_v53, %v7897_v47  ;;  %vm7992_vm9 = vcmp.ge.f32.partialorder %v7960_v0, 1.0  ;;  %v8081_v31 = vsub.f32 1.0, %v10949_v28  ;;  %v8112_v16 = vmul.f32 %v8080_v39, %v7952_v8  ;;  %v8497_v20 = vld [vmem:[%s17440_s8 + $0xc8] sm:$0xff]  ;;  %v8496_v33 = vld [vmem:[%s17440_s8 + $0xc0] sm:$0xff] }
 0x50d   : > { %v10956_v21 = vsel %vm7992_vm9, 1.0, %v17512_v35  ;;  %8137 = vst [vmem:[#allocation3 + $0x20] sm:$0xff] %v8105_v9  ;;  %v8493_v8 = vld [vmem:[%s17440_s8 + $0xa8] sm:$0xff]  ;;  %v8492_v51 = vld [vmem:[%s17440_s8 + $0xa0] sm:$0xff]  ;;  %v7858_v47 = vsub.s32 7, %v15195_v4  ;;  %v15579_v9 = vrot.slane %v15216_v6, %v7854_v3 }
 0x50e   : > { %vm7993_vm10 = vcmp.ge.f32.partialorder %v7961_v52, 1.0  ;;  %v8088_v11 = vsub.f32 1.0, %v10956_v21  ;;  %v8113_v55 = vmul.f32 %v8081_v31, %v7953_v44  ;;  %8144 = vst [vmem:[#allocation3 + $0xc0] sm:$0xff] %v8112_v16  ;;  %v8489_v42 = vld [vmem:[%s17440_s8 + $0x88] sm:$0xff]  ;;  %v8488_v32 = vld [vmem:[%s17440_s8 + $0x80] sm:$0xff] }
 0x50f   : > { %v10957_v37 = vsel %vm7993_vm10, 1.0, %v17512_v35  ;;  %10980 = vmatprep.subr.msk.mxu0 %vm7993_vm10, %v11162_v60  ;;  %v8485_v27 = vld [vmem:[%s17440_s8 + $0x68] sm:$0xff]  ;;  %v8484_v62 = vld [vmem:[%s17440_s8 + $0x60] sm:$0xff]  ;;  %v15589_v21 = vrot.slane %v15216_v6, %v7858_v47  ;;  %v7907_v6 = vld [vmem:[#allocation3 + $0x30] sm:$0xff] }
 0x510   : > { %v8089_v17 = vsub.f32 1.0, %v10957_v37  ;;  %v8120_v34 = vmul.f32 %v8088_v11, %v7960_v0  ;;  %10981 = vmatpush1.msk.msra.mxu0 %vm7992_vm9, %v11162_v60  ;;  %8145 = vst [vmem:[#allocation3 + $0x38] sm:$0xff] %v8113_v55  ;;  %v8481_v58 = vld [vmem:[%s17440_s8 + $0x48] sm:$0xff]  ;;  %v8480_v19 = vld [vmem:[%s17440_s8 + $0x40] sm:$0xff] }
 0x511   : > { %10982 = vmatprep.subr.msk.mxu0 %vm7985_vm8, %v11162_v60  ;;  %v8477_v44 = vld [vmem:[%s17440_s8 + $0x28] sm:$0xff]  ;;  %v8476_v2 = vld [vmem:[%s17440_s8 + $0x20] sm:$0xff] }
 0x512   : > { %v8121_v13 = vmul.f32 %v8089_v17, %v7961_v52  ;;  %8152 = vst [vmem:[#allocation3 + $0x10] sm:$0xff] %v8120_v34  ;;  %10983 = vmatpush1.msk.msra.mxu0 %vm7984_vm7, %v11162_v60  ;;  %v8473_v18 = vld [vmem:[%s17440_s8 + $0x8] sm:$0xff]  ;;  %v8472_v53 = vld [vmem:[%s17440_s8] sm:$0xff]  ;;  %vm9680_vm7 = vcmask 523264  }
 0x513   : > { %10984 = vmatprep.subr.msk.mxu0 %vm7977_vm6, %v11162_v60  ;;  %v8597_v29 = vld [vmem:[%s17440_s8 + $0x3e8] sm:$0xff]  ;;  %v8596_v30 = vld [vmem:[%s17440_s8 + $0x3e0] sm:$0xff] }
 0x514   : > { %8153 = vst [vmem:[#allocation3 + $0x80] sm:$0xff] %v8121_v13  ;;  %10985 = vmatpush1.msk.msra.mxu0 %vm7976_vm5, %v11162_v60  ;;  %v8593_v0 = vld [vmem:[%s17440_s8 + $0x3c8] sm:$0xff]  ;;  %v8592_v39 = vld [vmem:[%s17440_s8 + $0x3c0] sm:$0xff] }
 0x515   : > { %10986 = vmatprep.subr.msk.mxu0 %vm7969_vm4, %v11162_v60  ;;  %v8589_v28 = vld [vmem:[%s17440_s8 + $0x3a8] sm:$0xff]  ;;  %v8588_v52 = vld [vmem:[%s17440_s8 + $0x3a0] sm:$0xff] }
 0x516   : > { %10987 = vmatpush1.msk.msra.mxu0 %vm7968_vm3, %v11162_v60  ;;  %v8585_v4 = vld [vmem:[%s17440_s8 + $0x388] sm:$0xff]  ;;  %v8584_v11 = vld [vmem:[%s17440_s8 + $0x380] sm:$0xff] }
 0x517   : > { %10988 = vmatmul.mubr.msk.f32.vlgmr.msra.gmra.mxu0 %vm7053_vm1, %v15302_v24  ;;  %8984 = vmatprep.subr.mxu0 %v8533_v49  ;;  %v7906_v55 = vld [vmem:[#allocation3 + $0xe0] sm:$0xff]  ;;  %v8581_v17 = vld [vmem:[%s17440_s8 + $0x368] sm:$0xff] }
 0x518   : > { %8388 = vmatprep.mubr.f32.mxu0 %v17512_v35  ;;  %8985 = vmatpush1.msra.mxu0 %v8532_v36  ;;  %v8577_v36 = vld [vmem:[%s17440_s8 + $0x348] sm:$0xff] }
 0x519   : > { %8986 = vmatprep.subr.mxu0 %v8529_v22 }
 0x51a   : > { %8987 = vmatpush1.msra.mxu0 %v8528_v1 }
 0x51b   : > { %10989 = vmatmul.mubr.msk.f32.gmra.mxu0 %vm7053_vm1, %v15316_v63  ;;  %8988 = vmatprep.subr.mxu0 %v8525_v46 }
 0x51c   : > { %8989 = vmatpush1.msra.mxu0 %v8524_v38  ;;  %v7914_v38 = vld [vmem:[#allocation3] sm:$0xff] }
 0x51d   : > { %8990 = vmatprep.subr.mxu0 %v8521_v10 }
 0x51e   : > { %8991 = vmatpush1.msra.mxu0 %v8520_v12  ;;  %v8573_v12 = vld [vmem:[%s17440_s8 + $0x328] sm:$0xff] }
 0x51f   : > { %8992 = vmatprep.subr.mxu0 %v8517_v61 }
 0x520   : > { %8993 = vmatpush1.msra.mxu0 %v8516_v25 }
 0x521   : > { %8994 = vmatprep.subr.mxu0 %v8513_v45 }
 0x522   : > { %8995 = vmatpush1.msra.mxu0 %v8512_v48  ;;  %v7915_v48 = vld [vmem:[#allocation3 + $0x18] sm:$0xff] }
 0x523   : > { %8996 = vmatprep.subr.mxu0 %v8509_v26 }
 0x524   : > { %8997 = vmatpush1.msra.mxu0 %v8508_v56 }
 0x525   : > { %8998 = vmatprep.subr.mxu0 %v8505_v57  ;;  %v8569_v57 = vld [vmem:[%s17440_s8 + $0x308] sm:$0xff] }
 0x526   : > { %8999 = vmatpush1.msra.mxu0 %v8504_v5 }
 0x527   : > { %9000 = vmatprep.subr.mxu0 %v8501_v59 }
 0x528   : > { %9001 = vmatpush1.msra.mxu0 %v8500_v7  ;;  %v8568_v7 = vld [vmem:[%s17440_s8 + $0x300] sm:$0xff] }
 0x529   : > { %9002 = vmatprep.subr.mxu0 %v8497_v20  ;;  %v7922_v20 = vld [vmem:[#allocation3 + $0x28] sm:$0xff] }
 0x52a   : > { %9003 = vmatpush1.msra.mxu0 %v8496_v33 }
 0x52b   : > { %9004 = vmatprep.subr.mxu0 %v8493_v8 }
 0x52c   : > { %9005 = vmatpush1.msra.mxu0 %v8492_v51 }
 0x52d   : > { %9006 = vmatprep.subr.mxu0 %v8489_v42  ;;  %v8565_v42 = vld [vmem:[%s17440_s8 + $0x2e8] sm:$0xff] }
 0x52e   : > { %9007 = vmatpush1.msra.mxu0 %v8488_v32 }
 0x52f   : > { %9008 = vmatprep.subr.mxu0 %v8485_v27 }
 0x530   : > { %9009 = vmatpush1.msra.mxu0 %v8484_v62  ;;  %v8564_v62 = vld [vmem:[%s17440_s8 + $0x2e0] sm:$0xff] }
 0x531   : > { %9010 = vmatprep.subr.mxu0 %v8481_v58  ;;  %v7923_v58 = vld [vmem:[#allocation3 + $0xa8] sm:$0xff] }
 0x532   : > { %9011 = vmatpush1.msra.mxu0 %v8480_v19 }
 0x533   : > { %9012 = vmatprep.subr.mxu0 %v8477_v44 }
 0x534   : > { %9013 = vmatpush1.msra.mxu0 %v8476_v2 }
 0x535   : > { %9014 = vmatprep.subr.mxu0 %v8473_v18 }
 0x536   : > { %9015 = vmatpush1.msra.mxu0 %v8472_v53 }
 0x537   : > { %9016 = vmatprep.subr.mxu0 %v8597_v29 }
 0x538   : > { %9017 = vmatpush2.msra.mxu0 %v8596_v30  ;;  %v8560_v30 = vld [vmem:[%s17440_s8 + $0x2c0] sm:$0xff] }
 0x539   : > { %9018 = vmatprep.subr.mxu0 %v8593_v0  ;;  %v7930_v0 = vld [vmem:[#allocation3 + $0x40] sm:$0xff] }
 0x53a   : > { %v7771_v31 = vpop.f32.mrf.mxu1  ;;  %9019 = vmatpush2.msra.mxu0 %v8592_v39 }
 0x53b   : > { %v7800_v16 = vadd.f32 %v7771_v31, %v15175_v41  ;;  %9020 = vmatprep.subr.mxu0 %v8589_v28  ;;  %v8580_v41 = vld [vmem:[%s17440_s8 + $0x360] sm:$0xff] }
 0x53c   : > { %v7773_v37 = vpop.f32.mrf.mxu1  ;;  %9021 = vmatpush2.msra.mxu0 %v8588_v52 }
 0x53d   : > { %v7874_v34 = vadd.f32 %v15579_v9, %v7800_v16  ;;  %v7801_v13 = vadd.f32 %v7773_v37, %v15183_v50  ;;  %9022 = vmatprep.subr.mxu0 %v8585_v4  ;;  %v8576_v50 = vld [vmem:[%s17440_s8 + $0x340] sm:$0xff] }
 0x53e   : > { %v7777_v49 = vpop.f32.mrf.mxu1  ;;  %9023 = vmatpush2.msra.mxu0 %v8584_v11  ;;  %v8556_v11 = vld [vmem:[%s17440_s8 + $0x2a0] sm:$0xff] }
 0x53f   : > { %v15605_v22 = vadd.f32 %v7906_v55, %v7874_v34  ;;  %v7875_v1 = vadd.f32 %v15589_v21, %v7801_v13  ;;  %v7808_v46 = vadd.f32 %v7777_v49, %v15190_v23  ;;  %9024 = vmatprep.subr.mxu0 %v8581_v17  ;;  %v8572_v23 = vld [vmem:[%s17440_s8 + $0x320] sm:$0xff]  ;;  %v7931_v55 = vld [vmem:[#allocation3 + $0xc8] sm:$0xff] }
 0x540   : > { %v7779_v10 = vpop.f32.mrf.mxu1  ;;  %9025 = vmatpush2.msra.mxu0 %v8580_v41 }
 0x541   : > { %v15615_v61 = vadd.f32 %v7907_v6, %v7875_v1  ;;  %v7882_v25 = vadd.f32 %v15579_v9, %v7808_v46  ;;  %v7809_v45 = vadd.f32 %v7779_v10, %v15198_v14  ;;  %vm7970_vm11 = vcmp.ge.f32.partialorder %v15605_v22, 1.0  ;;  %9026 = vmatprep.subr.mxu0 %v8577_v36  ;;  %v8552_v6 = vld [vmem:[%s17440_s8 + $0x280] sm:$0xff]  ;;  %v8549_v1 = vld [vmem:[%s17440_s8 + $0x268] sm:$0xff] }
 0x542   : > { %v7783_v26 = vpop.f32.mrf.mxu1  ;;  %v10934_v56 = vsel %vm7970_vm11, 1.0, %v17512_v35  ;;  %9027 = vmatpush2.msra.mxu0 %v8576_v50 }
 0x543   : > { %v15629_v5 = vadd.f32 %v7914_v38, %v7882_v25  ;;  %v7883_v14 = vadd.f32 %v15589_v21, %v7809_v45  ;;  %v7816_v59 = vadd.f32 %v7783_v26, %v15204_v40  ;;  %vm7971_vm12 = vcmp.ge.f32.partialorder %v15615_v61, 1.0  ;;  %9028 = vmatprep.subr.mxu0 %v8573_v12  ;;  %v8548_v38 = vld [vmem:[%s17440_s8 + $0x260] sm:$0xff]  ;;  %v8545_v12 = vld [vmem:[%s17440_s8 + $0x248] sm:$0xff] }
 0x544   : > { %v7785_v33 = vpop.f32.mrf.mxu1  ;;  %v10935_v8 = vsel %vm7971_vm12, 1.0, %v17512_v35  ;;  %v8066_v51 = vsub.f32 1.0, %v10934_v56  ;;  %9029 = vmatpush2.msra.mxu0 %v8572_v23  ;;  %v8544_v23 = vld [vmem:[%s17440_s8 + $0x240] sm:$0xff]  ;;  %v8541_v26 = vld [vmem:[%s17440_s8 + $0x228] sm:$0xff] }
 0x545   : > { %v15643_v40 = vadd.f32 %v7915_v48, %v7883_v14  ;;  %v7890_v32 = vadd.f32 %v15579_v9, %v7816_v59  ;;  %v7817_v27 = vadd.f32 %v7785_v33, %v15211_v15  ;;  %vm7978_vm13 = vcmp.ge.f32.partialorder %v15629_v5, 1.0  ;;  %9030 = vmatprep.subr.mxu0 %v8569_v57  ;;  %v8561_v15 = vld [vmem:[%s17440_s8 + $0x2c8] sm:$0xff]  ;;  %v8540_v14 = vld [vmem:[%s17440_s8 + $0x220] sm:$0xff] }
 0x546   : > { %v7789_v19 = vpop.f32.mrf.mxu1  ;;  %v10942_v44 = vsel %vm7978_vm13, 1.0, %v17512_v35  ;;  %v8067_v2 = vsub.f32 1.0, %v10935_v8  ;;  %v8098_v18 = vmul.f32 %v8066_v51, %v15605_v22  ;;  %9031 = vmatpush2.msra.mxu0 %v8568_v7  ;;  %v8537_v59 = vld [vmem:[%s17440_s8 + $0x208] sm:$0xff]  ;;  %v8660_v51 = vld [vmem:[%s17440_s8 + $0x5e0] sm:$0xff] }
 0x547   : > { %v15658_v53 = vadd.f32 %v7922_v20, %v7890_v32  ;;  %v7891_v29 = vadd.f32 %v15589_v21, %v7817_v27  ;;  %v7824_v3 = vadd.f32 %v7789_v19, %v15223_v43  ;;  %vm7979_vm14 = vcmp.ge.f32.partialorder %v15643_v40, 1.0  ;;  %9032 = vmatprep.subr.mxu0 %v8565_v42  ;;  %v8557_v43 = vld [vmem:[%s17440_s8 + $0x2a8] sm:$0xff]  ;;  %v8536_v20 = vld [vmem:[%s17440_s8 + $0x200] sm:$0xff] }
 0x548   : > { %v7791_v47 = vpop.f32.mrf.mxu1  ;;  %v10943_v39 = vsel %vm7979_vm14, 1.0, %v17512_v35  ;;  %v8074_v28 = vsub.f32 1.0, %v10942_v44  ;;  %v8099_v52 = vmul.f32 %v8067_v2, %v15615_v61  ;;  %8130 = vst [vmem:[#allocation3 + $0xe0] sm:$0xff] %v8098_v18  ;;  %9033 = vmatpush2.msra.mxu0 %v8564_v62  ;;  %v8789_v33 = vld [vmem:[%s17440_s8 + $0x9e8] sm:$0xff]  ;;  %v8656_v61 = vld [vmem:[%s17440_s8 + $0x5c0] sm:$0xff] }
 0x549   : > { %v7955_v31 = vadd.f32 %v7923_v58, %v7891_v29  ;;  %v7898_v4 = vadd.f32 %v15579_v9, %v7824_v3  ;;  %v7825_v16 = vadd.f32 %v7791_v47, %v15234_v54  ;;  %vm7986_vm15 = vcmp.ge.f32.partialorder %v15658_v53, 1.0  ;;  %9034 = vmatprep.subr.mxu0 %v8561_v15  ;;  %v8553_v54 = vld [vmem:[%s17440_s8 + $0x288] sm:$0xff]  ;;  %v8652_v42 = vld [vmem:[%s17440_s8 + $0x5a0] sm:$0xff] }
 0x54a   : > { %v10950_v37 = vsel %vm7986_vm15, 1.0, %v17512_v35  ;;  %v8075_v17 = vsub.f32 1.0, %v10943_v39  ;;  %v8106_v34 = vmul.f32 %v8074_v28, %v15629_v5  ;;  %8131 = vst [vmem:[#allocation3 + $0x30] sm:$0xff] %v8099_v52  ;;  %9035 = vmatpush2.msra.mxu0 %v8560_v30  ;;  %v8661_v8 = vld [vmem:[%s17440_s8 + $0x5e8] sm:$0xff]  ;;  %v8644_v27 = vld [vmem:[%s17440_s8 + $0x560] sm:$0xff] }
 0x54b   : > { %v7962_v9 = vadd.f32 %v7930_v0, %v7898_v4  ;;  %v7899_v13 = vadd.f32 %v15589_v21, %v7825_v16  ;;  %vm7987_vm0 = vcmp.ge.f32.partialorder %v7955_v31, 1.0  ;;  %v8082_v41 = vsub.f32 1.0, %v10950_v37  ;;  %9036 = vmatprep.subr.mxu0 %v8557_v43  ;;  %v8657_v5 = vld [vmem:[%s17440_s8 + $0x5c8] sm:$0xff]  ;;  %v8640_v62 = vld [vmem:[%s17440_s8 + $0x540] sm:$0xff] }
 0x54c   : > { %v10951_v49 = vsel %vm7987_vm0, 1.0, %v17512_v35  ;;  %v8107_v36 = vmul.f32 %v8075_v17, %v15643_v40  ;;  %8138 = vst [vmem:[#allocation3] sm:$0xff] %v8106_v34  ;;  %9037 = vmatpush2.msra.mxu0 %v8556_v11  ;;  %v8653_v22 = vld [vmem:[%s17440_s8 + $0x5a8] sm:$0xff]  ;;  %v8648_v40 = vld [vmem:[%s17440_s8 + $0x580] sm:$0xff] }
 0x54d   : > { %v7963_v46 = vadd.f32 %v7931_v55, %v7899_v13  ;;  %vm7994_vm2 = vcmp.ge.f32.partialorder %v7962_v9, 1.0  ;;  %v8083_v21 = vsub.f32 1.0, %v10951_v49  ;;  %v8114_v50 = vmul.f32 %v8082_v41, %v15658_v53  ;;  %9038 = vmatprep.subr.mxu0 %v8553_v54  ;;  %v8645_v32 = vld [vmem:[%s17440_s8 + $0x568] sm:$0xff]  ;;  %v8636_v19 = vld [vmem:[%s17440_s8 + $0x520] sm:$0xff] }
 0x54e   : > { %v10958_v10 = vsel %vm7994_vm2, 1.0, %v17512_v35  ;;  %8139 = vst [vmem:[#allocation3 + $0x18] sm:$0xff] %v8107_v36  ;;  %9039 = vmatpush2.msra.mxu0 %v8552_v6  ;;  %v8637_v58 = vld [vmem:[%s17440_s8 + $0x528] sm:$0xff]  ;;  %v8632_v2 = vld [vmem:[%s17440_s8 + $0x500] sm:$0xff] }
 0x54f   : > { %vm7995_vm3 = vcmp.ge.f32.partialorder %v7963_v46, 1.0  ;;  %v8090_v25 = vsub.f32 1.0, %v10958_v10  ;;  %v8115_v45 = vmul.f32 %v8083_v21, %v7955_v31  ;;  %8146 = vst [vmem:[#allocation3 + $0x28] sm:$0xff] %v8114_v50  ;;  %9040 = vmatprep.subr.mxu0 %v8549_v1  ;;  %v8633_v44 = vld [vmem:[%s17440_s8 + $0x508] sm:$0xff]  ;;  %v8628_v15 = vld [vmem:[%s17440_s8 + $0x4e0] sm:$0xff] }
 0x550   : > { %v10959_v48 = vsel %vm7995_vm3, 1.0, %v17512_v35  ;;  %10990 = vmatprep.subr.msk.mxu1 %vm7995_vm3, %v11162_v60  ;;  %9041 = vmatpush2.msra.mxu0 %v8548_v38  ;;  %v8629_v18 = vld [vmem:[%s17440_s8 + $0x4e8] sm:$0xff]  ;;  %v8624_v29 = vld [vmem:[%s17440_s8 + $0x4c0] sm:$0xff] }
 0x551   : > { %v8091_v56 = vsub.f32 1.0, %v10959_v48  ;;  %v8122_v57 = vmul.f32 %v8090_v25, %v7962_v9  ;;  %10991 = vmatpush1.msk.msra.mxu1 %vm7994_vm2, %v11162_v60  ;;  %8147 = vst [vmem:[#allocation3 + $0xa8] sm:$0xff] %v8115_v45  ;;  %9042 = vmatprep.subr.mxu0 %v8545_v12  ;;  %v8625_v53 = vld [vmem:[%s17440_s8 + $0x4c8] sm:$0xff]  ;;  %v8620_v30 = vld [vmem:[%s17440_s8 + $0x4a0] sm:$0xff]  ;;  %vm10020_vm2 = vcmask 74752  }
 0x552   : > { %10992 = vmatprep.subr.msk.mxu1 %vm7987_vm0, %v11162_v60  ;;  %9043 = vmatpush2.msra.mxu0 %v8544_v23  ;;  %v8621_v3 = vld [vmem:[%s17440_s8 + $0x4a8] sm:$0xff]  ;;  %v8616_v47 = vld [vmem:[%s17440_s8 + $0x480] sm:$0xff] }
 0x553   : > { %v8123_v7 = vmul.f32 %v8091_v56, %v7963_v46  ;;  %8154 = vst [vmem:[#allocation3 + $0x40] sm:$0xff] %v8122_v57  ;;  %10993 = vmatpush1.msk.msra.mxu1 %vm7986_vm15, %v11162_v60  ;;  %9044 = vmatprep.subr.mxu0 %v8541_v26  ;;  %v8617_v0 = vld [vmem:[%s17440_s8 + $0x488] sm:$0xff]  ;;  %v8612_v28 = vld [vmem:[%s17440_s8 + $0x460] sm:$0xff]  ;;  %vm9936_vm15 = vcmask 572416  }
 0x554   : > { %10994 = vmatprep.subr.msk.mxu1 %vm7979_vm14, %v11162_v60  ;;  %9045 = vmatpush2.msra.mxu0 %v8540_v14  ;;  %v8613_v39 = vld [vmem:[%s17440_s8 + $0x468] sm:$0xff]  ;;  %v8608_v43 = vld [vmem:[%s17440_s8 + $0x440] sm:$0xff]  ;;  %vm9842_vm14 = vcmask 113664  }
 0x555   : > { %8155 = vst [vmem:[#allocation3 + $0xc8] sm:$0xff] %v8123_v7  ;;  %10995 = vmatpush1.msk.msra.mxu1 %vm7978_vm13, %v11162_v60  ;;  %9046 = vmatprep.subr.mxu0 %v8537_v59  ;;  %v8609_v52 = vld [vmem:[%s17440_s8 + $0x448] sm:$0xff]  ;;  %v8604_v16 = vld [vmem:[%s17440_s8 + $0x420] sm:$0xff]  ;;  %vm9846_vm13 = vcmask 1045504  }
 0x556   : > { %10996 = vmatprep.subr.msk.mxu1 %vm7971_vm12, %v11162_v60  ;;  %9047 = vmatpush2.msra.mxu0 %v8536_v20  ;;  %v8605_v31 = vld [vmem:[%s17440_s8 + $0x428] sm:$0xff]  ;;  %v8788_v37 = vld [vmem:[%s17440_s8 + $0x9e0] sm:$0xff]  ;;  %vm11163_vm12 = vmmov 0  }
 0x557   : > { %10997 = vmatpush1.msk.msra.mxu1 %vm7970_vm11, %v11162_v60  ;;  %9138 = vmatprep.subr.mxu0 %v8789_v33  ;;  %v8601_v11 = vld [vmem:[%s17440_s8 + $0x408] sm:$0xff]  ;;  %v8600_v17 = vld [vmem:[%s17440_s8 + $0x400] sm:$0xff] }
 0x558   : > { %10998 = vmatmul.mubr.msk.f32.vlgmr.msra.gmra.mxu1 %vm7053_vm1, %v15302_v24  ;;  %9061 = vmatprep.subr.mxu1 %v8661_v8  ;;  %v8649_v24 = vld [vmem:[%s17440_s8 + $0x588] sm:$0xff]  ;;  %v8784_v9 = vld [vmem:[%s17440_s8 + $0x9c0] sm:$0xff] }
 0x559   : > { %8465 = vmatprep.mubr.f32.mxu1 %v17512_v35  ;;  %9062 = vmatpush1.msra.mxu1 %v8660_v51  ;;  %v8785_v34 = vld [vmem:[%s17440_s8 + $0x9c8] sm:$0xff]  ;;  %v8724_v13 = vld [vmem:[%s17440_s8 + $0x7e0] sm:$0xff] }
 0x55a   : > { %9063 = vmatprep.subr.mxu1 %v8657_v5  ;;  %v8725_v54 = vld [vmem:[%s17440_s8 + $0x7e8] sm:$0xff]  ;;  %v8780_v49 = vld [vmem:[%s17440_s8 + $0x9a0] sm:$0xff] }
 0x55b   : > { %9064 = vmatpush1.msra.mxu1 %v8656_v61  ;;  %v8781_v41 = vld [vmem:[%s17440_s8 + $0x9a8] sm:$0xff]  ;;  %v8720_v36 = vld [vmem:[%s17440_s8 + $0x7c0] sm:$0xff] }
 0x55c   : > { %10999 = vmatmul.mubr.msk.f32.gmra.mxu1 %vm7053_vm1, %v15316_v63  ;;  %9065 = vmatprep.subr.mxu1 %v8653_v22  ;;  %v8641_v63 = vld [vmem:[%s17440_s8 + $0x548] sm:$0xff]  ;;  %v8776_v21 = vld [vmem:[%s17440_s8 + $0x980] sm:$0xff] }
 0x55d   : > { %9066 = vmatpush1.msra.mxu1 %v8652_v42  ;;  %v8721_v6 = vld [vmem:[%s17440_s8 + $0x7c8] sm:$0xff]  ;;  %v8716_v50 = vld [vmem:[%s17440_s8 + $0x7a0] sm:$0xff] }
 0x55e   : > { %9067 = vmatprep.subr.mxu1 %v8649_v24  ;;  %v8777_v1 = vld [vmem:[%s17440_s8 + $0x988] sm:$0xff]  ;;  %v8772_v12 = vld [vmem:[%s17440_s8 + $0x960] sm:$0xff] }
 0x55f   : > { %9068 = vmatpush1.msra.mxu1 %v8648_v40  ;;  %v8717_v46 = vld [vmem:[%s17440_s8 + $0x7a8] sm:$0xff]  ;;  %v8712_v25 = vld [vmem:[%s17440_s8 + $0x780] sm:$0xff] }
 0x560   : > { %9069 = vmatprep.subr.mxu1 %v8645_v32  ;;  %v8773_v38 = vld [vmem:[%s17440_s8 + $0x968] sm:$0xff]  ;;  %v8768_v48 = vld [vmem:[%s17440_s8 + $0x940] sm:$0xff] }
 0x561   : > { %9070 = vmatpush1.msra.mxu1 %v8644_v27  ;;  %v8713_v10 = vld [vmem:[%s17440_s8 + $0x788] sm:$0xff]  ;;  %v8708_v26 = vld [vmem:[%s17440_s8 + $0x760] sm:$0xff] }
 0x562   : > { %9071 = vmatprep.subr.mxu1 %v8641_v63  ;;  %v8769_v45 = vld [vmem:[%s17440_s8 + $0x948] sm:$0xff]  ;;  %v8764_v14 = vld [vmem:[%s17440_s8 + $0x920] sm:$0xff] }
 0x563   : > { %9072 = vmatpush1.msra.mxu1 %v8640_v62  ;;  %v8709_v23 = vld [vmem:[%s17440_s8 + $0x768] sm:$0xff]  ;;  %v8704_v59 = vld [vmem:[%s17440_s8 + $0x740] sm:$0xff] }
 0x564   : > { %9073 = vmatprep.subr.mxu1 %v8637_v58  ;;  %v8765_v56 = vld [vmem:[%s17440_s8 + $0x928] sm:$0xff]  ;;  %v8760_v33 = vld [vmem:[%s17440_s8 + $0x900] sm:$0xff] }
 0x565   : > { %9074 = vmatpush1.msra.mxu1 %v8636_v19  ;;  %v8705_v57 = vld [vmem:[%s17440_s8 + $0x748] sm:$0xff]  ;;  %v8700_v8 = vld [vmem:[%s17440_s8 + $0x720] sm:$0xff] }
 0x566   : > { %9075 = vmatprep.subr.mxu1 %v8633_v44  ;;  %v8761_v7 = vld [vmem:[%s17440_s8 + $0x908] sm:$0xff]  ;;  %v8756_v61 = vld [vmem:[%s17440_s8 + $0x8e0] sm:$0xff] }
 0x567   : > { %9076 = vmatpush1.msra.mxu1 %v8632_v2  ;;  %v8701_v20 = vld [vmem:[%s17440_s8 + $0x728] sm:$0xff]  ;;  %v8696_v22 = vld [vmem:[%s17440_s8 + $0x700] sm:$0xff] }
 0x568   : > { %9077 = vmatprep.subr.mxu1 %v8629_v18  ;;  %v8757_v51 = vld [vmem:[%s17440_s8 + $0x8e8] sm:$0xff]  ;;  %v8752_v40 = vld [vmem:[%s17440_s8 + $0x8c0] sm:$0xff] }
 0x569   : > { %9078 = vmatpush1.msra.mxu1 %v8628_v15  ;;  %v8697_v5 = vld [vmem:[%s17440_s8 + $0x708] sm:$0xff]  ;;  %v8692_v32 = vld [vmem:[%s17440_s8 + $0x6e0] sm:$0xff] }
 0x56a   : > { %9079 = vmatprep.subr.mxu1 %v8625_v53  ;;  %v8753_v42 = vld [vmem:[%s17440_s8 + $0x8c8] sm:$0xff]  ;;  %v8748_v62 = vld [vmem:[%s17440_s8 + $0x8a0] sm:$0xff] }
 0x56b   : > { %9080 = vmatpush1.msra.mxu1 %v8624_v29  ;;  %v8693_v24 = vld [vmem:[%s17440_s8 + $0x6e8] sm:$0xff]  ;;  %v8688_v58 = vld [vmem:[%s17440_s8 + $0x6c0] sm:$0xff] }
 0x56c   : > { %9081 = vmatprep.subr.mxu1 %v8621_v3  ;;  %v8749_v27 = vld [vmem:[%s17440_s8 + $0x8a8] sm:$0xff]  ;;  %v8744_v2 = vld [vmem:[%s17440_s8 + $0x880] sm:$0xff] }
 0x56d   : > { %9082 = vmatpush1.msra.mxu1 %v8620_v30  ;;  %v8689_v63 = vld [vmem:[%s17440_s8 + $0x6c8] sm:$0xff]  ;;  %v8684_v18 = vld [vmem:[%s17440_s8 + $0x6a0] sm:$0xff] }
 0x56e   : > { %9083 = vmatprep.subr.mxu1 %v8617_v0  ;;  %v8745_v19 = vld [vmem:[%s17440_s8 + $0x888] sm:$0xff]  ;;  %v8740_v29 = vld [vmem:[%s17440_s8 + $0x860] sm:$0xff] }
 0x56f   : > { %9084 = vmatpush1.msra.mxu1 %v8616_v47  ;;  %v8685_v44 = vld [vmem:[%s17440_s8 + $0x6a8] sm:$0xff]  ;;  %v8680_v3 = vld [vmem:[%s17440_s8 + $0x680] sm:$0xff] }
 0x570   : > { %9085 = vmatprep.subr.mxu1 %v8613_v39  ;;  %v8741_v15 = vld [vmem:[%s17440_s8 + $0x868] sm:$0xff]  ;;  %v8736_v47 = vld [vmem:[%s17440_s8 + $0x840] sm:$0xff] }
 0x571   : > { %9086 = vmatpush1.msra.mxu1 %v8612_v28  ;;  %v15836_v4 = vpop.f32.mrf.mxu0  ;;  %v8681_v53 = vld [vmem:[%s17440_s8 + $0x688] sm:$0xff]  ;;  %v8676_v39 = vld [vmem:[%s17440_s8 + $0x660] sm:$0xff] }
 0x572   : > { %9087 = vmatprep.subr.mxu1 %v8609_v52  ;;  %v8737_v30 = vld [vmem:[%s17440_s8 + $0x848] sm:$0xff] }
 0x573   : > { %9088 = vmatpush1.msra.mxu1 %v8608_v43  ;;  %v15844_v55 = vpop.f32.mrf.mxu0  ;;  %v8677_v0 = vld [vmem:[%s17440_s8 + $0x668] sm:$0xff] }
 0x574   : > { %9089 = vmatprep.subr.mxu1 %v8605_v31  ;;  %9048 = vmatprep.mubr.f32.mxu0 %v15844_v55  ;;  %v8733_v28 = vld [vmem:[%s17440_s8 + $0x828] sm:$0xff]  ;;  %v8732_v31 = vld [vmem:[%s17440_s8 + $0x820] sm:$0xff] }
 0x575   : > { %9090 = vmatpush1.msra.mxu1 %v8604_v16  ;;  %9049 = vmatmul.mubr.f32.vlgmr.msra.gmra.mxu0 %v15836_v4  ;;  %v8673_v52 = vld [vmem:[%s17440_s8 + $0x648] sm:$0xff]  ;;  %v16016_v43 = vpop.f32.mrf.mxu0  ;;  %v8672_v16 = vld [vmem:[%s17440_s8 + $0x640] sm:$0xff] }
 0x576   : > { %9091 = vmatprep.subr.mxu1 %v8601_v11  ;;  %9139 = vmatpush1.msra.mxu0 %v8788_v37  ;;  %v8729_v11 = vld [vmem:[%s17440_s8 + $0x808] sm:$0xff] }
 0x577   : > { %9092 = vmatpush1.msra.mxu1 %v8600_v17  ;;  %9140 = vmatprep.subr.mxu0 %v8785_v34  ;;  %v8669_v37 = vld [vmem:[%s17440_s8 + $0x628] sm:$0xff]  ;;  %v8728_v17 = vld [vmem:[%s17440_s8 + $0x800] sm:$0xff] }
 0x578   : > { %9093 = vmatprep.subr.mxu1 %v8725_v54  ;;  %9141 = vmatpush1.msra.mxu0 %v8784_v9  ;;  %v8668_v34 = vld [vmem:[%s17440_s8 + $0x620] sm:$0xff]  ;;  %v8853_v54 = vld [vmem:[%s17440_s8 + $0xbe8] sm:$0xff]  ;;  %v16039_v9 = vpop.f32.mrf.mxu0 }
 0x579   : > { %9094 = vmatpush2.msra.mxu1 %v8724_v13  ;;  %9142 = vmatprep.subr.mxu0 %v8781_v41  ;;  %v8852_v13 = vld [vmem:[%s17440_s8 + $0xbe0] sm:$0xff]  ;;  %v8665_v41 = vld [vmem:[%s17440_s8 + $0x608] sm:$0xff] }
 0x57a   : > { %9095 = vmatprep.subr.mxu1 %v8721_v6  ;;  %9143 = vmatpush1.msra.mxu0 %v8780_v49  ;;  %v8849_v6 = vld [vmem:[%s17440_s8 + $0xbc8] sm:$0xff]  ;;  %v8848_v49 = vld [vmem:[%s17440_s8 + $0xbc0] sm:$0xff] }
 0x57b   : > { %9096 = vmatpush2.msra.mxu1 %v8720_v36  ;;  %9144 = vmatprep.subr.mxu0 %v8777_v1  ;;  %v8664_v36 = vld [vmem:[%s17440_s8 + $0x600] sm:$0xff]  ;;  %v8845_v1 = vld [vmem:[%s17440_s8 + $0xba8] sm:$0xff] }
 0x57c   : > { %9097 = vmatprep.subr.mxu1 %v8717_v46  ;;  %9145 = vmatpush1.msra.mxu0 %v8776_v21  ;;  %v8844_v21 = vld [vmem:[%s17440_s8 + $0xba0] sm:$0xff] }
 0x57d   : > { %9098 = vmatpush2.msra.mxu1 %v8716_v50  ;;  %9146 = vmatprep.subr.mxu0 %v8773_v38  ;;  %v8841_v50 = vld [vmem:[%s17440_s8 + $0xb88] sm:$0xff] }
 0x57e   : > { %9099 = vmatprep.subr.mxu1 %v8713_v10  ;;  %9147 = vmatpush1.msra.mxu0 %v8772_v12  ;;  %v8917_v10 = vld [vmem:[%s17440_s8 + $0xde8] sm:$0xff]  ;;  %v8840_v12 = vld [vmem:[%s17440_s8 + $0xb80] sm:$0xff] }
 0x57f   : > { %9100 = vmatpush2.msra.mxu1 %v8712_v25  ;;  %9148 = vmatprep.subr.mxu0 %v8769_v45  ;;  %v8916_v25 = vld [vmem:[%s17440_s8 + $0xde0] sm:$0xff]  ;;  %v8837_v45 = vld [vmem:[%s17440_s8 + $0xb68] sm:$0xff] }
 0x580   : > { %9101 = vmatprep.subr.mxu1 %v8709_v23  ;;  %9149 = vmatpush1.msra.mxu0 %v8768_v48  ;;  %v8913_v23 = vld [vmem:[%s17440_s8 + $0xdc8] sm:$0xff]  ;;  %v8836_v48 = vld [vmem:[%s17440_s8 + $0xb60] sm:$0xff] }
 0x581   : > { %9102 = vmatpush2.msra.mxu1 %v8708_v26  ;;  %9150 = vmatprep.subr.mxu0 %v8765_v56  ;;  %v8912_v26 = vld [vmem:[%s17440_s8 + $0xdc0] sm:$0xff]  ;;  %v8833_v56 = vld [vmem:[%s17440_s8 + $0xb48] sm:$0xff] }
 0x582   : > { %9103 = vmatprep.subr.mxu1 %v8705_v57  ;;  %9151 = vmatpush1.msra.mxu0 %v8764_v14  ;;  %v8909_v57 = vld [vmem:[%s17440_s8 + $0xda8] sm:$0xff]  ;;  %v8832_v14 = vld [vmem:[%s17440_s8 + $0xb40] sm:$0xff] }
 0x583   : > { %9104 = vmatpush2.msra.mxu1 %v8704_v59  ;;  %9152 = vmatprep.subr.mxu0 %v8761_v7  ;;  %v8908_v59 = vld [vmem:[%s17440_s8 + $0xda0] sm:$0xff]  ;;  %v8829_v7 = vld [vmem:[%s17440_s8 + $0xb28] sm:$0xff] }
 0x584   : > { %9105 = vmatprep.subr.mxu1 %v8701_v20  ;;  %9153 = vmatpush1.msra.mxu0 %v8760_v33  ;;  %v8905_v20 = vld [vmem:[%s17440_s8 + $0xd88] sm:$0xff]  ;;  %v8828_v33 = vld [vmem:[%s17440_s8 + $0xb20] sm:$0xff] }
 0x585   : > { %9106 = vmatpush2.msra.mxu1 %v8700_v8  ;;  %9154 = vmatprep.subr.mxu0 %v8757_v51  ;;  %v8904_v8 = vld [vmem:[%s17440_s8 + $0xd80] sm:$0xff]  ;;  %v8825_v51 = vld [vmem:[%s17440_s8 + $0xb08] sm:$0xff] }
 0x586   : > { %9107 = vmatprep.subr.mxu1 %v8697_v5  ;;  %9155 = vmatpush1.msra.mxu0 %v8756_v61  ;;  %v8901_v5 = vld [vmem:[%s17440_s8 + $0xd68] sm:$0xff]  ;;  %v8824_v61 = vld [vmem:[%s17440_s8 + $0xb00] sm:$0xff] }
 0x587   : > { %9108 = vmatpush2.msra.mxu1 %v8696_v22  ;;  %9156 = vmatprep.subr.mxu0 %v8753_v42  ;;  %v8900_v22 = vld [vmem:[%s17440_s8 + $0xd60] sm:$0xff]  ;;  %v8821_v42 = vld [vmem:[%s17440_s8 + $0xae8] sm:$0xff] }
 0x588   : > { %9109 = vmatprep.subr.mxu1 %v8693_v24  ;;  %9157 = vmatpush1.msra.mxu0 %v8752_v40  ;;  %v8897_v24 = vld [vmem:[%s17440_s8 + $0xd48] sm:$0xff]  ;;  %v8820_v40 = vld [vmem:[%s17440_s8 + $0xae0] sm:$0xff] }
 0x589   : > { %9110 = vmatpush2.msra.mxu1 %v8692_v32  ;;  %9158 = vmatprep.subr.mxu0 %v8749_v27  ;;  %v8896_v32 = vld [vmem:[%s17440_s8 + $0xd40] sm:$0xff]  ;;  %v8817_v27 = vld [vmem:[%s17440_s8 + $0xac8] sm:$0xff] }
 0x58a   : > { %9111 = vmatprep.subr.mxu1 %v8689_v63  ;;  %9159 = vmatpush1.msra.mxu0 %v8748_v62  ;;  %v8893_v63 = vld [vmem:[%s17440_s8 + $0xd28] sm:$0xff]  ;;  %v8816_v62 = vld [vmem:[%s17440_s8 + $0xac0] sm:$0xff] }
 0x58b   : > { %9112 = vmatpush2.msra.mxu1 %v8688_v58  ;;  %9160 = vmatprep.subr.mxu0 %v8745_v19  ;;  %v8892_v58 = vld [vmem:[%s17440_s8 + $0xd20] sm:$0xff]  ;;  %v8813_v19 = vld [vmem:[%s17440_s8 + $0xaa8] sm:$0xff] }
 0x58c   : > { %9113 = vmatprep.subr.mxu1 %v8685_v44  ;;  %9161 = vmatpush1.msra.mxu0 %v8744_v2  ;;  %v8889_v44 = vld [vmem:[%s17440_s8 + $0xd08] sm:$0xff]  ;;  %v8812_v2 = vld [vmem:[%s17440_s8 + $0xaa0] sm:$0xff] }
 0x58d   : > { %9114 = vmatpush2.msra.mxu1 %v8684_v18  ;;  %9162 = vmatprep.subr.mxu0 %v8741_v15  ;;  %v8888_v18 = vld [vmem:[%s17440_s8 + $0xd00] sm:$0xff]  ;;  %v8809_v15 = vld [vmem:[%s17440_s8 + $0xa88] sm:$0xff] }
 0x58e   : > { %9115 = vmatprep.subr.mxu1 %v8681_v53  ;;  %9163 = vmatpush1.msra.mxu0 %v8740_v29  ;;  %v8885_v53 = vld [vmem:[%s17440_s8 + $0xce8] sm:$0xff]  ;;  %v8808_v29 = vld [vmem:[%s17440_s8 + $0xa80] sm:$0xff] }
 0x58f   : > { %9116 = vmatpush2.msra.mxu1 %v8680_v3  ;;  %9164 = vmatprep.subr.mxu0 %v8737_v30  ;;  %v8884_v3 = vld [vmem:[%s17440_s8 + $0xce0] sm:$0xff]  ;;  %v8805_v30 = vld [vmem:[%s17440_s8 + $0xa68] sm:$0xff] }
 0x590   : > { %9117 = vmatprep.subr.mxu1 %v8677_v0  ;;  %9165 = vmatpush1.msra.mxu0 %v8736_v47  ;;  %v8881_v0 = vld [vmem:[%s17440_s8 + $0xcc8] sm:$0xff]  ;;  %v8804_v47 = vld [vmem:[%s17440_s8 + $0xa60] sm:$0xff] }
 0x591   : > { %9118 = vmatpush2.msra.mxu1 %v8676_v39  ;;  %9166 = vmatprep.subr.mxu0 %v8733_v28  ;;  %v8880_v39 = vld [vmem:[%s17440_s8 + $0xcc0] sm:$0xff]  ;;  %v8801_v28 = vld [vmem:[%s17440_s8 + $0xa48] sm:$0xff] }
 0x592   : > { %9119 = vmatprep.subr.mxu1 %v8673_v52  ;;  %9167 = vmatpush1.msra.mxu0 %v8732_v31  ;;  %v8877_v52 = vld [vmem:[%s17440_s8 + $0xca8] sm:$0xff]  ;;  %v8800_v31 = vld [vmem:[%s17440_s8 + $0xa40] sm:$0xff] }
 0x593   : > { %9120 = vmatpush2.msra.mxu1 %v8672_v16  ;;  %9168 = vmatprep.subr.mxu0 %v8729_v11  ;;  %v8876_v16 = vld [vmem:[%s17440_s8 + $0xca0] sm:$0xff]  ;;  %v8797_v11 = vld [vmem:[%s17440_s8 + $0xa28] sm:$0xff] }
 0x594   : > { %9121 = vmatprep.subr.mxu1 %v8669_v37  ;;  %9169 = vmatpush1.msra.mxu0 %v8728_v17  ;;  %v8873_v37 = vld [vmem:[%s17440_s8 + $0xc88] sm:$0xff]  ;;  %v8796_v17 = vld [vmem:[%s17440_s8 + $0xa20] sm:$0xff] }
 0x595   : > { %9122 = vmatpush2.msra.mxu1 %v8668_v34  ;;  %9170 = vmatprep.subr.mxu0 %v8853_v54  ;;  %v8872_v34 = vld [vmem:[%s17440_s8 + $0xc80] sm:$0xff] }
 0x596   : > { %9054 = vmatprep.mubr.f32.mxu0 %v16039_v9  ;;  %9171 = vmatpush2.msra.mxu0 %v8852_v13  ;;  %v8793_v13 = vld [vmem:[%s17440_s8 + $0xa08] sm:$0xff] }
 0x597   : > { %v16060_v46 = vpop.f32.mrf.mxu1  ;;  %9123 = vmatprep.subr.mxu1 %v8665_v41  ;;  %9172 = vmatprep.subr.mxu0 %v8849_v6  ;;  %v8869_v41 = vld [vmem:[%s17440_s8 + $0xc68] sm:$0xff]  ;;  %v8792_v6 = vld [vmem:[%s17440_s8 + $0xa00] sm:$0xff] }
 0x598   : > { %9055 = vmatmul.mubr.f32.gmra.mxu0 %v16016_v43  ;;  %9124 = vmatpush2.msra.mxu1 %v8664_v36  ;;  %v8535_v36 = vld [vmem:[%s17440_s8 + $0x1f8] sm:$0xff] }
 0x599   : > { %9173 = vmatpush2.msra.mxu0 %v8848_v49  ;;  %v16069_v38 = vpop.f32.mrf.mxu1  ;;  %9215 = vmatprep.subr.mxu1 %v8917_v10  ;;  %v8868_v49 = vld [vmem:[%s17440_s8 + $0xc60] sm:$0xff]  ;;  %v8861_v10 = vld [vmem:[%s17440_s8 + $0xc28] sm:$0xff] }
 0x59a   : > { %9174 = vmatprep.subr.mxu0 %v8845_v1  ;;  %9125 = vmatprep.mubr.f32.mxu1 %v16069_v38  ;;  %v8865_v1 = vld [vmem:[%s17440_s8 + $0xc48] sm:$0xff] }
 0x59b   : > { %9175 = vmatpush2.msra.mxu0 %v8844_v21  ;;  %9126 = vmatmul.mubr.f32.vlgmr.msra.gmra.mxu1 %v16060_v46  ;;  %v16214_v54 = vpop.f32.mrf.mxu1  ;;  %v8864_v21 = vld [vmem:[%s17440_s8 + $0xc40] sm:$0xff] }
 0x59c   : > { %9176 = vmatprep.subr.mxu0 %v8841_v50  ;;  %9216 = vmatpush1.msra.mxu1 %v8916_v25  ;;  %v8857_v25 = vld [vmem:[%s17440_s8 + $0xc08] sm:$0xff] }
 0x59d   : > { %9177 = vmatpush2.msra.mxu0 %v8840_v12  ;;  %9217 = vmatprep.subr.mxu1 %v8913_v23  ;;  %v16237_v50 = vpop.f32.mrf.mxu1  ;;  %v8860_v12 = vld [vmem:[%s17440_s8 + $0xc20] sm:$0xff]  ;;  %v8981_v23 = vld [vmem:[%s17440_s8 + $0xfe8] sm:$0xff] }
 0x59e   : > { %9178 = vmatprep.subr.mxu0 %v8837_v45  ;;  %9218 = vmatpush1.msra.mxu1 %v8912_v26  ;;  %v8856_v45 = vld [vmem:[%s17440_s8 + $0xc00] sm:$0xff]  ;;  %v8977_v26 = vld [vmem:[%s17440_s8 + $0xfc8] sm:$0xff] }
 0x59f   : > { %9179 = vmatpush2.msra.mxu0 %v8836_v48  ;;  %9219 = vmatprep.subr.mxu1 %v8909_v57  ;;  %v8980_v48 = vld [vmem:[%s17440_s8 + $0xfe0] sm:$0xff]  ;;  %v8973_v57 = vld [vmem:[%s17440_s8 + $0xfa8] sm:$0xff] }
 0x5a0   : > { %9180 = vmatprep.subr.mxu0 %v8833_v56  ;;  %9220 = vmatpush1.msra.mxu1 %v8908_v59  ;;  %v8976_v56 = vld [vmem:[%s17440_s8 + $0xfc0] sm:$0xff]  ;;  %v8969_v59 = vld [vmem:[%s17440_s8 + $0xf88] sm:$0xff] }
 0x5a1   : > { %9181 = vmatpush2.msra.mxu0 %v8832_v14  ;;  %9221 = vmatprep.subr.mxu1 %v8905_v20  ;;  %v8972_v14 = vld [vmem:[%s17440_s8 + $0xfa0] sm:$0xff]  ;;  %v8965_v20 = vld [vmem:[%s17440_s8 + $0xf68] sm:$0xff] }
 0x5a2   : > { %9182 = vmatprep.subr.mxu0 %v8829_v7  ;;  %9222 = vmatpush1.msra.mxu1 %v8904_v8  ;;  %v8968_v7 = vld [vmem:[%s17440_s8 + $0xf80] sm:$0xff]  ;;  %v8961_v8 = vld [vmem:[%s17440_s8 + $0xf48] sm:$0xff] }
 0x5a3   : > { %9183 = vmatpush2.msra.mxu0 %v8828_v33  ;;  %9223 = vmatprep.subr.mxu1 %v8901_v5  ;;  %v8964_v33 = vld [vmem:[%s17440_s8 + $0xf60] sm:$0xff]  ;;  %v8957_v5 = vld [vmem:[%s17440_s8 + $0xf28] sm:$0xff] }
 0x5a4   : > { %9184 = vmatprep.subr.mxu0 %v8825_v51  ;;  %9224 = vmatpush1.msra.mxu1 %v8900_v22  ;;  %v8960_v51 = vld [vmem:[%s17440_s8 + $0xf40] sm:$0xff]  ;;  %v8953_v22 = vld [vmem:[%s17440_s8 + $0xf08] sm:$0xff] }
 0x5a5   : > { %9185 = vmatpush2.msra.mxu0 %v8824_v61  ;;  %9225 = vmatprep.subr.mxu1 %v8897_v24  ;;  %v8956_v61 = vld [vmem:[%s17440_s8 + $0xf20] sm:$0xff]  ;;  %v8949_v24 = vld [vmem:[%s17440_s8 + $0xee8] sm:$0xff] }
 0x5a6   : > { %9186 = vmatprep.subr.mxu0 %v8821_v42  ;;  %9226 = vmatpush1.msra.mxu1 %v8896_v32  ;;  %v8952_v42 = vld [vmem:[%s17440_s8 + $0xf00] sm:$0xff]  ;;  %v8945_v32 = vld [vmem:[%s17440_s8 + $0xec8] sm:$0xff] }
 0x5a7   : > { %9187 = vmatpush2.msra.mxu0 %v8820_v40  ;;  %9227 = vmatprep.subr.mxu1 %v8893_v63  ;;  %v8948_v40 = vld [vmem:[%s17440_s8 + $0xee0] sm:$0xff]  ;;  %v8941_v63 = vld [vmem:[%s17440_s8 + $0xea8] sm:$0xff] }
 0x5a8   : > { %9188 = vmatprep.subr.mxu0 %v8817_v27  ;;  %9228 = vmatpush1.msra.mxu1 %v8892_v58  ;;  %v8944_v27 = vld [vmem:[%s17440_s8 + $0xec0] sm:$0xff]  ;;  %v8937_v58 = vld [vmem:[%s17440_s8 + $0xe88] sm:$0xff] }
 0x5a9   : > { %9189 = vmatpush2.msra.mxu0 %v8816_v62  ;;  %9229 = vmatprep.subr.mxu1 %v8889_v44  ;;  %v8940_v62 = vld [vmem:[%s17440_s8 + $0xea0] sm:$0xff]  ;;  %v8933_v44 = vld [vmem:[%s17440_s8 + $0xe68] sm:$0xff] }
 0x5aa   : > { %9190 = vmatprep.subr.mxu0 %v8813_v19  ;;  %9230 = vmatpush1.msra.mxu1 %v8888_v18  ;;  %v8936_v19 = vld [vmem:[%s17440_s8 + $0xe80] sm:$0xff]  ;;  %v8929_v18 = vld [vmem:[%s17440_s8 + $0xe48] sm:$0xff] }
 0x5ab   : > { %9191 = vmatpush2.msra.mxu0 %v8812_v2  ;;  %9231 = vmatprep.subr.mxu1 %v8885_v53  ;;  %v8932_v2 = vld [vmem:[%s17440_s8 + $0xe60] sm:$0xff]  ;;  %v8925_v53 = vld [vmem:[%s17440_s8 + $0xe28] sm:$0xff] }
 0x5ac   : > { %9192 = vmatprep.subr.mxu0 %v8809_v15  ;;  %9232 = vmatpush1.msra.mxu1 %v8884_v3  ;;  %v8928_v15 = vld [vmem:[%s17440_s8 + $0xe40] sm:$0xff] }
 0x5ad   : > { %9193 = vmatpush2.msra.mxu0 %v8808_v29  ;;  %9233 = vmatprep.subr.mxu1 %v8881_v0  ;;  %v8924_v29 = vld [vmem:[%s17440_s8 + $0xe20] sm:$0xff] }
 0x5ae   : > { %9194 = vmatprep.subr.mxu0 %v8805_v30  ;;  %9234 = vmatpush1.msra.mxu1 %v8880_v39  ;;  %v8921_v30 = vld [vmem:[%s17440_s8 + $0xe08] sm:$0xff]  ;;  %v8920_v0 = vld [vmem:[%s17440_s8 + $0xe00] sm:$0xff]  ;;  %v8534_v39 = vld [vmem:[%s17440_s8 + $0x1f0] sm:$0xff] }
 0x5af   : > { %9195 = vmatpush2.msra.mxu0 %v8804_v47  ;;  %9235 = vmatprep.subr.mxu1 %v8877_v52  ;;  %v8531_v52 = vld [vmem:[%s17440_s8 + $0x1d8] sm:$0xff] }
 0x5b0   : > { %9196 = vmatprep.subr.mxu0 %v8801_v28  ;;  %9236 = vmatpush1.msra.mxu1 %v8876_v16  ;;  %v8663_v28 = vld [vmem:[%s17440_s8 + $0x5f8] sm:$0xff]  ;;  %v8530_v16 = vld [vmem:[%s17440_s8 + $0x1d0] sm:$0xff] }
 0x5b1   : > { %9197 = vmatpush2.msra.mxu0 %v8800_v31  ;;  %9237 = vmatprep.subr.mxu1 %v8873_v37 }
 0x5b2   : > { %9198 = vmatprep.subr.mxu0 %v8797_v11  ;;  %9238 = vmatpush1.msra.mxu1 %v8872_v34  ;;  %v8527_v11 = vld [vmem:[%s17440_s8 + $0x1b8] sm:$0xff] }
 0x5b3   : > { %9199 = vmatpush2.msra.mxu0 %v8796_v17  ;;  %9239 = vmatprep.subr.mxu1 %v8869_v41  ;;  %v8526_v17 = vld [vmem:[%s17440_s8 + $0x1b0] sm:$0xff]  ;;  %v8523_v34 = vld [vmem:[%s17440_s8 + $0x198] sm:$0xff] }
 0x5b4   : > { %9200 = vmatprep.subr.mxu0 %v8793_v13  ;;  %9240 = vmatpush1.msra.mxu1 %v8868_v49  ;;  %v8522_v13 = vld [vmem:[%s17440_s8 + $0x190] sm:$0xff]  ;;  %v8519_v41 = vld [vmem:[%s17440_s8 + $0x178] sm:$0xff] }
 0x5b5   : > { %9201 = vmatpush2.msra.mxu0 %v8792_v6  ;;  %9241 = vmatprep.subr.mxu1 %v8865_v1  ;;  %v8518_v6 = vld [vmem:[%s17440_s8 + $0x170] sm:$0xff]  ;;  %v8515_v49 = vld [vmem:[%s17440_s8 + $0x158] sm:$0xff] }
 0x5b6   : > { %9292 = vmatprep.subr.mxu0 %v8535_v36  ;;  %9242 = vmatpush1.msra.mxu1 %v8864_v21  ;;  %v8514_v36 = vld [vmem:[%s17440_s8 + $0x150] sm:$0xff]  ;;  %v8507_v21 = vld [vmem:[%s17440_s8 + $0x118] sm:$0xff] }
 0x5b7   : > { %9131 = vmatprep.mubr.f32.mxu1 %v16237_v50  ;;  %9243 = vmatprep.subr.mxu1 %v8861_v10  ;;  %v8510_v1 = vld [vmem:[%s17440_s8 + $0x130] sm:$0xff] }
 0x5b8   : > { %9132 = vmatmul.mubr.f32.gmra.mxu1 %v16214_v54  ;;  %v8506_v10 = vld [vmem:[%s17440_s8 + $0x110] sm:$0xff] }
 0x5b9   : > { %9244 = vmatpush1.msra.mxu1 %v8860_v12  ;;  %v8503_v12 = vld [vmem:[%s17440_s8 + $0xf8] sm:$0xff] }
 0x5ba   : > { %9245 = vmatprep.subr.mxu1 %v8857_v25  ;;  %v8502_v25 = vld [vmem:[%s17440_s8 + $0xf0] sm:$0xff] }
 0x5bb   : > { %9246 = vmatpush1.msra.mxu1 %v8856_v45  ;;  %v8499_v45 = vld [vmem:[%s17440_s8 + $0xd8] sm:$0xff] }
 0x5bc   : > { %9247 = vmatprep.subr.mxu1 %v8981_v23  ;;  %v8498_v23 = vld [vmem:[%s17440_s8 + $0xd0] sm:$0xff] }
 0x5bd   : > { %9248 = vmatpush2.msra.mxu1 %v8980_v48  ;;  %v8495_v48 = vld [vmem:[%s17440_s8 + $0xb8] sm:$0xff] }
 0x5be   : > { %9249 = vmatprep.subr.mxu1 %v8977_v26  ;;  %v8494_v26 = vld [vmem:[%s17440_s8 + $0xb0] sm:$0xff] }
 0x5bf   : > { %9250 = vmatpush2.msra.mxu1 %v8976_v56  ;;  %v8491_v56 = vld [vmem:[%s17440_s8 + $0x98] sm:$0xff] }
 0x5c0   : > { %9251 = vmatprep.subr.mxu1 %v8973_v57  ;;  %v8490_v57 = vld [vmem:[%s17440_s8 + $0x90] sm:$0xff] }
 0x5c1   : > { %9252 = vmatpush2.msra.mxu1 %v8972_v14  ;;  %v8487_v14 = vld [vmem:[%s17440_s8 + $0x78] sm:$0xff] }
 0x5c2   : > { %9253 = vmatprep.subr.mxu1 %v8969_v59  ;;  %v8486_v59 = vld [vmem:[%s17440_s8 + $0x70] sm:$0xff] }
 0x5c3   : > { %9254 = vmatpush2.msra.mxu1 %v8968_v7  ;;  %v8483_v7 = vld [vmem:[%s17440_s8 + $0x58] sm:$0xff] }
 0x5c4   : > { %9255 = vmatprep.subr.mxu1 %v8965_v20  ;;  %v8482_v20 = vld [vmem:[%s17440_s8 + $0x50] sm:$0xff] }
 0x5c5   : > { %9256 = vmatpush2.msra.mxu1 %v8964_v33  ;;  %v8479_v33 = vld [vmem:[%s17440_s8 + $0x38] sm:$0xff] }
 0x5c6   : > { %9257 = vmatprep.subr.mxu1 %v8961_v8  ;;  %v8478_v8 = vld [vmem:[%s17440_s8 + $0x30] sm:$0xff] }
 0x5c7   : > { %9258 = vmatpush2.msra.mxu1 %v8960_v51  ;;  %v8475_v51 = vld [vmem:[%s17440_s8 + $0x18] sm:$0xff] }
 0x5c8   : > { %9259 = vmatprep.subr.mxu1 %v8957_v5  ;;  %v8474_v5 = vld [vmem:[%s17440_s8 + $0x10] sm:$0xff] }
 0x5c9   : > { %9260 = vmatpush2.msra.mxu1 %v8956_v61  ;;  %v8599_v61 = vld [vmem:[%s17440_s8 + $0x3f8] sm:$0xff] }
 0x5ca   : > { %9261 = vmatprep.subr.mxu1 %v8953_v22  ;;  %v8598_v22 = vld [vmem:[%s17440_s8 + $0x3f0] sm:$0xff] }
 0x5cb   : > { %9262 = vmatpush2.msra.mxu1 %v8952_v42  ;;  %v8595_v42 = vld [vmem:[%s17440_s8 + $0x3d8] sm:$0xff] }
 0x5cc   : > { %9263 = vmatprep.subr.mxu1 %v8949_v24  ;;  %v8594_v24 = vld [vmem:[%s17440_s8 + $0x3d0] sm:$0xff] }
 0x5cd   : > { %9264 = vmatpush2.msra.mxu1 %v8948_v40  ;;  %v8591_v40 = vld [vmem:[%s17440_s8 + $0x3b8] sm:$0xff] }
 0x5ce   : > { %9265 = vmatprep.subr.mxu1 %v8945_v32  ;;  %v8590_v32 = vld [vmem:[%s17440_s8 + $0x3b0] sm:$0xff] }
 0x5cf   : > { %9266 = vmatpush2.msra.mxu1 %v8944_v27  ;;  %v8587_v27 = vld [vmem:[%s17440_s8 + $0x398] sm:$0xff] }
 0x5d0   : > { %9267 = vmatprep.subr.mxu1 %v8941_v63  ;;  %v8586_v63 = vld [vmem:[%s17440_s8 + $0x390] sm:$0xff] }
 0x5d1   : > { %9268 = vmatpush2.msra.mxu1 %v8940_v62  ;;  %v8583_v62 = vld [vmem:[%s17440_s8 + $0x378] sm:$0xff] }
 0x5d2   : > { %9269 = vmatprep.subr.mxu1 %v8937_v58  ;;  %v8582_v58 = vld [vmem:[%s17440_s8 + $0x370] sm:$0xff] }
 0x5d3   : > { %9270 = vmatpush2.msra.mxu1 %v8936_v19  ;;  %v8579_v19 = vld [vmem:[%s17440_s8 + $0x358] sm:$0xff] }
 0x5d4   : > { %9271 = vmatprep.subr.mxu1 %v8933_v44  ;;  %v8578_v44 = vld [vmem:[%s17440_s8 + $0x350] sm:$0xff] }
 0x5d5   : > { %9272 = vmatpush2.msra.mxu1 %v8932_v2  ;;  %v8575_v2 = vld [vmem:[%s17440_s8 + $0x338] sm:$0xff] }
 0x5d6   : > { %9273 = vmatprep.subr.mxu1 %v8929_v18  ;;  %v8574_v18 = vld [vmem:[%s17440_s8 + $0x330] sm:$0xff] }
 0x5d7   : > { %v16343_v3 = vpop.f32.mrf.mxu0  ;;  %9274 = vmatpush2.msra.mxu1 %v8928_v15  ;;  %v8571_v15 = vld [vmem:[%s17440_s8 + $0x318] sm:$0xff] }
 0x5d8   : > { %9275 = vmatprep.subr.mxu1 %v8925_v53  ;;  %v8570_v53 = vld [vmem:[%s17440_s8 + $0x310] sm:$0xff] }
 0x5d9   : > { %v16351_v47 = vpop.f32.mrf.mxu0  ;;  %9276 = vmatpush2.msra.mxu1 %v8924_v29  ;;  %v8567_v29 = vld [vmem:[%s17440_s8 + $0x2f8] sm:$0xff] }
 0x5da   : > { %9202 = vmatprep.mubr.f32.mxu0 %v16351_v47  ;;  %9277 = vmatprep.subr.mxu1 %v8921_v30  ;;  %v8566_v30 = vld [vmem:[%s17440_s8 + $0x2f0] sm:$0xff] }
 0x5db   : > { %v16363_v31 = vpop.f32.mrf.mxu0  ;;  %9203 = vmatmul.mubr.f32.vlgmr.msra.gmra.mxu0 %v16343_v3  ;;  %9278 = vmatpush2.msra.mxu1 %v8920_v0  ;;  %v8563_v0 = vld [vmem:[%s17440_s8 + $0x2d8] sm:$0xff] }
 0x5dc   : > { %9293 = vmatpush1.msra.mxu0 %v8534_v39  ;;  %9369 = vmatprep.subr.mxu1 %v8663_v28  ;;  %v8562_v39 = vld [vmem:[%s17440_s8 + $0x2d0] sm:$0xff]  ;;  %v8559_v28 = vld [vmem:[%s17440_s8 + $0x2b8] sm:$0xff] }
 0x5dd   : > { %9294 = vmatprep.subr.mxu0 %v8531_v52  ;;  %v16372_v37 = vpop.f32.mrf.mxu0  ;;  %v8558_v52 = vld [vmem:[%s17440_s8 + $0x2b0] sm:$0xff] }
 0x5de   : > { %9295 = vmatpush1.msra.mxu0 %v8530_v16  ;;  %9208 = vmatprep.mubr.f32.mxu0 %v16372_v37  ;;  %v8555_v16 = vld [vmem:[%s17440_s8 + $0x298] sm:$0xff] }
 0x5df   : > { %9296 = vmatprep.subr.mxu0 %v8527_v11  ;;  %9209 = vmatmul.mubr.f32.gmra.mxu0 %v16363_v31  ;;  %v8554_v11 = vld [vmem:[%s17440_s8 + $0x290] sm:$0xff] }
 0x5e0   : > { %9297 = vmatpush1.msra.mxu0 %v8526_v17  ;;  %9356 = vmatprep.mubr.f32.mxu0 %v15844_v55  ;;  %v8511_v55 = vld [vmem:[%s17440_s8 + $0x138] sm:$0xff] }
 0x5e1   : > { %9298 = vmatprep.subr.mxu0 %v8523_v34  ;;  %v8551_v17 = vld [vmem:[%s17440_s8 + $0x278] sm:$0xff]  ;;  %v8550_v34 = vld [vmem:[%s17440_s8 + $0x270] sm:$0xff] }
 0x5e2   : > { %9299 = vmatpush1.msra.mxu0 %v8522_v13  ;;  %v8547_v13 = vld [vmem:[%s17440_s8 + $0x258] sm:$0xff] }
 0x5e3   : > { %9300 = vmatprep.subr.mxu0 %v8519_v41  ;;  %v8546_v41 = vld [vmem:[%s17440_s8 + $0x250] sm:$0xff] }
 0x5e4   : > { %9301 = vmatpush1.msra.mxu0 %v8518_v6  ;;  %v8543_v6 = vld [vmem:[%s17440_s8 + $0x238] sm:$0xff] }
 0x5e5   : > { %9302 = vmatprep.subr.mxu0 %v8515_v49  ;;  %v8542_v49 = vld [vmem:[%s17440_s8 + $0x230] sm:$0xff] }
 0x5e6   : > { %9303 = vmatpush1.msra.mxu0 %v8514_v36  ;;  %v8539_v36 = vld [vmem:[%s17440_s8 + $0x218] sm:$0xff] }
 0x5e7   : > { %9304 = vmatprep.subr.mxu0 %v8511_v55  ;;  %v8538_v55 = vld [vmem:[%s17440_s8 + $0x210] sm:$0xff] }
 0x5e8   : > { %9305 = vmatpush1.msra.mxu0 %v8510_v1 }
 0x5e9   : > { %9306 = vmatprep.subr.mxu0 %v8507_v21  ;;  %v8791_v21 = vld [vmem:[%s17440_s8 + $0x9f8] sm:$0xff] }
 0x5ea   : > { %9307 = vmatpush1.msra.mxu0 %v8506_v10 }
 0x5eb   : > { %9308 = vmatprep.subr.mxu0 %v8503_v12  ;;  %v8662_v12 = vld [vmem:[%s17440_s8 + $0x5f0] sm:$0xff] }
 0x5ec   : > { %9309 = vmatpush1.msra.mxu0 %v8502_v25  ;;  %v8790_v25 = vld [vmem:[%s17440_s8 + $0x9f0] sm:$0xff] }
 0x5ed   : > { %9310 = vmatprep.subr.mxu0 %v8499_v45  ;;  %v8659_v45 = vld [vmem:[%s17440_s8 + $0x5d8] sm:$0xff] }
 0x5ee   : > { %9311 = vmatpush1.msra.mxu0 %v8498_v23 }
 0x5ef   : > { %9312 = vmatprep.subr.mxu0 %v8495_v48  ;;  %v8787_v48 = vld [vmem:[%s17440_s8 + $0x9d8] sm:$0xff] }
 0x5f0   : > { %9313 = vmatpush1.msra.mxu0 %v8494_v26  ;;  %v8786_v26 = vld [vmem:[%s17440_s8 + $0x9d0] sm:$0xff] }
 0x5f1   : > { %9314 = vmatprep.subr.mxu0 %v8491_v56 }
 0x5f2   : > { %9315 = vmatpush1.msra.mxu0 %v8490_v57  ;;  %v8655_v57 = vld [vmem:[%s17440_s8 + $0x5b8] sm:$0xff] }
 0x5f3   : > { %9316 = vmatprep.subr.mxu0 %v8487_v14  ;;  %v8783_v14 = vld [vmem:[%s17440_s8 + $0x9b8] sm:$0xff] }
 0x5f4   : > { %9317 = vmatpush1.msra.mxu0 %v8486_v59  ;;  %v8782_v59 = vld [vmem:[%s17440_s8 + $0x9b0] sm:$0xff] }
 0x5f5   : > { %9318 = vmatprep.subr.mxu0 %v8483_v7  ;;  %v8651_v7 = vld [vmem:[%s17440_s8 + $0x598] sm:$0xff] }
 0x5f6   : > { %9319 = vmatpush1.msra.mxu0 %v8482_v20  ;;  %v8779_v20 = vld [vmem:[%s17440_s8 + $0x998] sm:$0xff] }
 0x5f7   : > { %9320 = vmatprep.subr.mxu0 %v8479_v33  ;;  %v8650_v33 = vld [vmem:[%s17440_s8 + $0x590] sm:$0xff] }
 0x5f8   : > { %9321 = vmatpush1.msra.mxu0 %v8478_v8  ;;  %v8647_v8 = vld [vmem:[%s17440_s8 + $0x578] sm:$0xff] }
 0x5f9   : > { %9322 = vmatprep.subr.mxu0 %v8475_v51  ;;  %v8775_v51 = vld [vmem:[%s17440_s8 + $0x978] sm:$0xff] }
 0x5fa   : > { %9323 = vmatpush1.msra.mxu0 %v8474_v5  ;;  %v8646_v5 = vld [vmem:[%s17440_s8 + $0x570] sm:$0xff] }
 0x5fb   : > { %9324 = vmatprep.subr.mxu0 %v8599_v61  ;;  %v8643_v61 = vld [vmem:[%s17440_s8 + $0x558] sm:$0xff] }
 0x5fc   : > { %9325 = vmatpush2.msra.mxu0 %v8598_v22  ;;  %v8771_v22 = vld [vmem:[%s17440_s8 + $0x958] sm:$0xff] }
 0x5fd   : > { %9326 = vmatprep.subr.mxu0 %v8595_v42  ;;  %v8770_v42 = vld [vmem:[%s17440_s8 + $0x950] sm:$0xff] }
 0x5fe   : > { %9327 = vmatpush2.msra.mxu0 %v8594_v24  ;;  %v8639_v24 = vld [vmem:[%s17440_s8 + $0x538] sm:$0xff] }
 0x5ff   : > { %9328 = vmatprep.subr.mxu0 %v8591_v40  ;;  %v8767_v40 = vld [vmem:[%s17440_s8 + $0x938] sm:$0xff] }
 0x600   : > { %9329 = vmatpush2.msra.mxu0 %v8590_v32  ;;  %v8638_v32 = vld [vmem:[%s17440_s8 + $0x530] sm:$0xff] }
 0x601   : > { %9330 = vmatprep.subr.mxu0 %v8587_v27  ;;  %v8766_v27 = vld [vmem:[%s17440_s8 + $0x930] sm:$0xff] }
 0x602   : > { %9331 = vmatpush2.msra.mxu0 %v8586_v63  ;;  %v8635_v63 = vld [vmem:[%s17440_s8 + $0x518] sm:$0xff] }
 0x603   : > { %9332 = vmatprep.subr.mxu0 %v8583_v62  ;;  %v8763_v62 = vld [vmem:[%s17440_s8 + $0x918] sm:$0xff] }
 0x604   : > { %9333 = vmatpush2.msra.mxu0 %v8582_v58  ;;  %v8634_v58 = vld [vmem:[%s17440_s8 + $0x510] sm:$0xff] }
 0x605   : > { %9334 = vmatprep.subr.mxu0 %v8579_v19  ;;  %v8762_v19 = vld [vmem:[%s17440_s8 + $0x910] sm:$0xff] }
 0x606   : > { %9335 = vmatpush2.msra.mxu0 %v8578_v44  ;;  %v8631_v44 = vld [vmem:[%s17440_s8 + $0x4f8] sm:$0xff] }
 0x607   : > { %9336 = vmatprep.subr.mxu0 %v8575_v2  ;;  %v8759_v2 = vld [vmem:[%s17440_s8 + $0x8f8] sm:$0xff] }
 0x608   : > { %9337 = vmatpush2.msra.mxu0 %v8574_v18  ;;  %v8630_v18 = vld [vmem:[%s17440_s8 + $0x4f0] sm:$0xff] }
 0x609   : > { %9338 = vmatprep.subr.mxu0 %v8571_v15  ;;  %v8758_v15 = vld [vmem:[%s17440_s8 + $0x8f0] sm:$0xff] }
 0x60a   : > { %9339 = vmatpush2.msra.mxu0 %v8570_v53  ;;  %v8627_v53 = vld [vmem:[%s17440_s8 + $0x4d8] sm:$0xff] }
 0x60b   : > { %9340 = vmatprep.subr.mxu0 %v8567_v29  ;;  %v8755_v29 = vld [vmem:[%s17440_s8 + $0x8d8] sm:$0xff] }
 0x60c   : > { %9341 = vmatpush2.msra.mxu0 %v8566_v30  ;;  %v8626_v30 = vld [vmem:[%s17440_s8 + $0x4d0] sm:$0xff] }
 0x60d   : > { %9342 = vmatprep.subr.mxu0 %v8563_v0  ;;  %v8754_v0 = vld [vmem:[%s17440_s8 + $0x8d0] sm:$0xff] }
 0x60e   : > { %9343 = vmatpush2.msra.mxu0 %v8562_v39  ;;  %v8623_v39 = vld [vmem:[%s17440_s8 + $0x4b8] sm:$0xff] }
 0x60f   : > { %9344 = vmatprep.subr.mxu0 %v8559_v28  ;;  %v8751_v28 = vld [vmem:[%s17440_s8 + $0x8b8] sm:$0xff] }
 0x610   : > { %9345 = vmatpush2.msra.mxu0 %v8558_v52  ;;  %v8622_v52 = vld [vmem:[%s17440_s8 + $0x4b0] sm:$0xff] }
 0x611   : > { %9346 = vmatprep.subr.mxu0 %v8555_v16  ;;  %v8750_v16 = vld [vmem:[%s17440_s8 + $0x8b0] sm:$0xff] }
 0x612   : > { %9347 = vmatpush2.msra.mxu0 %v8554_v11  ;;  %v8619_v11 = vld [vmem:[%s17440_s8 + $0x498] sm:$0xff] }
 0x613   : > { %9348 = vmatprep.subr.mxu0 %v8551_v17  ;;  %v8747_v17 = vld [vmem:[%s17440_s8 + $0x898] sm:$0xff] }
 0x614   : > { %9349 = vmatpush2.msra.mxu0 %v8550_v34  ;;  %v8618_v34 = vld [vmem:[%s17440_s8 + $0x490] sm:$0xff] }
 0x615   : > { %9350 = vmatprep.subr.mxu0 %v8547_v13  ;;  %v8746_v13 = vld [vmem:[%s17440_s8 + $0x890] sm:$0xff] }
 0x616   : > { %9351 = vmatpush2.msra.mxu0 %v8546_v41  ;;  %v8615_v41 = vld [vmem:[%s17440_s8 + $0x478] sm:$0xff] }
 0x617   : > { %9352 = vmatprep.subr.mxu0 %v8543_v6  ;;  %v8743_v6 = vld [vmem:[%s17440_s8 + $0x878] sm:$0xff] }
 0x618   : > { %v16554_v1 = vpop.f32.mrf.mxu1  ;;  %9353 = vmatpush2.msra.mxu0 %v8542_v49  ;;  %v8614_v49 = vld [vmem:[%s17440_s8 + $0x470] sm:$0xff] }
 0x619   : > { %9354 = vmatprep.subr.mxu0 %v8539_v36  ;;  %v8742_v36 = vld [vmem:[%s17440_s8 + $0x870] sm:$0xff] }
 0x61a   : > { %v16559_v10 = vpop.f32.mrf.mxu1  ;;  %9355 = vmatpush2.msra.mxu0 %v8538_v55  ;;  %v8611_v55 = vld [vmem:[%s17440_s8 + $0x458] sm:$0xff] }
 0x61b   : > { %9279 = vmatprep.mubr.f32.mxu1 %v16559_v10  ;;  %9357 = vmatmul.mubr.f32.vlgmr.msra.gmra.mxu0 %v15836_v4  ;;  %v8658_v4 = vld [vmem:[%s17440_s8 + $0x5d0] sm:$0xff] }
 0x61c   : > { %9446 = vmatprep.subr.mxu0 %v8791_v21  ;;  %v16572_v23 = vpop.f32.mrf.mxu1  ;;  %9280 = vmatmul.mubr.f32.vlgmr.msra.gmra.mxu1 %v16554_v1  ;;  %v8739_v21 = vld [vmem:[%s17440_s8 + $0x858] sm:$0xff] }
 0x61d   : > { %9362 = vmatprep.mubr.f32.mxu0 %v16039_v9  ;;  %9370 = vmatpush1.msra.mxu1 %v8662_v12  ;;  %v8654_v9 = vld [vmem:[%s17440_s8 + $0x5b0] sm:$0xff] }
 0x61e   : > { %9447 = vmatpush1.msra.mxu0 %v8790_v25  ;;  %9371 = vmatprep.subr.mxu1 %v8659_v45  ;;  %v16585_v56 = vpop.f32.mrf.mxu1  ;;  %v8610_v12 = vld [vmem:[%s17440_s8 + $0x450] sm:$0xff]  ;;  %v8607_v45 = vld [vmem:[%s17440_s8 + $0x438] sm:$0xff] }
 0x61f   : > { %9448 = vmatprep.subr.mxu0 %v8787_v48  ;;  %9372 = vmatpush1.msra.mxu1 %v8658_v4  ;;  %v8738_v25 = vld [vmem:[%s17440_s8 + $0x850] sm:$0xff]  ;;  %v8735_v48 = vld [vmem:[%s17440_s8 + $0x838] sm:$0xff] }
 0x620   : > { %9449 = vmatpush1.msra.mxu0 %v8786_v26  ;;  %9285 = vmatprep.mubr.f32.mxu1 %v16585_v56  ;;  %v8606_v4 = vld [vmem:[%s17440_s8 + $0x430] sm:$0xff] }
 0x621   : > { %9363 = vmatmul.mubr.f32.gmra.mxu0 %v16016_v43  ;;  %9373 = vmatprep.subr.mxu1 %v8655_v57  ;;  %v8778_v43 = vld [vmem:[%s17440_s8 + $0x990] sm:$0xff]  ;;  %v8603_v57 = vld [vmem:[%s17440_s8 + $0x418] sm:$0xff] }
 0x622   : > { %9450 = vmatprep.subr.mxu0 %v8783_v14  ;;  %9286 = vmatmul.mubr.f32.gmra.mxu1 %v16572_v23  ;;  %v8734_v26 = vld [vmem:[%s17440_s8 + $0x830] sm:$0xff]  ;;  %v8731_v14 = vld [vmem:[%s17440_s8 + $0x818] sm:$0xff] }
 0x623   : > { %9374 = vmatpush1.msra.mxu1 %v8654_v9  ;;  %9451 = vmatpush1.msra.mxu0 %v8782_v59  ;;  %v8602_v9 = vld [vmem:[%s17440_s8 + $0x410] sm:$0xff] }
 0x624   : > { %9510 = vmatprep.mubr.f32.mxu0 %v16351_v47  ;;  %9375 = vmatprep.subr.mxu1 %v8651_v7  ;;  %v8774_v47 = vld [vmem:[%s17440_s8 + $0x970] sm:$0xff]  ;;  %v8727_v7 = vld [vmem:[%s17440_s8 + $0x7f8] sm:$0xff] }
 0x625   : > { %9433 = vmatprep.mubr.f32.mxu1 %v16069_v38  ;;  %9452 = vmatprep.subr.mxu0 %v8779_v20  ;;  %v8642_v38 = vld [vmem:[%s17440_s8 + $0x550] sm:$0xff]  ;;  %v8855_v20 = vld [vmem:[%s17440_s8 + $0xbf8] sm:$0xff] }
 0x626   : > { %9376 = vmatpush1.msra.mxu1 %v8650_v33  ;;  %9453 = vmatpush1.msra.mxu0 %v8778_v43  ;;  %v8730_v59 = vld [vmem:[%s17440_s8 + $0x810] sm:$0xff] }
 0x627   : > { %9377 = vmatprep.subr.mxu1 %v8647_v8  ;;  %9454 = vmatprep.subr.mxu0 %v8775_v51  ;;  %v8726_v33 = vld [vmem:[%s17440_s8 + $0x7f0] sm:$0xff]  ;;  %v8723_v8 = vld [vmem:[%s17440_s8 + $0x7d8] sm:$0xff] }
 0x628   : > { %9378 = vmatpush1.msra.mxu1 %v8646_v5  ;;  %9455 = vmatpush1.msra.mxu0 %v8774_v47  ;;  %v8854_v43 = vld [vmem:[%s17440_s8 + $0xbf0] sm:$0xff]  ;;  %v8851_v51 = vld [vmem:[%s17440_s8 + $0xbd8] sm:$0xff] }
 0x629   : > { %9379 = vmatprep.subr.mxu1 %v8643_v61  ;;  %9456 = vmatprep.subr.mxu0 %v8771_v22  ;;  %v8722_v5 = vld [vmem:[%s17440_s8 + $0x7d0] sm:$0xff]  ;;  %v8719_v61 = vld [vmem:[%s17440_s8 + $0x7b8] sm:$0xff] }
 0x62a   : > { %9380 = vmatpush1.msra.mxu1 %v8642_v38  ;;  %9457 = vmatpush1.msra.mxu0 %v8770_v42  ;;  %v8850_v47 = vld [vmem:[%s17440_s8 + $0xbd0] sm:$0xff]  ;;  %v8847_v22 = vld [vmem:[%s17440_s8 + $0xbb8] sm:$0xff] }
 0x62b   : > { %9381 = vmatprep.subr.mxu1 %v8639_v24  ;;  %9458 = vmatprep.subr.mxu0 %v8767_v40  ;;  %v8718_v38 = vld [vmem:[%s17440_s8 + $0x7b0] sm:$0xff]  ;;  %v8715_v24 = vld [vmem:[%s17440_s8 + $0x798] sm:$0xff] }
 0x62c   : > { %9382 = vmatpush1.msra.mxu1 %v8638_v32  ;;  %9459 = vmatpush1.msra.mxu0 %v8766_v27  ;;  %v8846_v42 = vld [vmem:[%s17440_s8 + $0xbb0] sm:$0xff]  ;;  %v8843_v40 = vld [vmem:[%s17440_s8 + $0xb98] sm:$0xff] }
 0x62d   : > { %9383 = vmatprep.subr.mxu1 %v8635_v63  ;;  %9460 = vmatprep.subr.mxu0 %v8763_v62  ;;  %v8714_v32 = vld [vmem:[%s17440_s8 + $0x790] sm:$0xff]  ;;  %v8711_v63 = vld [vmem:[%s17440_s8 + $0x778] sm:$0xff] }
 0x62e   : > { %9384 = vmatpush1.msra.mxu1 %v8634_v58  ;;  %9461 = vmatpush1.msra.mxu0 %v8762_v19  ;;  %v8842_v27 = vld [vmem:[%s17440_s8 + $0xb90] sm:$0xff]  ;;  %v8839_v62 = vld [vmem:[%s17440_s8 + $0xb78] sm:$0xff] }
 0x62f   : > { %9385 = vmatprep.subr.mxu1 %v8631_v44  ;;  %9462 = vmatprep.subr.mxu0 %v8759_v2  ;;  %v8710_v58 = vld [vmem:[%s17440_s8 + $0x770] sm:$0xff]  ;;  %v8707_v44 = vld [vmem:[%s17440_s8 + $0x758] sm:$0xff] }
 0x630   : > { %9386 = vmatpush1.msra.mxu1 %v8630_v18  ;;  %9463 = vmatpush1.msra.mxu0 %v8758_v15  ;;  %v8838_v19 = vld [vmem:[%s17440_s8 + $0xb70] sm:$0xff]  ;;  %v8835_v2 = vld [vmem:[%s17440_s8 + $0xb58] sm:$0xff] }
 0x631   : > { %9387 = vmatprep.subr.mxu1 %v8627_v53  ;;  %9464 = vmatprep.subr.mxu0 %v8755_v29  ;;  %v8706_v18 = vld [vmem:[%s17440_s8 + $0x750] sm:$0xff]  ;;  %v8703_v53 = vld [vmem:[%s17440_s8 + $0x738] sm:$0xff] }
 0x632   : > { %9388 = vmatpush1.msra.mxu1 %v8626_v30  ;;  %9465 = vmatpush1.msra.mxu0 %v8754_v0  ;;  %v8834_v15 = vld [vmem:[%s17440_s8 + $0xb50] sm:$0xff]  ;;  %v8831_v29 = vld [vmem:[%s17440_s8 + $0xb38] sm:$0xff] }
 0x633   : > { %9389 = vmatprep.subr.mxu1 %v8623_v39  ;;  %9466 = vmatprep.subr.mxu0 %v8751_v28  ;;  %v8702_v30 = vld [vmem:[%s17440_s8 + $0x730] sm:$0xff]  ;;  %v8699_v39 = vld [vmem:[%s17440_s8 + $0x718] sm:$0xff] }
 0x634   : > { %9390 = vmatpush1.msra.mxu1 %v8622_v52  ;;  %9467 = vmatpush1.msra.mxu0 %v8750_v16  ;;  %v8830_v0 = vld [vmem:[%s17440_s8 + $0xb30] sm:$0xff]  ;;  %v8827_v28 = vld [vmem:[%s17440_s8 + $0xb18] sm:$0xff] }
 0x635   : > { %9391 = vmatprep.subr.mxu1 %v8619_v11  ;;  %9468 = vmatprep.subr.mxu0 %v8747_v17  ;;  %v8698_v52 = vld [vmem:[%s17440_s8 + $0x710] sm:$0xff]  ;;  %v8695_v11 = vld [vmem:[%s17440_s8 + $0x6f8] sm:$0xff] }
 0x636   : > { %9392 = vmatpush1.msra.mxu1 %v8618_v34  ;;  %9469 = vmatpush1.msra.mxu0 %v8746_v13  ;;  %v8826_v16 = vld [vmem:[%s17440_s8 + $0xb10] sm:$0xff]  ;;  %v8823_v17 = vld [vmem:[%s17440_s8 + $0xaf8] sm:$0xff] }
 0x637   : > { %9393 = vmatprep.subr.mxu1 %v8615_v41  ;;  %9470 = vmatprep.subr.mxu0 %v8743_v6  ;;  %v8694_v34 = vld [vmem:[%s17440_s8 + $0x6f0] sm:$0xff]  ;;  %v8691_v41 = vld [vmem:[%s17440_s8 + $0x6d8] sm:$0xff] }
 0x638   : > { %9394 = vmatpush1.msra.mxu1 %v8614_v49  ;;  %9471 = vmatpush1.msra.mxu0 %v8742_v36  ;;  %v8822_v13 = vld [vmem:[%s17440_s8 + $0xaf0] sm:$0xff]  ;;  %v8819_v6 = vld [vmem:[%s17440_s8 + $0xad8] sm:$0xff] }
 0x639   : > { %9395 = vmatprep.subr.mxu1 %v8611_v55  ;;  %9472 = vmatprep.subr.mxu0 %v8739_v21  ;;  %v8690_v49 = vld [vmem:[%s17440_s8 + $0x6d0] sm:$0xff]  ;;  %v8687_v55 = vld [vmem:[%s17440_s8 + $0x6b8] sm:$0xff] }
 0x63a   : > { %9396 = vmatpush1.msra.mxu1 %v8610_v12  ;;  %9473 = vmatpush1.msra.mxu0 %v8738_v25  ;;  %v8818_v36 = vld [vmem:[%s17440_s8 + $0xad0] sm:$0xff]  ;;  %v8815_v21 = vld [vmem:[%s17440_s8 + $0xab8] sm:$0xff] }
 0x63b   : > { %9397 = vmatprep.subr.mxu1 %v8607_v45  ;;  %9474 = vmatprep.subr.mxu0 %v8735_v48  ;;  %v8686_v12 = vld [vmem:[%s17440_s8 + $0x6b0] sm:$0xff]  ;;  %v8683_v45 = vld [vmem:[%s17440_s8 + $0x698] sm:$0xff] }
 0x63c   : > { %9398 = vmatpush1.msra.mxu1 %v8606_v4  ;;  %9475 = vmatpush1.msra.mxu0 %v8734_v26  ;;  %v8814_v25 = vld [vmem:[%s17440_s8 + $0xab0] sm:$0xff]  ;;  %v8811_v48 = vld [vmem:[%s17440_s8 + $0xa98] sm:$0xff] }
 0x63d   : > { %9399 = vmatprep.subr.mxu1 %v8603_v57  ;;  %9476 = vmatprep.subr.mxu0 %v8731_v14  ;;  %v8682_v4 = vld [vmem:[%s17440_s8 + $0x690] sm:$0xff]  ;;  %v8679_v57 = vld [vmem:[%s17440_s8 + $0x678] sm:$0xff] }
 0x63e   : > { %9400 = vmatpush1.msra.mxu1 %v8602_v9  ;;  %9477 = vmatpush1.msra.mxu0 %v8730_v59  ;;  %v8810_v26 = vld [vmem:[%s17440_s8 + $0xa90] sm:$0xff]  ;;  %v8807_v14 = vld [vmem:[%s17440_s8 + $0xa78] sm:$0xff] }
 0x63f   : > { %9401 = vmatprep.subr.mxu1 %v8727_v7  ;;  %9478 = vmatprep.subr.mxu0 %v8855_v20  ;;  %v8678_v9 = vld [vmem:[%s17440_s8 + $0x670] sm:$0xff]  ;;  %v8675_v7 = vld [vmem:[%s17440_s8 + $0x658] sm:$0xff] }
 0x640   : > { %9402 = vmatpush2.msra.mxu1 %v8726_v33  ;;  %9479 = vmatpush2.msra.mxu0 %v8854_v43  ;;  %v8806_v59 = vld [vmem:[%s17440_s8 + $0xa70] sm:$0xff]  ;;  %v8803_v20 = vld [vmem:[%s17440_s8 + $0xa58] sm:$0xff] }
 0x641   : > { %9403 = vmatprep.subr.mxu1 %v8723_v8  ;;  %9480 = vmatprep.subr.mxu0 %v8851_v51  ;;  %v8674_v33 = vld [vmem:[%s17440_s8 + $0x650] sm:$0xff]  ;;  %v8671_v8 = vld [vmem:[%s17440_s8 + $0x638] sm:$0xff] }
 0x642   : > { %9404 = vmatpush2.msra.mxu1 %v8722_v5  ;;  %9481 = vmatpush2.msra.mxu0 %v8850_v47  ;;  %v8802_v43 = vld [vmem:[%s17440_s8 + $0xa50] sm:$0xff]  ;;  %v8799_v51 = vld [vmem:[%s17440_s8 + $0xa38] sm:$0xff] }
 0x643   : > { %9405 = vmatprep.subr.mxu1 %v8719_v61  ;;  %9482 = vmatprep.subr.mxu0 %v8847_v22  ;;  %v8670_v5 = vld [vmem:[%s17440_s8 + $0x630] sm:$0xff]  ;;  %v8667_v61 = vld [vmem:[%s17440_s8 + $0x618] sm:$0xff] }
 0x644   : > { %9406 = vmatpush2.msra.mxu1 %v8718_v38  ;;  %9483 = vmatpush2.msra.mxu0 %v8846_v42  ;;  %v8798_v47 = vld [vmem:[%s17440_s8 + $0xa30] sm:$0xff]  ;;  %v8795_v22 = vld [vmem:[%s17440_s8 + $0xa18] sm:$0xff] }
 0x645   : > { %9407 = vmatprep.subr.mxu1 %v8715_v24  ;;  %9484 = vmatprep.subr.mxu0 %v8843_v40  ;;  %v8666_v38 = vld [vmem:[%s17440_s8 + $0x610] sm:$0xff]  ;;  %v8919_v24 = vld [vmem:[%s17440_s8 + $0xdf8] sm:$0xff] }
 0x646   : > { %9408 = vmatpush2.msra.mxu1 %v8714_v32  ;;  %9485 = vmatpush2.msra.mxu0 %v8842_v27  ;;  %v8794_v42 = vld [vmem:[%s17440_s8 + $0xa10] sm:$0xff]  ;;  %v8915_v32 = vld [vmem:[%s17440_s8 + $0xdd8] sm:$0xff] }
 0x647   : > { %9409 = vmatprep.subr.mxu1 %v8711_v63  ;;  %9486 = vmatprep.subr.mxu0 %v8839_v62  ;;  %v8918_v40 = vld [vmem:[%s17440_s8 + $0xdf0] sm:$0xff]  ;;  %v9655_v27 = vld [vmem:[%s17441_s9 + $0xf8] sm:$0xff] }
 0x648   : > { %9410 = vmatpush2.msra.mxu1 %v8710_v58  ;;  %9487 = vmatpush2.msra.mxu0 %v8838_v19  ;;  %v8914_v63 = vld [vmem:[%s17440_s8 + $0xdd0] sm:$0xff] }
 0x649   : > { %9411 = vmatprep.subr.mxu1 %v8707_v44  ;;  %9488 = vmatprep.subr.mxu0 %v8835_v2  ;;  %v8906_v62 = vld [vmem:[%s17440_s8 + $0xd90] sm:$0xff]  ;;  %v9653_v44 = vld [vmem:[%s17441_s9 + $0xe8] sm:$0xff] }
 0x64a   : > { %9412 = vmatpush2.msra.mxu1 %v8706_v18  ;;  %9489 = vmatpush2.msra.mxu0 %v8834_v15  ;;  %v9654_v58 = vld [vmem:[%s17441_s9 + $0xf0] sm:$0xff]  ;;  %v9637_v2 = vld [vmem:[%s17441_s9 + $0x68] sm:$0xff]  ;;  %v9652_v15 = vld [vmem:[%s17441_s9 + $0xe0] sm:$0xff] }
 0x64b   : > { %9413 = vmatprep.subr.mxu1 %v8703_v53  ;;  %9490 = vmatprep.subr.mxu0 %v8831_v29  ;;  %v8902_v19 = vld [vmem:[%s17440_s8 + $0xd70] sm:$0xff]  ;;  %v8895_v53 = vld [vmem:[%s17440_s8 + $0xd38] sm:$0xff]  ;;  %v9636_v29 = vld [vmem:[%s17441_s9 + $0x60] sm:$0xff] }
 0x64c   : > { %9414 = vmatpush2.msra.mxu1 %v8702_v30  ;;  %9491 = vmatpush2.msra.mxu0 %v8830_v0  ;;  %v8898_v18 = vld [vmem:[%s17440_s8 + $0xd50] sm:$0xff]  ;;  %v9651_v0 = vld [vmem:[%s17441_s9 + $0xd8] sm:$0xff] }
 0x64d   : > { %9415 = vmatprep.subr.mxu1 %v8699_v39  ;;  %9492 = vmatprep.subr.mxu0 %v8827_v28  ;;  %v8894_v30 = vld [vmem:[%s17440_s8 + $0xd30] sm:$0xff]  ;;  %v8891_v39 = vld [vmem:[%s17440_s8 + $0xd18] sm:$0xff] }
 0x64e   : > { %9416 = vmatpush2.msra.mxu1 %v8698_v52  ;;  %9493 = vmatpush2.msra.mxu0 %v8826_v16  ;;  %v9635_v28 = vld [vmem:[%s17441_s9 + $0x58] sm:$0xff]  ;;  %v8890_v52 = vld [vmem:[%s17440_s8 + $0xd10] sm:$0xff] }
 0x64f   : > { %9417 = vmatprep.subr.mxu1 %v8695_v11  ;;  %9494 = vmatprep.subr.mxu0 %v8823_v17  ;;  %v9650_v16 = vld [vmem:[%s17441_s9 + $0xd0] sm:$0xff]  ;;  %v8887_v11 = vld [vmem:[%s17440_s8 + $0xcf8] sm:$0xff] }
 0x650   : > { %9418 = vmatpush2.msra.mxu1 %v8694_v34  ;;  %9495 = vmatpush2.msra.mxu0 %v8822_v13  ;;  %v9634_v17 = vld [vmem:[%s17441_s9 + $0x50] sm:$0xff]  ;;  %v9649_v13 = vld [vmem:[%s17441_s9 + $0xc8] sm:$0xff] }
 0x651   : > { %9419 = vmatprep.subr.mxu1 %v8691_v41  ;;  %9496 = vmatprep.subr.mxu0 %v8819_v6  ;;  %v8886_v34 = vld [vmem:[%s17440_s8 + $0xcf0] sm:$0xff]  ;;  %v8883_v41 = vld [vmem:[%s17440_s8 + $0xcd8] sm:$0xff]  ;;  %v9633_v6 = vld [vmem:[%s17441_s9 + $0x48] sm:$0xff] }
 0x652   : > { %9420 = vmatpush2.msra.mxu1 %v8690_v49  ;;  %9497 = vmatpush2.msra.mxu0 %v8818_v36  ;;  %v8882_v49 = vld [vmem:[%s17440_s8 + $0xcd0] sm:$0xff]  ;;  %v9648_v36 = vld [vmem:[%s17441_s9 + $0xc0] sm:$0xff] }
 0x653   : > { %9421 = vmatprep.subr.mxu1 %v8687_v55  ;;  %9498 = vmatprep.subr.mxu0 %v8815_v21  ;;  %v8879_v55 = vld [vmem:[%s17440_s8 + $0xcb8] sm:$0xff]  ;;  %v9632_v21 = vld [vmem:[%s17441_s9 + $0x40] sm:$0xff] }
 0x654   : > { %9422 = vmatpush2.msra.mxu1 %v8686_v12  ;;  %9499 = vmatpush2.msra.mxu0 %v8814_v25  ;;  %v8878_v12 = vld [vmem:[%s17440_s8 + $0xcb0] sm:$0xff]  ;;  %v9647_v25 = vld [vmem:[%s17441_s9 + $0xb8] sm:$0xff] }
 0x655   : > { %9423 = vmatprep.subr.mxu1 %v8683_v45  ;;  %9500 = vmatprep.subr.mxu0 %v8811_v48  ;;  %v8875_v45 = vld [vmem:[%s17440_s8 + $0xc98] sm:$0xff] }
 0x656   : > { %9424 = vmatpush2.msra.mxu1 %v8682_v4  ;;  %9501 = vmatpush2.msra.mxu0 %v8810_v26  ;;  %v9631_v48 = vld [vmem:[%s17441_s9 + $0x38] sm:$0xff]  ;;  %v8874_v4 = vld [vmem:[%s17440_s8 + $0xc90] sm:$0xff] }
 0x657   : > { %9425 = vmatprep.subr.mxu1 %v8679_v57  ;;  %9502 = vmatprep.subr.mxu0 %v8807_v14  ;;  %v9646_v26 = vld [vmem:[%s17441_s9 + $0xb0] sm:$0xff]  ;;  %v8871_v57 = vld [vmem:[%s17440_s8 + $0xc78] sm:$0xff] }
 0x658   : > { %9426 = vmatpush2.msra.mxu1 %v8678_v9  ;;  %9503 = vmatpush2.msra.mxu0 %v8806_v59  ;;  %v9630_v14 = vld [vmem:[%s17441_s9 + $0x30] sm:$0xff]  ;;  %v9645_v59 = vld [vmem:[%s17441_s9 + $0xa8] sm:$0xff] }
 0x659   : > { %9427 = vmatprep.subr.mxu1 %v8675_v7  ;;  %9504 = vmatprep.subr.mxu0 %v8803_v20  ;;  %v8870_v9 = vld [vmem:[%s17440_s8 + $0xc70] sm:$0xff]  ;;  %v8867_v7 = vld [vmem:[%s17440_s8 + $0xc58] sm:$0xff]  ;;  %v9629_v20 = vld [vmem:[%s17441_s9 + $0x28] sm:$0xff] }
 0x65a   : > { %9428 = vmatpush2.msra.mxu1 %v8674_v33  ;;  %9505 = vmatpush2.msra.mxu0 %v8802_v43  ;;  %v8866_v33 = vld [vmem:[%s17440_s8 + $0xc50] sm:$0xff]  ;;  %v9644_v43 = vld [vmem:[%s17441_s9 + $0xa0] sm:$0xff] }
 0x65b   : > { %9429 = vmatprep.subr.mxu1 %v8671_v8  ;;  %9506 = vmatprep.subr.mxu0 %v8799_v51  ;;  %v8863_v8 = vld [vmem:[%s17440_s8 + $0xc38] sm:$0xff]  ;;  %v9628_v51 = vld [vmem:[%s17441_s9 + $0x20] sm:$0xff] }
 0x65c   : > { %9430 = vmatpush2.msra.mxu1 %v8670_v5  ;;  %9507 = vmatpush2.msra.mxu0 %v8798_v47  ;;  %v8862_v5 = vld [vmem:[%s17440_s8 + $0xc30] sm:$0xff]  ;;  %v9643_v47 = vld [vmem:[%s17441_s9 + $0x98] sm:$0xff] }
 0x65d   : > { %9431 = vmatprep.subr.mxu1 %v8667_v61  ;;  %9508 = vmatprep.subr.mxu0 %v8795_v22  ;;  %v8859_v61 = vld [vmem:[%s17440_s8 + $0xc18] sm:$0xff] }
 0x65e   : > { %9432 = vmatpush2.msra.mxu1 %v8666_v38  ;;  %9509 = vmatpush2.msra.mxu0 %v8794_v42  ;;  %v9627_v22 = vld [vmem:[%s17441_s9 + $0x18] sm:$0xff]  ;;  %v8858_v38 = vld [vmem:[%s17440_s8 + $0xc10] sm:$0xff] }
 0x65f   : > { %9434 = vmatmul.mubr.f32.vlgmr.msra.gmra.mxu1 %v16060_v46  ;;  %9511 = vmatmul.mubr.f32.vlgmr.msra.gmra.mxu0 %v16343_v3  ;;  %v8911_v46 = vld [vmem:[%s17440_s8 + $0xdb8] sm:$0xff]  ;;  %v8910_v3 = vld [vmem:[%s17440_s8 + $0xdb0] sm:$0xff] }
 0x660   : > { %9523 = vmatprep.subr.mxu1 %v8919_v24  ;;  %9439 = vmatprep.mubr.f32.mxu1 %v16237_v50  ;;  %v8907_v50 = vld [vmem:[%s17440_s8 + $0xd98] sm:$0xff]  ;;  %v9642_v42 = vld [vmem:[%s17441_s9 + $0x90] sm:$0xff] }
 0x661   : > { %9516 = vmatprep.mubr.f32.mxu0 %v16372_v37  ;;  %9524 = vmatpush1.msra.mxu1 %v8918_v40  ;;  %v9639_v37 = vld [vmem:[%s17441_s9 + $0x78] sm:$0xff]  ;;  %v9626_v40 = vld [vmem:[%s17441_s9 + $0x10] sm:$0xff] }
 0x662   : > { %9525 = vmatprep.subr.mxu1 %v8915_v32  ;;  %11026 = vmatprep.subr.mxu0 %v9655_v27  ;;  %v8983_v24 = vld [vmem:[%s17440_s8 + $0xff8] sm:$0xff]  ;;  %v8982_v32 = vld [vmem:[%s17440_s8 + $0xff0] sm:$0xff]  ;;  %v9641_v27 = vld [vmem:[%s17441_s9 + $0x88] sm:$0xff] }
 0x663   : > { %9526 = vmatpush1.msra.mxu1 %v8914_v63  ;;  %9517 = vmatmul.mubr.f32.gmra.mxu0 %v16363_v31  ;;  %v8903_v31 = vld [vmem:[%s17440_s8 + $0xd78] sm:$0xff] }
 0x664   : > { %9440 = vmatmul.mubr.f32.gmra.mxu1 %v16214_v54  ;;  %9527 = vmatprep.subr.mxu1 %v8911_v46  ;;  %v9638_v54 = vld [vmem:[%s17441_s9 + $0x70] sm:$0xff]  ;;  %v8979_v63 = vld [vmem:[%s17440_s8 + $0xfd8] sm:$0xff]  ;;  %v9625_v46 = vld [vmem:[%s17441_s9 + $0x8] sm:$0xff] }
 0x665   : > { %9528 = vmatpush1.msra.mxu1 %v8910_v3  ;;  %9587 = vmatprep.mubr.f32.mxu1 %v16559_v10  ;;  %v8899_v10 = vld [vmem:[%s17440_s8 + $0xd58] sm:$0xff]  ;;  %v8978_v3 = vld [vmem:[%s17440_s8 + $0xfd0] sm:$0xff] }
 0x666   : > { %9529 = vmatprep.subr.mxu1 %v8907_v50  ;;  %11027 = vmatpush3.msra.mxu0 %v9639_v37  ;;  %v9640_v50 = vld [vmem:[%s17441_s9 + $0x80] sm:$0xff]  ;;  %v8975_v37 = vld [vmem:[%s17440_s8 + $0xfb8] sm:$0xff] }
 0x667   : > { %9530 = vmatpush1.msra.mxu1 %v8906_v62  ;;  %11028 = vmatprep.subr.mxu0 %v9654_v58  ;;  %v9624_v62 = vld [vmem:[%s17441_s9] sm:$0xff]  ;;  %v8974_v58 = vld [vmem:[%s17440_s8 + $0xfb0] sm:$0xff] }
 0x668   : > { %9531 = vmatprep.subr.mxu1 %v8903_v31  ;;  %11029 = vmatpush3.msra.mxu0 %v9638_v54  ;;  %v8971_v31 = vld [vmem:[%s17440_s8 + $0xf98] sm:$0xff]  ;;  %v8970_v54 = vld [vmem:[%s17440_s8 + $0xf90] sm:$0xff] }
 0x669   : > { %9532 = vmatpush1.msra.mxu1 %v8902_v19  ;;  %11030 = vmatprep.subr.mxu0 %v9653_v44  ;;  %v8967_v19 = vld [vmem:[%s17440_s8 + $0xf78] sm:$0xff]  ;;  %v8966_v44 = vld [vmem:[%s17440_s8 + $0xf70] sm:$0xff] }
 0x66a   : > { %9533 = vmatprep.subr.mxu1 %v8899_v10  ;;  %11031 = vmatpush3.msra.mxu0 %v9637_v2  ;;  %v8963_v10 = vld [vmem:[%s17440_s8 + $0xf58] sm:$0xff]  ;;  %v8962_v2 = vld [vmem:[%s17440_s8 + $0xf50] sm:$0xff] }
 0x66b   : > { %9534 = vmatpush1.msra.mxu1 %v8898_v18  ;;  %11032 = vmatprep.subr.mxu0 %v9652_v15  ;;  %v8959_v18 = vld [vmem:[%s17440_s8 + $0xf38] sm:$0xff]  ;;  %v8958_v15 = vld [vmem:[%s17440_s8 + $0xf30] sm:$0xff] }
 0x66c   : > { %9535 = vmatprep.subr.mxu1 %v8895_v53  ;;  %11033 = vmatpush3.msra.mxu0 %v9636_v29  ;;  %v8955_v53 = vld [vmem:[%s17440_s8 + $0xf18] sm:$0xff]  ;;  %v8954_v29 = vld [vmem:[%s17440_s8 + $0xf10] sm:$0xff] }
 0x66d   : > { %9536 = vmatpush1.msra.mxu1 %v8894_v30  ;;  %11034 = vmatprep.subr.mxu0 %v9651_v0  ;;  %v8951_v30 = vld [vmem:[%s17440_s8 + $0xef8] sm:$0xff]  ;;  %v8950_v0 = vld [vmem:[%s17440_s8 + $0xef0] sm:$0xff] }
 0x66e   : > { %9537 = vmatprep.subr.mxu1 %v8891_v39  ;;  %11035 = vmatpush3.msra.mxu0 %v9635_v28  ;;  %v8947_v39 = vld [vmem:[%s17440_s8 + $0xed8] sm:$0xff]  ;;  %v8946_v28 = vld [vmem:[%s17440_s8 + $0xed0] sm:$0xff] }
 0x66f   : > { %9538 = vmatpush1.msra.mxu1 %v8890_v52  ;;  %11036 = vmatprep.subr.mxu0 %v9650_v16  ;;  %v8943_v52 = vld [vmem:[%s17440_s8 + $0xeb8] sm:$0xff]  ;;  %v8942_v16 = vld [vmem:[%s17440_s8 + $0xeb0] sm:$0xff] }
 0x670   : > { %9539 = vmatprep.subr.mxu1 %v8887_v11  ;;  %11037 = vmatpush3.msra.mxu0 %v9634_v17  ;;  %v8939_v11 = vld [vmem:[%s17440_s8 + $0xe98] sm:$0xff]  ;;  %v8938_v17 = vld [vmem:[%s17440_s8 + $0xe90] sm:$0xff] }
 0x671   : > { %9540 = vmatpush1.msra.mxu1 %v8886_v34  ;;  %11038 = vmatprep.subr.mxu0 %v9649_v13  ;;  %v8935_v34 = vld [vmem:[%s17440_s8 + $0xe78] sm:$0xff]  ;;  %v8934_v13 = vld [vmem:[%s17440_s8 + $0xe70] sm:$0xff] }
 0x672   : > { %9541 = vmatprep.subr.mxu1 %v8883_v41  ;;  %11039 = vmatpush3.msra.mxu0 %v9633_v6  ;;  %v8931_v41 = vld [vmem:[%s17440_s8 + $0xe58] sm:$0xff]  ;;  %v8930_v6 = vld [vmem:[%s17440_s8 + $0xe50] sm:$0xff] }
 0x673   : > { %9542 = vmatpush1.msra.mxu1 %v8882_v49  ;;  %11040 = vmatprep.subr.mxu0 %v9648_v36  ;;  %v8927_v49 = vld [vmem:[%s17440_s8 + $0xe38] sm:$0xff]  ;;  %v8926_v36 = vld [vmem:[%s17440_s8 + $0xe30] sm:$0xff] }
 0x674   : > { %9543 = vmatprep.subr.mxu1 %v8879_v55  ;;  %11041 = vmatpush3.msra.mxu0 %v9632_v21  ;;  %v8923_v55 = vld [vmem:[%s17440_s8 + $0xe18] sm:$0xff]  ;;  %v8922_v21 = vld [vmem:[%s17440_s8 + $0xe10] sm:$0xff] }
 0x675   : > { %9544 = vmatpush1.msra.mxu1 %v8878_v12  ;;  %11042 = vmatprep.subr.mxu0 %v9647_v25  ;;  %v9671_v12 = vld [vmem:[%s17441_s9 + $0x178] sm:$0xff]  ;;  %v9670_v25 = vld [vmem:[%s17441_s9 + $0x170] sm:$0xff] }
 0x676   : > { %9545 = vmatprep.subr.mxu1 %v8875_v45  ;;  %11043 = vmatpush3.msra.mxu0 %v9631_v48  ;;  %v9666_v45 = vld [vmem:[%s17441_s9 + $0x150] sm:$0xff]  ;;  %v9665_v48 = vld [vmem:[%s17441_s9 + $0x148] sm:$0xff] }
 0x677   : > { %9546 = vmatpush1.msra.mxu1 %v8874_v4  ;;  %11044 = vmatprep.subr.mxu0 %v9646_v26  ;;  %v9664_v4 = vld [vmem:[%s17441_s9 + $0x140] sm:$0xff]  ;;  %v9663_v26 = vld [vmem:[%s17441_s9 + $0x138] sm:$0xff] }
 0x678   : > { %9547 = vmatprep.subr.mxu1 %v8871_v57  ;;  %11045 = vmatpush3.msra.mxu0 %v9630_v14  ;;  %v9662_v57 = vld [vmem:[%s17441_s9 + $0x130] sm:$0xff]  ;;  %v9661_v14 = vld [vmem:[%s17441_s9 + $0x128] sm:$0xff] }
 0x679   : > { %9548 = vmatpush1.msra.mxu1 %v8870_v9  ;;  %11046 = vmatprep.subr.mxu0 %v9645_v59  ;;  %v9660_v9 = vld [vmem:[%s17441_s9 + $0x120] sm:$0xff]  ;;  %v9659_v59 = vld [vmem:[%s17441_s9 + $0x118] sm:$0xff] }
 0x67a   : > { %9549 = vmatprep.subr.mxu1 %v8867_v7  ;;  %11047 = vmatpush3.msra.mxu0 %v9629_v20  ;;  %v9658_v7 = vld [vmem:[%s17441_s9 + $0x110] sm:$0xff]  ;;  %v9657_v20 = vld [vmem:[%s17441_s9 + $0x108] sm:$0xff] }
 0x67b   : > { %9550 = vmatpush1.msra.mxu1 %v8866_v33  ;;  %11048 = vmatprep.subr.mxu0 %v9644_v43  ;;  %v9656_v33 = vld [vmem:[%s17441_s9 + $0x100] sm:$0xff]  ;;  %v9050_v43 = vpop.f32.mrf.mxu0 }
 0x67c   : > { %9551 = vmatprep.subr.mxu1 %v8863_v8  ;;  %11049 = vmatpush3.msra.mxu0 %v9628_v51  ;;  %v9679_v8 = vld [vmem:[%s17441_s9 + $0x1b8] sm:$0xff]  ;;  %v9678_v51 = vld [vmem:[%s17441_s9 + $0x1b0] sm:$0xff] }
 0x67d   : > { %9552 = vmatpush1.msra.mxu1 %v8862_v5  ;;  %11050 = vmatprep.subr.mxu0 %v9643_v47  ;;  %v9052_v5 = vpop.f32.mrf.mxu0  ;;  %v9677_v47 = vld [vmem:[%s17441_s9 + $0x1a8] sm:$0xff] }
 0x67e   : > { %9553 = vmatprep.subr.mxu1 %v8859_v61  ;;  %11051 = vmatpush3.msra.mxu0 %v9627_v22  ;;  %v9676_v61 = vld [vmem:[%s17441_s9 + $0x1a0] sm:$0xff] }
 0x67f   : > { %9554 = vmatpush1.msra.mxu1 %v8858_v38  ;;  %11052 = vmatprep.subr.mxu0 %v9642_v42  ;;  %v9056_v22 = vpop.f32.mrf.mxu0  ;;  %v9127_v38 = vpop.f32.mrf.mxu1 }
 0x680   : > { %9555 = vmatprep.subr.mxu1 %v8983_v24  ;;  %11053 = vmatpush3.msra.mxu0 %v9626_v40 }
 0x681   : > { %9556 = vmatpush2.msra.mxu1 %v8982_v32  ;;  %11054 = vmatprep.subr.mxu0 %v9641_v27  ;;  %v9058_v42 = vpop.f32.mrf.mxu0  ;;  %v9129_v24 = vpop.f32.mrf.mxu1  ;;  %v9128_v27 = vadd.f32 %v9127_v38, %v9050_v43  ;;  %v9924_v38 = vld [vmem:[%s17444_s12 + $0x20] sm:$0xff] }
 0x682   : > { %9557 = vmatprep.subr.mxu1 %v8979_v63  ;;  %11055 = vmatpush3.msra.mxu0 %v9625_v46 }
 0x683   : > { %9558 = vmatpush2.msra.mxu1 %v8978_v3  ;;  %11056 = vmatprep.subr.mxu0 %v9640_v50  ;;  %v9133_v32 = vpop.f32.mrf.mxu1  ;;  %v9130_v3 = vadd.f32 %v9129_v24, %v9052_v5  ;;  %v9922_v24 = vld [vmem:[%s17444_s12 + $0x10] sm:$0xff] }
 0x684   : > { %9559 = vmatprep.subr.mxu1 %v8975_v37  ;;  %11057 = vmatpush3.msra.mxu0 %v9624_v62 }
 0x685   : > { %9560 = vmatpush2.msra.mxu1 %v8974_v58  ;;  %11084 = vmatprep.subr.mxu0 %v17512_v35  ;;  %v9135_v46 = vpop.f32.mrf.mxu1 }
 0x686   : > { %9561 = vmatprep.subr.mxu1 %v8971_v31  ;;  %v9134_v31 = vadd.f32 %v9133_v32, %v9056_v22  ;;  %v9925_v22 = vld [vmem:[%s17444_s12 + $0x28] sm:$0xff] }
 0x687   : > { %9562 = vmatpush2.msra.mxu1 %v8970_v54 }
 0x688   : > { %9563 = vmatprep.subr.mxu1 %v8967_v19 }
 0x689   : > { %9564 = vmatpush2.msra.mxu1 %v8966_v44  ;;  %v9136_v44 = vadd.f32 %v9135_v46, %v9058_v42  ;;  %v9923_v42 = vld [vmem:[%s17444_s12 + $0x18] sm:$0xff] }
 0x68a   : > { %9565 = vmatprep.subr.mxu1 %v8963_v10 }
 0x68b   : > { %9566 = vmatpush2.msra.mxu1 %v8962_v2 }
 0x68c   : > { %9567 = vmatprep.subr.mxu1 %v8959_v18  ;;  %v9675_v18 = vld [vmem:[%s17441_s9 + $0x198] sm:$0xff] }
 0x68d   : > { %9568 = vmatpush2.msra.mxu1 %v8958_v15 }
 0x68e   : > { %9569 = vmatprep.subr.mxu1 %v8955_v53 }
 0x68f   : > { %9570 = vmatpush2.msra.mxu1 %v8954_v29  ;;  %v9674_v29 = vld [vmem:[%s17441_s9 + $0x190] sm:$0xff] }
 0x690   : > { %9571 = vmatprep.subr.mxu1 %v8951_v30 }
 0x691   : > { %9572 = vmatpush2.msra.mxu1 %v8950_v0 }
 0x692   : > { %9573 = vmatprep.subr.mxu1 %v8947_v39 }
 0x693   : > { %9574 = vmatpush2.msra.mxu1 %v8946_v28  ;;  %v9673_v28 = vld [vmem:[%s17441_s9 + $0x188] sm:$0xff] }
 0x694   : > { %9575 = vmatprep.subr.mxu1 %v8943_v52 }
 0x695   : > { %9576 = vmatpush2.msra.mxu1 %v8942_v16  ;;  %v9672_v16 = vld [vmem:[%s17441_s9 + $0x180] sm:$0xff] }
 0x696   : > { %9577 = vmatprep.subr.mxu1 %v8939_v11 }
 0x697   : > { %9578 = vmatpush2.msra.mxu1 %v8938_v17 }
 0x698   : > { %9579 = vmatprep.subr.mxu1 %v8935_v34 }
 0x699   : > { %9580 = vmatpush2.msra.mxu1 %v8934_v13 }
 0x69a   : > { %9581 = vmatprep.subr.mxu1 %v8931_v41 }
 0x69b   : > { %9582 = vmatpush2.msra.mxu1 %v8930_v6  ;;  %v9204_v40 = vpop.f32.mrf.mxu0 }
 0x69c   : > { %9583 = vmatprep.subr.mxu1 %v8927_v49  ;;  %v9205_v50 = vadd.f32 %v9204_v40, %v9128_v27  ;;  %v9921_v40 = vld [vmem:[%s17444_s12 + $0x8] sm:$0xff] }
 0x69d   : > { %9584 = vmatpush2.msra.mxu1 %v8926_v36  ;;  %v9206_v63 = vpop.f32.mrf.mxu0 }
 0x69e   : > { %9585 = vmatprep.subr.mxu1 %v8923_v55  ;;  %v9207_v58 = vadd.f32 %v9206_v63, %v9130_v3 }
 0x69f   : > { %9586 = vmatpush2.msra.mxu1 %v8922_v21  ;;  %v9210_v37 = vpop.f32.mrf.mxu0 }
 0x6a0   : > { %9588 = vmatmul.mubr.f32.vlgmr.msra.gmra.mxu1 %v16554_v1  ;;  %9762 = vmatprep.subr.mxu1 %v17512_v35  ;;  %v9669_v1 = vld [vmem:[%s17441_s9 + $0x168] sm:$0xff]  ;;  %v9211_v15 = vadd.f32 %v9210_v37, %v9134_v31 }
 0x6a1   : > { %9593 = vmatprep.mubr.f32.mxu1 %v16585_v56  ;;  %9763 = vmatpush1.msra.mxu1 %v9671_v12  ;;  %v9667_v56 = vld [vmem:[%s17441_s9 + $0x158] sm:$0xff]  ;;  %v9212_v2 = vpop.f32.mrf.mxu0  ;;  %v9838_v31 = vld [vmem:[%s17442_s10 + $0x8] sm:$0x3f] }
 0x6a2   : > { %9764 = vmatprep.subr.mxu1 %v17512_v35  ;;  %v9213_v30 = vadd.f32 %v9212_v2, %v9136_v44  ;;  %v9837_v44 = vld [vmem:[%s17442_s10] sm:$0xff] }
 0x6a3   : > { %9765 = vmatpush1.msra.mxu1 %v9670_v25 }
 0x6a4   : > { %9594 = vmatmul.mubr.f32.gmra.mxu1 %v16572_v23  ;;  %9766 = vmatprep.subr.mxu1 %v17512_v35  ;;  %v9668_v23 = vld [vmem:[%s17441_s9 + $0x160] sm:$0xff] }
 0x6a5   : > { %9767 = vmatpush1.msra.mxu1 %v9669_v1 }
 0x6a6   : > { %9768 = vmatprep.subr.mxu1 %v17512_v35 }
 0x6a7   : > { %9769 = vmatpush1.msra.mxu1 %v9668_v23 }
 0x6a8   : > { %9770 = vmatprep.subr.mxu1 %v17512_v35 }
 0x6a9   : > { %9771 = vmatpush1.msra.mxu1 %v9667_v56 }
 0x6aa   : > { %9772 = vmatprep.subr.mxu1 %v17512_v35 }
 0x6ab   : > { %9773 = vmatpush1.msra.mxu1 %v9666_v45 }
 0x6ac   : > { %9774 = vmatprep.subr.mxu1 %v17512_v35 }
 0x6ad   : > { %9775 = vmatpush1.msra.mxu1 %v9665_v48 }
 0x6ae   : > { %9776 = vmatprep.subr.mxu1 %v17512_v35 }
 0x6af   : > { %9777 = vmatpush1.msra.mxu1 %v9664_v4 }
 0x6b0   : > { %9778 = vmatprep.subr.mxu1 %v17512_v35 }
 0x6b1   : > { %9779 = vmatpush1.msra.mxu1 %v9663_v26 }
 0x6b2   : > { %9780 = vmatprep.subr.mxu1 %v17512_v35 }
 0x6b3   : > { %9781 = vmatpush1.msra.mxu1 %v9662_v57 }
 0x6b4   : > { %9782 = vmatprep.subr.mxu1 %v17512_v35 }
 0x6b5   : > { %9783 = vmatpush1.msra.mxu1 %v9661_v14 }
 0x6b6   : > { %9784 = vmatprep.subr.mxu1 %v17512_v35 }
 0x6b7   : > { %9785 = vmatpush1.msra.mxu1 %v9660_v9 }
 0x6b8   : > { %9786 = vmatprep.subr.mxu1 %v17512_v35 }
 0x6b9   : > { %9787 = vmatpush1.msra.mxu1 %v9659_v59 }
 0x6ba   : > { %9788 = vmatprep.subr.mxu1 %v17512_v35 }
 0x6bb   : > { %9789 = vmatpush1.msra.mxu1 %v9658_v7 }
 0x6bc   : > { %9790 = vmatprep.subr.mxu1 %v17512_v35 }
 0x6bd   : > { %9791 = vmatpush1.msra.mxu1 %v9657_v20 }
 0x6be   : > { %9792 = vmatprep.subr.mxu1 %v17512_v35 }
 0x6bf   : > { %9793 = vmatpush1.msra.mxu1 %v9656_v33 }
 0x6c0   : > { %9810 = vmatprep.subr.mxu1 %v17512_v35 }
 0x6c1   : > { %9811 = vmatpush2.msra.mxu1 %v9679_v8 }
 0x6c2   : > { %9812 = vmatprep.subr.mxu1 %v17512_v35 }
 0x6c3   : > { %9813 = vmatpush2.msra.mxu1 %v9678_v51 }
 0x6c4   : > { %9814 = vmatprep.subr.mxu1 %v17512_v35 }
 0x6c5   : > { %9815 = vmatpush2.msra.mxu1 %v9677_v47  ;;  %v9928_v47 = vld [vmem:[%s17444_s12 + $0x40] sm:$0x3f] }
 0x6c6   : > { %9816 = vmatprep.subr.mxu1 %v17512_v35 }
 0x6c7   : > { %9817 = vmatpush2.msra.mxu1 %v9676_v61  ;;  %v9927_v61 = vld [vmem:[%s17444_s12 + $0x38] sm:$0xff] }
 0x6c8   : > { %9818 = vmatprep.subr.mxu1 %v17512_v35 }
 0x6c9   : > { %9819 = vmatpush2.msra.mxu1 %v9675_v18 }
 0x6ca   : > { %9820 = vmatprep.subr.mxu1 %v17512_v35 }
 0x6cb   : > { %9821 = vmatpush2.msra.mxu1 %v9674_v29 }
 0x6cc   : > { %9822 = vmatprep.subr.mxu1 %v17512_v35 }
 0x6cd   : > { %9823 = vmatpush2.msra.mxu1 %v9673_v28  ;;  %v10013_v28 = vld [vmem:[#allocation4] sm:$0x3] }
 0x6ce   : > { %9824 = vmatprep.subr.mxu1 %v17512_v35 }
 0x6cf   : > { %9825 = vmatpush2.msra.mxu1 %v9672_v16 }
 0x6d0   : > { %11077 = vmatprep.subr.mxu1 %v17512_v35 }
 0x6db   : > { %v9358_v11 = vpop.f32.mrf.mxu0 }
 0x6dc   : > { %v9281_v62 = vpop.f32.mrf.mxu1 }
 0x6dd   : > { %v9282_v54 = vadd.f32 %v9281_v62, %v9205_v50  ;;  %v9360_v17 = vpop.f32.mrf.mxu0 }
 0x6de   : > { %v9283_v19 = vpop.f32.mrf.mxu1 }
 0x6df   : > { %v9284_v10 = vadd.f32 %v9283_v19, %v9207_v58  ;;  %vm9600_vm4 = vcmp.ge.f32.partialorder %v9282_v54, 0.5 }
 0x6e1   : > { %vm9601_vm1 = vcmp.ge.f32.partialorder %v9284_v10, 0.5  ;;  %v9364_v34 = vpop.f32.mrf.mxu0 }
 0x6e2   : > { %v9287_v53 = vpop.f32.mrf.mxu1  ;;  %11008 = vmatprep.mubr.msk.f32.mxu0 %vm9601_vm1, %v11162_v60 }
 0x6e3   : > { %11009 = vmatmul.mubr.msk.f32.vlgmr.msra.gmra.mxu0 %vm9600_vm4, %v11162_v60  ;;  %v9288_v0 = vadd.f32 %v9287_v53, %v9211_v15  ;;  %v9366_v41 = vpop.f32.mrf.mxu0  ;;  %v9841_v15 = vld [vmem:[%s17443_s11] sm:$0x3] }
 0x6e4   : > { %v9289_v39 = vpop.f32.mrf.mxu1  ;;  %11085 = vmatpush3.msk.msra.mxu0 %vm9846_vm13, %v9928_v47  ;;  %v9920_v53 = vld [vmem:[%s17444_s12] sm:$0xff] }
 0x6e5   : > { %v9290_v52 = vadd.f32 %v9289_v39, %v9213_v30  ;;  %vm9604_vm6 = vcmp.ge.f32.partialorder %v9288_v0, 0.5  ;;  %11086 = vmatprep.subr.mxu0 %v17512_v35  ;;  %v11018_v0 = vld [vmem:[%s17445_s13] ss:$0 sm:$0xff] }
 0x6e6   : > { %11087 = vmatpush3.msra.mxu0 %v9927_v61 }
 0x6e7   : > { %vm9605_vm5 = vcmp.ge.f32.partialorder %v9290_v52, 0.5  ;;  %11088 = vmatprep.subr.mxu0 %v17512_v35 }
 0x6e8   : > { %11010 = vmatprep.mubr.msk.f32.mxu0 %vm9605_vm5, %v11162_v60 }
 0x6e9   : > { %11011 = vmatmul.mubr.msk.f32.gmra.mxu0 %vm9604_vm6, %v11162_v60 }
 0x6ea   : > { %11102 = vmatprep.mubr.msk.f32.mxu0 %vm11163_vm12, %v17512_v35 }
 0x71f   : > { %v9435_v13 = vpop.f32.mrf.mxu1  ;;  %v9512_v49 = vpop.f32.mrf.mxu0 }
 0x720   : > { %v9436_v21 = vadd.f32 %v9435_v13, %v9358_v11 }
 0x721   : > { %v9437_v6 = vpop.f32.mrf.mxu1  ;;  %v9514_v55 = vpop.f32.mrf.mxu0 }
 0x722   : > { %v9438_v12 = vadd.f32 %v9437_v6, %v9360_v17  ;;  %v9513_v56 = vadd.f32 %v9512_v49, %v9436_v21  ;;  %v10022_v17 = vld [vmem:[#allocation5] sm:$0x3] }
 0x723   : > { %v9518_v1 = vpop.f32.mrf.mxu0 }
 0x724   : > { %v9441_v36 = vpop.f32.mrf.mxu1  ;;  %v9515_v45 = vadd.f32 %v9514_v55, %v9438_v12 }
 0x725   : > { %v9442_v48 = vadd.f32 %v9441_v36, %v9364_v34  ;;  %v9520_v9 = vpop.f32.mrf.mxu0 }
 0x726   : > { %v9443_v25 = vpop.f32.mrf.mxu1 }
 0x727   : > { %v9444_v4 = vadd.f32 %v9443_v25, %v9366_v41  ;;  %v9519_v7 = vadd.f32 %v9518_v1, %v9442_v48 }
 0x729   : > { %v9521_v20 = vadd.f32 %v9520_v9, %v9444_v4 }
 0x760   : > { %v9589_v23 = vpop.f32.mrf.mxu1 }
 0x761   : > { %v9590_v57 = vadd.f32 %v9589_v23, %v9513_v56 }
 0x762   : > { %v9591_v26 = vpop.f32.mrf.mxu1 }
 0x763   : > { %v9592_v14 = vadd.f32 %v9591_v26, %v9515_v45  ;;  %vm9602_vm9 = vcmp.ge.f32.partialorder %v9590_v57, 0.5 }
 0x764   : > { %v9595_v59 = vpop.f32.mrf.mxu1 }
 0x765   : > { %vm9603_vm8 = vcmp.ge.f32.partialorder %v9592_v14, 0.5  ;;  %v9596_v8 = vadd.f32 %v9595_v59, %v9519_v7 }
 0x766   : > { %v11003_v33 = vsel %vm9603_vm8, 1.0, %v17512_v35  ;;  %v9597_v43 = vpop.f32.mrf.mxu1 }
 0x767   : > { %v9598_v51 = vadd.f32 %v9597_v43, %v9521_v20  ;;  %11012 = vmatprep.mubr.msk.f32.mxu1 %vm9680_vm7, %v11003_v33  ;;  %vm9606_vm11 = vcmp.ge.f32.partialorder %v9596_v8, 0.5 }
 0x768   : > { %11013 = vmatmul.mubr.msk.f32.vlgmr.msra.gmra.mxu1 %vm9602_vm9, %v11162_v60 }
 0x769   : > { %vm9607_vm10 = vcmp.ge.f32.partialorder %v9598_v51, 0.5 }
 0x76a   : > { %v11007_v5 = vsel %vm9607_vm10, 1.0, %v17512_v35 }
 0x76b   : > { %11014 = vmatprep.mubr.msk.f32.mxu1 %vm9680_vm7, %v11007_v5 }
 0x76c   : > { %11015 = vmatmul.mubr.msk.f32.gmra.mxu1 %vm9606_vm11, %v11162_v60  ;;  %v9926_v60 = vld [vmem:[%s17444_s12 + $0x30] sm:$0xff] }
 0x76d   : > { %11081 = vmatprep.mubr.msk.f32.mxu1 %vm11163_vm12, %v17512_v35  ;;  %11089 = vmatpush3.msra.mxu0 %v9926_v60 }
 0x76e   : > { %11090 = vmatprep.subr.mxu0 %v17512_v35 }
 0x76f   : > { %11091 = vmatpush3.msra.mxu0 %v9925_v22 }
 0x770   : > { %11092 = vmatprep.subr.mxu0 %v17512_v35 }
 0x771   : > { %11093 = vmatpush3.msra.mxu0 %v9924_v38 }
 0x772   : > { %11094 = vmatprep.subr.mxu0 %v17512_v35 }
 0x773   : > { %11095 = vmatpush3.msra.mxu0 %v9923_v42 }
 0x774   : > { %11096 = vmatprep.subr.mxu0 %v17512_v35 }
 0x775   : > { %11097 = vmatpush3.msra.mxu0 %v9922_v24 }
 0x776   : > { %11098 = vmatprep.subr.mxu0 %v17512_v35 }
 0x777   : > { %11099 = vmatpush3.msra.mxu0 %v9921_v40 }
 0x778   : > { %11100 = vmatprep.subr.mxu0 %v17512_v35 }
 0x779   : > { %11101 = vmatpush3.msra.mxu0 %v9920_v53 }
 0x7a3   : > { %v11058_v32 = vpop.f32.mrf.mxu0 }
 0x7a5   : > { %v11059_v27 = vpop.f32.mrf.mxu0 }
 0x7a6   : > { %v11060_v37 = vadd.f32 %v11059_v27, %v11058_v32 }
 0x7a9   : > { %v11061_v63 = vpop.f32.mrf.mxu0 }
 0x7ab   : > { %v11062_v46 = vpop.f32.mrf.mxu0 }
 0x7ac   : > { %v11063_v62 = vadd.f32 %v11062_v46, %v11061_v63 }
 0x828   : > { %v9828_v3 = vpop.f32.mrf.mxu1 }
 0x829   : > { %v9829_v54 = vadd.f32 %v11060_v37, %v9828_v3 }
 0x82a   : > { %v9830_v50 = vpop.f32.mrf.mxu1 }
 0x82b   : > { %v9839_v18 = vmul.f32 %v9837_v44, %v9829_v54 }
 0x82c   : > { %v9833_v58 = vpop.f32.mrf.mxu1 }
 0x82d   : > { %v9834_v19 = vadd.f32 %v11063_v62, %v9833_v58 }
 0x82e   : > { %v9835_v10 = vpop.f32.mrf.mxu1 }
 0x82f   : > { %v9840_v2 = vmul.f32 %v9838_v31, %v9834_v19 }
 0x831   : > { %11078 = vmatpush3.msk.msra.mxu1 %vm9846_vm13, %v9840_v2 }
 0x832   : > { %11079 = vmatprep.subr.mxu1 %v17512_v35 }
 0x833   : > { %11080 = vmatpush3.msra.mxu1 %v9839_v18 }
 0x834   : > { %11082 = vmatmul.mubr.msk.f32.vlgmr.msra.gmra.mxu1 %vm9842_vm14, %v9841_v15 }
 0x8f4   : > { %v9916_v29 = vpop.f32.mrf.mxu1 }
 0x8f5   : > { %11103 = vmatmul.mubr.msk.f32.vlgmr.msra.gmra.mxu0 %vm9936_vm15, %v9916_v29 }
 0x8f6   : > { %v11083_v30 = vpop.f32.mrf.mxu1 }
 0x9b5   : > { %v10009_v39 = vpop.f32.mrf.mxu0 }
 0x9b6   : > { %v10010_v52 = vadd.f32 %v11018_v0, %v10009_v39 }
 0x9b7   : > { %v11104_v16 = vpop.f32.mrf.mxu0 }
 0x9b8   : > { %v10014_v11 = vadd.f32 %v10013_v28, %v10010_v52 }
 0x9ba   : > { %vm10015_vm0 = vcmp.ge.f32.partialorder %v10014_v11, 1.0 }
 0x9bb   : > { %v11021_v34 = vsel %vm10015_vm0, 1.0, %v17512_v35 }
 0x9bc   : > { %v10018_v13 = vsub.f32 1.0, %v11021_v34  ;;  %v10023_v41 = vadd.f32 %v11021_v34, %v10022_v17 }
 0x9be   : > { %v10019_v6 = vmul.f32 %v10018_v13, %v10014_v11  ;;  %10024 = vst.msk [vmem:[#allocation5] sm:$0x3] %vm10020_vm2, %v10023_v41  ;;  %10025 = vst.msk [vmem:[#allocation6] sm:$0x3] %vm10020_vm2, %v10023_v41 }
 0x9bf   : > { %11137 = shalt.err (!%p11134_p11)
}
 0x9c0   : > { %11106 = dma.vmem_to_hbm [thread:$0]  (%p17411_p4), %s10034_s22, 32, %s17446_s14, [#allocation7]   ;;  %10021 = vst.msk [vmem:[#allocation4] sm:$0x3] %vm10020_vm2, %v10019_v6 }
 0x9c1   : > { %11153 = dma.done.wait (%p17411_p4), [#allocation7], 32  }
 0x9c2   : > { %11155 = vsyncadd (%p17411_p4), [#allocation7], 4294967264 }
 0x9c3 PF: > { %s25_s29 = sadd.s32 1, %s11158_s29  }
 0x9c4   : > { %p22_p12 = scmp.ge.s32.totalorder %s25_s29, 6  }
 0x9c6   :  { %24 = sbr.rel (!%p22_p12) target bundleno = 1 (0x1), region = 104 }
 0x9cb   :  { %10046 = vsyncpa [#allocation7], 1 }
 0x9cc   :  { %10048 = vsyncpa [#allocation7 + $0x1], 1 }

</bundles_post_ra>
